<compile_context>
chip_gen: v7x
topology: tpu7x:2x2x1
jax: 0.10.0
libtpu: 0.0.40
codegen_flags: <defaults>
</compile_context>

<pallas_src>
import jax
import jax.numpy as jnp
from jax.experimental import pallas as pl
from jax.experimental.pallas import tpu as pltpu

EPS = 1e-5  # nn.BatchNorm2d default eps


def _conv3x3_bn_relu(xp_ref, w_ref, b, g, be):
    """One Conv2d(3x3, pad=1) -> BatchNorm2d(training stats) -> ReLU stage.

    xp_ref : (N, H+2, W+2, Cin) zero-padded input (VMEM scratch ref)
    w_ref  : (3, 3, Cin, Cout)  HWIO conv weight ref
    b,g,be : (1, Cout)          conv bias / BN gamma / BN beta (values)
    returns: (N*H*W, Cout) f32
    """
    n, hp, wp, cin = xp_ref.shape
    h, w = hp - 2, wp - 2
    cout = w_ref.shape[-1]
    p = n * h * w

    # 3x3 conv: 9 statically-unrolled taps, each a (P, Cin) x (Cin, Cout) matmul on
    # the MXU (contraction over cin).  At real UNet channel counts (64-256) each tap
    # dot has a large K and the stage is MXU-bound rather than VALU/XLU-bound.
    acc = jnp.zeros((p, cout), jnp.float32)
    for ky in range(3):
        for kx in range(3):
            patch = xp_ref[:, ky:ky + h, kx:kx + w, :].reshape(p, cin)
            acc = acc + jnp.dot(patch, w_ref[ky, kx],
                                preferred_element_type=jnp.float32)
    acc = acc + b

    # BatchNorm2d (training mode): biased batch statistics over (N, H, W), folded
    # into one per-channel affine computed from a single pass (sum and sum-of-sq).
    inv_cnt = 1.0 / float(p)
    mean = jnp.sum(acc, axis=0, keepdims=True) * inv_cnt           # (1, Cout)
    ex2 = jnp.sum(acc * acc, axis=0, keepdims=True) * inv_cnt      # (1, Cout)
    var = jnp.maximum(ex2 - mean * mean, 0.0)                      # biased variance
    scale = g * jax.lax.rsqrt(var + EPS)                           # EUP rsqrt
    shift = be - mean * scale
    return jnp.maximum(acc * scale + shift, 0.0)                   # ReLU


def double_conv_kernel(x_ref, w1_ref, b1_ref, g1_ref, be1_ref,
                       w2_ref, b2_ref, g2_ref, be2_ref,
                       out_ref, xp1_ref, xp2_ref):
    n, h, w, _ = x_ref.shape
    cout = out_ref.shape[-1]

    # Stage 1: zero-pad the 1-pixel halo in VMEM (no HBM-side jnp.pad).
    xp1_ref[...] = jnp.zeros_like(xp1_ref)
    xp1_ref[:, 1:h + 1, 1:w + 1, :] = x_ref[...]
    y1 = _conv3x3_bn_relu(xp1_ref, w1_ref, b1_ref[...], g1_ref[...], be1_ref[...])

    # Stage 2: the intermediate activation never leaves VMEM.
    xp2_ref[...] = jnp.zeros_like(xp2_ref)
    xp2_ref[:, 1:h + 1, 1:w + 1, :] = y1.reshape(n, h, w, cout)
    y2 = _conv3x3_bn_relu(xp2_ref, w2_ref, b2_ref[...], g2_ref[...], be2_ref[...])

    out_ref[...] = y2.reshape(n, h, w, cout).astype(out_ref.dtype)


def double_conv(x_nchw, params):
    """DoubleConv.forward; x is NCHW exactly like the PyTorch module."""
    (w1, b1, g1, be1, w2, b2, g2, be2) = params
    n, cin, h, w = x_nchw.shape
    cout = w1.shape[-1]

    x = jnp.transpose(x_nchw, (0, 2, 3, 1))                        # NCHW -> NHWC

    # TODO(synk): at production UNet sizes this needs an H-row halo-tiled grid sized
    # per-generation VMEM (v7x: 64 MiB, parallel axis for the 2 TCs) plus a two-pass
    # accumulate-then-finalize BatchNorm, since batch stats are global over (N,H,W).
    y = pl.pallas_call(
        double_conv_kernel,
        out_shape=jax.ShapeDtypeStruct((n, h, w, cout), jnp.float32),
        in_specs=[pl.BlockSpec(memory_space=pltpu.MemorySpace.VMEM)] * 9,
        out_specs=pl.BlockSpec(memory_space=pltpu.MemorySpace.VMEM),
        scratch_shapes=[
            pltpu.VMEM((n, h + 2, w + 2, cin), jnp.float32),   # padded stage-1 input
            pltpu.VMEM((n, h + 2, w + 2, cout), jnp.float32),  # padded stage-2 input
        ],
        compiler_params=pltpu.CompilerParams(vmem_limit_bytes=32 * 1024 * 1024),
    )(x, w1, b1.reshape(1, cout), g1.reshape(1, cout), be1.reshape(1, cout),
      w2, b2.reshape(1, cout), g2.reshape(1, cout), be2.reshape(1, cout))

    return jnp.transpose(y, (0, 3, 1, 2))                          # NHWC -> NCHW


# ----------------------- pure-JAX reference (for checking) -----------------------
def _ref_block(x, w, b, g, be):
    y = jax.lax.conv_general_dilated(
        x, w, window_strides=(1, 1), padding="SAME",
        dimension_numbers=("NHWC", "HWIO", "NHWC"),
        precision=jax.lax.Precision.HIGHEST) + b.reshape(1, 1, 1, -1)
    mu = jnp.mean(y, axis=(0, 1, 2), keepdims=True)
    var = jnp.mean((y - mu) ** 2, axis=(0, 1, 2), keepdims=True)
    y = (y - mu) * jax.lax.rsqrt(var + EPS) * g.reshape(1, 1, 1, -1) \
        + be.reshape(1, 1, 1, -1)
    return jnp.maximum(y, 0.0)


def double_conv_reference(x_nchw, params):
    (w1, b1, g1, be1, w2, b2, g2, be2) = params
    x = jnp.transpose(x_nchw, (0, 2, 3, 1))
    y = _ref_block(x, w1, b1, g1, be1)
    y = _ref_block(y, w2, b2, g2, be2)
    return jnp.transpose(y, (0, 3, 1, 2))


if __name__ == "__main__":
    N, CIN, COUT, H, W = 2, 4, 8, 16, 16
    key = jax.random.PRNGKey(0)
    ks = jax.random.split(key, 9)

    x = jax.random.normal(ks[0], (N, CIN, H, W), jnp.float32)            # NCHW input
    params = (
        0.1 * jax.random.normal(ks[1], (3, 3, CIN, COUT), jnp.float32),  # conv1 w (HWIO)
        0.1 * jax.random.normal(ks[2], (COUT,), jnp.float32),            # conv1 b
        1.0 + 0.1 * jax.random.normal(ks[3], (COUT,), jnp.float32),      # bn1 gamma
        0.1 * jax.random.normal(ks[4], (COUT,), jnp.float32),            # bn1 beta
        0.1 * jax.random.normal(ks[5], (3, 3, COUT, COUT), jnp.float32), # conv2 w (HWIO)
        0.1 * jax.random.normal(ks[6], (COUT,), jnp.float32),            # conv2 b
        1.0 + 0.1 * jax.random.normal(ks[7], (COUT,), jnp.float32),      # bn2 gamma
        0.1 * jax.random.normal(ks[8], (COUT,), jnp.float32),            # bn2 beta
    )

    out = jax.jit(double_conv)(x, params)
    out = jax.block_until_ready(out)
    assert out.shape == (N, COUT, H, W), out.shape

    # Tolerance: the in-kernel conv now runs on the MXU at Mosaic's default f32
    # precision (bf16 passes), while the reference conv uses Precision.HIGHEST.
    ref = double_conv_reference(x, params)
    if not bool(jnp.allclose(out, ref, rtol=2e-2, atol=2e-2)):
        raise AssertionError("Pallas DoubleConv deviates from JAX reference")

    print("KERNEL_OK")
</pallas_src>

<mosaic_0001>
module attributes {stable_mosaic.version = 11 : i64} {
  func.func @double_conv_kernel(%arg0: memref<2x16x16x4xf32, #tpu.memory_space<vmem>>, %arg1: memref<3x3x4x8xf32, #tpu.memory_space<vmem>>, %arg2: memref<1x8xf32, #tpu.memory_space<vmem>>, %arg3: memref<1x8xf32, #tpu.memory_space<vmem>>, %arg4: memref<1x8xf32, #tpu.memory_space<vmem>>, %arg5: memref<3x3x8x8xf32, #tpu.memory_space<vmem>>, %arg6: memref<1x8xf32, #tpu.memory_space<vmem>>, %arg7: memref<1x8xf32, #tpu.memory_space<vmem>>, %arg8: memref<1x8xf32, #tpu.memory_space<vmem>>, %arg9: memref<2x16x16x8xf32, #tpu.memory_space<vmem>>, %arg10: memref<2x18x18x4xf32, #tpu.memory_space<vmem>>, %arg11: memref<2x18x18x8xf32, #tpu.memory_space<vmem>>) attributes {dimension_semantics = [], scalar_prefetch = 0 : i64, scratch_operands = 2 : i64, tpu.core_type = #tpu.core_type<tc>} {
    %cst = arith.constant 0.000000e+00 : f32
    %0 = vector.broadcast %cst : f32 to vector<2x18x18x4xf32>
    %c0 = arith.constant 0 : index
    %c0_0 = arith.constant 0 : index
    %c0_1 = arith.constant 0 : index
    %c0_2 = arith.constant 0 : index
    %1 = vector.load %arg10[%c0, %c0_0, %c0_1, %c0_2] : memref<2x18x18x4xf32, #tpu.memory_space<vmem>>, vector<2x18x18x4xf32>
    tpu.vector_store %arg10[%c0, %c0_0, %c0_1, %c0_2], %0 {strides = array<i32>} : memref<2x18x18x4xf32, #tpu.memory_space<vmem>>, vector<2x18x18x4xf32>,
    %c0_3 = arith.constant 0 : index
    %c0_4 = arith.constant 0 : index
    %c0_5 = arith.constant 0 : index
    %c0_6 = arith.constant 0 : index
    %2 = vector.load %arg0[%c0_3, %c0_4, %c0_5, %c0_6] : memref<2x16x16x4xf32, #tpu.memory_space<vmem>>, vector<2x16x16x4xf32>
    %c0_7 = arith.constant 0 : index
    %c1 = arith.constant 1 : index
    %c1_8 = arith.constant 1 : index
    %c0_9 = arith.constant 0 : index
    %3 = vector.load %arg10[%c0_7, %c1, %c1_8, %c0_9] : memref<2x18x18x4xf32, #tpu.memory_space<vmem>>, vector<2x16x16x4xf32>
    tpu.vector_store %arg10[%c0_7, %c1, %c1_8, %c0_9], %2 {strides = array<i32>} : memref<2x18x18x4xf32, #tpu.memory_space<vmem>>, vector<2x16x16x4xf32>,
    %c0_10 = arith.constant 0 : index
    %c0_11 = arith.constant 0 : index
    %4 = vector.load %arg2[%c0_10, %c0_11] : memref<1x8xf32, #tpu.memory_space<vmem>>, vector<1x8xf32>
    %c0_12 = arith.constant 0 : index
    %c0_13 = arith.constant 0 : index
    %5 = vector.load %arg3[%c0_12, %c0_13] : memref<1x8xf32, #tpu.memory_space<vmem>>, vector<1x8xf32>
    %c0_14 = arith.constant 0 : index
    %c0_15 = arith.constant 0 : index
    %6 = vector.load %arg4[%c0_14, %c0_15] : memref<1x8xf32, #tpu.memory_space<vmem>>, vector<1x8xf32>
    %cst_16 = arith.constant 0.000000e+00 : f32
    %7 = vector.broadcast %cst_16 : f32 to vector<512x8xf32>
    %c0_17 = arith.constant 0 : index
    %c0_18 = arith.constant 0 : index
    %c0_19 = arith.constant 0 : index
    %c0_20 = arith.constant 0 : index
    %8 = vector.load %arg10[%c0_17, %c0_18, %c0_19, %c0_20] : memref<2x18x18x4xf32, #tpu.memory_space<vmem>>, vector<2x16x16x4xf32>
    %9 = vector.shape_cast %8 : vector<2x16x16x4xf32> to vector<512x4xf32>
    %c0_21 = arith.constant 0 : index
    %c0_22 = arith.constant 0 : index
    %c0_23 = arith.constant 0 : index
    %c0_24 = arith.constant 0 : index
    %10 = vector.load %arg1[%c0_21, %c0_22, %c0_23, %c0_24] : memref<3x3x4x8xf32, #tpu.memory_space<vmem>>, vector<1x1x4x8xf32>
    %11 = vector.shape_cast %10 : vector<1x1x4x8xf32> to vector<4x8xf32>
    %cst_25 = arith.constant dense<0.000000e+00> : vector<512x8xf32>
    %12 = tpu.matmul %9, %11, %cst_25 {dimension_numbers = #tpu.dot_dimension_numbers<[1], [0], [0], [1], [0, 0, 1, 1], [], []>} : vector<512x4xf32>, vector<4x8xf32>, vector<512x8xf32> -> vector<512x8xf32>
    %13 = arith.addf %7, %12 : vector<512x8xf32>
    %c0_26 = arith.constant 0 : index
    %c0_27 = arith.constant 0 : index
    %c1_28 = arith.constant 1 : index
    %c0_29 = arith.constant 0 : index
    %14 = vector.load %arg10[%c0_26, %c0_27, %c1_28, %c0_29] : memref<2x18x18x4xf32, #tpu.memory_space<vmem>>, vector<2x16x16x4xf32>
    %15 = vector.shape_cast %14 : vector<2x16x16x4xf32> to vector<512x4xf32>
    %c0_30 = arith.constant 0 : index
    %c1_31 = arith.constant 1 : index
    %c0_32 = arith.constant 0 : index
    %c0_33 = arith.constant 0 : index
    %16 = vector.load %arg1[%c0_30, %c1_31, %c0_32, %c0_33] : memref<3x3x4x8xf32, #tpu.memory_space<vmem>>, vector<1x1x4x8xf32>
    %17 = vector.shape_cast %16 : vector<1x1x4x8xf32> to vector<4x8xf32>
    %cst_34 = arith.constant dense<0.000000e+00> : vector<512x8xf32>
    %18 = tpu.matmul %15, %17, %cst_34 {dimension_numbers = #tpu.dot_dimension_numbers<[1], [0], [0], [1], [0, 0, 1, 1], [], []>} : vector<512x4xf32>, vector<4x8xf32>, vector<512x8xf32> -> vector<512x8xf32>
    %19 = arith.addf %13, %18 : vector<512x8xf32>
    %c0_35 = arith.constant 0 : index
    %c0_36 = arith.constant 0 : index
    %c2 = arith.constant 2 : index
    %c0_37 = arith.constant 0 : index
    %20 = vector.load %arg10[%c0_35, %c0_36, %c2, %c0_37] : memref<2x18x18x4xf32, #tpu.memory_space<vmem>>, vector<2x16x16x4xf32>
    %21 = vector.shape_cast %20 : vector<2x16x16x4xf32> to vector<512x4xf32>
    %c0_38 = arith.constant 0 : index
    %c2_39 = arith.constant 2 : index
    %c0_40 = arith.constant 0 : index
    %c0_41 = arith.constant 0 : index
    %22 = vector.load %arg1[%c0_38, %c2_39, %c0_40, %c0_41] : memref<3x3x4x8xf32, #tpu.memory_space<vmem>>, vector<1x1x4x8xf32>
    %23 = vector.shape_cast %22 : vector<1x1x4x8xf32> to vector<4x8xf32>
    %cst_42 = arith.constant dense<0.000000e+00> : vector<512x8xf32>
    %24 = tpu.matmul %21, %23, %cst_42 {dimension_numbers = #tpu.dot_dimension_numbers<[1], [0], [0], [1], [0, 0, 1, 1], [], []>} : vector<512x4xf32>, vector<4x8xf32>, vector<512x8xf32> -> vector<512x8xf32>
    %25 = arith.addf %19, %24 : vector<512x8xf32>
    %c0_43 = arith.constant 0 : index
    %c1_44 = arith.constant 1 : index
    %c0_45 = arith.constant 0 : index
    %c0_46 = arith.constant 0 : index
    %26 = vector.load %arg10[%c0_43, %c1_44, %c0_45, %c0_46] : memref<2x18x18x4xf32, #tpu.memory_space<vmem>>, vector<2x16x16x4xf32>
    %27 = vector.shape_cast %26 : vector<2x16x16x4xf32> to vector<512x4xf32>
    %c1_47 = arith.constant 1 : index
    %c0_48 = arith.constant 0 : index
    %c0_49 = arith.constant 0 : index
    %c0_50 = arith.constant 0 : index
    %28 = vector.load %arg1[%c1_47, %c0_48, %c0_49, %c0_50] : memref<3x3x4x8xf32, #tpu.memory_space<vmem>>, vector<1x1x4x8xf32>
    %29 = vector.shape_cast %28 : vector<1x1x4x8xf32> to vector<4x8xf32>
    %cst_51 = arith.constant dense<0.000000e+00> : vector<512x8xf32>
    %30 = tpu.matmul %27, %29, %cst_51 {dimension_numbers = #tpu.dot_dimension_numbers<[1], [0], [0], [1], [0, 0, 1, 1], [], []>} : vector<512x4xf32>, vector<4x8xf32>, vector<512x8xf32> -> vector<512x8xf32>
    %31 = arith.addf %25, %30 : vector<512x8xf32>
    %c0_52 = arith.constant 0 : index
    %c1_53 = arith.constant 1 : index
    %c1_54 = arith.constant 1 : index
    %c0_55 = arith.constant 0 : index
    %32 = vector.load %arg10[%c0_52, %c1_53, %c1_54, %c0_55] : memref<2x18x18x4xf32, #tpu.memory_space<vmem>>, vector<2x16x16x4xf32>
    %33 = vector.shape_cast %32 : vector<2x16x16x4xf32> to vector<512x4xf32>
    %c1_56 = arith.constant 1 : index
    %c1_57 = arith.constant 1 : index
    %c0_58 = arith.constant 0 : index
    %c0_59 = arith.constant 0 : index
    %34 = vector.load %arg1[%c1_56, %c1_57, %c0_58, %c0_59] : memref<3x3x4x8xf32, #tpu.memory_space<vmem>>, vector<1x1x4x8xf32>
    %35 = vector.shape_cast %34 : vector<1x1x4x8xf32> to vector<4x8xf32>
    %cst_60 = arith.constant dense<0.000000e+00> : vector<512x8xf32>
    %36 = tpu.matmul %33, %35, %cst_60 {dimension_numbers = #tpu.dot_dimension_numbers<[1], [0], [0], [1], [0, 0, 1, 1], [], []>} : vector<512x4xf32>, vector<4x8xf32>, vector<512x8xf32> -> vector<512x8xf32>
    %37 = arith.addf %31, %36 : vector<512x8xf32>
    %c0_61 = arith.constant 0 : index
    %c1_62 = arith.constant 1 : index
    %c2_63 = arith.constant 2 : index
    %c0_64 = arith.constant 0 : index
    %38 = vector.load %arg10[%c0_61, %c1_62, %c2_63, %c0_64] : memref<2x18x18x4xf32, #tpu.memory_space<vmem>>, vector<2x16x16x4xf32>
    %39 = vector.shape_cast %38 : vector<2x16x16x4xf32> to vector<512x4xf32>
    %c1_65 = arith.constant 1 : index
    %c2_66 = arith.constant 2 : index
    %c0_67 = arith.constant 0 : index
    %c0_68 = arith.constant 0 : index
    %40 = vector.load %arg1[%c1_65, %c2_66, %c0_67, %c0_68] : memref<3x3x4x8xf32, #tpu.memory_space<vmem>>, vector<1x1x4x8xf32>
    %41 = vector.shape_cast %40 : vector<1x1x4x8xf32> to vector<4x8xf32>
    %cst_69 = arith.constant dense<0.000000e+00> : vector<512x8xf32>
    %42 = tpu.matmul %39, %41, %cst_69 {dimension_numbers = #tpu.dot_dimension_numbers<[1], [0], [0], [1], [0, 0, 1, 1], [], []>} : vector<512x4xf32>, vector<4x8xf32>, vector<512x8xf32> -> vector<512x8xf32>
    %43 = arith.addf %37, %42 : vector<512x8xf32>
    %c0_70 = arith.constant 0 : index
    %c2_71 = arith.constant 2 : index
    %c0_72 = arith.constant 0 : index
    %c0_73 = arith.constant 0 : index
    %44 = vector.load %arg10[%c0_70, %c2_71, %c0_72, %c0_73] : memref<2x18x18x4xf32, #tpu.memory_space<vmem>>, vector<2x16x16x4xf32>
    %45 = vector.shape_cast %44 : vector<2x16x16x4xf32> to vector<512x4xf32>
    %c2_74 = arith.constant 2 : index
    %c0_75 = arith.constant 0 : index
    %c0_76 = arith.constant 0 : index
    %c0_77 = arith.constant 0 : index
    %46 = vector.load %arg1[%c2_74, %c0_75, %c0_76, %c0_77] : memref<3x3x4x8xf32, #tpu.memory_space<vmem>>, vector<1x1x4x8xf32>
    %47 = vector.shape_cast %46 : vector<1x1x4x8xf32> to vector<4x8xf32>
    %cst_78 = arith.constant dense<0.000000e+00> : vector<512x8xf32>
    %48 = tpu.matmul %45, %47, %cst_78 {dimension_numbers = #tpu.dot_dimension_numbers<[1], [0], [0], [1], [0, 0, 1, 1], [], []>} : vector<512x4xf32>, vector<4x8xf32>, vector<512x8xf32> -> vector<512x8xf32>
    %49 = arith.addf %43, %48 : vector<512x8xf32>
    %c0_79 = arith.constant 0 : index
    %c2_80 = arith.constant 2 : index
    %c1_81 = arith.constant 1 : index
    %c0_82 = arith.constant 0 : index
    %50 = vector.load %arg10[%c0_79, %c2_80, %c1_81, %c0_82] : memref<2x18x18x4xf32, #tpu.memory_space<vmem>>, vector<2x16x16x4xf32>
    %51 = vector.shape_cast %50 : vector<2x16x16x4xf32> to vector<512x4xf32>
    %c2_83 = arith.constant 2 : index
    %c1_84 = arith.constant 1 : index
    %c0_85 = arith.constant 0 : index
    %c0_86 = arith.constant 0 : index
    %52 = vector.load %arg1[%c2_83, %c1_84, %c0_85, %c0_86] : memref<3x3x4x8xf32, #tpu.memory_space<vmem>>, vector<1x1x4x8xf32>
    %53 = vector.shape_cast %52 : vector<1x1x4x8xf32> to vector<4x8xf32>
    %cst_87 = arith.constant dense<0.000000e+00> : vector<512x8xf32>
    %54 = tpu.matmul %51, %53, %cst_87 {dimension_numbers = #tpu.dot_dimension_numbers<[1], [0], [0], [1], [0, 0, 1, 1], [], []>} : vector<512x4xf32>, vector<4x8xf32>, vector<512x8xf32> -> vector<512x8xf32>
    %55 = arith.addf %49, %54 : vector<512x8xf32>
    %c0_88 = arith.constant 0 : index
    %c2_89 = arith.constant 2 : index
    %c2_90 = arith.constant 2 : index
    %c0_91 = arith.constant 0 : index
    %56 = vector.load %arg10[%c0_88, %c2_89, %c2_90, %c0_91] : memref<2x18x18x4xf32, #tpu.memory_space<vmem>>, vector<2x16x16x4xf32>
    %57 = vector.shape_cast %56 : vector<2x16x16x4xf32> to vector<512x4xf32>
    %c2_92 = arith.constant 2 : index
    %c2_93 = arith.constant 2 : index
    %c0_94 = arith.constant 0 : index
    %c0_95 = arith.constant 0 : index
    %58 = vector.load %arg1[%c2_92, %c2_93, %c0_94, %c0_95] : memref<3x3x4x8xf32, #tpu.memory_space<vmem>>, vector<1x1x4x8xf32>
    %59 = vector.shape_cast %58 : vector<1x1x4x8xf32> to vector<4x8xf32>
    %cst_96 = arith.constant dense<0.000000e+00> : vector<512x8xf32>
    %60 = tpu.matmul %57, %59, %cst_96 {dimension_numbers = #tpu.dot_dimension_numbers<[1], [0], [0], [1], [0, 0, 1, 1], [], []>} : vector<512x4xf32>, vector<4x8xf32>, vector<512x8xf32> -> vector<512x8xf32>
    %61 = arith.addf %55, %60 : vector<512x8xf32>
    %62 = vector.broadcast %4 : vector<1x8xf32> to vector<512x8xf32>
    %63 = arith.addf %61, %62 : vector<512x8xf32>
    %cst_97 = arith.constant dense<0.000000e+00> : vector<8xf32>
    %64 = vector.multi_reduction <add>, %63, %cst_97 [0] : vector<512x8xf32> to vector<8xf32>
    %65 = vector.shape_cast %64 : vector<8xf32> to vector<1x8xf32>
    %cst_98 = arith.constant 0.001953125 : f32
    %66 = vector.broadcast %cst_98 : f32 to vector<1x8xf32>
    %67 = arith.mulf %65, %66 : vector<1x8xf32>
    %68 = arith.mulf %63, %63 : vector<512x8xf32>
    %cst_99 = arith.constant dense<0.000000e+00> : vector<8xf32>
    %69 = vector.multi_reduction <add>, %68, %cst_99 [0] : vector<512x8xf32> to vector<8xf32>
    %70 = vector.shape_cast %69 : vector<8xf32> to vector<1x8xf32>
    %cst_100 = arith.constant 0.001953125 : f32
    %71 = vector.broadcast %cst_100 : f32 to vector<1x8xf32>
    %72 = arith.mulf %70, %71 : vector<1x8xf32>
    %73 = arith.mulf %67, %67 : vector<1x8xf32>
    %74 = arith.subf %72, %73 : vector<1x8xf32>
    %cst_101 = arith.constant 0.000000e+00 : f32
    %75 = vector.broadcast %cst_101 : f32 to vector<1x8xf32>
    %76 = arith.maximumf %74, %75 : vector<1x8xf32>
    %cst_102 = arith.constant 9.99999974E-6 : f32
    %77 = vector.broadcast %cst_102 : f32 to vector<1x8xf32>
    %78 = arith.addf %76, %77 : vector<1x8xf32>
    %79 = math.rsqrt %78 : vector<1x8xf32>
    %80 = arith.mulf %5, %79 : vector<1x8xf32>
    %81 = arith.mulf %67, %80 : vector<1x8xf32>
    %82 = arith.subf %6, %81 : vector<1x8xf32>
    %83 = vector.broadcast %80 : vector<1x8xf32> to vector<512x8xf32>
    %84 = arith.mulf %63, %83 : vector<512x8xf32>
    %85 = vector.broadcast %82 : vector<1x8xf32> to vector<512x8xf32>
    %86 = arith.addf %84, %85 : vector<512x8xf32>
    %cst_103 = arith.constant 0.000000e+00 : f32
    %87 = vector.broadcast %cst_103 : f32 to vector<512x8xf32>
    %88 = arith.maximumf %86, %87 : vector<512x8xf32>
    %cst_104 = arith.constant 0.000000e+00 : f32
    %89 = vector.broadcast %cst_104 : f32 to vector<2x18x18x8xf32>
    %c0_105 = arith.constant 0 : index
    %c0_106 = arith.constant 0 : index
    %c0_107 = arith.constant 0 : index
    %c0_108 = arith.constant 0 : index
    %90 = vector.load %arg11[%c0_105, %c0_106, %c0_107, %c0_108] : memref<2x18x18x8xf32, #tpu.memory_space<vmem>>, vector<2x18x18x8xf32>
    tpu.vector_store %arg11[%c0_105, %c0_106, %c0_107, %c0_108], %89 {strides = array<i32>} : memref<2x18x18x8xf32, #tpu.memory_space<vmem>>, vector<2x18x18x8xf32>,
    %91 = vector.shape_cast %88 : vector<512x8xf32> to vector<2x16x16x8xf32>
    %c0_109 = arith.constant 0 : index
    %c1_110 = arith.constant 1 : index
    %c1_111 = arith.constant 1 : index
    %c0_112 = arith.constant 0 : index
    %92 = vector.load %arg11[%c0_109, %c1_110, %c1_111, %c0_112] : memref<2x18x18x8xf32, #tpu.memory_space<vmem>>, vector<2x16x16x8xf32>
    tpu.vector_store %arg11[%c0_109, %c1_110, %c1_111, %c0_112], %91 {strides = array<i32>} : memref<2x18x18x8xf32, #tpu.memory_space<vmem>>, vector<2x16x16x8xf32>,
    %c0_113 = arith.constant 0 : index
    %c0_114 = arith.constant 0 : index
    %93 = vector.load %arg6[%c0_113, %c0_114] : memref<1x8xf32, #tpu.memory_space<vmem>>, vector<1x8xf32>
    %c0_115 = arith.constant 0 : index
    %c0_116 = arith.constant 0 : index
    %94 = vector.load %arg7[%c0_115, %c0_116] : memref<1x8xf32, #tpu.memory_space<vmem>>, vector<1x8xf32>
    %c0_117 = arith.constant 0 : index
    %c0_118 = arith.constant 0 : index
    %95 = vector.load %arg8[%c0_117, %c0_118] : memref<1x8xf32, #tpu.memory_space<vmem>>, vector<1x8xf32>
    %cst_119 = arith.constant 0.000000e+00 : f32
    %96 = vector.broadcast %cst_119 : f32 to vector<512x8xf32>
    %c0_120 = arith.constant 0 : index
    %c0_121 = arith.constant 0 : index
    %c0_122 = arith.constant 0 : index
    %c0_123 = arith.constant 0 : index
    %97 = vector.load %arg11[%c0_120, %c0_121, %c0_122, %c0_123] : memref<2x18x18x8xf32, #tpu.memory_space<vmem>>, vector<2x16x16x8xf32>
    %98 = vector.shape_cast %97 : vector<2x16x16x8xf32> to vector<512x8xf32>
    %c0_124 = arith.constant 0 : index
    %c0_125 = arith.constant 0 : index
    %c0_126 = arith.constant 0 : index
    %c0_127 = arith.constant 0 : index
    %99 = vector.load %arg5[%c0_124, %c0_125, %c0_126, %c0_127] : memref<3x3x8x8xf32, #tpu.memory_space<vmem>>, vector<1x1x8x8xf32>
    %100 = vector.shape_cast %99 : vector<1x1x8x8xf32> to vector<8x8xf32>
    %cst_128 = arith.constant dense<0.000000e+00> : vector<512x8xf32>
    %101 = tpu.matmul %98, %100, %cst_128 {dimension_numbers = #tpu.dot_dimension_numbers<[1], [0], [0], [1], [0, 0, 1, 1], [], []>} : vector<512x8xf32>, vector<8x8xf32>, vector<512x8xf32> -> vector<512x8xf32>
    %102 = arith.addf %96, %101 : vector<512x8xf32>
    %c0_129 = arith.constant 0 : index
    %c0_130 = arith.constant 0 : index
    %c1_131 = arith.constant 1 : index
    %c0_132 = arith.constant 0 : index
    %103 = vector.load %arg11[%c0_129, %c0_130, %c1_131, %c0_132] : memref<2x18x18x8xf32, #tpu.memory_space<vmem>>, vector<2x16x16x8xf32>
    %104 = vector.shape_cast %103 : vector<2x16x16x8xf32> to vector<512x8xf32>
    %c0_133 = arith.constant 0 : index
    %c1_134 = arith.constant 1 : index
    %c0_135 = arith.constant 0 : index
    %c0_136 = arith.constant 0 : index
    %105 = vector.load %arg5[%c0_133, %c1_134, %c0_135, %c0_136] : memref<3x3x8x8xf32, #tpu.memory_space<vmem>>, vector<1x1x8x8xf32>
    %106 = vector.shape_cast %105 : vector<1x1x8x8xf32> to vector<8x8xf32>
    %cst_137 = arith.constant dense<0.000000e+00> : vector<512x8xf32>
    %107 = tpu.matmul %104, %106, %cst_137 {dimension_numbers = #tpu.dot_dimension_numbers<[1], [0], [0], [1], [0, 0, 1, 1], [], []>} : vector<512x8xf32>, vector<8x8xf32>, vector<512x8xf32> -> vector<512x8xf32>
    %108 = arith.addf %102, %107 : vector<512x8xf32>
    %c0_138 = arith.constant 0 : index
    %c0_139 = arith.constant 0 : index
    %c2_140 = arith.constant 2 : index
    %c0_141 = arith.constant 0 : index
    %109 = vector.load %arg11[%c0_138, %c0_139, %c2_140, %c0_141] : memref<2x18x18x8xf32, #tpu.memory_space<vmem>>, vector<2x16x16x8xf32>
    %110 = vector.shape_cast %109 : vector<2x16x16x8xf32> to vector<512x8xf32>
    %c0_142 = arith.constant 0 : index
    %c2_143 = arith.constant 2 : index
    %c0_144 = arith.constant 0 : index
    %c0_145 = arith.constant 0 : index
    %111 = vector.load %arg5[%c0_142, %c2_143, %c0_144, %c0_145] : memref<3x3x8x8xf32, #tpu.memory_space<vmem>>, vector<1x1x8x8xf32>
    %112 = vector.shape_cast %111 : vector<1x1x8x8xf32> to vector<8x8xf32>
    %cst_146 = arith.constant dense<0.000000e+00> : vector<512x8xf32>
    %113 = tpu.matmul %110, %112, %cst_146 {dimension_numbers = #tpu.dot_dimension_numbers<[1], [0], [0], [1], [0, 0, 1, 1], [], []>} : vector<512x8xf32>, vector<8x8xf32>, vector<512x8xf32> -> vector<512x8xf32>
    %114 = arith.addf %108, %113 : vector<512x8xf32>
    %c0_147 = arith.constant 0 : index
    %c1_148 = arith.constant 1 : index
    %c0_149 = arith.constant 0 : index
    %c0_150 = arith.constant 0 : index
    %115 = vector.load %arg11[%c0_147, %c1_148, %c0_149, %c0_150] : memref<2x18x18x8xf32, #tpu.memory_space<vmem>>, vector<2x16x16x8xf32>
    %116 = vector.shape_cast %115 : vector<2x16x16x8xf32> to vector<512x8xf32>
    %c1_151 = arith.constant 1 : index
    %c0_152 = arith.constant 0 : index
    %c0_153 = arith.constant 0 : index
    %c0_154 = arith.constant 0 : index
    %117 = vector.load %arg5[%c1_151, %c0_152, %c0_153, %c0_154] : memref<3x3x8x8xf32, #tpu.memory_space<vmem>>, vector<1x1x8x8xf32>
    %118 = vector.shape_cast %117 : vector<1x1x8x8xf32> to vector<8x8xf32>
    %cst_155 = arith.constant dense<0.000000e+00> : vector<512x8xf32>
    %119 = tpu.matmul %116, %118, %cst_155 {dimension_numbers = #tpu.dot_dimension_numbers<[1], [0], [0], [1], [0, 0, 1, 1], [], []>} : vector<512x8xf32>, vector<8x8xf32>, vector<512x8xf32> -> vector<512x8xf32>
    %120 = arith.addf %114, %119 : vector<512x8xf32>
    %c0_156 = arith.constant 0 : index
    %c1_157 = arith.constant 1 : index
    %c1_158 = arith.constant 1 : index
    %c0_159 = arith.constant 0 : index
    %121 = vector.load %arg11[%c0_156, %c1_157, %c1_158, %c0_159] : memref<2x18x18x8xf32, #tpu.memory_space<vmem>>, vector<2x16x16x8xf32>
    %122 = vector.shape_cast %121 : vector<2x16x16x8xf32> to vector<512x8xf32>
    %c1_160 = arith.constant 1 : index
    %c1_161 = arith.constant 1 : index
    %c0_162 = arith.constant 0 : index
    %c0_163 = arith.constant 0 : index
    %123 = vector.load %arg5[%c1_160, %c1_161, %c0_162, %c0_163] : memref<3x3x8x8xf32, #tpu.memory_space<vmem>>, vector<1x1x8x8xf32>
    %124 = vector.shape_cast %123 : vector<1x1x8x8xf32> to vector<8x8xf32>
    %cst_164 = arith.constant dense<0.000000e+00> : vector<512x8xf32>
    %125 = tpu.matmul %122, %124, %cst_164 {dimension_numbers = #tpu.dot_dimension_numbers<[1], [0], [0], [1], [0, 0, 1, 1], [], []>} : vector<512x8xf32>, vector<8x8xf32>, vector<512x8xf32> -> vector<512x8xf32>
    %126 = arith.addf %120, %125 : vector<512x8xf32>
    %c0_165 = arith.constant 0 : index
    %c1_166 = arith.constant 1 : index
    %c2_167 = arith.constant 2 : index
    %c0_168 = arith.constant 0 : index
    %127 = vector.load %arg11[%c0_165, %c1_166, %c2_167, %c0_168] : memref<2x18x18x8xf32, #tpu.memory_space<vmem>>, vector<2x16x16x8xf32>
    %128 = vector.shape_cast %127 : vector<2x16x16x8xf32> to vector<512x8xf32>
    %c1_169 = arith.constant 1 : index
    %c2_170 = arith.constant 2 : index
    %c0_171 = arith.constant 0 : index
    %c0_172 = arith.constant 0 : index
    %129 = vector.load %arg5[%c1_169, %c2_170, %c0_171, %c0_172] : memref<3x3x8x8xf32, #tpu.memory_space<vmem>>, vector<1x1x8x8xf32>
    %130 = vector.shape_cast %129 : vector<1x1x8x8xf32> to vector<8x8xf32>
    %cst_173 = arith.constant dense<0.000000e+00> : vector<512x8xf32>
    %131 = tpu.matmul %128, %130, %cst_173 {dimension_numbers = #tpu.dot_dimension_numbers<[1], [0], [0], [1], [0, 0, 1, 1], [], []>} : vector<512x8xf32>, vector<8x8xf32>, vector<512x8xf32> -> vector<512x8xf32>
    %132 = arith.addf %126, %131 : vector<512x8xf32>
    %c0_174 = arith.constant 0 : index
    %c2_175 = arith.constant 2 : index
    %c0_176 = arith.constant 0 : index
    %c0_177 = arith.constant 0 : index
    %133 = vector.load %arg11[%c0_174, %c2_175, %c0_176, %c0_177] : memref<2x18x18x8xf32, #tpu.memory_space<vmem>>, vector<2x16x16x8xf32>
    %134 = vector.shape_cast %133 : vector<2x16x16x8xf32> to vector<512x8xf32>
    %c2_178 = arith.constant 2 : index
    %c0_179 = arith.constant 0 : index
    %c0_180 = arith.constant 0 : index
    %c0_181 = arith.constant 0 : index
    %135 = vector.load %arg5[%c2_178, %c0_179, %c0_180, %c0_181] : memref<3x3x8x8xf32, #tpu.memory_space<vmem>>, vector<1x1x8x8xf32>
    %136 = vector.shape_cast %135 : vector<1x1x8x8xf32> to vector<8x8xf32>
    %cst_182 = arith.constant dense<0.000000e+00> : vector<512x8xf32>
    %137 = tpu.matmul %134, %136, %cst_182 {dimension_numbers = #tpu.dot_dimension_numbers<[1], [0], [0], [1], [0, 0, 1, 1], [], []>} : vector<512x8xf32>, vector<8x8xf32>, vector<512x8xf32> -> vector<512x8xf32>
    %138 = arith.addf %132, %137 : vector<512x8xf32>
    %c0_183 = arith.constant 0 : index
    %c2_184 = arith.constant 2 : index
    %c1_185 = arith.constant 1 : index
    %c0_186 = arith.constant 0 : index
    %139 = vector.load %arg11[%c0_183, %c2_184, %c1_185, %c0_186] : memref<2x18x18x8xf32, #tpu.memory_space<vmem>>, vector<2x16x16x8xf32>
    %140 = vector.shape_cast %139 : vector<2x16x16x8xf32> to vector<512x8xf32>
    %c2_187 = arith.constant 2 : index
    %c1_188 = arith.constant 1 : index
    %c0_189 = arith.constant 0 : index
    %c0_190 = arith.constant 0 : index
    %141 = vector.load %arg5[%c2_187, %c1_188, %c0_189, %c0_190] : memref<3x3x8x8xf32, #tpu.memory_space<vmem>>, vector<1x1x8x8xf32>
    %142 = vector.shape_cast %141 : vector<1x1x8x8xf32> to vector<8x8xf32>
    %cst_191 = arith.constant dense<0.000000e+00> : vector<512x8xf32>
    %143 = tpu.matmul %140, %142, %cst_191 {dimension_numbers = #tpu.dot_dimension_numbers<[1], [0], [0], [1], [0, 0, 1, 1], [], []>} : vector<512x8xf32>, vector<8x8xf32>, vector<512x8xf32> -> vector<512x8xf32>
    %144 = arith.addf %138, %143 : vector<512x8xf32>
    %c0_192 = arith.constant 0 : index
    %c2_193 = arith.constant 2 : index
    %c2_194 = arith.constant 2 : index
    %c0_195 = arith.constant 0 : index
    %145 = vector.load %arg11[%c0_192, %c2_193, %c2_194, %c0_195] : memref<2x18x18x8xf32, #tpu.memory_space<vmem>>, vector<2x16x16x8xf32>
    %146 = vector.shape_cast %145 : vector<2x16x16x8xf32> to vector<512x8xf32>
    %c2_196 = arith.constant 2 : index
    %c2_197 = arith.constant 2 : index
    %c0_198 = arith.constant 0 : index
    %c0_199 = arith.constant 0 : index
    %147 = vector.load %arg5[%c2_196, %c2_197, %c0_198, %c0_199] : memref<3x3x8x8xf32, #tpu.memory_space<vmem>>, vector<1x1x8x8xf32>
    %148 = vector.shape_cast %147 : vector<1x1x8x8xf32> to vector<8x8xf32>
    %cst_200 = arith.constant dense<0.000000e+00> : vector<512x8xf32>
    %149 = tpu.matmul %146, %148, %cst_200 {dimension_numbers = #tpu.dot_dimension_numbers<[1], [0], [0], [1], [0, 0, 1, 1], [], []>} : vector<512x8xf32>, vector<8x8xf32>, vector<512x8xf32> -> vector<512x8xf32>
    %150 = arith.addf %144, %149 : vector<512x8xf32>
    %151 = vector.broadcast %93 : vector<1x8xf32> to vector<512x8xf32>
    %152 = arith.addf %150, %151 : vector<512x8xf32>
    %cst_201 = arith.constant dense<0.000000e+00> : vector<8xf32>
    %153 = vector.multi_reduction <add>, %152, %cst_201 [0] : vector<512x8xf32> to vector<8xf32>
    %154 = vector.shape_cast %153 : vector<8xf32> to vector<1x8xf32>
    %cst_202 = arith.constant 0.001953125 : f32
    %155 = vector.broadcast %cst_202 : f32 to vector<1x8xf32>
    %156 = arith.mulf %154, %155 : vector<1x8xf32>
    %157 = arith.mulf %152, %152 : vector<512x8xf32>
    %cst_203 = arith.constant dense<0.000000e+00> : vector<8xf32>
    %158 = vector.multi_reduction <add>, %157, %cst_203 [0] : vector<512x8xf32> to vector<8xf32>
    %159 = vector.shape_cast %158 : vector<8xf32> to vector<1x8xf32>
    %cst_204 = arith.constant 0.001953125 : f32
    %160 = vector.broadcast %cst_204 : f32 to vector<1x8xf32>
    %161 = arith.mulf %159, %160 : vector<1x8xf32>
    %162 = arith.mulf %156, %156 : vector<1x8xf32>
    %163 = arith.subf %161, %162 : vector<1x8xf32>
    %cst_205 = arith.constant 0.000000e+00 : f32
    %164 = vector.broadcast %cst_205 : f32 to vector<1x8xf32>
    %165 = arith.maximumf %163, %164 : vector<1x8xf32>
    %cst_206 = arith.constant 9.99999974E-6 : f32
    %166 = vector.broadcast %cst_206 : f32 to vector<1x8xf32>
    %167 = arith.addf %165, %166 : vector<1x8xf32>
    %168 = math.rsqrt %167 : vector<1x8xf32>
    %169 = arith.mulf %94, %168 : vector<1x8xf32>
    %170 = arith.mulf %156, %169 : vector<1x8xf32>
    %171 = arith.subf %95, %170 : vector<1x8xf32>
    %172 = vector.broadcast %169 : vector<1x8xf32> to vector<512x8xf32>
    %173 = arith.mulf %152, %172 : vector<512x8xf32>
    %174 = vector.broadcast %171 : vector<1x8xf32> to vector<512x8xf32>
    %175 = arith.addf %173, %174 : vector<512x8xf32>
    %cst_207 = arith.constant 0.000000e+00 : f32
    %176 = vector.broadcast %cst_207 : f32 to vector<512x8xf32>
    %177 = arith.maximumf %175, %176 : vector<512x8xf32>
    %178 = vector.shape_cast %177 : vector<512x8xf32> to vector<2x16x16x8xf32>
    %c0_208 = arith.constant 0 : index
    %c0_209 = arith.constant 0 : index
    %c0_210 = arith.constant 0 : index
    %c0_211 = arith.constant 0 : index
    %179 = vector.load %arg9[%c0_208, %c0_209, %c0_210, %c0_211] : memref<2x16x16x8xf32, #tpu.memory_space<vmem>>, vector<2x16x16x8xf32>
    tpu.vector_store %arg9[%c0_208, %c0_209, %c0_210, %c0_211], %178 {strides = array<i32>} : memref<2x16x16x8xf32, #tpu.memory_space<vmem>>, vector<2x16x16x8xf32>,
    return
  }
}

</mosaic_0001>

<bundles_post_ra>
// kernel: double_conv.1
= control target key start
LH: loop header
LB: loop body
LE: loop exit
PB: predicated region body
PF: predicated region fallthrough
CT: control target
= control target key end

     0   :  { %vm597_vm0 = vcmask 1043456   ;;  %vm32_vm1 = vcmask 31744   ;;  %vm35_vm2 = vcmask 25600   ;;  %v25440_v1 = vmov 0.0   ;;  %s25430_s1 = inlined_call_operand.vmem [shape: f32[3,3,4,8], index: 1, kind: input, shape index: {}]   ;;  %s25431_s0 = inlined_call_operand.vmem [shape: f32[2,16,16,4], index: 0, kind: input, shape index: {}]   ;;  %s25432_s2 = inlined_call_operand.vmem [shape: f32[1,8], index: 2, kind: input, shape index: {}]   ;;  %s25433_s5 = inlined_call_operand.vmem [shape: f32[3,3,8,8], index: 5, kind: input, shape index: {}]   ;;  %s25434_s3 = inlined_call_operand.vmem [shape: f32[1,8], index: 3, kind: input, shape index: {}]   ;;  %s25435_s4 = inlined_call_operand.vmem [shape: f32[1,8], index: 4, kind: input, shape index: {}]   ;;  %s25436_s6 = inlined_call_operand.vmem [shape: f32[1,8], index: 6, kind: input, shape index: {}]   ;;  %s25437_s7 = inlined_call_operand.vmem [shape: f32[1,8], index: 7, kind: input, shape index: {}]   ;;  %s25438_s8 = inlined_call_operand.vmem [shape: f32[1,8], index: 8, kind: input, shape index: {}]   ;;  %s25439_s9 = inlined_call_operand.vmem [shape: f32[2,16,16,8], index: 9, kind: output, shape index: {}]  }
   0x1   :  { %v19442_v0 = vld [vmem:[%s25430_s1 + $0x4] sm:$0xf]  ;;  %33 = vst.msk [vmem:[#allocation2] sm:$0xff] %vm32_vm1, %v25440_v1  ;;  %34 = vst.msk [vmem:[#allocation2 + $0x8] sm:$0xff] %vm32_vm1, %v25440_v1  ;;  %v19591_v2 = vld [vmem:[%s25430_s1] sm:$0xf] }
   0x2   :  { %37 = vst.msk [vmem:[#allocation2 + $0x18] sm:$0xff] %vm32_vm1, %v25440_v1  ;;  %38 = vst.msk [vmem:[#allocation2 + $0x20] sm:$0xff] %vm32_vm1, %v25440_v1  ;;  %v142_v3 = vld [vmem:[%s25431_s0] sm:$0xff]  ;;  %16595 = vmatprep.subr.msk.mxu0 %vm597_vm0, %v19442_v0  ;;  %v143_v4 = vld [vmem:[%s25431_s0 + $0x8] sm:$0xff]  ;;  %vm6607_vm3 = vcmask 64512   ;;  %vm7154_vm4 = vcmask 58368  }
   0x3   :  { %40 = vst.msk [vmem:[#allocation2 + $0x30] sm:$0xff] %vm32_vm1, %v25440_v1  ;;  %41 = vst.msk [vmem:[#allocation2 + $0x38] sm:$0xff] %vm32_vm1, %v25440_v1  ;;  %v144_v5 = vld [vmem:[%s25431_s0 + $0x10] sm:$0xff]  ;;  %v145_v6 = vld [vmem:[%s25431_s0 + $0x18] sm:$0xff]  ;;  %16596 = vmatpush3.msk.msra.mxu0 %vm597_vm0, %v19442_v0 }
   0x4   :  { %43 = vst.msk [vmem:[#allocation2 + $0x48] sm:$0xff] %vm32_vm1, %v25440_v1  ;;  %44 = vst.msk [vmem:[#allocation2 + $0x50] sm:$0xff] %vm32_vm1, %v25440_v1  ;;  %v146_v7 = vld [vmem:[%s25431_s0 + $0x20] sm:$0xff]  ;;  %v147_v8 = vld [vmem:[%s25431_s0 + $0x28] sm:$0xff]  ;;  %16693 = vmatprep.subr.msk.mxu0 %vm597_vm0, %v19591_v2 }
   0x5   :  { %46 = vst.msk [vmem:[#allocation2 + $0x60] sm:$0xff] %vm32_vm1, %v25440_v1  ;;  %47 = vst.msk [vmem:[#allocation2 + $0x68] sm:$0xff] %vm32_vm1, %v25440_v1  ;;  %v148_v9 = vld [vmem:[%s25431_s0 + $0x30] sm:$0xff]  ;;  %v149_v10 = vld [vmem:[%s25431_s0 + $0x38] sm:$0xff] }
   0x6   :  { %49 = vst.msk [vmem:[#allocation2 + $0x78] sm:$0xff] %vm32_vm1, %v25440_v1  ;;  %50 = vst.msk [vmem:[#allocation2 + $0x80] sm:$0xff] %vm32_vm1, %v25440_v1  ;;  %v150_v11 = vld [vmem:[%s25431_s0 + $0x40] sm:$0xff]  ;;  %v151_v12 = vld [vmem:[%s25431_s0 + $0x48] sm:$0xff] }
   0x7   :  { %52 = vst.msk [vmem:[#allocation2 + $0x90] sm:$0xff] %vm32_vm1, %v25440_v1  ;;  %53 = vst.msk [vmem:[#allocation2 + $0x98] sm:$0xff] %vm32_vm1, %v25440_v1  ;;  %v152_v13 = vld [vmem:[%s25431_s0 + $0x50] sm:$0xff]  ;;  %v153_v14 = vld [vmem:[%s25431_s0 + $0x58] sm:$0xff] }
   0x8   :  { %55 = vst.msk [vmem:[#allocation2 + $0xa8] sm:$0xff] %vm32_vm1, %v25440_v1  ;;  %56 = vst.msk [vmem:[#allocation2 + $0xb0] sm:$0xff] %vm32_vm1, %v25440_v1  ;;  %v154_v15 = vld [vmem:[%s25431_s0 + $0x60] sm:$0xff]  ;;  %v155_v16 = vld [vmem:[%s25431_s0 + $0x68] sm:$0xff] }
   0x9   :  { %58 = vst.msk [vmem:[#allocation2 + $0xc0] sm:$0xff] %vm32_vm1, %v25440_v1  ;;  %59 = vst.msk [vmem:[#allocation2 + $0xc8] sm:$0xff] %vm32_vm1, %v25440_v1  ;;  %v156_v17 = vld [vmem:[%s25431_s0 + $0x70] sm:$0xff]  ;;  %v157_v18 = vld [vmem:[%s25431_s0 + $0x78] sm:$0xff] }
   0xa   :  { %61 = vst.msk [vmem:[#allocation2 + $0xd8] sm:$0xff] %vm32_vm1, %v25440_v1  ;;  %62 = vst.msk [vmem:[#allocation2 + $0xe0] sm:$0xff] %vm32_vm1, %v25440_v1  ;;  %v158_v19 = vld [vmem:[%s25431_s0 + $0x80] sm:$0xff]  ;;  %v159_v20 = vld [vmem:[%s25431_s0 + $0x88] sm:$0xff] }
   0xb   :  { %64 = vst.msk [vmem:[#allocation2 + $0xf0] sm:$0xff] %vm32_vm1, %v25440_v1  ;;  %65 = vst.msk [vmem:[#allocation2 + $0xf8] sm:$0xff] %vm32_vm1, %v25440_v1  ;;  %v160_v21 = vld [vmem:[%s25431_s0 + $0x90] sm:$0xff]  ;;  %v339_v22 = vld [vmem:[#allocation2 + $0x1] sm:$0xff] }
   0xc   :  { %67 = vst.msk [vmem:[#allocation2 + $0x108] sm:$0xff] %vm32_vm1, %v25440_v1  ;;  %68 = vst.msk [vmem:[#allocation2 + $0x110] sm:$0xff] %vm32_vm1, %v25440_v1  ;;  %v161_v24 = vld [vmem:[%s25431_s0 + $0x98] sm:$0xff]  ;;  %16597 = vmatprep.mubr.msk.f32.mxu0 %vm32_vm1, %v339_v22  ;;  %v162_v26 = vld [vmem:[%s25431_s0 + $0xa0] sm:$0xff] }
   0xd   :  { %70 = vst.msk [vmem:[#allocation2 + $0x120] sm:$0xff] %vm32_vm1, %v25440_v1  ;;  %71 = vst.msk [vmem:[#allocation2 + $0x128] sm:$0xff] %vm32_vm1, %v25440_v1  ;;  %v163_v27 = vld [vmem:[%s25431_s0 + $0xa8] sm:$0xff]  ;;  %v164_v32 = vld [vmem:[%s25431_s0 + $0xb0] sm:$0xff] }
   0xe   :  { %73 = vst.msk [vmem:[#allocation2 + $0x138] sm:$0xff] %vm32_vm1, %v25440_v1  ;;  %74 = vst.msk [vmem:[#allocation2 + $0x140] sm:$0xff] %vm32_vm1, %v25440_v1  ;;  %v165_v33 = vld [vmem:[%s25431_s0 + $0xb8] sm:$0xff]  ;;  %v166_v34 = vld [vmem:[%s25431_s0 + $0xc0] sm:$0xff] }
   0xf   :  { %76 = vst.msk [vmem:[#allocation2 + $0x150] sm:$0xff] %vm32_vm1, %v25440_v1  ;;  %77 = vst.msk [vmem:[#allocation2 + $0x158] sm:$0xff] %vm32_vm1, %v25440_v1  ;;  %v167_v35 = vld [vmem:[%s25431_s0 + $0xc8] sm:$0xff]  ;;  %v168_v36 = vld [vmem:[%s25431_s0 + $0xd0] sm:$0xff] }
  0x10   :  { %79 = vst.msk [vmem:[#allocation2 + $0x168] sm:$0xff] %vm32_vm1, %v25440_v1  ;;  %80 = vst.msk [vmem:[#allocation2 + $0x170] sm:$0xff] %vm32_vm1, %v25440_v1  ;;  %v169_v37 = vld [vmem:[%s25431_s0 + $0xd8] sm:$0xff]  ;;  %v170_v39 = vld [vmem:[%s25431_s0 + $0xe0] sm:$0xff] }
  0x11   :  { %82 = vst.msk [vmem:[#allocation2 + $0x180] sm:$0xff] %vm32_vm1, %v25440_v1  ;;  %83 = vst.msk [vmem:[#allocation2 + $0x188] sm:$0xff] %vm32_vm1, %v25440_v1  ;;  %v171_v40 = vld [vmem:[%s25431_s0 + $0xe8] sm:$0xff]  ;;  %v174_v42 = vld [vmem:[%s25431_s0 + $0x100] sm:$0xff] }
  0x12   :  { %85 = vst.msk [vmem:[#allocation2 + $0x198] sm:$0xff] %vm32_vm1, %v25440_v1  ;;  %86 = vst.msk [vmem:[#allocation2 + $0x1a0] sm:$0xff] %vm32_vm1, %v25440_v1  ;;  %v175_v43 = vld [vmem:[%s25431_s0 + $0x108] sm:$0xff]  ;;  %v176_v45 = vld [vmem:[%s25431_s0 + $0x110] sm:$0xff] }
  0x13   :  { %88 = vst.msk [vmem:[#allocation2 + $0x1b0] sm:$0xff] %vm32_vm1, %v25440_v1  ;;  %89 = vst.msk [vmem:[#allocation2 + $0x1b8] sm:$0xff] %vm32_vm1, %v25440_v1  ;;  %v177_v46 = vld [vmem:[%s25431_s0 + $0x118] sm:$0xff]  ;;  %v178_v47 = vld [vmem:[%s25431_s0 + $0x120] sm:$0xff] }
  0x14   :  { %91 = vst.msk [vmem:[#allocation2 + $0x1c8] sm:$0xff] %vm32_vm1, %v25440_v1  ;;  %92 = vst.msk [vmem:[#allocation2 + $0x1d0] sm:$0xff] %vm32_vm1, %v25440_v1  ;;  %v179_v48 = vld [vmem:[%s25431_s0 + $0x128] sm:$0xff]  ;;  %v180_v49 = vld [vmem:[%s25431_s0 + $0x130] sm:$0xff] }
  0x15   :  { %94 = vst.msk [vmem:[#allocation2 + $0x1e0] sm:$0xff] %vm32_vm1, %v25440_v1  ;;  %95 = vst.msk [vmem:[#allocation2 + $0x1e8] sm:$0xff] %vm32_vm1, %v25440_v1  ;;  %v181_v50 = vld [vmem:[%s25431_s0 + $0x138] sm:$0xff]  ;;  %v182_v51 = vld [vmem:[%s25431_s0 + $0x140] sm:$0xff] }
  0x16   :  { %97 = vst.msk [vmem:[#allocation2 + $0x1f8] sm:$0xff] %vm32_vm1, %v25440_v1  ;;  %98 = vst.msk [vmem:[#allocation2 + $0x200] sm:$0xff] %vm32_vm1, %v25440_v1  ;;  %v183_v52 = vld [vmem:[%s25431_s0 + $0x148] sm:$0xff]  ;;  %v184_v53 = vld [vmem:[%s25431_s0 + $0x150] sm:$0xff] }
  0x17   :  { %100 = vst.msk [vmem:[#allocation2 + $0x210] sm:$0xff] %vm32_vm1, %v25440_v1  ;;  %101 = vst.msk [vmem:[#allocation2 + $0x218] sm:$0xff] %vm32_vm1, %v25440_v1  ;;  %v185_v55 = vld [vmem:[%s25431_s0 + $0x158] sm:$0xff]  ;;  %v186_v56 = vld [vmem:[%s25431_s0 + $0x160] sm:$0xff] }
  0x18   :  { %103 = vst.msk [vmem:[#allocation2 + $0x228] sm:$0xff] %vm32_vm1, %v25440_v1  ;;  %104 = vst.msk [vmem:[#allocation2 + $0x230] sm:$0xff] %vm32_vm1, %v25440_v1  ;;  %v187_v57 = vld [vmem:[%s25431_s0 + $0x168] sm:$0xff]  ;;  %v188_v59 = vld [vmem:[%s25431_s0 + $0x170] sm:$0xff] }
  0x19   :  { %106 = vst.msk [vmem:[#allocation2 + $0x240] sm:$0xff] %vm32_vm1, %v25440_v1  ;;  %107 = vst.msk [vmem:[#allocation2 + $0x248] sm:$0xff] %vm32_vm1, %v25440_v1  ;;  %v189_v61 = vld [vmem:[%s25431_s0 + $0x178] sm:$0xff]  ;;  %v190_v0 = vld [vmem:[%s25431_s0 + $0x180] sm:$0xff] }
  0x1a   :  { %109 = vst.msk [vmem:[#allocation2 + $0x258] sm:$0xff] %vm32_vm1, %v25440_v1  ;;  %110 = vst.msk [vmem:[#allocation2 + $0x260] sm:$0xff] %vm32_vm1, %v25440_v1 }
  0x1b   :  { %112 = vst.msk [vmem:[#allocation2 + $0x270] sm:$0xff] %vm32_vm1, %v25440_v1  ;;  %113 = vst.msk [vmem:[#allocation2 + $0x278] sm:$0xff] %vm32_vm1, %v25440_v1 }
  0x1c   :  { %115 = vst.msk [vmem:[#allocation2 + $0x288] sm:$0xff] %vm32_vm1, %v25440_v1  ;;  %116 = vst.msk [vmem:[#allocation2 + $0x290] sm:$0xff] %vm32_vm1, %v25440_v1 }
  0x1d   :  { %118 = vst.msk [vmem:[#allocation2 + $0x2a0] sm:$0xff] %vm32_vm1, %v25440_v1  ;;  %119 = vst.msk [vmem:[#allocation2 + $0x2a8] sm:$0xff] %vm32_vm1, %v25440_v1 }
  0x1e   :  { %121 = vst.msk [vmem:[#allocation2 + $0x2b8] sm:$0xff] %vm32_vm1, %v25440_v1  ;;  %122 = vst.msk [vmem:[#allocation2 + $0x2c0] sm:$0xff] %vm32_vm1, %v25440_v1 }
  0x1f   :  { %124 = vst.msk [vmem:[#allocation2 + $0x2d0] sm:$0xff] %vm32_vm1, %v25440_v1  ;;  %125 = vst.msk [vmem:[#allocation2 + $0x2d8] sm:$0xff] %vm32_vm1, %v25440_v1 }
  0x20   :  { %127 = vst.msk [vmem:[#allocation2 + $0x2e8] sm:$0xff] %vm32_vm1, %v25440_v1  ;;  %128 = vst.msk [vmem:[#allocation2 + $0x2f0] sm:$0xff] %vm32_vm1, %v25440_v1 }
  0x21   :  { %130 = vst.msk [vmem:[#allocation2 + $0x300] sm:$0xff] %vm32_vm1, %v25440_v1  ;;  %131 = vst.msk [vmem:[#allocation2 + $0x308] sm:$0xff] %vm32_vm1, %v25440_v1 }
  0x22   :  { %133 = vst.msk [vmem:[#allocation2 + $0x318] sm:$0xff] %vm32_vm1, %v25440_v1  ;;  %134 = vst.msk [vmem:[#allocation2 + $0x320] sm:$0xff] %vm32_vm1, %v25440_v1 }
  0x23   :  { %136 = vst.msk [vmem:[#allocation2 + $0x330] sm:$0xff] %vm32_vm1, %v25440_v1  ;;  %137 = vst.msk [vmem:[#allocation2 + $0x338] sm:$0xff] %vm32_vm1, %v25440_v1 }
  0x24   :  { %139 = vst.msk [vmem:[#allocation2 + $0x348] sm:$0xff] %vm32_vm1, %v25440_v1  ;;  %140 = vst.msk [vmem:[#allocation2 + $0x350] sm:$0xff] %vm32_vm1, %v25440_v1 }
  0x25   :  { %36 = vst.msk [vmem:[#allocation2 + $0x10] sm:$0x3] %vm35_vm2, %v25440_v1  ;;  %39 = vst.msk [vmem:[#allocation2 + $0x28] sm:$0x3] %vm35_vm2, %v25440_v1 }
  0x26   :  { %42 = vst.msk [vmem:[#allocation2 + $0x40] sm:$0x3] %vm35_vm2, %v25440_v1  ;;  %45 = vst.msk [vmem:[#allocation2 + $0x58] sm:$0x3] %vm35_vm2, %v25440_v1 }
  0x27   :  { %48 = vst.msk [vmem:[#allocation2 + $0x70] sm:$0x3] %vm35_vm2, %v25440_v1  ;;  %51 = vst.msk [vmem:[#allocation2 + $0x88] sm:$0x3] %vm35_vm2, %v25440_v1 }
  0x28   :  { %54 = vst.msk [vmem:[#allocation2 + $0xa0] sm:$0x3] %vm35_vm2, %v25440_v1  ;;  %57 = vst.msk [vmem:[#allocation2 + $0xb8] sm:$0x3] %vm35_vm2, %v25440_v1 }
  0x29   :  { %60 = vst.msk [vmem:[#allocation2 + $0xd0] sm:$0x3] %vm35_vm2, %v25440_v1  ;;  %63 = vst.msk [vmem:[#allocation2 + $0xe8] sm:$0x3] %vm35_vm2, %v25440_v1 }
  0x2a   :  { %66 = vst.msk [vmem:[#allocation2 + $0x100] sm:$0x3] %vm35_vm2, %v25440_v1  ;;  %69 = vst.msk [vmem:[#allocation2 + $0x118] sm:$0x3] %vm35_vm2, %v25440_v1 }
  0x2b   :  { %72 = vst.msk [vmem:[#allocation2 + $0x130] sm:$0x3] %vm35_vm2, %v25440_v1  ;;  %75 = vst.msk [vmem:[#allocation2 + $0x148] sm:$0x3] %vm35_vm2, %v25440_v1 }
  0x2c   :  { %78 = vst.msk [vmem:[#allocation2 + $0x160] sm:$0x3] %vm35_vm2, %v25440_v1  ;;  %81 = vst.msk [vmem:[#allocation2 + $0x178] sm:$0x3] %vm35_vm2, %v25440_v1  ;;  %v340_v23 = vld [vmem:[#allocation2 + $0x9] sm:$0xff] }
  0x2d   :  { %84 = vst.msk [vmem:[#allocation2 + $0x190] sm:$0x3] %vm35_vm2, %v25440_v1  ;;  %87 = vst.msk [vmem:[#allocation2 + $0x1a8] sm:$0x3] %vm35_vm2, %v25440_v1  ;;  %16598 = vmatmul.mubr.msk.f32.vlgmr.msra.gmra.mrb[0].mxu0 %vm32_vm1, %v340_v23 }
  0x2e   :  { %90 = vst.msk [vmem:[#allocation2 + $0x1c0] sm:$0x3] %vm35_vm2, %v25440_v1  ;;  %93 = vst.msk [vmem:[#allocation2 + $0x1d8] sm:$0x3] %vm35_vm2, %v25440_v1  ;;  %16694 = vmatpush3.msk.msra.mxu0 %vm597_vm0, %v19591_v2  ;;  %v191_v2 = vld [vmem:[%s25431_s0 + $0x188] sm:$0xff] }
  0x2f   :  { %96 = vst.msk [vmem:[#allocation2 + $0x1f0] sm:$0x3] %vm35_vm2, %v25440_v1  ;;  %99 = vst.msk [vmem:[#allocation2 + $0x208] sm:$0x3] %vm35_vm2, %v25440_v1 }
  0x30   :  { %102 = vst.msk [vmem:[#allocation2 + $0x220] sm:$0x3] %vm35_vm2, %v25440_v1  ;;  %105 = vst.msk [vmem:[#allocation2 + $0x238] sm:$0x3] %vm35_vm2, %v25440_v1 }
  0x31   :  { %108 = vst.msk [vmem:[#allocation2 + $0x250] sm:$0x3] %vm35_vm2, %v25440_v1  ;;  %111 = vst.msk [vmem:[#allocation2 + $0x268] sm:$0x3] %vm35_vm2, %v25440_v1 }
  0x32   :  { %114 = vst.msk [vmem:[#allocation2 + $0x280] sm:$0x3] %vm35_vm2, %v25440_v1  ;;  %117 = vst.msk [vmem:[#allocation2 + $0x298] sm:$0x3] %vm35_vm2, %v25440_v1 }
  0x33   :  { %120 = vst.msk [vmem:[#allocation2 + $0x2b0] sm:$0x3] %vm35_vm2, %v25440_v1  ;;  %123 = vst.msk [vmem:[#allocation2 + $0x2c8] sm:$0x3] %vm35_vm2, %v25440_v1 }
  0x34   :  { %126 = vst.msk [vmem:[#allocation2 + $0x2e0] sm:$0x3] %vm35_vm2, %v25440_v1  ;;  %129 = vst.msk [vmem:[#allocation2 + $0x2f8] sm:$0x3] %vm35_vm2, %v25440_v1 }
  0x35   :  { %132 = vst.msk [vmem:[#allocation2 + $0x310] sm:$0x3] %vm35_vm2, %v25440_v1  ;;  %135 = vst.msk [vmem:[#allocation2 + $0x328] sm:$0x3] %vm35_vm2, %v25440_v1 }
  0x36   :  { %138 = vst.msk [vmem:[#allocation2 + $0x340] sm:$0x3] %vm35_vm2, %v25440_v1  ;;  %141 = vst.msk [vmem:[#allocation2 + $0x358] sm:$0x3] %vm35_vm2, %v25440_v1 }
  0x37   :  { %207 = vst.msk [vmem:[#allocation2 + $0x19] sm:$0xff] %vm32_vm1, %v142_v3  ;;  %208 = vst.msk [vmem:[#allocation2 + $0x21] sm:$0xff] %vm32_vm1, %v143_v4  ;;  %v192_v3 = vld [vmem:[%s25431_s0 + $0x190] sm:$0xff]  ;;  %v193_v4 = vld [vmem:[%s25431_s0 + $0x198] sm:$0xff] }
  0x38   :  { %209 = vst.msk [vmem:[#allocation2 + $0x31] sm:$0xff] %vm32_vm1, %v144_v5  ;;  %210 = vst.msk [vmem:[#allocation2 + $0x39] sm:$0xff] %vm32_vm1, %v145_v6  ;;  %v194_v5 = vld [vmem:[%s25431_s0 + $0x1a0] sm:$0xff]  ;;  %v195_v6 = vld [vmem:[%s25431_s0 + $0x1a8] sm:$0xff] }
  0x39   :  { %211 = vst.msk [vmem:[#allocation2 + $0x49] sm:$0xff] %vm32_vm1, %v146_v7  ;;  %212 = vst.msk [vmem:[#allocation2 + $0x51] sm:$0xff] %vm32_vm1, %v147_v8  ;;  %v196_v8 = vld [vmem:[%s25431_s0 + $0x1b0] sm:$0xff] }
  0x3a   :  { %213 = vst.msk [vmem:[#allocation2 + $0x61] sm:$0xff] %vm32_vm1, %v148_v9  ;;  %214 = vst.msk [vmem:[#allocation2 + $0x69] sm:$0xff] %vm32_vm1, %v149_v10  ;;  %v197_v9 = vld [vmem:[%s25431_s0 + $0x1b8] sm:$0xff] }
  0x3b   :  { %215 = vst.msk [vmem:[#allocation2 + $0x79] sm:$0xff] %vm32_vm1, %v150_v11  ;;  %216 = vst.msk [vmem:[#allocation2 + $0x81] sm:$0xff] %vm32_vm1, %v151_v12  ;;  %v198_v11 = vld [vmem:[%s25431_s0 + $0x1c0] sm:$0xff]  ;;  %v199_v12 = vld [vmem:[%s25431_s0 + $0x1c8] sm:$0xff] }
  0x3c   :  { %217 = vst.msk [vmem:[#allocation2 + $0x91] sm:$0xff] %vm32_vm1, %v152_v13  ;;  %218 = vst.msk [vmem:[#allocation2 + $0x99] sm:$0xff] %vm32_vm1, %v153_v14  ;;  %v200_v13 = vld [vmem:[%s25431_s0 + $0x1d0] sm:$0xff]  ;;  %v201_v14 = vld [vmem:[%s25431_s0 + $0x1d8] sm:$0xff] }
  0x3d   :  { %219 = vst.msk [vmem:[#allocation2 + $0xa9] sm:$0xff] %vm32_vm1, %v154_v15  ;;  %220 = vst.msk [vmem:[#allocation2 + $0xb1] sm:$0xff] %vm32_vm1, %v155_v16  ;;  %v202_v15 = vld [vmem:[%s25431_s0 + $0x1e0] sm:$0xff]  ;;  %v203_v16 = vld [vmem:[%s25431_s0 + $0x1e8] sm:$0xff] }
  0x3e   :  { %221 = vst.msk [vmem:[#allocation2 + $0xc1] sm:$0xff] %vm32_vm1, %v156_v17  ;;  %222 = vst.msk [vmem:[#allocation2 + $0xc9] sm:$0xff] %vm32_vm1, %v157_v18  ;;  %v341_v25 = vld [vmem:[#allocation2 + $0x19] sm:$0xff]  ;;  %v342_v28 = vld [vmem:[#allocation2 + $0x21] sm:$0xff] }
  0x3f   :  { %223 = vst.msk [vmem:[#allocation2 + $0xd9] sm:$0xff] %vm32_vm1, %v158_v19  ;;  %224 = vst.msk [vmem:[#allocation2 + $0xe1] sm:$0xff] %vm32_vm1, %v159_v20  ;;  %16600 = vmatprep.mubr.msk.f32.mxu0 %vm32_vm1, %v341_v25  ;;  %v343_v29 = vld [vmem:[#allocation2 + $0x31] sm:$0xff]  ;;  %v344_v30 = vld [vmem:[#allocation2 + $0x39] sm:$0xff] }
  0x40   :  { %225 = vst.msk [vmem:[#allocation2 + $0xf1] sm:$0xff] %vm32_vm1, %v160_v21  ;;  %226 = vst.msk [vmem:[#allocation2 + $0xf9] sm:$0xff] %vm32_vm1, %v161_v24  ;;  %16601 = vmatmul.mubr.msk.f32.gmra.mrb[2].mxu0 %vm32_vm1, %v342_v28  ;;  %v345_v31 = vld [vmem:[#allocation2 + $0x49] sm:$0xff]  ;;  %v346_v38 = vld [vmem:[#allocation2 + $0x51] sm:$0xff] }
  0x41   :  { %227 = vst.msk [vmem:[#allocation2 + $0x109] sm:$0xff] %vm32_vm1, %v162_v26  ;;  %228 = vst.msk [vmem:[#allocation2 + $0x111] sm:$0xff] %vm32_vm1, %v163_v27  ;;  %16603 = vmatprep.mubr.msk.f32.mxu0 %vm32_vm1, %v343_v29  ;;  %v347_v41 = vld [vmem:[#allocation2 + $0x61] sm:$0xff]  ;;  %v348_v44 = vld [vmem:[#allocation2 + $0x69] sm:$0xff] }
  0x42   :  { %229 = vst.msk [vmem:[#allocation2 + $0x121] sm:$0xff] %vm32_vm1, %v164_v32  ;;  %230 = vst.msk [vmem:[#allocation2 + $0x129] sm:$0xff] %vm32_vm1, %v165_v33  ;;  %v349_v54 = vld [vmem:[#allocation2 + $0x79] sm:$0xff]  ;;  %v350_v58 = vld [vmem:[#allocation2 + $0x81] sm:$0xff] }
  0x43   :  { %231 = vst.msk [vmem:[#allocation2 + $0x139] sm:$0xff] %vm32_vm1, %v166_v34  ;;  %232 = vst.msk [vmem:[#allocation2 + $0x141] sm:$0xff] %vm32_vm1, %v167_v35  ;;  %v351_v60 = vld [vmem:[#allocation2 + $0x91] sm:$0xff]  ;;  %v352_v62 = vld [vmem:[#allocation2 + $0x99] sm:$0xff] }
  0x44   :  { %16604 = vmatmul.mubr.msk.f32.gmra.mrb[4].mxu0 %vm32_vm1, %v344_v30  ;;  %233 = vst.msk [vmem:[#allocation2 + $0x151] sm:$0xff] %vm32_vm1, %v168_v36  ;;  %234 = vst.msk [vmem:[#allocation2 + $0x159] sm:$0xff] %vm32_vm1, %v169_v37  ;;  %v353_v63 = vld [vmem:[#allocation2 + $0xa9] sm:$0xff]  ;;  %v354_v7 = vld [vmem:[#allocation2 + $0xb1] sm:$0xff] }
  0x45   :  { %16606 = vmatprep.mubr.msk.f32.mxu0 %vm32_vm1, %v345_v31  ;;  %235 = vst.msk [vmem:[#allocation2 + $0x169] sm:$0xff] %vm32_vm1, %v170_v39  ;;  %236 = vst.msk [vmem:[#allocation2 + $0x171] sm:$0xff] %vm32_vm1, %v171_v40  ;;  %v355_v10 = vld [vmem:[#allocation2 + $0xc1] sm:$0xff]  ;;  %v356_v18 = vld [vmem:[#allocation2 + $0xc9] sm:$0xff] }
  0x46   :  { %239 = vst.msk [vmem:[#allocation2 + $0x1c9] sm:$0xff] %vm32_vm1, %v174_v42  ;;  %240 = vst.msk [vmem:[#allocation2 + $0x1d1] sm:$0xff] %vm32_vm1, %v175_v43  ;;  %v19931_v17 = vld [vmem:[%s25430_s1 + $0x8] sm:$0xf]  ;;  %v357_v19 = vld [vmem:[#allocation2 + $0xd9] sm:$0xff] }
  0x47   :  { %241 = vst.msk [vmem:[#allocation2 + $0x1e1] sm:$0xff] %vm32_vm1, %v176_v45  ;;  %242 = vst.msk [vmem:[#allocation2 + $0x1e9] sm:$0xff] %vm32_vm1, %v177_v46  ;;  %16791 = vmatprep.subr.msk.mxu0 %vm597_vm0, %v19931_v17  ;;  %v358_v20 = vld [vmem:[#allocation2 + $0xe1] sm:$0xff]  ;;  %v359_v21 = vld [vmem:[#allocation2 + $0xf1] sm:$0xff] }
  0x48   :  { %16607 = vmatmul.mubr.msk.f32.gmra.mrb[6].mxu0 %vm32_vm1, %v346_v38  ;;  %243 = vst.msk [vmem:[#allocation2 + $0x1f9] sm:$0xff] %vm32_vm1, %v178_v47  ;;  %244 = vst.msk [vmem:[#allocation2 + $0x201] sm:$0xff] %vm32_vm1, %v179_v48  ;;  %v360_v22 = vld [vmem:[#allocation2 + $0xf9] sm:$0xff]  ;;  %v361_v23 = vld [vmem:[#allocation2 + $0x109] sm:$0xff] }
  0x49   :  { %16609 = vmatprep.mubr.msk.f32.mxu0 %vm32_vm1, %v347_v41  ;;  %245 = vst.msk [vmem:[#allocation2 + $0x211] sm:$0xff] %vm32_vm1, %v180_v49  ;;  %246 = vst.msk [vmem:[#allocation2 + $0x219] sm:$0xff] %vm32_vm1, %v181_v50  ;;  %v362_v24 = vld [vmem:[#allocation2 + $0x111] sm:$0xff]  ;;  %v363_v25 = vld [vmem:[#allocation2 + $0x121] sm:$0xff] }
  0x4a   :  { %247 = vst.msk [vmem:[#allocation2 + $0x229] sm:$0xff] %vm32_vm1, %v182_v51  ;;  %248 = vst.msk [vmem:[#allocation2 + $0x231] sm:$0xff] %vm32_vm1, %v183_v52  ;;  %v364_v26 = vld [vmem:[#allocation2 + $0x129] sm:$0xff]  ;;  %v365_v27 = vld [vmem:[#allocation2 + $0x139] sm:$0xff] }
  0x4b   :  { %249 = vst.msk [vmem:[#allocation2 + $0x241] sm:$0xff] %vm32_vm1, %v184_v53  ;;  %250 = vst.msk [vmem:[#allocation2 + $0x249] sm:$0xff] %vm32_vm1, %v185_v55  ;;  %v366_v28 = vld [vmem:[#allocation2 + $0x141] sm:$0xff]  ;;  %v367_v29 = vld [vmem:[#allocation2 + $0x151] sm:$0xff] }
  0x4c   :  { %16610 = vmatmul.mubr.msk.f32.gmra.mrb[8].mxu0 %vm32_vm1, %v348_v44  ;;  %251 = vst.msk [vmem:[#allocation2 + $0x259] sm:$0xff] %vm32_vm1, %v186_v56  ;;  %252 = vst.msk [vmem:[#allocation2 + $0x261] sm:$0xff] %vm32_vm1, %v187_v57  ;;  %v368_v30 = vld [vmem:[#allocation2 + $0x159] sm:$0xff]  ;;  %v369_v31 = vld [vmem:[#allocation2 + $0x169] sm:$0xff] }
  0x4d   :  { %16612 = vmatprep.mubr.msk.f32.mxu0 %vm32_vm1, %v349_v54  ;;  %253 = vst.msk [vmem:[#allocation2 + $0x271] sm:$0xff] %vm32_vm1, %v188_v59  ;;  %254 = vst.msk [vmem:[#allocation2 + $0x279] sm:$0xff] %vm32_vm1, %v189_v61  ;;  %v370_v32 = vld [vmem:[#allocation2 + $0x171] sm:$0xff]  ;;  %v372_v34 = vld [vmem:[#allocation2 + $0x1b9] sm:$0xff] }
  0x4e   :  { %255 = vst.msk [vmem:[#allocation2 + $0x289] sm:$0xff] %vm32_vm1, %v190_v0  ;;  %256 = vst.msk [vmem:[#allocation2 + $0x291] sm:$0xff] %vm32_vm1, %v191_v2  ;;  %v371_v33 = vld [vmem:[#allocation2 + $0x1b1] sm:$0xff]  ;;  %v373_v35 = vld [vmem:[#allocation2 + $0x1c9] sm:$0xff] }
  0x4f   :  { %257 = vst.msk [vmem:[#allocation2 + $0x2a1] sm:$0xff] %vm32_vm1, %v192_v3  ;;  %258 = vst.msk [vmem:[#allocation2 + $0x2a9] sm:$0xff] %vm32_vm1, %v193_v4  ;;  %v374_v36 = vld [vmem:[#allocation2 + $0x1d1] sm:$0xff]  ;;  %v375_v37 = vld [vmem:[#allocation2 + $0x1e1] sm:$0xff] }
  0x50   :  { %16613 = vmatmul.mubr.msk.f32.gmra.mrb[10].mxu0 %vm32_vm1, %v350_v58  ;;  %259 = vst.msk [vmem:[#allocation2 + $0x2b9] sm:$0xff] %vm32_vm1, %v194_v5  ;;  %260 = vst.msk [vmem:[#allocation2 + $0x2c1] sm:$0xff] %vm32_vm1, %v195_v6  ;;  %v376_v38 = vld [vmem:[#allocation2 + $0x1e9] sm:$0xff]  ;;  %v377_v39 = vld [vmem:[#allocation2 + $0x1f9] sm:$0xff] }
  0x51   :  { %16615 = vmatprep.mubr.msk.f32.mxu0 %vm32_vm1, %v351_v60  ;;  %261 = vst.msk [vmem:[#allocation2 + $0x2d1] sm:$0xff] %vm32_vm1, %v196_v8  ;;  %262 = vst.msk [vmem:[#allocation2 + $0x2d9] sm:$0xff] %vm32_vm1, %v197_v9  ;;  %v378_v40 = vld [vmem:[#allocation2 + $0x201] sm:$0xff]  ;;  %v379_v41 = vld [vmem:[#allocation2 + $0x211] sm:$0xff] }
  0x52   :  { %263 = vst.msk [vmem:[#allocation2 + $0x2e9] sm:$0xff] %vm32_vm1, %v198_v11  ;;  %264 = vst.msk [vmem:[#allocation2 + $0x2f1] sm:$0xff] %vm32_vm1, %v199_v12  ;;  %v380_v42 = vld [vmem:[#allocation2 + $0x219] sm:$0xff]  ;;  %v381_v43 = vld [vmem:[#allocation2 + $0x229] sm:$0xff] }
  0x53   :  { %265 = vst.msk [vmem:[#allocation2 + $0x301] sm:$0xff] %vm32_vm1, %v200_v13  ;;  %266 = vst.msk [vmem:[#allocation2 + $0x309] sm:$0xff] %vm32_vm1, %v201_v14  ;;  %v382_v44 = vld [vmem:[#allocation2 + $0x231] sm:$0xff]  ;;  %v383_v45 = vld [vmem:[#allocation2 + $0x241] sm:$0xff] }
  0x54   :  { %16616 = vmatmul.mubr.msk.f32.gmra.mrb[12].mxu0 %vm32_vm1, %v352_v62  ;;  %267 = vst.msk [vmem:[#allocation2 + $0x319] sm:$0xff] %vm32_vm1, %v202_v15  ;;  %268 = vst.msk [vmem:[#allocation2 + $0x321] sm:$0xff] %vm32_vm1, %v203_v16  ;;  %v384_v46 = vld [vmem:[#allocation2 + $0x249] sm:$0xff]  ;;  %v385_v47 = vld [vmem:[#allocation2 + $0x259] sm:$0xff] }
  0x55   :  { %16618 = vmatprep.mubr.msk.f32.mxu0 %vm32_vm1, %v353_v63  ;;  %v386_v48 = vld [vmem:[#allocation2 + $0x261] sm:$0xff]  ;;  %v387_v49 = vld [vmem:[#allocation2 + $0x271] sm:$0xff]  ;;  %v388_v50 = vld [vmem:[#allocation2 + $0x279] sm:$0xff] }
  0x56   :  { %v389_v51 = vld [vmem:[#allocation2 + $0x289] sm:$0xff]  ;;  %v390_v52 = vld [vmem:[#allocation2 + $0x291] sm:$0xff]  ;;  %v391_v53 = vld [vmem:[#allocation2 + $0x2a1] sm:$0xff] }
  0x57   :  { %v392_v54 = vld [vmem:[#allocation2 + $0x2a9] sm:$0xff]  ;;  %v393_v55 = vld [vmem:[#allocation2 + $0x2b9] sm:$0xff]  ;;  %v394_v56 = vld [vmem:[#allocation2 + $0x2c1] sm:$0xff] }
  0x58   :  { %16619 = vmatmul.mubr.msk.f32.gmra.mrb[14].mxu0 %vm32_vm1, %v354_v7  ;;  %v395_v57 = vld [vmem:[#allocation2 + $0x2d1] sm:$0xff]  ;;  %v396_v58 = vld [vmem:[#allocation2 + $0x2d9] sm:$0xff]  ;;  %v275_v3 = vld [vmem:[#allocation2 + $0x8] sm:$0xff] }
  0x59   :  { %16621 = vmatprep.mubr.msk.f32.mxu0 %vm32_vm1, %v355_v10  ;;  %v397_v59 = vld [vmem:[#allocation2 + $0x2e9] sm:$0xff]  ;;  %v398_v60 = vld [vmem:[#allocation2 + $0x2f1] sm:$0xff]  ;;  %v274_v2 = vld [vmem:[#allocation2] sm:$0xff] }
  0x5a   :  { %v399_v61 = vld [vmem:[#allocation2 + $0x301] sm:$0xff]  ;;  %v400_v62 = vld [vmem:[#allocation2 + $0x309] sm:$0xff]  ;;  %v19985_v4 = vld [vmem:[#allocation2 + $0x18] sm:$0xff] }
  0x5b   :  { %v401_v63 = vld [vmem:[#allocation2 + $0x319] sm:$0xff]  ;;  %v402_v0 = vld [vmem:[#allocation2 + $0x321] sm:$0xff]  ;;  %v19990_v5 = vld [vmem:[%s25430_s1 + $0xc] sm:$0xf] }
  0x5c   :  { %16622 = vmatmul.mubr.msk.f32.gmra.mrb[16].mxu0 %vm32_vm1, %v356_v18  ;;  %v19997_v6 = vld [vmem:[#allocation2 + $0x20] sm:$0xff]  ;;  %v19999_v7 = vld [vmem:[#allocation2 + $0x30] sm:$0xff]  ;;  %v20007_v8 = vld [vmem:[#allocation2 + $0x38] sm:$0xff] }
  0x5d   :  { %16624 = vmatprep.mubr.msk.f32.mxu0 %vm32_vm1, %v357_v19  ;;  %v20009_v9 = vld [vmem:[#allocation2 + $0x48] sm:$0xff]  ;;  %v20015_v10 = vld [vmem:[#allocation2 + $0x50] sm:$0xff]  ;;  %v20017_v11 = vld [vmem:[#allocation2 + $0x60] sm:$0xff] }
  0x5e   :  { %v20023_v12 = vld [vmem:[#allocation2 + $0x68] sm:$0xff]  ;;  %v20025_v13 = vld [vmem:[#allocation2 + $0x78] sm:$0xff]  ;;  %v20031_v14 = vld [vmem:[#allocation2 + $0x80] sm:$0xff] }
  0x5f   :  { %v20033_v15 = vld [vmem:[#allocation2 + $0x90] sm:$0xff]  ;;  %v20039_v16 = vld [vmem:[#allocation2 + $0x98] sm:$0xff]  ;;  %v20049_v19 = vld [vmem:[#allocation2 + $0xc0] sm:$0xff] }
  0x60   :  { %16625 = vmatmul.mubr.msk.f32.gmra.mrb[18].mxu0 %vm32_vm1, %v358_v20  ;;  %v20047_v18 = vld [vmem:[#allocation2 + $0xb0] sm:$0xff]  ;;  %v20055_v20 = vld [vmem:[#allocation2 + $0xc8] sm:$0xff]  ;;  %v20238_v1 = vld [vmem:[#allocation2 + $0x1a] sm:$0xff] }
  0x61   :  { %16627 = vmatprep.mubr.msk.f32.mxu0 %vm32_vm1, %v359_v21  ;;  %v20057_v21 = vld [vmem:[#allocation2 + $0xd8] sm:$0xff]  ;;  %25643 = vst [vmem:[#allocation8_spill] sm:$0xff] %v20238_v1 }
  0x64   :  { %16628 = vmatmul.mubr.msk.f32.gmra.mrb[20].mxu0 %vm32_vm1, %v360_v22  ;;  %v20063_v22 = vld [vmem:[#allocation2 + $0xe0] sm:$0xff] }
  0x65   :  { %16630 = vmatprep.mubr.msk.f32.mxu0 %vm32_vm1, %v361_v23  ;;  %v20065_v23 = vld [vmem:[#allocation2 + $0xf0] sm:$0xff] }
  0x68   :  { %16631 = vmatmul.mubr.msk.f32.gmra.mrb[22].mxu0 %vm32_vm1, %v362_v24  ;;  %v20071_v24 = vld [vmem:[#allocation2 + $0xf8] sm:$0xff] }
  0x69   :  { %16633 = vmatprep.mubr.msk.f32.mxu0 %vm32_vm1, %v363_v25  ;;  %v20073_v25 = vld [vmem:[#allocation2 + $0x108] sm:$0xff] }
  0x6c   :  { %16634 = vmatmul.mubr.msk.f32.gmra.mrb[24].mxu0 %vm32_vm1, %v364_v26  ;;  %v20079_v26 = vld [vmem:[#allocation2 + $0x110] sm:$0xff] }
  0x6d   :  { %16636 = vmatprep.mubr.msk.f32.mxu0 %vm32_vm1, %v365_v27  ;;  %v20081_v27 = vld [vmem:[#allocation2 + $0x120] sm:$0xff] }
  0x70   :  { %16637 = vmatmul.mubr.msk.f32.gmra.mrb[26].mxu0 %vm32_vm1, %v366_v28  ;;  %v20087_v28 = vld [vmem:[#allocation2 + $0x128] sm:$0xff] }
  0x71   :  { %16639 = vmatprep.mubr.msk.f32.mxu0 %vm32_vm1, %v367_v29  ;;  %v20089_v29 = vld [vmem:[#allocation2 + $0x138] sm:$0xff] }
  0x74   :  { %16640 = vmatmul.mubr.msk.f32.gmra.mrb[28].mxu0 %vm32_vm1, %v368_v30  ;;  %v20095_v30 = vld [vmem:[#allocation2 + $0x140] sm:$0xff] }
  0x75   :  { %16642 = vmatprep.mubr.msk.f32.mxu0 %vm32_vm1, %v369_v31  ;;  %v20097_v31 = vld [vmem:[#allocation2 + $0x150] sm:$0xff] }
  0x78   :  { %16643 = vmatmul.mubr.msk.f32.gmra.mrb[30].mxu0 %vm32_vm1, %v370_v32  ;;  %v20103_v32 = vld [vmem:[#allocation2 + $0x158] sm:$0xff] }
  0x79   :  { %16645 = vmatprep.mubr.msk.f32.mxu0 %vm32_vm1, %v371_v33  ;;  %v20105_v33 = vld [vmem:[#allocation2 + $0x168] sm:$0xff] }
  0x7c   :  { %16646 = vmatmul.mubr.msk.f32.gmra.mrb[32].mxu0 %vm32_vm1, %v372_v34  ;;  %v20111_v34 = vld [vmem:[#allocation2 + $0x170] sm:$0xff] }
  0x7d   :  { %16648 = vmatprep.mubr.msk.f32.mxu0 %vm32_vm1, %v373_v35  ;;  %v306_v35 = vld [vmem:[#allocation2 + $0x1b0] sm:$0xff] }
  0x80   :  { %16649 = vmatmul.mubr.msk.f32.gmra.mrb[34].mxu0 %vm32_vm1, %v374_v36  ;;  %v307_v36 = vld [vmem:[#allocation2 + $0x1b8] sm:$0xff] }
  0x81   :  { %16651 = vmatprep.mubr.msk.f32.mxu0 %vm32_vm1, %v375_v37  ;;  %v20116_v37 = vld [vmem:[#allocation2 + $0x1c8] sm:$0xff] }
  0x84   :  { %16652 = vmatmul.mubr.msk.f32.gmra.mrb[36].mxu0 %vm32_vm1, %v376_v38  ;;  %v20121_v38 = vld [vmem:[#allocation2 + $0x1d0] sm:$0xff] }
  0x85   :  { %16654 = vmatprep.mubr.msk.f32.mxu0 %vm32_vm1, %v377_v39  ;;  %v20123_v39 = vld [vmem:[#allocation2 + $0x1e0] sm:$0xff] }
  0x88   :  { %16655 = vmatmul.mubr.msk.f32.gmra.mrb[38].mxu0 %vm32_vm1, %v378_v40  ;;  %v20129_v40 = vld [vmem:[#allocation2 + $0x1e8] sm:$0xff] }
  0x89   :  { %16657 = vmatprep.mubr.msk.f32.mxu0 %vm32_vm1, %v379_v41  ;;  %v20131_v41 = vld [vmem:[#allocation2 + $0x1f8] sm:$0xff] }
  0x8c   :  { %16658 = vmatmul.mubr.msk.f32.gmra.mrb[40].mxu0 %vm32_vm1, %v380_v42  ;;  %v20137_v42 = vld [vmem:[#allocation2 + $0x200] sm:$0xff] }
  0x8d   :  { %16660 = vmatprep.mubr.msk.f32.mxu0 %vm32_vm1, %v381_v43  ;;  %v20139_v43 = vld [vmem:[#allocation2 + $0x210] sm:$0xff] }
  0x90   :  { %16661 = vmatmul.mubr.msk.f32.gmra.mrb[42].mxu0 %vm32_vm1, %v382_v44  ;;  %v20145_v44 = vld [vmem:[#allocation2 + $0x218] sm:$0xff] }
  0x91   :  { %16663 = vmatprep.mubr.msk.f32.mxu0 %vm32_vm1, %v383_v45  ;;  %v20147_v45 = vld [vmem:[#allocation2 + $0x228] sm:$0xff] }
  0x94   :  { %16664 = vmatmul.mubr.msk.f32.gmra.mrb[44].mxu0 %vm32_vm1, %v384_v46  ;;  %v20153_v46 = vld [vmem:[#allocation2 + $0x230] sm:$0xff] }
  0x95   :  { %16666 = vmatprep.mubr.msk.f32.mxu0 %vm32_vm1, %v385_v47  ;;  %v20155_v47 = vld [vmem:[#allocation2 + $0x240] sm:$0xff] }
  0x98   :  { %16667 = vmatmul.mubr.msk.f32.gmra.mrb[46].mxu0 %vm32_vm1, %v386_v48  ;;  %v20161_v48 = vld [vmem:[#allocation2 + $0x248] sm:$0xff] }
  0x99   :  { %16669 = vmatprep.mubr.msk.f32.mxu0 %vm32_vm1, %v387_v49  ;;  %v20163_v49 = vld [vmem:[#allocation2 + $0x258] sm:$0xff] }
  0x9c   :  { %16670 = vmatmul.mubr.msk.f32.gmra.mrb[48].mxu0 %vm32_vm1, %v388_v50  ;;  %v20169_v50 = vld [vmem:[#allocation2 + $0x260] sm:$0xff] }
  0x9d   :  { %16672 = vmatprep.mubr.msk.f32.mxu0 %vm32_vm1, %v389_v51  ;;  %v20171_v51 = vld [vmem:[#allocation2 + $0x270] sm:$0xff] }
  0xa0   :  { %16673 = vmatmul.mubr.msk.f32.gmra.mrb[50].mxu0 %vm32_vm1, %v390_v52  ;;  %v20177_v52 = vld [vmem:[#allocation2 + $0x278] sm:$0xff] }
  0xa1   :  { %16675 = vmatprep.mubr.msk.f32.mxu0 %vm32_vm1, %v391_v53  ;;  %v20179_v53 = vld [vmem:[#allocation2 + $0x288] sm:$0xff] }
  0xa4   :  { %16676 = vmatmul.mubr.msk.f32.gmra.mrb[52].mxu0 %vm32_vm1, %v392_v54  ;;  %v20185_v54 = vld [vmem:[#allocation2 + $0x290] sm:$0xff] }
  0xa5   :  { %16678 = vmatprep.mubr.msk.f32.mxu0 %vm32_vm1, %v393_v55  ;;  %v20187_v55 = vld [vmem:[#allocation2 + $0x2a0] sm:$0xff] }
  0xa8   :  { %16679 = vmatmul.mubr.msk.f32.gmra.mrb[54].mxu0 %vm32_vm1, %v394_v56  ;;  %v20193_v56 = vld [vmem:[#allocation2 + $0x2a8] sm:$0xff] }
  0xa9   :  { %16681 = vmatprep.mubr.msk.f32.mxu0 %vm32_vm1, %v395_v57  ;;  %v20195_v57 = vld [vmem:[#allocation2 + $0x2b8] sm:$0xff] }
  0xac   :  { %16682 = vmatmul.mubr.msk.f32.gmra.mrb[56].mxu0 %vm32_vm1, %v396_v58  ;;  %v20201_v58 = vld [vmem:[#allocation2 + $0x2c0] sm:$0xff] }
  0xad   :  { %16684 = vmatprep.mubr.msk.f32.mxu0 %vm32_vm1, %v397_v59  ;;  %v20203_v59 = vld [vmem:[#allocation2 + $0x2d0] sm:$0xff] }
  0xb0   :  { %16685 = vmatmul.mubr.msk.f32.gmra.mrb[58].mxu0 %vm32_vm1, %v398_v60  ;;  %v20209_v60 = vld [vmem:[#allocation2 + $0x2d8] sm:$0xff] }
  0xb1   :  { %16687 = vmatprep.mubr.msk.f32.mxu0 %vm32_vm1, %v399_v61  ;;  %v20211_v61 = vld [vmem:[#allocation2 + $0x2e8] sm:$0xff] }
  0xb4   :  { %16688 = vmatmul.mubr.msk.f32.gmra.mrb[60].mxu0 %vm32_vm1, %v400_v62  ;;  %v20217_v62 = vld [vmem:[#allocation2 + $0x2f0] sm:$0xff] }
  0xb5   :  { %16690 = vmatprep.mubr.msk.f32.mxu0 %vm32_vm1, %v401_v63  ;;  %v20219_v63 = vld [vmem:[#allocation2 + $0x300] sm:$0xff] }
  0xb6   :  { %25639 = vst [vmem:[#allocation4_spill] sm:$0xff] %v20219_v63 }
  0xb8   :  { %16691 = vmatmul.mubr.msk.f32.gmra.mrb[62].mxu0 %vm32_vm1, %v402_v0  ;;  %v20225_v0 = vld [vmem:[#allocation2 + $0x308] sm:$0xff] }
  0xb9   :  { %16695 = vmatprep.mubr.msk.f32.mxu0 %vm32_vm1, %v274_v2  ;;  %25640 = vst [vmem:[#allocation5_spill] sm:$0xff] %v20225_v0  ;;  %v20227_v2 = vld [vmem:[#allocation2 + $0x318] sm:$0xff] }
  0xba   :  { %25641 = vst [vmem:[#allocation6_spill] sm:$0xff] %v20227_v2 }
  0xbc   :  { %16696 = vmatmul.mubr.msk.f32.vlgmr.msra.gmra.mrb[0].mxu0 %vm32_vm1, %v275_v3  ;;  %v20233_v3 = vld [vmem:[#allocation2 + $0x320] sm:$0xff] }
  0xbd   :  { %16792 = vmatpush3.msk.msra.mxu0 %vm597_vm0, %v19931_v17  ;;  %16698 = vmatprep.mubr.msk.f32.mxu0 %vm32_vm1, %v19985_v4  ;;  %v20041_v17 = vld [vmem:[#allocation2 + $0xa8] sm:$0xff]  ;;  %25642 = vst [vmem:[#allocation7_spill] sm:$0xff] %v20233_v3 }
  0xbe   :  { %16889 = vmatprep.subr.msk.mxu0 %vm597_vm0, %v19990_v5 }
  0xc0   :  { %16699 = vmatmul.mubr.msk.f32.gmra.mrb[2].mxu0 %vm32_vm1, %v19997_v6 }
  0xc1   :  { %16701 = vmatprep.mubr.msk.f32.mxu0 %vm32_vm1, %v19999_v7 }
  0xc4   :  { %16702 = vmatmul.mubr.msk.f32.gmra.mrb[4].mxu0 %vm32_vm1, %v20007_v8 }
  0xc5   :  { %16704 = vmatprep.mubr.msk.f32.mxu0 %vm32_vm1, %v20009_v9 }
  0xc8   :  { %16705 = vmatmul.mubr.msk.f32.gmra.mrb[6].mxu0 %vm32_vm1, %v20015_v10 }
  0xc9   :  { %16707 = vmatprep.mubr.msk.f32.mxu0 %vm32_vm1, %v20017_v11 }
  0xcc   :  { %16708 = vmatmul.mubr.msk.f32.gmra.mrb[8].mxu0 %vm32_vm1, %v20023_v12 }
  0xcd   :  { %16710 = vmatprep.mubr.msk.f32.mxu0 %vm32_vm1, %v20025_v13 }
  0xd0   :  { %16711 = vmatmul.mubr.msk.f32.gmra.mrb[10].mxu0 %vm32_vm1, %v20031_v14 }
  0xd1   :  { %16713 = vmatprep.mubr.msk.f32.mxu0 %vm32_vm1, %v20033_v15 }
  0xd4   :  { %16714 = vmatmul.mubr.msk.f32.gmra.mrb[12].mxu0 %vm32_vm1, %v20039_v16 }
  0xd5   :  { %16716 = vmatprep.mubr.msk.f32.mxu0 %vm32_vm1, %v20041_v17 }
  0xd8   :  { %16717 = vmatmul.mubr.msk.f32.gmra.mrb[14].mxu0 %vm32_vm1, %v20047_v18 }
  0xd9   :  { %16719 = vmatprep.mubr.msk.f32.mxu0 %vm32_vm1, %v20049_v19 }
  0xdc   :  { %16720 = vmatmul.mubr.msk.f32.gmra.mrb[16].mxu0 %vm32_vm1, %v20055_v20 }
  0xdd   :  { %16722 = vmatprep.mubr.msk.f32.mxu0 %vm32_vm1, %v20057_v21 }
  0xe0   :  { %16723 = vmatmul.mubr.msk.f32.gmra.mrb[18].mxu0 %vm32_vm1, %v20063_v22 }
  0xe1   :  { %16725 = vmatprep.mubr.msk.f32.mxu0 %vm32_vm1, %v20065_v23 }
  0xe4   :  { %16726 = vmatmul.mubr.msk.f32.gmra.mrb[20].mxu0 %vm32_vm1, %v20071_v24 }
  0xe5   :  { %16728 = vmatprep.mubr.msk.f32.mxu0 %vm32_vm1, %v20073_v25 }
  0xe8   :  { %16729 = vmatmul.mubr.msk.f32.gmra.mrb[22].mxu0 %vm32_vm1, %v20079_v26 }
  0xe9   :  { %16731 = vmatprep.mubr.msk.f32.mxu0 %vm32_vm1, %v20081_v27 }
  0xec   :  { %16732 = vmatmul.mubr.msk.f32.gmra.mrb[24].mxu0 %vm32_vm1, %v20087_v28 }
  0xed   :  { %16734 = vmatprep.mubr.msk.f32.mxu0 %vm32_vm1, %v20089_v29 }
  0xf0   :  { %16735 = vmatmul.mubr.msk.f32.gmra.mrb[26].mxu0 %vm32_vm1, %v20095_v30 }
  0xf1   :  { %16737 = vmatprep.mubr.msk.f32.mxu0 %vm32_vm1, %v20097_v31 }
  0xf4   :  { %16738 = vmatmul.mubr.msk.f32.gmra.mrb[28].mxu0 %vm32_vm1, %v20103_v32 }
  0xf5   :  { %16740 = vmatprep.mubr.msk.f32.mxu0 %vm32_vm1, %v20105_v33 }
  0xf8   :  { %16741 = vmatmul.mubr.msk.f32.gmra.mrb[30].mxu0 %vm32_vm1, %v20111_v34 }
  0xf9   :  { %16743 = vmatprep.mubr.msk.f32.mxu0 %vm32_vm1, %v306_v35  ;;  %v1566_v35 = vld [vmem:[#allocation2 + $0x2] sm:$0xff] }
  0xfc   :  { %16744 = vmatmul.mubr.msk.f32.gmra.mrb[32].mxu0 %vm32_vm1, %v307_v36  ;;  %v1567_v36 = vld [vmem:[#allocation2 + $0xa] sm:$0xff] }
  0xfd   :  { %16746 = vmatprep.mubr.msk.f32.mxu0 %vm32_vm1, %v20116_v37 }
 0x100   :  { %16747 = vmatmul.mubr.msk.f32.gmra.mrb[34].mxu0 %vm32_vm1, %v20121_v38 }
 0x101   :  { %16749 = vmatprep.mubr.msk.f32.mxu0 %vm32_vm1, %v20123_v39 }
 0x104   :  { %16750 = vmatmul.mubr.msk.f32.gmra.mrb[36].mxu0 %vm32_vm1, %v20129_v40 }
 0x105   :  { %16752 = vmatprep.mubr.msk.f32.mxu0 %vm32_vm1, %v20131_v41 }
 0x108   :  { %16753 = vmatmul.mubr.msk.f32.gmra.mrb[38].mxu0 %vm32_vm1, %v20137_v42 }
 0x109   :  { %16755 = vmatprep.mubr.msk.f32.mxu0 %vm32_vm1, %v20139_v43 }
 0x10c   :  { %16756 = vmatmul.mubr.msk.f32.gmra.mrb[40].mxu0 %vm32_vm1, %v20145_v44 }
 0x10d   :  { %16758 = vmatprep.mubr.msk.f32.mxu0 %vm32_vm1, %v20147_v45 }
 0x110   :  { %16759 = vmatmul.mubr.msk.f32.gmra.mrb[42].mxu0 %vm32_vm1, %v20153_v46 }
 0x111   :  { %16761 = vmatprep.mubr.msk.f32.mxu0 %vm32_vm1, %v20155_v47 }
 0x114   :  { %16762 = vmatmul.mubr.msk.f32.gmra.mrb[44].mxu0 %vm32_vm1, %v20161_v48 }
 0x115   :  { %16764 = vmatprep.mubr.msk.f32.mxu0 %vm32_vm1, %v20163_v49 }
 0x118   :  { %16765 = vmatmul.mubr.msk.f32.gmra.mrb[46].mxu0 %vm32_vm1, %v20169_v50 }
 0x119   :  { %16767 = vmatprep.mubr.msk.f32.mxu0 %vm32_vm1, %v20171_v51 }
 0x11c   :  { %16768 = vmatmul.mubr.msk.f32.gmra.mrb[48].mxu0 %vm32_vm1, %v20177_v52 }
 0x11d   :  { %16770 = vmatprep.mubr.msk.f32.mxu0 %vm32_vm1, %v20179_v53 }
 0x120   :  { %16771 = vmatmul.mubr.msk.f32.gmra.mrb[50].mxu0 %vm32_vm1, %v20185_v54 }
 0x121   :  { %16773 = vmatprep.mubr.msk.f32.mxu0 %vm32_vm1, %v20187_v55 }
 0x124   :  { %16774 = vmatmul.mubr.msk.f32.gmra.mrb[52].mxu0 %vm32_vm1, %v20193_v56 }
 0x125   :  { %16776 = vmatprep.mubr.msk.f32.mxu0 %vm32_vm1, %v20195_v57 }
 0x128   :  { %16777 = vmatmul.mubr.msk.f32.gmra.mrb[54].mxu0 %vm32_vm1, %v20201_v58 }
 0x129   :  { %16779 = vmatprep.mubr.msk.f32.mxu0 %vm32_vm1, %v20203_v59 }
 0x12c   :  { %16780 = vmatmul.mubr.msk.f32.gmra.mrb[56].mxu0 %vm32_vm1, %v20209_v60 }
 0x12d   :  { %16782 = vmatprep.mubr.msk.f32.mxu0 %vm32_vm1, %v20211_v61 }
 0x130   :  { %16783 = vmatmul.mubr.msk.f32.gmra.mrb[58].mxu0 %vm32_vm1, %v20217_v62 }
 0x131   :  { %16785 = vmatprep.mubr.msk.f32.mxu0 %vm32_vm1, %v20219_v63  ;;  %v20243_v63 = vld [vmem:[%s25430_s1 + $0x10] sm:$0xf] }
 0x134   :  { %16786 = vmatmul.mubr.msk.f32.gmra.mrb[60].mxu0 %vm32_vm1, %v20225_v0  ;;  %v1598_v0 = vld [vmem:[#allocation2 + $0x1b2] sm:$0xff] }
 0x135   :  { %16788 = vmatprep.mubr.msk.f32.mxu0 %vm32_vm1, %v20227_v2  ;;  %v20250_v2 = vld [vmem:[#allocation2 + $0x22] sm:$0xff] }
 0x136   :  { %25644 = vst [vmem:[#allocation9_spill] sm:$0xff] %v20250_v2 }
 0x138   :  { %16789 = vmatmul.mubr.msk.f32.gmra.mrb[62].mxu0 %vm32_vm1, %v20233_v3  ;;  %v20252_v3 = vld [vmem:[#allocation2 + $0x32] sm:$0xff] }
 0x139   :  { %16793 = vmatprep.mubr.msk.f32.mxu0 %vm32_vm1, %v1566_v35  ;;  %25645 = vst [vmem:[#allocation10_spill] sm:$0xff] %v20252_v3  ;;  %v20260_v35 = vld [vmem:[#allocation2 + $0x3a] sm:$0xff] }
 0x13a   :  { %25646 = vst [vmem:[#allocation11_spill] sm:$0xff] %v20260_v35 }
 0x13c   :  { %16794 = vmatmul.mubr.msk.f32.vlgmr.msra.gmra.mrb[0].mxu0 %vm32_vm1, %v1567_v36  ;;  %v20262_v36 = vld [vmem:[#allocation2 + $0x4a] sm:$0xff] }
 0x13d   :  { %16890 = vmatpush3.msk.msra.mxu0 %vm597_vm0, %v19990_v5  ;;  %16796 = vmatprep.mubr.msk.f32.mxu0 %vm32_vm1, %v20238_v1  ;;  %25647 = vst [vmem:[#allocation12_spill] sm:$0xff] %v20262_v36  ;;  %v20268_v5 = vld [vmem:[#allocation2 + $0x52] sm:$0xff]  ;;  %v20270_v1 = vld [vmem:[#allocation2 + $0x62] sm:$0xff] }
 0x13e   :  { %16987 = vmatprep.subr.msk.mxu0 %vm597_vm0, %v20243_v63  ;;  %25648 = vst [vmem:[#allocation13_spill] sm:$0xff] %v20268_v5  ;;  %25649 = vst [vmem:[#allocation14_spill] sm:$0xff] %v20270_v1 }
 0x140   :  { %16797 = vmatmul.mubr.msk.f32.gmra.mrb[2].mxu0 %vm32_vm1, %v20250_v2  ;;  %v20278_v2 = vld [vmem:[#allocation2 + $0x7a] sm:$0xff] }
 0x141   :  { %16799 = vmatprep.mubr.msk.f32.mxu0 %vm32_vm1, %v20252_v3  ;;  %v20276_v3 = vld [vmem:[#allocation2 + $0x6a] sm:$0xff]  ;;  %25651 = vst [vmem:[#allocation16_spill] sm:$0xff] %v20278_v2 }
 0x142   :  { %25650 = vst [vmem:[#allocation15_spill] sm:$0xff] %v20276_v3 }
 0x144   :  { %16800 = vmatmul.mubr.msk.f32.gmra.mrb[4].mxu0 %vm32_vm1, %v20260_v35  ;;  %v20286_v35 = vld [vmem:[#allocation2 + $0x92] sm:$0xff] }
 0x145   :  { %16802 = vmatprep.mubr.msk.f32.mxu0 %vm32_vm1, %v20262_v36  ;;  %v20284_v36 = vld [vmem:[#allocation2 + $0x82] sm:$0xff]  ;;  %25653 = vst [vmem:[#allocation18_spill] sm:$0xff] %v20286_v35 }
 0x146   :  { %25652 = vst [vmem:[#allocation17_spill] sm:$0xff] %v20284_v36 }
 0x148   :  { %16803 = vmatmul.mubr.msk.f32.gmra.mrb[6].mxu0 %vm32_vm1, %v20268_v5  ;;  %v20294_v5 = vld [vmem:[#allocation2 + $0xaa] sm:$0xff] }
 0x149   :  { %16805 = vmatprep.mubr.msk.f32.mxu0 %vm32_vm1, %v20270_v1  ;;  %v20292_v1 = vld [vmem:[#allocation2 + $0x9a] sm:$0xff]  ;;  %25655 = vst [vmem:[#allocation20_spill] sm:$0xff] %v20294_v5 }
 0x14a   :  { %25654 = vst [vmem:[#allocation19_spill] sm:$0xff] %v20292_v1 }
 0x14c   :  { %16806 = vmatmul.mubr.msk.f32.gmra.mrb[8].mxu0 %vm32_vm1, %v20276_v3  ;;  %v20302_v3 = vld [vmem:[#allocation2 + $0xc2] sm:$0xff] }
 0x14d   :  { %16808 = vmatprep.mubr.msk.f32.mxu0 %vm32_vm1, %v20278_v2  ;;  %v20300_v2 = vld [vmem:[#allocation2 + $0xb2] sm:$0xff]  ;;  %25657 = vst [vmem:[#allocation22_spill] sm:$0xff] %v20302_v3 }
 0x14e   :  { %25656 = vst [vmem:[#allocation21_spill] sm:$0xff] %v20300_v2 }
 0x150   :  { %16809 = vmatmul.mubr.msk.f32.gmra.mrb[10].mxu0 %vm32_vm1, %v20284_v36  ;;  %v20310_v36 = vld [vmem:[#allocation2 + $0xda] sm:$0xff] }
 0x151   :  { %16811 = vmatprep.mubr.msk.f32.mxu0 %vm32_vm1, %v20286_v35  ;;  %v20308_v35 = vld [vmem:[#allocation2 + $0xca] sm:$0xff]  ;;  %25659 = vst [vmem:[#allocation24_spill] sm:$0xff] %v20310_v36 }
 0x152   :  { %25658 = vst [vmem:[#allocation23_spill] sm:$0xff] %v20308_v35 }
 0x154   :  { %16812 = vmatmul.mubr.msk.f32.gmra.mrb[12].mxu0 %vm32_vm1, %v20292_v1  ;;  %v20318_v1 = vld [vmem:[#allocation2 + $0xf2] sm:$0xff] }
 0x155   :  { %16814 = vmatprep.mubr.msk.f32.mxu0 %vm32_vm1, %v20294_v5  ;;  %v20316_v5 = vld [vmem:[#allocation2 + $0xe2] sm:$0xff]  ;;  %25661 = vst [vmem:[#allocation26_spill] sm:$0xff] %v20318_v1 }
 0x156   :  { %25660 = vst [vmem:[#allocation25_spill] sm:$0xff] %v20316_v5 }
 0x158   :  { %16815 = vmatmul.mubr.msk.f32.gmra.mrb[14].mxu0 %vm32_vm1, %v20300_v2  ;;  %v20326_v2 = vld [vmem:[#allocation2 + $0x10a] sm:$0xff] }
 0x159   :  { %16817 = vmatprep.mubr.msk.f32.mxu0 %vm32_vm1, %v20302_v3  ;;  %v20324_v3 = vld [vmem:[#allocation2 + $0xfa] sm:$0xff]  ;;  %25663 = vst [vmem:[#allocation28_spill] sm:$0xff] %v20326_v2 }
 0x15a   :  { %25662 = vst [vmem:[#allocation27_spill] sm:$0xff] %v20324_v3 }
 0x15c   :  { %16818 = vmatmul.mubr.msk.f32.gmra.mrb[16].mxu0 %vm32_vm1, %v20308_v35  ;;  %v20334_v35 = vld [vmem:[#allocation2 + $0x122] sm:$0xff] }
 0x15d   :  { %16820 = vmatprep.mubr.msk.f32.mxu0 %vm32_vm1, %v20310_v36  ;;  %v20332_v36 = vld [vmem:[#allocation2 + $0x112] sm:$0xff]  ;;  %25665 = vst [vmem:[#allocation30_spill] sm:$0xff] %v20334_v35 }
 0x15e   :  { %25664 = vst [vmem:[#allocation29_spill] sm:$0xff] %v20332_v36 }
 0x160   :  { %16821 = vmatmul.mubr.msk.f32.gmra.mrb[18].mxu0 %vm32_vm1, %v20316_v5  ;;  %v20342_v5 = vld [vmem:[#allocation2 + $0x13a] sm:$0xff] }
 0x161   :  { %16823 = vmatprep.mubr.msk.f32.mxu0 %vm32_vm1, %v20318_v1  ;;  %v20340_v1 = vld [vmem:[#allocation2 + $0x12a] sm:$0xff]  ;;  %25667 = vst [vmem:[#allocation32_spill] sm:$0xff] %v20342_v5 }
 0x162   :  { %25666 = vst [vmem:[#allocation31_spill] sm:$0xff] %v20340_v1 }
 0x164   :  { %16824 = vmatmul.mubr.msk.f32.gmra.mrb[20].mxu0 %vm32_vm1, %v20324_v3  ;;  %v20350_v3 = vld [vmem:[#allocation2 + $0x152] sm:$0xff] }
 0x165   :  { %16826 = vmatprep.mubr.msk.f32.mxu0 %vm32_vm1, %v20326_v2  ;;  %v20348_v2 = vld [vmem:[#allocation2 + $0x142] sm:$0xff]  ;;  %25669 = vst [vmem:[#allocation34_spill] sm:$0xff] %v20350_v3 }
 0x166   :  { %25668 = vst [vmem:[#allocation33_spill] sm:$0xff] %v20348_v2 }
 0x168   :  { %16827 = vmatmul.mubr.msk.f32.gmra.mrb[22].mxu0 %vm32_vm1, %v20332_v36  ;;  %v172_v36 = vld [vmem:[%s25431_s0 + $0xf0] sm:$0xff] }
 0x169   :  { %16829 = vmatprep.mubr.msk.f32.mxu0 %vm32_vm1, %v20334_v35  ;;  %237 = vst.msk [vmem:[#allocation2 + $0x181] sm:$0xff] %vm32_vm1, %v172_v36  ;;  %v173_v35 = vld [vmem:[%s25431_s0 + $0xf8] sm:$0xff] }
 0x16a   :  { %238 = vst.msk [vmem:[#allocation2 + $0x189] sm:$0xff] %vm32_vm1, %v173_v35  ;;  %v20372_v36 = vld [vmem:[#allocation2 + $0x172] sm:$0xff]  ;;  %v1599_v35 = vld [vmem:[#allocation2 + $0x1ba] sm:$0xff] }
 0x16b   :  { %25671 = vst [vmem:[#allocation36_spill] sm:$0xff] %v20372_v36 }
 0x16c   :  { %16830 = vmatmul.mubr.msk.f32.gmra.mrb[24].mxu0 %vm32_vm1, %v20340_v1  ;;  %v20366_v1 = vld [vmem:[#allocation2 + $0x16a] sm:$0xff] }
 0x16d   :  { %16832 = vmatprep.mubr.msk.f32.mxu0 %vm32_vm1, %v20342_v5  ;;  %v20364_v5 = vld [vmem:[#allocation2 + $0x15a] sm:$0xff] }
 0x16e   :  { %25670 = vst [vmem:[#allocation35_spill] sm:$0xff] %v20364_v5 }
 0x170   :  { %16833 = vmatmul.mubr.msk.f32.gmra.mrb[26].mxu0 %vm32_vm1, %v20348_v2  ;;  %v20384_v2 = vld [vmem:[#allocation2 + $0x1e2] sm:$0xff] }
 0x171   :  { %16835 = vmatprep.mubr.msk.f32.mxu0 %vm32_vm1, %v20350_v3  ;;  %v20377_v3 = vld [vmem:[#allocation2 + $0x1ca] sm:$0xff]  ;;  %25674 = vst [vmem:[#allocation39_spill] sm:$0xff] %v20384_v2 }
 0x172   :  { %25672 = vst [vmem:[#allocation37_spill] sm:$0xff] %v20377_v3 }
 0x174   :  { %16836 = vmatmul.mubr.msk.f32.gmra.mrb[28].mxu0 %vm32_vm1, %v20364_v5  ;;  %v20382_v5 = vld [vmem:[#allocation2 + $0x1d2] sm:$0xff] }
 0x175   :  { %16838 = vmatprep.mubr.msk.f32.mxu0 %vm32_vm1, %v20366_v1  ;;  %25673 = vst [vmem:[#allocation38_spill] sm:$0xff] %v20382_v5 }
 0x178   :  { %16839 = vmatmul.mubr.msk.f32.gmra.mrb[30].mxu0 %vm32_vm1, %v20372_v36  ;;  %v20390_v36 = vld [vmem:[#allocation2 + $0x1ea] sm:$0xff] }
 0x179   :  { %16841 = vmatprep.mubr.msk.f32.mxu0 %vm32_vm1, %v1598_v0  ;;  %25675 = vst [vmem:[#allocation40_spill] sm:$0xff] %v20390_v36  ;;  %v20392_v0 = vld [vmem:[#allocation2 + $0x1fa] sm:$0xff] }
 0x17a   :  { %25676 = vst [vmem:[#allocation41_spill] sm:$0xff] %v20392_v0 }
 0x17c   :  { %16842 = vmatmul.mubr.msk.f32.gmra.mrb[32].mxu0 %vm32_vm1, %v1599_v35  ;;  %v20398_v35 = vld [vmem:[#allocation2 + $0x202] sm:$0xff] }
 0x17d   :  { %16844 = vmatprep.mubr.msk.f32.mxu0 %vm32_vm1, %v20377_v3  ;;  %25677 = vst [vmem:[#allocation42_spill] sm:$0xff] %v20398_v35  ;;  %v20400_v3 = vld [vmem:[#allocation2 + $0x212] sm:$0xff] }
 0x17e   :  { %25678 = vst [vmem:[#allocation43_spill] sm:$0xff] %v20400_v3 }
 0x180   :  { %16845 = vmatmul.mubr.msk.f32.gmra.mrb[34].mxu0 %vm32_vm1, %v20382_v5  ;;  %v20408_v5 = vld [vmem:[#allocation2 + $0x22a] sm:$0xff] }
 0x181   :  { %16847 = vmatprep.mubr.msk.f32.mxu0 %vm32_vm1, %v20384_v2  ;;  %v20406_v2 = vld [vmem:[#allocation2 + $0x21a] sm:$0xff]  ;;  %25680 = vst [vmem:[#allocation45_spill] sm:$0xff] %v20408_v5 }
 0x182   :  { %25679 = vst [vmem:[#allocation44_spill] sm:$0xff] %v20406_v2 }
 0x184   :  { %16848 = vmatmul.mubr.msk.f32.gmra.mrb[36].mxu0 %vm32_vm1, %v20390_v36  ;;  %v20416_v36 = vld [vmem:[#allocation2 + $0x242] sm:$0xff] }
 0x185   :  { %16850 = vmatprep.mubr.msk.f32.mxu0 %vm32_vm1, %v20392_v0  ;;  %v20414_v0 = vld [vmem:[#allocation2 + $0x232] sm:$0xff]  ;;  %25682 = vst [vmem:[#allocation47_spill] sm:$0xff] %v20416_v36 }
 0x186   :  { %25681 = vst [vmem:[#allocation46_spill] sm:$0xff] %v20414_v0 }
 0x188   :  { %16851 = vmatmul.mubr.msk.f32.gmra.mrb[38].mxu0 %vm32_vm1, %v20398_v35  ;;  %v20424_v35 = vld [vmem:[#allocation2 + $0x25a] sm:$0xff] }
 0x189   :  { %16853 = vmatprep.mubr.msk.f32.mxu0 %vm32_vm1, %v20400_v3  ;;  %v20422_v3 = vld [vmem:[#allocation2 + $0x24a] sm:$0xff]  ;;  %25684 = vst [vmem:[#allocation49_spill] sm:$0xff] %v20424_v35 }
 0x18a   :  { %25683 = vst [vmem:[#allocation48_spill] sm:$0xff] %v20422_v3 }
 0x18c   :  { %16854 = vmatmul.mubr.msk.f32.gmra.mrb[40].mxu0 %vm32_vm1, %v20406_v2  ;;  %v20432_v2 = vld [vmem:[#allocation2 + $0x272] sm:$0xff] }
 0x18d   :  { %16856 = vmatprep.mubr.msk.f32.mxu0 %vm32_vm1, %v20408_v5  ;;  %v20430_v5 = vld [vmem:[#allocation2 + $0x262] sm:$0xff]  ;;  %25686 = vst [vmem:[#allocation51_spill] sm:$0xff] %v20432_v2 }
 0x18e   :  { %25685 = vst [vmem:[#allocation50_spill] sm:$0xff] %v20430_v5 }
 0x190   :  { %16857 = vmatmul.mubr.msk.f32.gmra.mrb[42].mxu0 %vm32_vm1, %v20414_v0  ;;  %v20440_v0 = vld [vmem:[#allocation2 + $0x28a] sm:$0xff] }
 0x191   :  { %16859 = vmatprep.mubr.msk.f32.mxu0 %vm32_vm1, %v20416_v36  ;;  %v20438_v36 = vld [vmem:[#allocation2 + $0x27a] sm:$0xff]  ;;  %25688 = vst [vmem:[#allocation53_spill] sm:$0xff] %v20440_v0 }
 0x192   :  { %25687 = vst [vmem:[#allocation52_spill] sm:$0xff] %v20438_v36 }
 0x194   :  { %16860 = vmatmul.mubr.msk.f32.gmra.mrb[44].mxu0 %vm32_vm1, %v20422_v3  ;;  %v20448_v3 = vld [vmem:[#allocation2 + $0x2a2] sm:$0xff] }
 0x195   :  { %16862 = vmatprep.mubr.msk.f32.mxu0 %vm32_vm1, %v20424_v35  ;;  %v20446_v35 = vld [vmem:[#allocation2 + $0x292] sm:$0xff]  ;;  %25690 = vst [vmem:[#allocation55_spill] sm:$0xff] %v20448_v3 }
 0x196   :  { %25689 = vst [vmem:[#allocation54_spill] sm:$0xff] %v20446_v35 }
 0x198   :  { %16863 = vmatmul.mubr.msk.f32.gmra.mrb[46].mxu0 %vm32_vm1, %v20430_v5  ;;  %v20456_v5 = vld [vmem:[#allocation2 + $0x2ba] sm:$0xff] }
 0x199   :  { %16865 = vmatprep.mubr.msk.f32.mxu0 %vm32_vm1, %v20432_v2  ;;  %v20454_v2 = vld [vmem:[#allocation2 + $0x2aa] sm:$0xff]  ;;  %25692 = vst [vmem:[#allocation57_spill] sm:$0xff] %v20456_v5 }
 0x19a   :  { %25691 = vst [vmem:[#allocation56_spill] sm:$0xff] %v20454_v2 }
 0x19c   :  { %16866 = vmatmul.mubr.msk.f32.gmra.mrb[48].mxu0 %vm32_vm1, %v20438_v36  ;;  %v20464_v36 = vld [vmem:[#allocation2 + $0x2d2] sm:$0xff] }
 0x19d   :  { %16868 = vmatprep.mubr.msk.f32.mxu0 %vm32_vm1, %v20440_v0  ;;  %v20462_v0 = vld [vmem:[#allocation2 + $0x2c2] sm:$0xff]  ;;  %25694 = vst [vmem:[#allocation59_spill] sm:$0xff] %v20464_v36 }
 0x19e   :  { %25693 = vst [vmem:[#allocation58_spill] sm:$0xff] %v20462_v0 }
 0x1a0   :  { %16869 = vmatmul.mubr.msk.f32.gmra.mrb[50].mxu0 %vm32_vm1, %v20446_v35  ;;  %v20472_v35 = vld [vmem:[#allocation2 + $0x2ea] sm:$0xff] }
 0x1a1   :  { %16871 = vmatprep.mubr.msk.f32.mxu0 %vm32_vm1, %v20448_v3  ;;  %v20470_v3 = vld [vmem:[#allocation2 + $0x2da] sm:$0xff]  ;;  %25696 = vst [vmem:[#allocation61_spill] sm:$0xff] %v20472_v35 }
 0x1a2   :  { %25695 = vst [vmem:[#allocation60_spill] sm:$0xff] %v20470_v3 }
 0x1a4   :  { %16872 = vmatmul.mubr.msk.f32.gmra.mrb[52].mxu0 %vm32_vm1, %v20454_v2  ;;  %v20480_v2 = vld [vmem:[#allocation2 + $0x302] sm:$0xff] }
 0x1a5   :  { %16874 = vmatprep.mubr.msk.f32.mxu0 %vm32_vm1, %v20456_v5  ;;  %v20478_v5 = vld [vmem:[#allocation2 + $0x2f2] sm:$0xff] }
 0x1a8   :  { %16875 = vmatmul.mubr.msk.f32.gmra.mrb[54].mxu0 %vm32_vm1, %v20462_v0  ;;  %v204_v0 = vld [vmem:[%s25431_s0 + $0x1f0] sm:$0xff] }
 0x1a9   :  { %16877 = vmatprep.mubr.msk.f32.mxu0 %vm32_vm1, %v20464_v36  ;;  %269 = vst.msk [vmem:[#allocation2 + $0x331] sm:$0xff] %vm32_vm1, %v204_v0  ;;  %v205_v36 = vld [vmem:[%s25431_s0 + $0x1f8] sm:$0xff]  ;;  %v20502_v0 = vld [vmem:[#allocation2 + $0x322] sm:$0xff] }
 0x1aa   :  { %270 = vst.msk [vmem:[#allocation2 + $0x339] sm:$0xff] %vm32_vm1, %v205_v36  ;;  %v20511_v36 = vld [vmem:[%s25430_s1 + $0x14] sm:$0xf] }
 0x1ac   :  { %16878 = vmatmul.mubr.msk.f32.gmra.mrb[56].mxu0 %vm32_vm1, %v20470_v3  ;;  %v20496_v3 = vld [vmem:[#allocation2 + $0x31a] sm:$0xff] }
 0x1ad   :  { %16880 = vmatprep.mubr.msk.f32.mxu0 %vm32_vm1, %v20472_v35  ;;  %v20494_v35 = vld [vmem:[#allocation2 + $0x30a] sm:$0xff] }
 0x1b0   :  { %16881 = vmatmul.mubr.msk.f32.gmra.mrb[58].mxu0 %vm32_vm1, %v20478_v5 }
 0x1b1   :  { %16883 = vmatprep.mubr.msk.f32.mxu0 %vm32_vm1, %v20480_v2 }
 0x1b4   :  { %16884 = vmatmul.mubr.msk.f32.gmra.mrb[60].mxu0 %vm32_vm1, %v20494_v35 }
 0x1b5   :  { %16886 = vmatprep.mubr.msk.f32.mxu0 %vm32_vm1, %v20496_v3 }
 0x1b8   :  { %16887 = vmatmul.mubr.msk.f32.gmra.mrb[62].mxu0 %vm32_vm1, %v20502_v0 }
 0x1b9   :  { %16891 = vmatprep.mubr.msk.f32.mxu0 %vm32_vm1, %v19985_v4  ;;  %v20573_v4 = vld [vmem:[#allocation2 + $0x180] sm:$0xff] }
 0x1bc   :  { %16892 = vmatmul.mubr.msk.f32.vlgmr.msra.gmra.mrb[0].mxu0 %vm32_vm1, %v19997_v6  ;;  %v20579_v6 = vld [vmem:[#allocation2 + $0x188] sm:$0xff] }
 0x1bd   :  { %16988 = vmatpush3.msk.msra.mxu0 %vm597_vm0, %v20243_v63  ;;  %16894 = vmatprep.mubr.msk.f32.mxu0 %vm32_vm1, %v19999_v7  ;;  %v25697_v7 = vld [vmem:[#allocation4_spill] sm:$0xff] }
 0x1be   :  { %17085 = vmatprep.subr.msk.mxu0 %vm597_vm0, %v20511_v36  ;;  %v20836_v63 = vld [vmem:[#allocation2 + $0x279] sm:$0xff] }
 0x1c0   :  { %16895 = vmatmul.mubr.msk.f32.gmra.mrb[2].mxu0 %vm32_vm1, %v20007_v8  ;;  %v25698_v8 = vld [vmem:[#allocation5_spill] sm:$0xff] }
 0x1c1   :  { %16897 = vmatprep.mubr.msk.f32.mxu0 %vm32_vm1, %v20009_v9  ;;  %v25699_v9 = vld [vmem:[#allocation6_spill] sm:$0xff] }
 0x1c4   :  { %16898 = vmatmul.mubr.msk.f32.gmra.mrb[4].mxu0 %vm32_vm1, %v20015_v10  ;;  %v20641_v10 = vld [vmem:[#allocation2 + $0x330] sm:$0xff] }
 0x1c5   :  { %16900 = vmatprep.mubr.msk.f32.mxu0 %vm32_vm1, %v20017_v11  ;;  %v25700_v11 = vld [vmem:[#allocation7_spill] sm:$0xff] }
 0x1c8   :  { %16901 = vmatmul.mubr.msk.f32.gmra.mrb[6].mxu0 %vm32_vm1, %v20023_v12  ;;  %v20647_v12 = vld [vmem:[#allocation2 + $0x338] sm:$0xff] }
 0x1c9   :  { %16903 = vmatprep.mubr.msk.f32.mxu0 %vm32_vm1, %v20025_v13  ;;  %v2986_v13 = vld [vmem:[#allocation2 + $0x19] sm:$0xff] }
 0x1cc   :  { %16904 = vmatmul.mubr.msk.f32.gmra.mrb[8].mxu0 %vm32_vm1, %v20031_v14  ;;  %v2987_v14 = vld [vmem:[#allocation2 + $0x21] sm:$0xff] }
 0x1cd   :  { %16906 = vmatprep.mubr.msk.f32.mxu0 %vm32_vm1, %v20033_v15  ;;  %v20652_v15 = vld [vmem:[#allocation2 + $0x31] sm:$0xff] }
 0x1d0   :  { %16907 = vmatmul.mubr.msk.f32.gmra.mrb[10].mxu0 %vm32_vm1, %v20039_v16  ;;  %v20657_v16 = vld [vmem:[%s25430_s1 + $0x18] sm:$0xf] }
 0x1d1   :  { %16909 = vmatprep.mubr.msk.f32.mxu0 %vm32_vm1, %v20041_v17  ;;  %v20664_v17 = vld [vmem:[#allocation2 + $0x39] sm:$0xff] }
 0x1d4   :  { %16910 = vmatmul.mubr.msk.f32.gmra.mrb[12].mxu0 %vm32_vm1, %v20047_v18  ;;  %v20666_v18 = vld [vmem:[#allocation2 + $0x49] sm:$0xff] }
 0x1d5   :  { %16912 = vmatprep.mubr.msk.f32.mxu0 %vm32_vm1, %v20049_v19  ;;  %v20674_v19 = vld [vmem:[#allocation2 + $0x51] sm:$0xff] }
 0x1d8   :  { %16913 = vmatmul.mubr.msk.f32.gmra.mrb[14].mxu0 %vm32_vm1, %v20055_v20  ;;  %v20676_v20 = vld [vmem:[#allocation2 + $0x61] sm:$0xff] }
 0x1d9   :  { %16915 = vmatprep.mubr.msk.f32.mxu0 %vm32_vm1, %v20057_v21  ;;  %v20682_v21 = vld [vmem:[#allocation2 + $0x69] sm:$0xff] }
 0x1dc   :  { %16916 = vmatmul.mubr.msk.f32.gmra.mrb[16].mxu0 %vm32_vm1, %v20063_v22  ;;  %v20684_v22 = vld [vmem:[#allocation2 + $0x79] sm:$0xff] }
 0x1dd   :  { %16918 = vmatprep.mubr.msk.f32.mxu0 %vm32_vm1, %v20065_v23  ;;  %v20690_v23 = vld [vmem:[#allocation2 + $0x81] sm:$0xff] }
 0x1e0   :  { %16919 = vmatmul.mubr.msk.f32.gmra.mrb[18].mxu0 %vm32_vm1, %v20071_v24  ;;  %v20692_v24 = vld [vmem:[#allocation2 + $0x91] sm:$0xff] }
 0x1e1   :  { %16921 = vmatprep.mubr.msk.f32.mxu0 %vm32_vm1, %v20073_v25  ;;  %v20698_v25 = vld [vmem:[#allocation2 + $0x99] sm:$0xff] }
 0x1e4   :  { %16922 = vmatmul.mubr.msk.f32.gmra.mrb[20].mxu0 %vm32_vm1, %v20079_v26  ;;  %v20700_v26 = vld [vmem:[#allocation2 + $0xa9] sm:$0xff] }
 0x1e5   :  { %16924 = vmatprep.mubr.msk.f32.mxu0 %vm32_vm1, %v20081_v27  ;;  %v20706_v27 = vld [vmem:[#allocation2 + $0xb1] sm:$0xff] }
 0x1e8   :  { %16925 = vmatmul.mubr.msk.f32.gmra.mrb[22].mxu0 %vm32_vm1, %v20087_v28  ;;  %v20708_v28 = vld [vmem:[#allocation2 + $0xc1] sm:$0xff] }
 0x1e9   :  { %16927 = vmatprep.mubr.msk.f32.mxu0 %vm32_vm1, %v20089_v29  ;;  %v20714_v29 = vld [vmem:[#allocation2 + $0xc9] sm:$0xff] }
 0x1ec   :  { %16928 = vmatmul.mubr.msk.f32.gmra.mrb[24].mxu0 %vm32_vm1, %v20095_v30  ;;  %v20716_v30 = vld [vmem:[#allocation2 + $0xd9] sm:$0xff] }
 0x1ed   :  { %16930 = vmatprep.mubr.msk.f32.mxu0 %vm32_vm1, %v20097_v31  ;;  %v20722_v31 = vld [vmem:[#allocation2 + $0xe1] sm:$0xff] }
 0x1f0   :  { %16931 = vmatmul.mubr.msk.f32.gmra.mrb[26].mxu0 %vm32_vm1, %v20103_v32  ;;  %v20724_v32 = vld [vmem:[#allocation2 + $0xf1] sm:$0xff] }
 0x1f1   :  { %16933 = vmatprep.mubr.msk.f32.mxu0 %vm32_vm1, %v20105_v33  ;;  %v20730_v33 = vld [vmem:[#allocation2 + $0xf9] sm:$0xff] }
 0x1f4   :  { %16934 = vmatmul.mubr.msk.f32.gmra.mrb[28].mxu0 %vm32_vm1, %v20111_v34  ;;  %v20732_v34 = vld [vmem:[#allocation2 + $0x109] sm:$0xff] }
 0x1f5   :  { %16936 = vmatprep.mubr.msk.f32.mxu0 %vm32_vm1, %v20573_v4 }
 0x1f8   :  { %16937 = vmatmul.mubr.msk.f32.gmra.mrb[30].mxu0 %vm32_vm1, %v20579_v6 }
 0x1f9   :  { %16939 = vmatprep.mubr.msk.f32.mxu0 %vm32_vm1, %v20116_v37  ;;  %v20738_v37 = vld [vmem:[#allocation2 + $0x111] sm:$0xff] }
 0x1fc   :  { %16940 = vmatmul.mubr.msk.f32.gmra.mrb[32].mxu0 %vm32_vm1, %v20121_v38  ;;  %v20740_v38 = vld [vmem:[#allocation2 + $0x121] sm:$0xff] }
 0x1fd   :  { %16942 = vmatprep.mubr.msk.f32.mxu0 %vm32_vm1, %v20123_v39  ;;  %v20746_v39 = vld [vmem:[#allocation2 + $0x129] sm:$0xff] }
 0x200   :  { %16943 = vmatmul.mubr.msk.f32.gmra.mrb[34].mxu0 %vm32_vm1, %v20129_v40  ;;  %v20748_v40 = vld [vmem:[#allocation2 + $0x139] sm:$0xff] }
 0x201   :  { %16945 = vmatprep.mubr.msk.f32.mxu0 %vm32_vm1, %v20131_v41  ;;  %v20754_v41 = vld [vmem:[#allocation2 + $0x141] sm:$0xff] }
 0x204   :  { %16946 = vmatmul.mubr.msk.f32.gmra.mrb[36].mxu0 %vm32_vm1, %v20137_v42  ;;  %v20756_v42 = vld [vmem:[#allocation2 + $0x151] sm:$0xff] }
 0x205   :  { %16948 = vmatprep.mubr.msk.f32.mxu0 %vm32_vm1, %v20139_v43  ;;  %v20762_v43 = vld [vmem:[#allocation2 + $0x159] sm:$0xff] }
 0x208   :  { %16949 = vmatmul.mubr.msk.f32.gmra.mrb[38].mxu0 %vm32_vm1, %v20145_v44  ;;  %v20764_v44 = vld [vmem:[#allocation2 + $0x169] sm:$0xff] }
 0x209   :  { %16951 = vmatprep.mubr.msk.f32.mxu0 %vm32_vm1, %v20147_v45  ;;  %v20770_v45 = vld [vmem:[#allocation2 + $0x171] sm:$0xff] }
 0x20c   :  { %16952 = vmatmul.mubr.msk.f32.gmra.mrb[40].mxu0 %vm32_vm1, %v20153_v46  ;;  %v20772_v46 = vld [vmem:[#allocation2 + $0x181] sm:$0xff] }
 0x20d   :  { %16954 = vmatprep.mubr.msk.f32.mxu0 %vm32_vm1, %v20155_v47  ;;  %v20778_v47 = vld [vmem:[#allocation2 + $0x189] sm:$0xff] }
 0x210   :  { %16955 = vmatmul.mubr.msk.f32.gmra.mrb[42].mxu0 %vm32_vm1, %v20161_v48  ;;  %v3018_v48 = vld [vmem:[#allocation2 + $0x1c9] sm:$0xff] }
 0x211   :  { %16957 = vmatprep.mubr.msk.f32.mxu0 %vm32_vm1, %v20163_v49  ;;  %v3019_v49 = vld [vmem:[#allocation2 + $0x1d1] sm:$0xff] }
 0x214   :  { %16958 = vmatmul.mubr.msk.f32.gmra.mrb[44].mxu0 %vm32_vm1, %v20169_v50  ;;  %v20783_v50 = vld [vmem:[#allocation2 + $0x1e1] sm:$0xff] }
 0x215   :  { %16960 = vmatprep.mubr.msk.f32.mxu0 %vm32_vm1, %v20171_v51  ;;  %v20788_v51 = vld [vmem:[#allocation2 + $0x1e9] sm:$0xff] }
 0x218   :  { %16961 = vmatmul.mubr.msk.f32.gmra.mrb[46].mxu0 %vm32_vm1, %v20177_v52  ;;  %v20790_v52 = vld [vmem:[#allocation2 + $0x1f9] sm:$0xff] }
 0x219   :  { %16963 = vmatprep.mubr.msk.f32.mxu0 %vm32_vm1, %v20179_v53  ;;  %v20796_v53 = vld [vmem:[#allocation2 + $0x201] sm:$0xff] }
 0x21c   :  { %16964 = vmatmul.mubr.msk.f32.gmra.mrb[48].mxu0 %vm32_vm1, %v20185_v54  ;;  %v20798_v54 = vld [vmem:[#allocation2 + $0x211] sm:$0xff] }
 0x21d   :  { %16966 = vmatprep.mubr.msk.f32.mxu0 %vm32_vm1, %v20187_v55  ;;  %v20804_v55 = vld [vmem:[#allocation2 + $0x219] sm:$0xff] }
 0x220   :  { %16967 = vmatmul.mubr.msk.f32.gmra.mrb[50].mxu0 %vm32_vm1, %v20193_v56  ;;  %v20806_v56 = vld [vmem:[#allocation2 + $0x229] sm:$0xff] }
 0x221   :  { %16969 = vmatprep.mubr.msk.f32.mxu0 %vm32_vm1, %v20195_v57  ;;  %v20812_v57 = vld [vmem:[#allocation2 + $0x231] sm:$0xff] }
 0x224   :  { %16970 = vmatmul.mubr.msk.f32.gmra.mrb[52].mxu0 %vm32_vm1, %v20201_v58  ;;  %v20814_v58 = vld [vmem:[#allocation2 + $0x241] sm:$0xff] }
 0x225   :  { %16972 = vmatprep.mubr.msk.f32.mxu0 %vm32_vm1, %v20203_v59  ;;  %v20820_v59 = vld [vmem:[#allocation2 + $0x249] sm:$0xff] }
 0x228   :  { %16973 = vmatmul.mubr.msk.f32.gmra.mrb[54].mxu0 %vm32_vm1, %v20209_v60  ;;  %v20822_v60 = vld [vmem:[#allocation2 + $0x259] sm:$0xff] }
 0x229   :  { %16975 = vmatprep.mubr.msk.f32.mxu0 %vm32_vm1, %v20211_v61  ;;  %v20828_v61 = vld [vmem:[#allocation2 + $0x261] sm:$0xff] }
 0x22c   :  { %16976 = vmatmul.mubr.msk.f32.gmra.mrb[56].mxu0 %vm32_vm1, %v20217_v62  ;;  %v20830_v62 = vld [vmem:[#allocation2 + $0x271] sm:$0xff] }
 0x22d   :  { %16978 = vmatprep.mubr.msk.f32.mxu0 %vm32_vm1, %v25697_v7  ;;  %v20844_v7 = vld [vmem:[#allocation2 + $0x291] sm:$0xff] }
 0x22e   :  { %25701 = vst [vmem:[#allocation4_spill] sm:$0xff] %v20844_v7 }
 0x230   :  { %16979 = vmatmul.mubr.msk.f32.gmra.mrb[58].mxu0 %vm32_vm1, %v25698_v8  ;;  %v20846_v8 = vld [vmem:[#allocation2 + $0x2a1] sm:$0xff] }
 0x231   :  { %16981 = vmatprep.mubr.msk.f32.mxu0 %vm32_vm1, %v25699_v9  ;;  %25702 = vst [vmem:[#allocation5_spill] sm:$0xff] %v20846_v8  ;;  %v20852_v9 = vld [vmem:[#allocation2 + $0x2a9] sm:$0xff] }
 0x232   :  { %25703 = vst [vmem:[#allocation6_spill] sm:$0xff] %v20852_v9 }
 0x234   :  { %16982 = vmatmul.mubr.msk.f32.gmra.mrb[60].mxu0 %vm32_vm1, %v25700_v11  ;;  %v20854_v11 = vld [vmem:[#allocation2 + $0x2b9] sm:$0xff] }
 0x235   :  { %16984 = vmatprep.mubr.msk.f32.mxu0 %vm32_vm1, %v20641_v10  ;;  %25704 = vst [vmem:[#allocation7_spill] sm:$0xff] %v20854_v11 }
 0x238   :  { %16985 = vmatmul.mubr.msk.f32.gmra.mrb[62].mxu0 %vm32_vm1, %v20647_v12 }
 0x239   :  { %16989 = vmatprep.mubr.msk.f32.mxu0 %vm32_vm1, %v2986_v13  ;;  %v20860_v13 = vld [vmem:[#allocation2 + $0x2c1] sm:$0xff] }
 0x23a   :  { %25705 = vst [vmem:[#allocation62_spill] sm:$0xff] %v20860_v13 }
 0x23c   :  { %16990 = vmatmul.mubr.msk.f32.vlgmr.msra.gmra.mrb[0].mxu0 %vm32_vm1, %v2987_v14  ;;  %v20862_v14 = vld [vmem:[#allocation2 + $0x2d1] sm:$0xff] }
 0x23d   :  { %17086 = vmatpush3.msk.msra.mxu0 %vm597_vm0, %v20511_v36  ;;  %16992 = vmatprep.mubr.msk.f32.mxu0 %vm32_vm1, %v20652_v15  ;;  %v20838_v36 = vld [vmem:[#allocation2 + $0x289] sm:$0xff]  ;;  %25706 = vst [vmem:[#allocation63_spill] sm:$0xff] %v20862_v14 }
 0x23e   :  { %17183 = vmatprep.subr.msk.mxu0 %vm597_vm0, %v20657_v16 }
 0x240   :  { %16993 = vmatmul.mubr.msk.f32.gmra.mrb[2].mxu0 %vm32_vm1, %v20664_v17 }
 0x241   :  { %16995 = vmatprep.mubr.msk.f32.mxu0 %vm32_vm1, %v20666_v18 }
 0x244   :  { %16996 = vmatmul.mubr.msk.f32.gmra.mrb[4].mxu0 %vm32_vm1, %v20674_v19 }
 0x245   :  { %16998 = vmatprep.mubr.msk.f32.mxu0 %vm32_vm1, %v20676_v20 }
 0x248   :  { %16999 = vmatmul.mubr.msk.f32.gmra.mrb[6].mxu0 %vm32_vm1, %v20682_v21 }
 0x249   :  { %17001 = vmatprep.mubr.msk.f32.mxu0 %vm32_vm1, %v20684_v22 }
 0x24c   :  { %17002 = vmatmul.mubr.msk.f32.gmra.mrb[8].mxu0 %vm32_vm1, %v20690_v23 }
 0x24d   :  { %17004 = vmatprep.mubr.msk.f32.mxu0 %vm32_vm1, %v20692_v24 }
 0x250   :  { %17005 = vmatmul.mubr.msk.f32.gmra.mrb[10].mxu0 %vm32_vm1, %v20698_v25 }
 0x251   :  { %17007 = vmatprep.mubr.msk.f32.mxu0 %vm32_vm1, %v20700_v26 }
 0x254   :  { %17008 = vmatmul.mubr.msk.f32.gmra.mrb[12].mxu0 %vm32_vm1, %v20706_v27 }
 0x255   :  { %17010 = vmatprep.mubr.msk.f32.mxu0 %vm32_vm1, %v20708_v28 }
 0x258   :  { %17011 = vmatmul.mubr.msk.f32.gmra.mrb[14].mxu0 %vm32_vm1, %v20714_v29 }
 0x259   :  { %17013 = vmatprep.mubr.msk.f32.mxu0 %vm32_vm1, %v20716_v30 }
 0x25c   :  { %17014 = vmatmul.mubr.msk.f32.gmra.mrb[16].mxu0 %vm32_vm1, %v20722_v31 }
 0x25d   :  { %17016 = vmatprep.mubr.msk.f32.mxu0 %vm32_vm1, %v20724_v32 }
 0x260   :  { %17017 = vmatmul.mubr.msk.f32.gmra.mrb[18].mxu0 %vm32_vm1, %v20730_v33 }
 0x261   :  { %17019 = vmatprep.mubr.msk.f32.mxu0 %vm32_vm1, %v20732_v34 }
 0x264   :  { %17020 = vmatmul.mubr.msk.f32.gmra.mrb[20].mxu0 %vm32_vm1, %v20738_v37 }
 0x265   :  { %17022 = vmatprep.mubr.msk.f32.mxu0 %vm32_vm1, %v20740_v38 }
 0x268   :  { %17023 = vmatmul.mubr.msk.f32.gmra.mrb[22].mxu0 %vm32_vm1, %v20746_v39 }
 0x269   :  { %17025 = vmatprep.mubr.msk.f32.mxu0 %vm32_vm1, %v20748_v40 }
 0x26c   :  { %17026 = vmatmul.mubr.msk.f32.gmra.mrb[24].mxu0 %vm32_vm1, %v20754_v41 }
 0x26d   :  { %17028 = vmatprep.mubr.msk.f32.mxu0 %vm32_vm1, %v20756_v42 }
 0x270   :  { %17029 = vmatmul.mubr.msk.f32.gmra.mrb[26].mxu0 %vm32_vm1, %v20762_v43 }
 0x271   :  { %17031 = vmatprep.mubr.msk.f32.mxu0 %vm32_vm1, %v20764_v44 }
 0x274   :  { %17032 = vmatmul.mubr.msk.f32.gmra.mrb[28].mxu0 %vm32_vm1, %v20770_v45 }
 0x275   :  { %17034 = vmatprep.mubr.msk.f32.mxu0 %vm32_vm1, %v20772_v46 }
 0x278   :  { %17035 = vmatmul.mubr.msk.f32.gmra.mrb[30].mxu0 %vm32_vm1, %v20778_v47 }
 0x279   :  { %17037 = vmatprep.mubr.msk.f32.mxu0 %vm32_vm1, %v3018_v48  ;;  %v20868_v48 = vld [vmem:[#allocation2 + $0x2d9] sm:$0xff] }
 0x27a   :  { %25707 = vst [vmem:[#allocation64_spill] sm:$0xff] %v20868_v48 }
 0x27c   :  { %17038 = vmatmul.mubr.msk.f32.gmra.mrb[32].mxu0 %vm32_vm1, %v3019_v49  ;;  %v20870_v49 = vld [vmem:[#allocation2 + $0x2e9] sm:$0xff] }
 0x27d   :  { %17040 = vmatprep.mubr.msk.f32.mxu0 %vm32_vm1, %v20783_v50  ;;  %25708 = vst [vmem:[#allocation65_spill] sm:$0xff] %v20870_v49 }
 0x280   :  { %17041 = vmatmul.mubr.msk.f32.gmra.mrb[34].mxu0 %vm32_vm1, %v20788_v51 }
 0x281   :  { %17043 = vmatprep.mubr.msk.f32.mxu0 %vm32_vm1, %v20790_v52 }
 0x284   :  { %17044 = vmatmul.mubr.msk.f32.gmra.mrb[36].mxu0 %vm32_vm1, %v20796_v53 }
 0x285   :  { %17046 = vmatprep.mubr.msk.f32.mxu0 %vm32_vm1, %v20798_v54 }
 0x288   :  { %17047 = vmatmul.mubr.msk.f32.gmra.mrb[38].mxu0 %vm32_vm1, %v20804_v55 }
 0x289   :  { %17049 = vmatprep.mubr.msk.f32.mxu0 %vm32_vm1, %v20806_v56 }
 0x28c   :  { %17050 = vmatmul.mubr.msk.f32.gmra.mrb[40].mxu0 %vm32_vm1, %v20812_v57 }
 0x28d   :  { %17052 = vmatprep.mubr.msk.f32.mxu0 %vm32_vm1, %v20814_v58 }
 0x290   :  { %17053 = vmatmul.mubr.msk.f32.gmra.mrb[42].mxu0 %vm32_vm1, %v20820_v59 }
 0x291   :  { %17055 = vmatprep.mubr.msk.f32.mxu0 %vm32_vm1, %v20822_v60 }
 0x294   :  { %17056 = vmatmul.mubr.msk.f32.gmra.mrb[44].mxu0 %vm32_vm1, %v20828_v61 }
 0x295   :  { %17058 = vmatprep.mubr.msk.f32.mxu0 %vm32_vm1, %v20830_v62 }
 0x298   :  { %17059 = vmatmul.mubr.msk.f32.gmra.mrb[46].mxu0 %vm32_vm1, %v20836_v63 }
 0x299   :  { %17061 = vmatprep.mubr.msk.f32.mxu0 %vm32_vm1, %v20838_v36 }
 0x29c   :  { %17062 = vmatmul.mubr.msk.f32.gmra.mrb[48].mxu0 %vm32_vm1, %v20844_v7  ;;  %v25726_v7 = vld [vmem:[#allocation18_spill] sm:$0xff] }
 0x29d   :  { %17064 = vmatprep.mubr.msk.f32.mxu0 %vm32_vm1, %v20846_v8  ;;  %v25722_v8 = vld [vmem:[#allocation14_spill] sm:$0xff] }
 0x2a0   :  { %17065 = vmatmul.mubr.msk.f32.gmra.mrb[50].mxu0 %vm32_vm1, %v20852_v9  ;;  %v20878_v9 = vld [vmem:[#allocation2 + $0x301] sm:$0xff] }
 0x2a1   :  { %17067 = vmatprep.mubr.msk.f32.mxu0 %vm32_vm1, %v20854_v11  ;;  %v20876_v11 = vld [vmem:[#allocation2 + $0x2f1] sm:$0xff]  ;;  %25710 = vst [vmem:[#allocation67_spill] sm:$0xff] %v20878_v9 }
 0x2a2   :  { %25709 = vst [vmem:[#allocation66_spill] sm:$0xff] %v20876_v11 }
 0x2a4   :  { %17068 = vmatmul.mubr.msk.f32.gmra.mrb[52].mxu0 %vm32_vm1, %v20860_v13  ;;  %v20886_v13 = vld [vmem:[#allocation2 + $0x319] sm:$0xff] }
 0x2a5   :  { %17070 = vmatprep.mubr.msk.f32.mxu0 %vm32_vm1, %v20862_v14  ;;  %v20884_v14 = vld [vmem:[#allocation2 + $0x309] sm:$0xff]  ;;  %25712 = vst [vmem:[#allocation69_spill] sm:$0xff] %v20886_v13 }
 0x2a6   :  { %25711 = vst [vmem:[#allocation68_spill] sm:$0xff] %v20884_v14 }
 0x2a8   :  { %17071 = vmatmul.mubr.msk.f32.gmra.mrb[54].mxu0 %vm32_vm1, %v20868_v48  ;;  %v20894_v48 = vld [vmem:[#allocation2 + $0x331] sm:$0xff] }
 0x2a9   :  { %17073 = vmatprep.mubr.msk.f32.mxu0 %vm32_vm1, %v20870_v49  ;;  %v20892_v49 = vld [vmem:[#allocation2 + $0x321] sm:$0xff]  ;;  %25714 = vst [vmem:[#allocation71_spill] sm:$0xff] %v20894_v48 }
 0x2aa   :  { %25713 = vst [vmem:[#allocation70_spill] sm:$0xff] %v20892_v49 }
 0x2ac   :  { %17074 = vmatmul.mubr.msk.f32.gmra.mrb[56].mxu0 %vm32_vm1, %v20876_v11  ;;  %v25716_v11 = vld [vmem:[#allocation8_spill] sm:$0xff] }
 0x2ad   :  { %17076 = vmatprep.mubr.msk.f32.mxu0 %vm32_vm1, %v20878_v9  ;;  %v20900_v9 = vld [vmem:[#allocation2 + $0x339] sm:$0xff] }
 0x2ae   :  { %25715 = vst [vmem:[#allocation72_spill] sm:$0xff] %v20900_v9 }
 0x2b0   :  { %17077 = vmatmul.mubr.msk.f32.gmra.mrb[58].mxu0 %vm32_vm1, %v20884_v14  ;;  %v25717_v14 = vld [vmem:[#allocation9_spill] sm:$0xff] }
 0x2b1   :  { %17079 = vmatprep.mubr.msk.f32.mxu0 %vm32_vm1, %v20886_v13  ;;  %v20909_v13 = vld [vmem:[%s25430_s1 + $0x1c] sm:$0xf] }
 0x2b4   :  { %17080 = vmatmul.mubr.msk.f32.gmra.mrb[60].mxu0 %vm32_vm1, %v20892_v49  ;;  %v25721_v49 = vld [vmem:[#allocation13_spill] sm:$0xff] }
 0x2b5   :  { %17082 = vmatprep.mubr.msk.f32.mxu0 %vm32_vm1, %v20894_v48  ;;  %v25718_v48 = vld [vmem:[#allocation10_spill] sm:$0xff] }
 0x2b8   :  { %17083 = vmatmul.mubr.msk.f32.gmra.mrb[62].mxu0 %vm32_vm1, %v20900_v9  ;;  %v25719_v9 = vld [vmem:[#allocation11_spill] sm:$0xff] }
 0x2b9   :  { %17087 = vmatprep.mubr.msk.f32.mxu0 %vm32_vm1, %v25716_v11  ;;  %v25720_v11 = vld [vmem:[#allocation12_spill] sm:$0xff] }
 0x2bc   :  { %17088 = vmatmul.mubr.msk.f32.vlgmr.msra.gmra.mrb[0].mxu0 %vm32_vm1, %v25717_v14  ;;  %v25723_v14 = vld [vmem:[#allocation15_spill] sm:$0xff] }
 0x2bd   :  { %17184 = vmatpush3.msk.msra.mxu0 %vm597_vm0, %v20657_v16  ;;  %17090 = vmatprep.mubr.msk.f32.mxu0 %vm32_vm1, %v25718_v48  ;;  %v25724_v16 = vld [vmem:[#allocation16_spill] sm:$0xff]  ;;  %v25725_v48 = vld [vmem:[#allocation17_spill] sm:$0xff] }
 0x2be   :  { %17281 = vmatprep.subr.msk.mxu0 %vm597_vm0, %v20909_v13 }
 0x2c0   :  { %17091 = vmatmul.mubr.msk.f32.gmra.mrb[2].mxu0 %vm32_vm1, %v25719_v9  ;;  %v25727_v9 = vld [vmem:[#allocation19_spill] sm:$0xff] }
 0x2c1   :  { %17093 = vmatprep.mubr.msk.f32.mxu0 %vm32_vm1, %v25720_v11  ;;  %v25728_v11 = vld [vmem:[#allocation20_spill] sm:$0xff] }
 0x2c4   :  { %17094 = vmatmul.mubr.msk.f32.gmra.mrb[4].mxu0 %vm32_vm1, %v25721_v49  ;;  %v25729_v49 = vld [vmem:[#allocation21_spill] sm:$0xff] }
 0x2c5   :  { %17096 = vmatprep.mubr.msk.f32.mxu0 %vm32_vm1, %v25722_v8  ;;  %v25730_v8 = vld [vmem:[#allocation22_spill] sm:$0xff] }
 0x2c8   :  { %17097 = vmatmul.mubr.msk.f32.gmra.mrb[6].mxu0 %vm32_vm1, %v25723_v14  ;;  %v25731_v14 = vld [vmem:[#allocation23_spill] sm:$0xff] }
 0x2c9   :  { %17099 = vmatprep.mubr.msk.f32.mxu0 %vm32_vm1, %v25724_v16  ;;  %v25732_v16 = vld [vmem:[#allocation24_spill] sm:$0xff] }
 0x2cc   :  { %17100 = vmatmul.mubr.msk.f32.gmra.mrb[8].mxu0 %vm32_vm1, %v25725_v48  ;;  %v25733_v48 = vld [vmem:[#allocation25_spill] sm:$0xff] }
 0x2cd   :  { %17102 = vmatprep.mubr.msk.f32.mxu0 %vm32_vm1, %v25726_v7  ;;  %v25734_v7 = vld [vmem:[#allocation26_spill] sm:$0xff] }
 0x2d0   :  { %17103 = vmatmul.mubr.msk.f32.gmra.mrb[10].mxu0 %vm32_vm1, %v25727_v9  ;;  %v25735_v9 = vld [vmem:[#allocation27_spill] sm:$0xff] }
 0x2d1   :  { %17105 = vmatprep.mubr.msk.f32.mxu0 %vm32_vm1, %v25728_v11  ;;  %v25736_v11 = vld [vmem:[#allocation28_spill] sm:$0xff] }
 0x2d4   :  { %17106 = vmatmul.mubr.msk.f32.gmra.mrb[12].mxu0 %vm32_vm1, %v25729_v49  ;;  %v25737_v49 = vld [vmem:[#allocation29_spill] sm:$0xff] }
 0x2d5   :  { %17108 = vmatprep.mubr.msk.f32.mxu0 %vm32_vm1, %v25730_v8  ;;  %v25738_v8 = vld [vmem:[#allocation30_spill] sm:$0xff] }
 0x2d8   :  { %17109 = vmatmul.mubr.msk.f32.gmra.mrb[14].mxu0 %vm32_vm1, %v25731_v14  ;;  %v25739_v14 = vld [vmem:[#allocation31_spill] sm:$0xff] }
 0x2d9   :  { %17111 = vmatprep.mubr.msk.f32.mxu0 %vm32_vm1, %v25732_v16  ;;  %v25740_v16 = vld [vmem:[#allocation32_spill] sm:$0xff] }
 0x2dc   :  { %17112 = vmatmul.mubr.msk.f32.gmra.mrb[16].mxu0 %vm32_vm1, %v25733_v48  ;;  %v25741_v48 = vld [vmem:[#allocation33_spill] sm:$0xff] }
 0x2dd   :  { %17114 = vmatprep.mubr.msk.f32.mxu0 %vm32_vm1, %v25734_v7  ;;  %v25742_v7 = vld [vmem:[#allocation34_spill] sm:$0xff] }
 0x2e0   :  { %17115 = vmatmul.mubr.msk.f32.gmra.mrb[18].mxu0 %vm32_vm1, %v25735_v9  ;;  %v25743_v9 = vld [vmem:[#allocation35_spill] sm:$0xff] }
 0x2e1   :  { %17117 = vmatprep.mubr.msk.f32.mxu0 %vm32_vm1, %v25736_v11  ;;  %v20971_v11 = vld [vmem:[#allocation2 + $0x182] sm:$0xff] }
 0x2e4   :  { %17118 = vmatmul.mubr.msk.f32.gmra.mrb[20].mxu0 %vm32_vm1, %v25737_v49  ;;  %v25744_v49 = vld [vmem:[#allocation36_spill] sm:$0xff] }
 0x2e5   :  { %17120 = vmatprep.mubr.msk.f32.mxu0 %vm32_vm1, %v25738_v8  ;;  %v20977_v8 = vld [vmem:[#allocation2 + $0x18a] sm:$0xff] }
 0x2e6   :  { %25745 = vst [vmem:[#allocation8_spill] sm:$0xff] %v20977_v8 }
 0x2e8   :  { %17121 = vmatmul.mubr.msk.f32.gmra.mrb[22].mxu0 %vm32_vm1, %v25739_v14  ;;  %v25746_v14 = vld [vmem:[#allocation37_spill] sm:$0xff] }
 0x2e9   :  { %17123 = vmatprep.mubr.msk.f32.mxu0 %vm32_vm1, %v25740_v16  ;;  %v25747_v16 = vld [vmem:[#allocation38_spill] sm:$0xff] }
 0x2ec   :  { %17124 = vmatmul.mubr.msk.f32.gmra.mrb[24].mxu0 %vm32_vm1, %v25741_v48  ;;  %v25749_v48 = vld [vmem:[#allocation40_spill] sm:$0xff] }
 0x2ed   :  { %17126 = vmatprep.mubr.msk.f32.mxu0 %vm32_vm1, %v25742_v7  ;;  %v25750_v7 = vld [vmem:[#allocation41_spill] sm:$0xff] }
 0x2f0   :  { %17127 = vmatmul.mubr.msk.f32.gmra.mrb[26].mxu0 %vm32_vm1, %v25743_v9  ;;  %v25751_v9 = vld [vmem:[#allocation42_spill] sm:$0xff] }
 0x2f1   :  { %17129 = vmatprep.mubr.msk.f32.mxu0 %vm32_vm1, %v20366_v1  ;;  %v25748_v1 = vld [vmem:[#allocation39_spill] sm:$0xff] }
 0x2f4   :  { %17130 = vmatmul.mubr.msk.f32.gmra.mrb[28].mxu0 %vm32_vm1, %v25744_v49  ;;  %v25752_v49 = vld [vmem:[#allocation43_spill] sm:$0xff] }
 0x2f5   :  { %17132 = vmatprep.mubr.msk.f32.mxu0 %vm32_vm1, %v20971_v11 }
 0x2f8   :  { %17133 = vmatmul.mubr.msk.f32.gmra.mrb[30].mxu0 %vm32_vm1, %v20977_v8  ;;  %v25753_v8 = vld [vmem:[#allocation44_spill] sm:$0xff] }
 0x2f9   :  { %17135 = vmatprep.mubr.msk.f32.mxu0 %vm32_vm1, %v25746_v14  ;;  %v25754_v14 = vld [vmem:[#allocation45_spill] sm:$0xff] }
 0x2fc   :  { %17136 = vmatmul.mubr.msk.f32.gmra.mrb[32].mxu0 %vm32_vm1, %v25747_v16  ;;  %v25755_v16 = vld [vmem:[#allocation46_spill] sm:$0xff] }
 0x2fd   :  { %17138 = vmatprep.mubr.msk.f32.mxu0 %vm32_vm1, %v25748_v1  ;;  %v25756_v1 = vld [vmem:[#allocation47_spill] sm:$0xff] }
 0x300   :  { %17139 = vmatmul.mubr.msk.f32.gmra.mrb[34].mxu0 %vm32_vm1, %v25749_v48  ;;  %v25757_v48 = vld [vmem:[#allocation48_spill] sm:$0xff] }
 0x301   :  { %17141 = vmatprep.mubr.msk.f32.mxu0 %vm32_vm1, %v25750_v7  ;;  %v25758_v7 = vld [vmem:[#allocation49_spill] sm:$0xff] }
 0x304   :  { %17142 = vmatmul.mubr.msk.f32.gmra.mrb[36].mxu0 %vm32_vm1, %v25751_v9  ;;  %v25759_v9 = vld [vmem:[#allocation50_spill] sm:$0xff] }
 0x305   :  { %17144 = vmatprep.mubr.msk.f32.mxu0 %vm32_vm1, %v25752_v49  ;;  %v25760_v49 = vld [vmem:[#allocation51_spill] sm:$0xff] }
 0x308   :  { %17145 = vmatmul.mubr.msk.f32.gmra.mrb[38].mxu0 %vm32_vm1, %v25753_v8  ;;  %v25761_v8 = vld [vmem:[#allocation52_spill] sm:$0xff] }
 0x309   :  { %17147 = vmatprep.mubr.msk.f32.mxu0 %vm32_vm1, %v25754_v14  ;;  %v25762_v14 = vld [vmem:[#allocation53_spill] sm:$0xff] }
 0x30c   :  { %17148 = vmatmul.mubr.msk.f32.gmra.mrb[40].mxu0 %vm32_vm1, %v25755_v16  ;;  %v25763_v16 = vld [vmem:[#allocation54_spill] sm:$0xff] }
 0x30d   :  { %17150 = vmatprep.mubr.msk.f32.mxu0 %vm32_vm1, %v25756_v1  ;;  %v25764_v1 = vld [vmem:[#allocation55_spill] sm:$0xff] }
 0x310   :  { %17151 = vmatmul.mubr.msk.f32.gmra.mrb[42].mxu0 %vm32_vm1, %v25757_v48  ;;  %v25765_v48 = vld [vmem:[#allocation56_spill] sm:$0xff] }
 0x311   :  { %17153 = vmatprep.mubr.msk.f32.mxu0 %vm32_vm1, %v25758_v7  ;;  %v25766_v7 = vld [vmem:[#allocation57_spill] sm:$0xff] }
 0x314   :  { %17154 = vmatmul.mubr.msk.f32.gmra.mrb[44].mxu0 %vm32_vm1, %v25759_v9  ;;  %v25767_v9 = vld [vmem:[#allocation58_spill] sm:$0xff] }
 0x315   :  { %17156 = vmatprep.mubr.msk.f32.mxu0 %vm32_vm1, %v25760_v49  ;;  %v25768_v49 = vld [vmem:[#allocation59_spill] sm:$0xff] }
 0x318   :  { %17157 = vmatmul.mubr.msk.f32.gmra.mrb[46].mxu0 %vm32_vm1, %v25761_v8  ;;  %v25769_v8 = vld [vmem:[#allocation60_spill] sm:$0xff] }
 0x319   :  { %17159 = vmatprep.mubr.msk.f32.mxu0 %vm32_vm1, %v25762_v14  ;;  %v25770_v14 = vld [vmem:[#allocation61_spill] sm:$0xff] }
 0x31c   :  { %17160 = vmatmul.mubr.msk.f32.gmra.mrb[48].mxu0 %vm32_vm1, %v25763_v16  ;;  %v21039_v16 = vld [vmem:[#allocation2 + $0x332] sm:$0xff] }
 0x31d   :  { %17162 = vmatprep.mubr.msk.f32.mxu0 %vm32_vm1, %v25764_v1  ;;  %v21045_v1 = vld [vmem:[#allocation2 + $0x33a] sm:$0xff] }
 0x320   :  { %17163 = vmatmul.mubr.msk.f32.gmra.mrb[50].mxu0 %vm32_vm1, %v25765_v48  ;;  %v4411_v48 = vld [vmem:[#allocation2 + $0x60] sm:$0xff] }
 0x321   :  { %17165 = vmatprep.mubr.msk.f32.mxu0 %vm32_vm1, %v25766_v7  ;;  %v4412_v7 = vld [vmem:[#allocation2 + $0x68] sm:$0xff] }
 0x324   :  { %17166 = vmatmul.mubr.msk.f32.gmra.mrb[52].mxu0 %vm32_vm1, %v25767_v9  ;;  %v4413_v9 = vld [vmem:[#allocation2 + $0x78] sm:$0xff] }
 0x325   :  { %17168 = vmatprep.mubr.msk.f32.mxu0 %vm32_vm1, %v25768_v49  ;;  %v4414_v49 = vld [vmem:[#allocation2 + $0x80] sm:$0xff] }
 0x328   :  { %17169 = vmatmul.mubr.msk.f32.gmra.mrb[54].mxu0 %vm32_vm1, %v25769_v8  ;;  %v4415_v8 = vld [vmem:[#allocation2 + $0x90] sm:$0xff] }
 0x329   :  { %17171 = vmatprep.mubr.msk.f32.mxu0 %vm32_vm1, %v25770_v14  ;;  %v4417_v14 = vld [vmem:[#allocation2 + $0xa8] sm:$0xff] }
 0x32c   :  { %17172 = vmatmul.mubr.msk.f32.gmra.mrb[56].mxu0 %vm32_vm1, %v20478_v5  ;;  %v4407_v5 = vld [vmem:[#allocation2 + $0x30] sm:$0xff] }
 0x32d   :  { %17174 = vmatprep.mubr.msk.f32.mxu0 %vm32_vm1, %v20480_v2  ;;  %v4408_v2 = vld [vmem:[#allocation2 + $0x38] sm:$0xff] }
 0x330   :  { %17175 = vmatmul.mubr.msk.f32.gmra.mrb[58].mxu0 %vm32_vm1, %v20494_v35  ;;  %v4409_v35 = vld [vmem:[#allocation2 + $0x48] sm:$0xff] }
 0x331   :  { %17177 = vmatprep.mubr.msk.f32.mxu0 %vm32_vm1, %v20496_v3  ;;  %v21053_v3 = vld [vmem:[%s25430_s1 + $0x20] sm:$0xf] }
 0x334   :  { %17178 = vmatmul.mubr.msk.f32.gmra.mrb[60].mxu0 %vm32_vm1, %v20502_v0  ;;  %v4410_v0 = vld [vmem:[#allocation2 + $0x50] sm:$0xff] }
 0x335   :  { %17180 = vmatprep.mubr.msk.f32.mxu0 %vm32_vm1, %v21039_v16 }
 0x338   :  { %17181 = vmatmul.mubr.msk.f32.gmra.mrb[62].mxu0 %vm32_vm1, %v21045_v1 }
 0x339   :  { %17185 = vmatprep.mubr.msk.f32.mxu0 %vm32_vm1, %v4407_v5  ;;  %v4418_v5 = vld [vmem:[#allocation2 + $0xb0] sm:$0xff] }
 0x33c   :  { %17186 = vmatmul.mubr.msk.f32.vlgmr.msra.gmra.mrb[0].mxu0 %vm32_vm1, %v4408_v2  ;;  %v4419_v2 = vld [vmem:[#allocation2 + $0xc0] sm:$0xff] }
 0x33d   :  { %17282 = vmatpush3.msk.msra.mxu0 %vm597_vm0, %v20909_v13  ;;  %17188 = vmatprep.mubr.msk.f32.mxu0 %vm32_vm1, %v4409_v35  ;;  %v4416_v13 = vld [vmem:[#allocation2 + $0x98] sm:$0xff]  ;;  %v4420_v35 = vld [vmem:[#allocation2 + $0xc8] sm:$0xff] }
 0x33e   :  { %17379 = vmatprep.subr.msk.mxu0 %vm597_vm0, %v21053_v3 }
 0x340   :  { %17189 = vmatmul.mubr.msk.f32.gmra.mrb[2].mxu0 %vm32_vm1, %v4410_v0  ;;  %v4421_v0 = vld [vmem:[#allocation2 + $0xd8] sm:$0xff] }
 0x341   :  { %17191 = vmatprep.mubr.msk.f32.mxu0 %vm32_vm1, %v4411_v48  ;;  %v4422_v48 = vld [vmem:[#allocation2 + $0xe0] sm:$0xff] }
 0x344   :  { %17192 = vmatmul.mubr.msk.f32.gmra.mrb[4].mxu0 %vm32_vm1, %v4412_v7  ;;  %v4423_v7 = vld [vmem:[#allocation2 + $0xf0] sm:$0xff] }
 0x345   :  { %17194 = vmatprep.mubr.msk.f32.mxu0 %vm32_vm1, %v4413_v9  ;;  %v4424_v9 = vld [vmem:[#allocation2 + $0xf8] sm:$0xff] }
 0x348   :  { %17195 = vmatmul.mubr.msk.f32.gmra.mrb[6].mxu0 %vm32_vm1, %v4414_v49  ;;  %v4425_v49 = vld [vmem:[#allocation2 + $0x108] sm:$0xff] }
 0x349   :  { %17197 = vmatprep.mubr.msk.f32.mxu0 %vm32_vm1, %v4415_v8  ;;  %v4426_v8 = vld [vmem:[#allocation2 + $0x110] sm:$0xff] }
 0x34c   :  { %17198 = vmatmul.mubr.msk.f32.gmra.mrb[8].mxu0 %vm32_vm1, %v4416_v13  ;;  %v4427_v13 = vld [vmem:[#allocation2 + $0x120] sm:$0xff] }
 0x34d   :  { %17200 = vmatprep.mubr.msk.f32.mxu0 %vm32_vm1, %v4417_v14  ;;  %v4428_v14 = vld [vmem:[#allocation2 + $0x128] sm:$0xff] }
 0x350   :  { %17201 = vmatmul.mubr.msk.f32.gmra.mrb[10].mxu0 %vm32_vm1, %v4418_v5  ;;  %v4429_v5 = vld [vmem:[#allocation2 + $0x138] sm:$0xff] }
 0x351   :  { %17203 = vmatprep.mubr.msk.f32.mxu0 %vm32_vm1, %v4419_v2  ;;  %v4430_v2 = vld [vmem:[#allocation2 + $0x140] sm:$0xff] }
 0x354   :  { %17204 = vmatmul.mubr.msk.f32.gmra.mrb[12].mxu0 %vm32_vm1, %v4420_v35  ;;  %v4431_v35 = vld [vmem:[#allocation2 + $0x150] sm:$0xff] }
 0x355   :  { %17206 = vmatprep.mubr.msk.f32.mxu0 %vm32_vm1, %v4421_v0  ;;  %v4432_v0 = vld [vmem:[#allocation2 + $0x158] sm:$0xff] }
 0x358   :  { %17207 = vmatmul.mubr.msk.f32.gmra.mrb[14].mxu0 %vm32_vm1, %v4422_v48  ;;  %v4433_v48 = vld [vmem:[#allocation2 + $0x168] sm:$0xff] }
 0x359   :  { %17209 = vmatprep.mubr.msk.f32.mxu0 %vm32_vm1, %v4423_v7  ;;  %v4434_v7 = vld [vmem:[#allocation2 + $0x170] sm:$0xff] }
 0x35c   :  { %17210 = vmatmul.mubr.msk.f32.gmra.mrb[16].mxu0 %vm32_vm1, %v4424_v9  ;;  %v4437_v9 = vld [vmem:[#allocation2 + $0x198] sm:$0xff] }
 0x35d   :  { %17212 = vmatprep.mubr.msk.f32.mxu0 %vm32_vm1, %v4425_v49  ;;  %v4438_v49 = vld [vmem:[#allocation2 + $0x1a0] sm:$0xff] }
 0x360   :  { %17213 = vmatmul.mubr.msk.f32.gmra.mrb[18].mxu0 %vm32_vm1, %v4426_v8  ;;  %v4439_v8 = vld [vmem:[#allocation2 + $0x1e0] sm:$0xff] }
 0x361   :  { %17215 = vmatprep.mubr.msk.f32.mxu0 %vm32_vm1, %v4427_v13  ;;  %v4440_v13 = vld [vmem:[#allocation2 + $0x1e8] sm:$0xff] }
 0x364   :  { %17216 = vmatmul.mubr.msk.f32.gmra.mrb[20].mxu0 %vm32_vm1, %v4428_v14  ;;  %v4441_v14 = vld [vmem:[#allocation2 + $0x1f8] sm:$0xff] }
 0x365   :  { %17218 = vmatprep.mubr.msk.f32.mxu0 %vm32_vm1, %v4429_v5  ;;  %v4442_v5 = vld [vmem:[#allocation2 + $0x200] sm:$0xff] }
 0x368   :  { %17219 = vmatmul.mubr.msk.f32.gmra.mrb[22].mxu0 %vm32_vm1, %v4430_v2  ;;  %v4445_v2 = vld [vmem:[#allocation2 + $0x228] sm:$0xff] }
 0x369   :  { %17221 = vmatprep.mubr.msk.f32.mxu0 %vm32_vm1, %v4431_v35  ;;  %v4446_v35 = vld [vmem:[#allocation2 + $0x230] sm:$0xff] }
 0x36c   :  { %17222 = vmatmul.mubr.msk.f32.gmra.mrb[24].mxu0 %vm32_vm1, %v4432_v0  ;;  %v4447_v0 = vld [vmem:[#allocation2 + $0x240] sm:$0xff] }
 0x36d   :  { %17224 = vmatprep.mubr.msk.f32.mxu0 %vm32_vm1, %v4433_v48  ;;  %v4448_v48 = vld [vmem:[#allocation2 + $0x248] sm:$0xff] }
 0x370   :  { %17225 = vmatmul.mubr.msk.f32.gmra.mrb[26].mxu0 %vm32_vm1, %v4434_v7  ;;  %v4449_v7 = vld [vmem:[#allocation2 + $0x258] sm:$0xff] }
 0x371   :  { %17227 = vmatprep.mubr.msk.f32.mxu0 %vm32_vm1, %v20573_v4  ;;  %v4443_v4 = vld [vmem:[#allocation2 + $0x210] sm:$0xff] }
 0x374   :  { %17228 = vmatmul.mubr.msk.f32.gmra.mrb[28].mxu0 %vm32_vm1, %v20579_v6  ;;  %v4444_v6 = vld [vmem:[#allocation2 + $0x218] sm:$0xff] }
 0x375   :  { %17230 = vmatprep.mubr.msk.f32.mxu0 %vm32_vm1, %v4437_v9  ;;  %v4450_v9 = vld [vmem:[#allocation2 + $0x260] sm:$0xff] }
 0x378   :  { %17231 = vmatmul.mubr.msk.f32.gmra.mrb[30].mxu0 %vm32_vm1, %v4438_v49  ;;  %v4451_v49 = vld [vmem:[#allocation2 + $0x270] sm:$0xff] }
 0x379   :  { %17233 = vmatprep.mubr.msk.f32.mxu0 %vm32_vm1, %v4439_v8  ;;  %v4452_v8 = vld [vmem:[#allocation2 + $0x278] sm:$0xff] }
 0x37c   :  { %17234 = vmatmul.mubr.msk.f32.gmra.mrb[32].mxu0 %vm32_vm1, %v4440_v13  ;;  %v4453_v13 = vld [vmem:[#allocation2 + $0x288] sm:$0xff] }
 0x37d   :  { %17236 = vmatprep.mubr.msk.f32.mxu0 %vm32_vm1, %v4441_v14  ;;  %v4454_v14 = vld [vmem:[#allocation2 + $0x290] sm:$0xff] }
 0x380   :  { %17237 = vmatmul.mubr.msk.f32.gmra.mrb[34].mxu0 %vm32_vm1, %v4442_v5  ;;  %v4455_v5 = vld [vmem:[#allocation2 + $0x2a0] sm:$0xff] }
 0x381   :  { %17239 = vmatprep.mubr.msk.f32.mxu0 %vm32_vm1, %v4443_v4  ;;  %v4456_v4 = vld [vmem:[#allocation2 + $0x2a8] sm:$0xff] }
 0x384   :  { %17240 = vmatmul.mubr.msk.f32.gmra.mrb[36].mxu0 %vm32_vm1, %v4444_v6  ;;  %v4457_v6 = vld [vmem:[#allocation2 + $0x2b8] sm:$0xff] }
 0x385   :  { %17242 = vmatprep.mubr.msk.f32.mxu0 %vm32_vm1, %v4445_v2  ;;  %v4458_v2 = vld [vmem:[#allocation2 + $0x2c0] sm:$0xff] }
 0x388   :  { %17243 = vmatmul.mubr.msk.f32.gmra.mrb[38].mxu0 %vm32_vm1, %v4446_v35  ;;  %v4459_v35 = vld [vmem:[#allocation2 + $0x2d0] sm:$0xff] }
 0x389   :  { %17245 = vmatprep.mubr.msk.f32.mxu0 %vm32_vm1, %v4447_v0  ;;  %v4460_v0 = vld [vmem:[#allocation2 + $0x2d8] sm:$0xff] }
 0x38c   :  { %17246 = vmatmul.mubr.msk.f32.gmra.mrb[40].mxu0 %vm32_vm1, %v4448_v48  ;;  %v4461_v48 = vld [vmem:[#allocation2 + $0x2e8] sm:$0xff] }
 0x38d   :  { %17248 = vmatprep.mubr.msk.f32.mxu0 %vm32_vm1, %v4449_v7  ;;  %v4462_v7 = vld [vmem:[#allocation2 + $0x2f0] sm:$0xff] }
 0x390   :  { %17249 = vmatmul.mubr.msk.f32.gmra.mrb[42].mxu0 %vm32_vm1, %v4450_v9  ;;  %v4463_v9 = vld [vmem:[#allocation2 + $0x300] sm:$0xff] }
 0x391   :  { %17251 = vmatprep.mubr.msk.f32.mxu0 %vm32_vm1, %v4451_v49  ;;  %v4464_v49 = vld [vmem:[#allocation2 + $0x308] sm:$0xff] }
 0x394   :  { %17252 = vmatmul.mubr.msk.f32.gmra.mrb[44].mxu0 %vm32_vm1, %v4452_v8  ;;  %v4465_v8 = vld [vmem:[#allocation2 + $0x318] sm:$0xff] }
 0x395   :  { %17254 = vmatprep.mubr.msk.f32.mxu0 %vm32_vm1, %v4453_v13  ;;  %v4466_v13 = vld [vmem:[#allocation2 + $0x320] sm:$0xff] }
 0x398   :  { %17255 = vmatmul.mubr.msk.f32.gmra.mrb[46].mxu0 %vm32_vm1, %v4454_v14  ;;  %v4469_v14 = vld [vmem:[#allocation2 + $0x348] sm:$0xff] }
 0x399   :  { %17257 = vmatprep.mubr.msk.f32.mxu0 %vm32_vm1, %v4455_v5  ;;  %v4470_v5 = vld [vmem:[#allocation2 + $0x350] sm:$0xff] }
 0x39c   :  { %17258 = vmatmul.mubr.msk.f32.gmra.mrb[48].mxu0 %vm32_vm1, %v4456_v4  ;;  %v25786_v4 = vld [vmem:[#allocation8_spill] sm:$0xff] }
 0x39d   :  { %17260 = vmatprep.mubr.msk.f32.mxu0 %vm32_vm1, %v4457_v6  ;;  %v5858_v6 = vld [vmem:[#allocation2 + $0x1a2] sm:$0xff] }
 0x3a0   :  { %17261 = vmatmul.mubr.msk.f32.gmra.mrb[50].mxu0 %vm32_vm1, %v4458_v2  ;;  %v5859_v2 = vld [vmem:[#allocation2 + $0x1e2] sm:$0xff] }
 0x3a1   :  { %17263 = vmatprep.mubr.msk.f32.mxu0 %vm32_vm1, %v4459_v35  ;;  %v5860_v35 = vld [vmem:[#allocation2 + $0x1ea] sm:$0xff] }
 0x3a4   :  { %17264 = vmatmul.mubr.msk.f32.gmra.mrb[52].mxu0 %vm32_vm1, %v4460_v0  ;;  %v5861_v0 = vld [vmem:[#allocation2 + $0x1fa] sm:$0xff] }
 0x3a5   :  { %17266 = vmatprep.mubr.msk.f32.mxu0 %vm32_vm1, %v4461_v48  ;;  %v5862_v48 = vld [vmem:[#allocation2 + $0x202] sm:$0xff] }
 0x3a8   :  { %17267 = vmatmul.mubr.msk.f32.gmra.mrb[54].mxu0 %vm32_vm1, %v4462_v7  ;;  %v5864_v7 = vld [vmem:[#allocation2 + $0x21a] sm:$0xff] }
 0x3a9   :  { %17269 = vmatprep.mubr.msk.f32.mxu0 %vm32_vm1, %v4463_v9  ;;  %v5865_v9 = vld [vmem:[#allocation2 + $0x22a] sm:$0xff] }
 0x3ac   :  { %17270 = vmatmul.mubr.msk.f32.gmra.mrb[56].mxu0 %vm32_vm1, %v4464_v49  ;;  %v5866_v49 = vld [vmem:[#allocation2 + $0x232] sm:$0xff] }
 0x3ad   :  { %17272 = vmatprep.mubr.msk.f32.mxu0 %vm32_vm1, %v4465_v8  ;;  %v5867_v8 = vld [vmem:[#allocation2 + $0x242] sm:$0xff] }
 0x3b0   :  { %17273 = vmatmul.mubr.msk.f32.gmra.mrb[58].mxu0 %vm32_vm1, %v4466_v13  ;;  %v5868_v13 = vld [vmem:[#allocation2 + $0x24a] sm:$0xff] }
 0x3b1   :  { %17275 = vmatprep.mubr.msk.f32.mxu0 %vm32_vm1, %v20641_v10  ;;  %v5147_v10 = vld [vmem:[#allocation2 + $0x199] sm:$0xff] }
 0x3b4   :  { %17276 = vmatmul.mubr.msk.f32.gmra.mrb[60].mxu0 %vm32_vm1, %v20647_v12  ;;  %v5148_v12 = vld [vmem:[#allocation2 + $0x1a1] sm:$0xff] }
 0x3b5   :  { %17278 = vmatprep.mubr.msk.f32.mxu0 %vm32_vm1, %v4469_v14  ;;  %v5869_v14 = vld [vmem:[#allocation2 + $0x25a] sm:$0xff] }
 0x3b8   :  { %17279 = vmatmul.mubr.msk.f32.gmra.mrb[62].mxu0 %vm32_vm1, %v4470_v5  ;;  %v5870_v5 = vld [vmem:[#allocation2 + $0x262] sm:$0xff] }
 0x3b9   :  { %17283 = vmatprep.mubr.msk.f32.mxu0 %vm32_vm1, %v20652_v15  ;;  %v25771_v15 = vld [vmem:[#allocation4_spill] sm:$0xff] }
 0x3bc   :  { %17284 = vmatmul.mubr.msk.f32.vlgmr.msra.gmra.mrb[0].mxu0 %vm32_vm1, %v20664_v17  ;;  %v25772_v17 = vld [vmem:[#allocation5_spill] sm:$0xff] }
 0x3bd   :  { %17380 = vmatpush3.msk.msra.mxu0 %vm597_vm0, %v21053_v3  ;;  %17286 = vmatprep.mubr.msk.f32.mxu0 %vm32_vm1, %v20666_v18  ;;  %v25773_v18 = vld [vmem:[#allocation6_spill] sm:$0xff]  ;;  %v5857_v3 = vld [vmem:[#allocation2 + $0x19a] sm:$0xff] }
 0x3c0   :  { %17287 = vmatmul.mubr.msk.f32.gmra.mrb[2].mxu0 %vm32_vm1, %v20674_v19  ;;  %v25774_v19 = vld [vmem:[#allocation7_spill] sm:$0xff] }
 0x3c1   :  { %17289 = vmatprep.mubr.msk.f32.mxu0 %vm32_vm1, %v20676_v20  ;;  %v25775_v20 = vld [vmem:[#allocation62_spill] sm:$0xff] }
 0x3c4   :  { %17290 = vmatmul.mubr.msk.f32.gmra.mrb[4].mxu0 %vm32_vm1, %v20682_v21  ;;  %v25776_v21 = vld [vmem:[#allocation63_spill] sm:$0xff] }
 0x3c5   :  { %17292 = vmatprep.mubr.msk.f32.mxu0 %vm32_vm1, %v20684_v22  ;;  %v25777_v22 = vld [vmem:[#allocation64_spill] sm:$0xff] }
 0x3c8   :  { %17293 = vmatmul.mubr.msk.f32.gmra.mrb[6].mxu0 %vm32_vm1, %v20690_v23  ;;  %v25778_v23 = vld [vmem:[#allocation65_spill] sm:$0xff] }
 0x3c9   :  { %17295 = vmatprep.mubr.msk.f32.mxu0 %vm32_vm1, %v20692_v24  ;;  %v25779_v24 = vld [vmem:[#allocation66_spill] sm:$0xff] }
 0x3cc   :  { %17296 = vmatmul.mubr.msk.f32.gmra.mrb[8].mxu0 %vm32_vm1, %v20698_v25  ;;  %v25780_v25 = vld [vmem:[#allocation67_spill] sm:$0xff] }
 0x3cd   :  { %17298 = vmatprep.mubr.msk.f32.mxu0 %vm32_vm1, %v20700_v26  ;;  %v25781_v26 = vld [vmem:[#allocation68_spill] sm:$0xff] }
 0x3d0   :  { %17299 = vmatmul.mubr.msk.f32.gmra.mrb[10].mxu0 %vm32_vm1, %v20706_v27  ;;  %v25782_v27 = vld [vmem:[#allocation69_spill] sm:$0xff] }
 0x3d1   :  { %17301 = vmatprep.mubr.msk.f32.mxu0 %vm32_vm1, %v20708_v28  ;;  %v25783_v28 = vld [vmem:[#allocation70_spill] sm:$0xff] }
 0x3d4   :  { %17302 = vmatmul.mubr.msk.f32.gmra.mrb[12].mxu0 %vm32_vm1, %v20714_v29  ;;  %v25784_v29 = vld [vmem:[#allocation71_spill] sm:$0xff] }
 0x3d5   :  { %17304 = vmatprep.mubr.msk.f32.mxu0 %vm32_vm1, %v20716_v30  ;;  %v5179_v30 = vld [vmem:[#allocation2 + $0x349] sm:$0xff] }
 0x3d8   :  { %17305 = vmatmul.mubr.msk.f32.gmra.mrb[14].mxu0 %vm32_vm1, %v20722_v31  ;;  %v25785_v31 = vld [vmem:[#allocation72_spill] sm:$0xff] }
 0x3d9   :  { %17307 = vmatprep.mubr.msk.f32.mxu0 %vm32_vm1, %v20724_v32  ;;  %v5180_v32 = vld [vmem:[#allocation2 + $0x351] sm:$0xff] }
 0x3dc   :  { %17308 = vmatmul.mubr.msk.f32.gmra.mrb[16].mxu0 %vm32_vm1, %v20730_v33  ;;  %v5827_v33 = vld [vmem:[#allocation2 + $0x32] sm:$0xff] }
 0x3dd   :  { %17310 = vmatprep.mubr.msk.f32.mxu0 %vm32_vm1, %v20732_v34  ;;  %v5828_v34 = vld [vmem:[#allocation2 + $0x3a] sm:$0xff] }
 0x3e0   :  { %17311 = vmatmul.mubr.msk.f32.gmra.mrb[18].mxu0 %vm32_vm1, %v20738_v37  ;;  %v5829_v37 = vld [vmem:[#allocation2 + $0x4a] sm:$0xff] }
 0x3e1   :  { %17313 = vmatprep.mubr.msk.f32.mxu0 %vm32_vm1, %v20740_v38  ;;  %v5830_v38 = vld [vmem:[#allocation2 + $0x52] sm:$0xff] }
 0x3e4   :  { %17314 = vmatmul.mubr.msk.f32.gmra.mrb[20].mxu0 %vm32_vm1, %v20746_v39  ;;  %v5831_v39 = vld [vmem:[#allocation2 + $0x62] sm:$0xff] }
 0x3e5   :  { %17316 = vmatprep.mubr.msk.f32.mxu0 %vm32_vm1, %v20748_v40  ;;  %v5832_v40 = vld [vmem:[#allocation2 + $0x6a] sm:$0xff] }
 0x3e8   :  { %17317 = vmatmul.mubr.msk.f32.gmra.mrb[22].mxu0 %vm32_vm1, %v20754_v41  ;;  %v5833_v41 = vld [vmem:[#allocation2 + $0x7a] sm:$0xff] }
 0x3e9   :  { %17319 = vmatprep.mubr.msk.f32.mxu0 %vm32_vm1, %v20756_v42  ;;  %v5834_v42 = vld [vmem:[#allocation2 + $0x82] sm:$0xff] }
 0x3ec   :  { %17320 = vmatmul.mubr.msk.f32.gmra.mrb[24].mxu0 %vm32_vm1, %v20762_v43  ;;  %v5835_v43 = vld [vmem:[#allocation2 + $0x92] sm:$0xff] }
 0x3ed   :  { %17322 = vmatprep.mubr.msk.f32.mxu0 %vm32_vm1, %v20764_v44  ;;  %v5836_v44 = vld [vmem:[#allocation2 + $0x9a] sm:$0xff] }
 0x3f0   :  { %17323 = vmatmul.mubr.msk.f32.gmra.mrb[26].mxu0 %vm32_vm1, %v20770_v45  ;;  %v5837_v45 = vld [vmem:[#allocation2 + $0xaa] sm:$0xff] }
 0x3f1   :  { %17325 = vmatprep.mubr.msk.f32.mxu0 %vm32_vm1, %v20772_v46  ;;  %v5838_v46 = vld [vmem:[#allocation2 + $0xb2] sm:$0xff] }
 0x3f4   :  { %17326 = vmatmul.mubr.msk.f32.gmra.mrb[28].mxu0 %vm32_vm1, %v20778_v47  ;;  %v5839_v47 = vld [vmem:[#allocation2 + $0xc2] sm:$0xff] }
 0x3f5   :  { %17328 = vmatprep.mubr.msk.f32.mxu0 %vm32_vm1, %v5147_v10  ;;  %v5871_v10 = vld [vmem:[#allocation2 + $0x272] sm:$0xff] }
 0x3f8   :  { %17329 = vmatmul.mubr.msk.f32.gmra.mrb[30].mxu0 %vm32_vm1, %v5148_v12  ;;  %v21299_v12 = vld [vmem:[#allocation2 + $0x27a] sm:$0xff] }
 0x3f9   :  { %17331 = vmatprep.mubr.msk.f32.mxu0 %vm32_vm1, %v20783_v50  ;;  %v5840_v50 = vld [vmem:[#allocation2 + $0xca] sm:$0xff] }
 0x3fc   :  { %17332 = vmatmul.mubr.msk.f32.gmra.mrb[32].mxu0 %vm32_vm1, %v20788_v51  ;;  %v5841_v51 = vld [vmem:[#allocation2 + $0xda] sm:$0xff] }
 0x3fd   :  { %17334 = vmatprep.mubr.msk.f32.mxu0 %vm32_vm1, %v20790_v52  ;;  %v5842_v52 = vld [vmem:[#allocation2 + $0xe2] sm:$0xff] }
 0x400   :  { %17335 = vmatmul.mubr.msk.f32.gmra.mrb[34].mxu0 %vm32_vm1, %v20796_v53  ;;  %v5843_v53 = vld [vmem:[#allocation2 + $0xf2] sm:$0xff] }
 0x401   :  { %17337 = vmatprep.mubr.msk.f32.mxu0 %vm32_vm1, %v20798_v54  ;;  %v5844_v54 = vld [vmem:[#allocation2 + $0xfa] sm:$0xff] }
 0x404   :  { %17338 = vmatmul.mubr.msk.f32.gmra.mrb[36].mxu0 %vm32_vm1, %v20804_v55  ;;  %v5845_v55 = vld [vmem:[#allocation2 + $0x10a] sm:$0xff] }
 0x405   :  { %17340 = vmatprep.mubr.msk.f32.mxu0 %vm32_vm1, %v20806_v56  ;;  %v5846_v56 = vld [vmem:[#allocation2 + $0x112] sm:$0xff] }
 0x408   :  { %17341 = vmatmul.mubr.msk.f32.gmra.mrb[38].mxu0 %vm32_vm1, %v20812_v57  ;;  %v5847_v57 = vld [vmem:[#allocation2 + $0x122] sm:$0xff] }
 0x409   :  { %17343 = vmatprep.mubr.msk.f32.mxu0 %vm32_vm1, %v20814_v58  ;;  %v5848_v58 = vld [vmem:[#allocation2 + $0x12a] sm:$0xff] }
 0x40c   :  { %17344 = vmatmul.mubr.msk.f32.gmra.mrb[40].mxu0 %vm32_vm1, %v20820_v59  ;;  %v5849_v59 = vld [vmem:[#allocation2 + $0x13a] sm:$0xff] }
 0x40d   :  { %17346 = vmatprep.mubr.msk.f32.mxu0 %vm32_vm1, %v20822_v60  ;;  %v5850_v60 = vld [vmem:[#allocation2 + $0x142] sm:$0xff] }
 0x410   :  { %17347 = vmatmul.mubr.msk.f32.gmra.mrb[42].mxu0 %vm32_vm1, %v20828_v61  ;;  %v5851_v61 = vld [vmem:[#allocation2 + $0x152] sm:$0xff] }
 0x411   :  { %17349 = vmatprep.mubr.msk.f32.mxu0 %vm32_vm1, %v20830_v62  ;;  %v5852_v62 = vld [vmem:[#allocation2 + $0x15a] sm:$0xff] }
 0x414   :  { %17350 = vmatmul.mubr.msk.f32.gmra.mrb[44].mxu0 %vm32_vm1, %v20836_v63  ;;  %v5853_v63 = vld [vmem:[#allocation2 + $0x16a] sm:$0xff] }
 0x415   :  { %17352 = vmatprep.mubr.msk.f32.mxu0 %vm32_vm1, %v20838_v36  ;;  %v5854_v36 = vld [vmem:[#allocation2 + $0x172] sm:$0xff] }
 0x418   :  { %17353 = vmatmul.mubr.msk.f32.gmra.mrb[46].mxu0 %vm32_vm1, %v25771_v15  ;;  %v25787_v15 = vmov 0.0  }
 0x419   :  { %17355 = vmatprep.mubr.msk.f32.mxu0 %vm32_vm1, %v25772_v17  ;;  %7157 = vst.msk [vmem:[#allocation3 + $0x20] sm:$0xff] %vm6607_vm3, %v25787_v15  ;;  %7152 = vst.msk [vmem:[#allocation3] sm:$0xff] %vm6607_vm3, %v25787_v15  ;;  %v5873_v17 = vld [vmem:[#allocation2 + $0x28a] sm:$0xff] }
 0x41a   :  { %7153 = vst.msk [vmem:[#allocation3 + $0x8] sm:$0xff] %vm6607_vm3, %v25787_v15  ;;  %7156 = vst.msk [vmem:[#allocation3 + $0x18] sm:$0xff] %vm6607_vm3, %v25787_v15 }
 0x41b   :  { %7159 = vst.msk [vmem:[#allocation3 + $0x30] sm:$0xff] %vm6607_vm3, %v25787_v15  ;;  %7160 = vst.msk [vmem:[#allocation3 + $0x38] sm:$0xff] %vm6607_vm3, %v25787_v15 }
 0x41c   :  { %17356 = vmatmul.mubr.msk.f32.gmra.mrb[48].mxu0 %vm32_vm1, %v25773_v18  ;;  %7162 = vst.msk [vmem:[#allocation3 + $0x48] sm:$0xff] %vm6607_vm3, %v25787_v15  ;;  %7163 = vst.msk [vmem:[#allocation3 + $0x50] sm:$0xff] %vm6607_vm3, %v25787_v15  ;;  %v5874_v18 = vld [vmem:[#allocation2 + $0x292] sm:$0xff] }
 0x41d   :  { %17358 = vmatprep.mubr.msk.f32.mxu0 %vm32_vm1, %v25774_v19  ;;  %7165 = vst.msk [vmem:[#allocation3 + $0x60] sm:$0xff] %vm6607_vm3, %v25787_v15  ;;  %7166 = vst.msk [vmem:[#allocation3 + $0x68] sm:$0xff] %vm6607_vm3, %v25787_v15  ;;  %v5875_v19 = vld [vmem:[#allocation2 + $0x2a2] sm:$0xff] }
 0x41e   :  { %7168 = vst.msk [vmem:[#allocation3 + $0x78] sm:$0xff] %vm6607_vm3, %v25787_v15  ;;  %7169 = vst.msk [vmem:[#allocation3 + $0x80] sm:$0xff] %vm6607_vm3, %v25787_v15 }
 0x41f   :  { %7171 = vst.msk [vmem:[#allocation3 + $0x90] sm:$0xff] %vm6607_vm3, %v25787_v15  ;;  %7172 = vst.msk [vmem:[#allocation3 + $0x98] sm:$0xff] %vm6607_vm3, %v25787_v15 }
 0x420   :  { %17359 = vmatmul.mubr.msk.f32.gmra.mrb[50].mxu0 %vm32_vm1, %v25775_v20  ;;  %7174 = vst.msk [vmem:[#allocation3 + $0xa8] sm:$0xff] %vm6607_vm3, %v25787_v15  ;;  %7175 = vst.msk [vmem:[#allocation3 + $0xb0] sm:$0xff] %vm6607_vm3, %v25787_v15  ;;  %v5876_v20 = vld [vmem:[#allocation2 + $0x2aa] sm:$0xff] }
 0x421   :  { %17361 = vmatprep.mubr.msk.f32.mxu0 %vm32_vm1, %v25776_v21  ;;  %7177 = vst.msk [vmem:[#allocation3 + $0xc0] sm:$0xff] %vm6607_vm3, %v25787_v15  ;;  %7178 = vst.msk [vmem:[#allocation3 + $0xc8] sm:$0xff] %vm6607_vm3, %v25787_v15  ;;  %v5877_v21 = vld [vmem:[#allocation2 + $0x2ba] sm:$0xff] }
 0x422   :  { %7180 = vst.msk [vmem:[#allocation3 + $0xd8] sm:$0xff] %vm6607_vm3, %v25787_v15  ;;  %7181 = vst.msk [vmem:[#allocation3 + $0xe0] sm:$0xff] %vm6607_vm3, %v25787_v15 }
 0x423   :  { %7183 = vst.msk [vmem:[#allocation3 + $0xf0] sm:$0xff] %vm6607_vm3, %v25787_v15  ;;  %7184 = vst.msk [vmem:[#allocation3 + $0xf8] sm:$0xff] %vm6607_vm3, %v25787_v15 }
 0x424   :  { %17362 = vmatmul.mubr.msk.f32.gmra.mrb[52].mxu0 %vm32_vm1, %v25777_v22  ;;  %7186 = vst.msk [vmem:[#allocation3 + $0x108] sm:$0xff] %vm6607_vm3, %v25787_v15  ;;  %7187 = vst.msk [vmem:[#allocation3 + $0x110] sm:$0xff] %vm6607_vm3, %v25787_v15  ;;  %v5878_v22 = vld [vmem:[#allocation2 + $0x2c2] sm:$0xff] }
 0x425   :  { %17364 = vmatprep.mubr.msk.f32.mxu0 %vm32_vm1, %v25778_v23  ;;  %7189 = vst.msk [vmem:[#allocation3 + $0x120] sm:$0xff] %vm6607_vm3, %v25787_v15  ;;  %7190 = vst.msk [vmem:[#allocation3 + $0x128] sm:$0xff] %vm6607_vm3, %v25787_v15  ;;  %v5879_v23 = vld [vmem:[#allocation2 + $0x2d2] sm:$0xff] }
 0x426   :  { %7192 = vst.msk [vmem:[#allocation3 + $0x138] sm:$0xff] %vm6607_vm3, %v25787_v15  ;;  %7193 = vst.msk [vmem:[#allocation3 + $0x140] sm:$0xff] %vm6607_vm3, %v25787_v15 }
 0x427   :  { %7195 = vst.msk [vmem:[#allocation3 + $0x150] sm:$0xff] %vm6607_vm3, %v25787_v15  ;;  %7196 = vst.msk [vmem:[#allocation3 + $0x158] sm:$0xff] %vm6607_vm3, %v25787_v15 }
 0x428   :  { %17365 = vmatmul.mubr.msk.f32.gmra.mrb[54].mxu0 %vm32_vm1, %v25779_v24  ;;  %7198 = vst.msk [vmem:[#allocation3 + $0x168] sm:$0xff] %vm6607_vm3, %v25787_v15  ;;  %7199 = vst.msk [vmem:[#allocation3 + $0x170] sm:$0xff] %vm6607_vm3, %v25787_v15  ;;  %v5880_v24 = vld [vmem:[#allocation2 + $0x2da] sm:$0xff] }
 0x429   :  { %17367 = vmatprep.mubr.msk.f32.mxu0 %vm32_vm1, %v25780_v25  ;;  %7201 = vst.msk [vmem:[#allocation3 + $0x180] sm:$0xff] %vm6607_vm3, %v25787_v15  ;;  %7202 = vst.msk [vmem:[#allocation3 + $0x188] sm:$0xff] %vm6607_vm3, %v25787_v15  ;;  %v5881_v25 = vld [vmem:[#allocation2 + $0x2ea] sm:$0xff] }
 0x42a   :  { %7204 = vst.msk [vmem:[#allocation3 + $0x198] sm:$0xff] %vm6607_vm3, %v25787_v15  ;;  %7205 = vst.msk [vmem:[#allocation3 + $0x1a0] sm:$0xff] %vm6607_vm3, %v25787_v15 }
 0x42b   :  { %7207 = vst.msk [vmem:[#allocation3 + $0x1b0] sm:$0xff] %vm6607_vm3, %v25787_v15  ;;  %7208 = vst.msk [vmem:[#allocation3 + $0x1b8] sm:$0xff] %vm6607_vm3, %v25787_v15 }
 0x42c   :  { %17368 = vmatmul.mubr.msk.f32.gmra.mrb[56].mxu0 %vm32_vm1, %v25781_v26  ;;  %7210 = vst.msk [vmem:[#allocation3 + $0x1c8] sm:$0xff] %vm6607_vm3, %v25787_v15  ;;  %7211 = vst.msk [vmem:[#allocation3 + $0x1d0] sm:$0xff] %vm6607_vm3, %v25787_v15  ;;  %v5882_v26 = vld [vmem:[#allocation2 + $0x2f2] sm:$0xff] }
 0x42d   :  { %17370 = vmatprep.mubr.msk.f32.mxu0 %vm32_vm1, %v25782_v27  ;;  %7213 = vst.msk [vmem:[#allocation3 + $0x1e0] sm:$0xff] %vm6607_vm3, %v25787_v15  ;;  %7214 = vst.msk [vmem:[#allocation3 + $0x1e8] sm:$0xff] %vm6607_vm3, %v25787_v15  ;;  %v5883_v27 = vld [vmem:[#allocation2 + $0x302] sm:$0xff] }
 0x42e   :  { %7216 = vst.msk [vmem:[#allocation3 + $0x1f8] sm:$0xff] %vm6607_vm3, %v25787_v15  ;;  %7217 = vst.msk [vmem:[#allocation3 + $0x200] sm:$0xff] %vm6607_vm3, %v25787_v15 }
 0x42f   :  { %7219 = vst.msk [vmem:[#allocation3 + $0x210] sm:$0xff] %vm6607_vm3, %v25787_v15  ;;  %7220 = vst.msk [vmem:[#allocation3 + $0x218] sm:$0xff] %vm6607_vm3, %v25787_v15 }
 0x430   :  { %17371 = vmatmul.mubr.msk.f32.gmra.mrb[58].mxu0 %vm32_vm1, %v25783_v28  ;;  %7222 = vst.msk [vmem:[#allocation3 + $0x228] sm:$0xff] %vm6607_vm3, %v25787_v15  ;;  %7223 = vst.msk [vmem:[#allocation3 + $0x230] sm:$0xff] %vm6607_vm3, %v25787_v15  ;;  %v5884_v28 = vld [vmem:[#allocation2 + $0x30a] sm:$0xff] }
 0x431   :  { %17373 = vmatprep.mubr.msk.f32.mxu0 %vm32_vm1, %v25784_v29  ;;  %7225 = vst.msk [vmem:[#allocation3 + $0x240] sm:$0xff] %vm6607_vm3, %v25787_v15  ;;  %7226 = vst.msk [vmem:[#allocation3 + $0x248] sm:$0xff] %vm6607_vm3, %v25787_v15  ;;  %v5885_v29 = vld [vmem:[#allocation2 + $0x31a] sm:$0xff] }
 0x432   :  { %7228 = vst.msk [vmem:[#allocation3 + $0x258] sm:$0xff] %vm6607_vm3, %v25787_v15  ;;  %7229 = vst.msk [vmem:[#allocation3 + $0x260] sm:$0xff] %vm6607_vm3, %v25787_v15 }
 0x433   :  { %7231 = vst.msk [vmem:[#allocation3 + $0x270] sm:$0xff] %vm6607_vm3, %v25787_v15  ;;  %7232 = vst.msk [vmem:[#allocation3 + $0x278] sm:$0xff] %vm6607_vm3, %v25787_v15 }
 0x434   :  { %17374 = vmatmul.mubr.msk.f32.gmra.mrb[60].mxu0 %vm32_vm1, %v25785_v31  ;;  %7234 = vst.msk [vmem:[#allocation3 + $0x288] sm:$0xff] %vm6607_vm3, %v25787_v15  ;;  %7235 = vst.msk [vmem:[#allocation3 + $0x290] sm:$0xff] %vm6607_vm3, %v25787_v15  ;;  %v5889_v31 = vld [vmem:[#allocation2 + $0x34a] sm:$0xff] }
 0x435   :  { %17376 = vmatprep.mubr.msk.f32.mxu0 %vm32_vm1, %v5179_v30  ;;  %7237 = vst.msk [vmem:[#allocation3 + $0x2a0] sm:$0xff] %vm6607_vm3, %v25787_v15  ;;  %7238 = vst.msk [vmem:[#allocation3 + $0x2a8] sm:$0xff] %vm6607_vm3, %v25787_v15  ;;  %v5886_v30 = vld [vmem:[#allocation2 + $0x322] sm:$0xff] }
 0x436   :  { %7240 = vst.msk [vmem:[#allocation3 + $0x2b8] sm:$0xff] %vm6607_vm3, %v25787_v15  ;;  %7241 = vst.msk [vmem:[#allocation3 + $0x2c0] sm:$0xff] %vm6607_vm3, %v25787_v15 }
 0x437   :  { %7243 = vst.msk [vmem:[#allocation3 + $0x2d0] sm:$0xff] %vm6607_vm3, %v25787_v15  ;;  %7244 = vst.msk [vmem:[#allocation3 + $0x2d8] sm:$0xff] %vm6607_vm3, %v25787_v15 }
 0x438   :  { %17377 = vmatmul.mubr.msk.f32.gmra.mrb[62].mxu0 %vm32_vm1, %v5180_v32  ;;  %7246 = vst.msk [vmem:[#allocation3 + $0x2e8] sm:$0xff] %vm6607_vm3, %v25787_v15  ;;  %7247 = vst.msk [vmem:[#allocation3 + $0x2f0] sm:$0xff] %vm6607_vm3, %v25787_v15  ;;  %v5890_v32 = vld [vmem:[#allocation2 + $0x352] sm:$0xff] }
 0x439   :  { %17381 = vmatprep.mubr.msk.f32.mxu0 %vm32_vm1, %v5827_v33  ;;  %7249 = vst.msk [vmem:[#allocation3 + $0x300] sm:$0xff] %vm6607_vm3, %v25787_v15  ;;  %7250 = vst.msk [vmem:[#allocation3 + $0x308] sm:$0xff] %vm6607_vm3, %v25787_v15  ;;  %v21542_v33 = vld [vmem:[%s25432_s2] ss:$0 sm:$0xff] }
 0x43a   :  { %7252 = vst.msk [vmem:[#allocation3 + $0x318] sm:$0xff] %vm6607_vm3, %v25787_v15  ;;  %7253 = vst.msk [vmem:[#allocation3 + $0x320] sm:$0xff] %vm6607_vm3, %v25787_v15 }
 0x43b   :  { %7255 = vst.msk [vmem:[#allocation3 + $0x330] sm:$0xff] %vm6607_vm3, %v25787_v15  ;;  %7256 = vst.msk [vmem:[#allocation3 + $0x338] sm:$0xff] %vm6607_vm3, %v25787_v15 }
 0x43c   :  { %17382 = vmatmul.mubr.msk.f32.vlgmr.msra.gmra.mrb[0].mxu0 %vm32_vm1, %v5828_v34  ;;  %7258 = vst.msk [vmem:[#allocation3 + $0x348] sm:$0xff] %vm6607_vm3, %v25787_v15  ;;  %7259 = vst.msk [vmem:[#allocation3 + $0x350] sm:$0xff] %vm6607_vm3, %v25787_v15 }
 0x43d   :  { %17384 = vmatprep.mubr.msk.f32.mxu0 %vm32_vm1, %v5829_v37  ;;  %7158 = vst.msk [vmem:[#allocation3 + $0x28] sm:$0x3] %vm7154_vm4, %v25787_v15  ;;  %7155 = vst.msk [vmem:[#allocation3 + $0x10] sm:$0x3] %vm7154_vm4, %v25787_v15 }
 0x43e   :  { %7161 = vst.msk [vmem:[#allocation3 + $0x40] sm:$0x3] %vm7154_vm4, %v25787_v15  ;;  %7164 = vst.msk [vmem:[#allocation3 + $0x58] sm:$0x3] %vm7154_vm4, %v25787_v15 }
 0x43f   :  { %7167 = vst.msk [vmem:[#allocation3 + $0x70] sm:$0x3] %vm7154_vm4, %v25787_v15  ;;  %7170 = vst.msk [vmem:[#allocation3 + $0x88] sm:$0x3] %vm7154_vm4, %v25787_v15 }
 0x440   :  { %17385 = vmatmul.mubr.msk.f32.gmra.mrb[2].mxu0 %vm32_vm1, %v5830_v38  ;;  %7173 = vst.msk [vmem:[#allocation3 + $0xa0] sm:$0x3] %vm7154_vm4, %v25787_v15  ;;  %7176 = vst.msk [vmem:[#allocation3 + $0xb8] sm:$0x3] %vm7154_vm4, %v25787_v15 }
 0x441   :  { %17387 = vmatprep.mubr.msk.f32.mxu0 %vm32_vm1, %v5831_v39  ;;  %7179 = vst.msk [vmem:[#allocation3 + $0xd0] sm:$0x3] %vm7154_vm4, %v25787_v15  ;;  %7182 = vst.msk [vmem:[#allocation3 + $0xe8] sm:$0x3] %vm7154_vm4, %v25787_v15 }
 0x442   :  { %7185 = vst.msk [vmem:[#allocation3 + $0x100] sm:$0x3] %vm7154_vm4, %v25787_v15  ;;  %7188 = vst.msk [vmem:[#allocation3 + $0x118] sm:$0x3] %vm7154_vm4, %v25787_v15 }
 0x443   :  { %7191 = vst.msk [vmem:[#allocation3 + $0x130] sm:$0x3] %vm7154_vm4, %v25787_v15  ;;  %7194 = vst.msk [vmem:[#allocation3 + $0x148] sm:$0x3] %vm7154_vm4, %v25787_v15 }
 0x444   :  { %17388 = vmatmul.mubr.msk.f32.gmra.mrb[4].mxu0 %vm32_vm1, %v5832_v40  ;;  %7197 = vst.msk [vmem:[#allocation3 + $0x160] sm:$0x3] %vm7154_vm4, %v25787_v15  ;;  %7200 = vst.msk [vmem:[#allocation3 + $0x178] sm:$0x3] %vm7154_vm4, %v25787_v15 }
 0x445   :  { %17390 = vmatprep.mubr.msk.f32.mxu0 %vm32_vm1, %v5833_v41  ;;  %7203 = vst.msk [vmem:[#allocation3 + $0x190] sm:$0x3] %vm7154_vm4, %v25787_v15  ;;  %7206 = vst.msk [vmem:[#allocation3 + $0x1a8] sm:$0x3] %vm7154_vm4, %v25787_v15 }
 0x446   :  { %7209 = vst.msk [vmem:[#allocation3 + $0x1c0] sm:$0x3] %vm7154_vm4, %v25787_v15  ;;  %7212 = vst.msk [vmem:[#allocation3 + $0x1d8] sm:$0x3] %vm7154_vm4, %v25787_v15 }
 0x447   :  { %7215 = vst.msk [vmem:[#allocation3 + $0x1f0] sm:$0x3] %vm7154_vm4, %v25787_v15  ;;  %7218 = vst.msk [vmem:[#allocation3 + $0x208] sm:$0x3] %vm7154_vm4, %v25787_v15 }
 0x448   :  { %17391 = vmatmul.mubr.msk.f32.gmra.mrb[6].mxu0 %vm32_vm1, %v5834_v42  ;;  %7221 = vst.msk [vmem:[#allocation3 + $0x220] sm:$0x3] %vm7154_vm4, %v25787_v15  ;;  %7224 = vst.msk [vmem:[#allocation3 + $0x238] sm:$0x3] %vm7154_vm4, %v25787_v15 }
 0x449   :  { %17393 = vmatprep.mubr.msk.f32.mxu0 %vm32_vm1, %v5835_v43  ;;  %7227 = vst.msk [vmem:[#allocation3 + $0x250] sm:$0x3] %vm7154_vm4, %v25787_v15  ;;  %7230 = vst.msk [vmem:[#allocation3 + $0x268] sm:$0x3] %vm7154_vm4, %v25787_v15 }
 0x44a   :  { %7233 = vst.msk [vmem:[#allocation3 + $0x280] sm:$0x3] %vm7154_vm4, %v25787_v15  ;;  %7236 = vst.msk [vmem:[#allocation3 + $0x298] sm:$0x3] %vm7154_vm4, %v25787_v15 }
 0x44b   :  { %7239 = vst.msk [vmem:[#allocation3 + $0x2b0] sm:$0x3] %vm7154_vm4, %v25787_v15  ;;  %7242 = vst.msk [vmem:[#allocation3 + $0x2c8] sm:$0x3] %vm7154_vm4, %v25787_v15 }
 0x44c   :  { %17394 = vmatmul.mubr.msk.f32.gmra.mrb[8].mxu0 %vm32_vm1, %v5836_v44  ;;  %7245 = vst.msk [vmem:[#allocation3 + $0x2e0] sm:$0x3] %vm7154_vm4, %v25787_v15  ;;  %7248 = vst.msk [vmem:[#allocation3 + $0x2f8] sm:$0x3] %vm7154_vm4, %v25787_v15 }
 0x44d   :  { %17396 = vmatprep.mubr.msk.f32.mxu0 %vm32_vm1, %v5837_v45  ;;  %7251 = vst.msk [vmem:[#allocation3 + $0x310] sm:$0x3] %vm7154_vm4, %v25787_v15  ;;  %7254 = vst.msk [vmem:[#allocation3 + $0x328] sm:$0x3] %vm7154_vm4, %v25787_v15 }
 0x44e   :  { %7257 = vst.msk [vmem:[#allocation3 + $0x340] sm:$0x3] %vm7154_vm4, %v25787_v15  ;;  %7260 = vst.msk [vmem:[#allocation3 + $0x358] sm:$0x3] %vm7154_vm4, %v25787_v15 }
 0x450   :  { %17397 = vmatmul.mubr.msk.f32.gmra.mrb[10].mxu0 %vm32_vm1, %v5838_v46 }
 0x451   :  { %17399 = vmatprep.mubr.msk.f32.mxu0 %vm32_vm1, %v5839_v47 }
 0x454   :  { %17400 = vmatmul.mubr.msk.f32.gmra.mrb[12].mxu0 %vm32_vm1, %v5840_v50 }
 0x455   :  { %17402 = vmatprep.mubr.msk.f32.mxu0 %vm32_vm1, %v5841_v51 }
 0x458   :  { %17403 = vmatmul.mubr.msk.f32.gmra.mrb[14].mxu0 %vm32_vm1, %v5842_v52 }
 0x459   :  { %17405 = vmatprep.mubr.msk.f32.mxu0 %vm32_vm1, %v5843_v53 }
 0x45c   :  { %17406 = vmatmul.mubr.msk.f32.gmra.mrb[16].mxu0 %vm32_vm1, %v5844_v54 }
 0x45d   :  { %17408 = vmatprep.mubr.msk.f32.mxu0 %vm32_vm1, %v5845_v55 }
 0x460   :  { %17409 = vmatmul.mubr.msk.f32.gmra.mrb[18].mxu0 %vm32_vm1, %v5846_v56 }
 0x461   :  { %17411 = vmatprep.mubr.msk.f32.mxu0 %vm32_vm1, %v5847_v57 }
 0x464   :  { %17412 = vmatmul.mubr.msk.f32.gmra.mrb[20].mxu0 %vm32_vm1, %v5848_v58 }
 0x465   :  { %17414 = vmatprep.mubr.msk.f32.mxu0 %vm32_vm1, %v5849_v59 }
 0x468   :  { %17415 = vmatmul.mubr.msk.f32.gmra.mrb[22].mxu0 %vm32_vm1, %v5850_v60 }
 0x469   :  { %17417 = vmatprep.mubr.msk.f32.mxu0 %vm32_vm1, %v5851_v61 }
 0x46c   :  { %17418 = vmatmul.mubr.msk.f32.gmra.mrb[24].mxu0 %vm32_vm1, %v5852_v62 }
 0x46d   :  { %17420 = vmatprep.mubr.msk.f32.mxu0 %vm32_vm1, %v5853_v63 }
 0x470   :  { %17421 = vmatmul.mubr.msk.f32.gmra.mrb[26].mxu0 %vm32_vm1, %v5854_v36 }
 0x471   :  { %17423 = vmatprep.mubr.msk.f32.mxu0 %vm32_vm1, %v20971_v11  ;;  %v5863_v11 = vld [vmem:[#allocation2 + $0x212] sm:$0xff] }
 0x474   :  { %17424 = vmatmul.mubr.msk.f32.gmra.mrb[28].mxu0 %vm32_vm1, %v25786_v4 }
 0x475   :  { %17426 = vmatprep.mubr.msk.f32.mxu0 %vm32_vm1, %v5857_v3 }
 0x478   :  { %17427 = vmatmul.mubr.msk.f32.gmra.mrb[30].mxu0 %vm32_vm1, %v5858_v6 }
 0x479   :  { %17429 = vmatprep.mubr.msk.f32.mxu0 %vm32_vm1, %v5859_v2 }
 0x47c   :  { %17430 = vmatmul.mubr.msk.f32.gmra.mrb[32].mxu0 %vm32_vm1, %v5860_v35 }
 0x47d   :  { %17432 = vmatprep.mubr.msk.f32.mxu0 %vm32_vm1, %v5861_v0 }
 0x480   :  { %17433 = vmatmul.mubr.msk.f32.gmra.mrb[34].mxu0 %vm32_vm1, %v5862_v48 }
 0x481   :  { %17435 = vmatprep.mubr.msk.f32.mxu0 %vm32_vm1, %v5863_v11 }
 0x484   :  { %17436 = vmatmul.mubr.msk.f32.gmra.mrb[36].mxu0 %vm32_vm1, %v5864_v7 }
 0x485   :  { %17438 = vmatprep.mubr.msk.f32.mxu0 %vm32_vm1, %v5865_v9 }
 0x488   :  { %17439 = vmatmul.mubr.msk.f32.gmra.mrb[38].mxu0 %vm32_vm1, %v5866_v49 }
 0x489   :  { %17441 = vmatprep.mubr.msk.f32.mxu0 %vm32_vm1, %v5867_v8 }
 0x48c   :  { %17442 = vmatmul.mubr.msk.f32.gmra.mrb[40].mxu0 %vm32_vm1, %v5868_v13 }
 0x48d   :  { %17444 = vmatprep.mubr.msk.f32.mxu0 %vm32_vm1, %v5869_v14 }
 0x490   :  { %17445 = vmatmul.mubr.msk.f32.gmra.mrb[42].mxu0 %vm32_vm1, %v5870_v5 }
 0x491   :  { %17447 = vmatprep.mubr.msk.f32.mxu0 %vm32_vm1, %v5871_v10 }
 0x494   :  { %17448 = vmatmul.mubr.msk.f32.gmra.mrb[44].mxu0 %vm32_vm1, %v21299_v12 }
 0x495   :  { %17450 = vmatprep.mubr.msk.f32.mxu0 %vm32_vm1, %v5873_v17 }
 0x498   :  { %17451 = vmatmul.mubr.msk.f32.gmra.mrb[46].mxu0 %vm32_vm1, %v5874_v18 }
 0x499   :  { %17453 = vmatprep.mubr.msk.f32.mxu0 %vm32_vm1, %v5875_v19 }
 0x49c   :  { %17454 = vmatmul.mubr.msk.f32.gmra.mrb[48].mxu0 %vm32_vm1, %v5876_v20 }
 0x49d   :  { %17456 = vmatprep.mubr.msk.f32.mxu0 %vm32_vm1, %v5877_v21 }
 0x4a0   :  { %17457 = vmatmul.mubr.msk.f32.gmra.mrb[50].mxu0 %vm32_vm1, %v5878_v22 }
 0x4a1   :  { %17459 = vmatprep.mubr.msk.f32.mxu0 %vm32_vm1, %v5879_v23 }
 0x4a4   :  { %17460 = vmatmul.mubr.msk.f32.gmra.mrb[52].mxu0 %vm32_vm1, %v5880_v24 }
 0x4a5   :  { %17462 = vmatprep.mubr.msk.f32.mxu0 %vm32_vm1, %v5881_v25 }
 0x4a8   :  { %17463 = vmatmul.mubr.msk.f32.gmra.mrb[54].mxu0 %vm32_vm1, %v5882_v26 }
 0x4a9   :  { %17465 = vmatprep.mubr.msk.f32.mxu0 %vm32_vm1, %v5883_v27 }
 0x4ac   :  { %17466 = vmatmul.mubr.msk.f32.gmra.mrb[56].mxu0 %vm32_vm1, %v5884_v28 }
 0x4ad   :  { %17468 = vmatprep.mubr.msk.f32.mxu0 %vm32_vm1, %v5885_v29 }
 0x4b0   :  { %17469 = vmatmul.mubr.msk.f32.gmra.mrb[58].mxu0 %vm32_vm1, %v5886_v30 }
 0x4b1   :  { %17471 = vmatprep.mubr.msk.f32.mxu0 %vm32_vm1, %v21039_v16 }
 0x4b4   :  { %17472 = vmatmul.mubr.msk.f32.gmra.mrb[60].mxu0 %vm32_vm1, %v21045_v1 }
 0x4b5   :  { %17474 = vmatprep.mubr.msk.f32.mxu0 %vm32_vm1, %v5889_v31 }
 0x4b8   :  { %17475 = vmatmul.mubr.msk.f32.gmra.mrb[62].mxu0 %vm32_vm1, %v5890_v32 }
 0x50f   :  { %v17383_v34 = vpop.f32.mrb[0].mxu0 }
 0x510   :  { %v21545_v37 = vadd.f32 %v17383_v34, %v21542_v33  ;;  %v6154_v38 = vpop.f32.mrb[1].mxu0 }
 0x511   :  { %v21548_v16 = vadd.f32 %v21542_v33, %v6154_v38 }
 0x512   :  { %v6743_v1 = vmul.f32 %v21545_v37, %v21545_v37  ;;  %v6609_v39 = vsel %vm6607_vm3, %v21545_v37, 0.0 }
 0x513   :  { %v6608_v40 = vsel %vm6607_vm3, %v21548_v16, 0.0  ;;  %v6742_v41 = vmul.f32 %v21548_v16, %v21548_v16  ;;  %v17386_v42 = vpop.f32.mrb[2].mxu0 }
 0x514   :  { %v21559_v43 = vadd.f32 %v17386_v42, %v21542_v33  ;;  %v6164_v44 = vpop.f32.mrb[3].mxu0  ;;  %v6807_v45 = vsel %vm6607_vm3, %v6743_v1, 0.0  ;;  %v6610_v50 = vadd.f32 %v6609_v39, %v6608_v40 }
 0x515   :  { %v6806_v46 = vsel %vm6607_vm3, %v6742_v41, 0.0  ;;  %v21564_v47 = vadd.f32 %v21542_v33, %v6164_v44 }
 0x516   :  { %v6745_v51 = vmul.f32 %v21559_v43, %v21559_v43  ;;  %v6808_v55 = vadd.f32 %v6807_v45, %v6806_v46  ;;  %v6613_v59 = vsel %vm6607_vm3, %v21559_v43, 0.0 }
 0x517   :  { %v6611_v52 = vsel %vm6607_vm3, %v21564_v47, 0.0  ;;  %v6744_v53 = vmul.f32 %v21564_v47, %v21564_v47  ;;  %v17389_v54 = vpop.f32.mrb[4].mxu0 }
 0x518   :  { %v6612_v56 = vadd.f32 %v6611_v52, %v6610_v50  ;;  %v21573_v57 = vadd.f32 %v17389_v54, %v21542_v33  ;;  %v6174_v58 = vpop.f32.mrb[5].mxu0  ;;  %v6811_v36 = vsel %vm6607_vm3, %v6745_v51, 0.0 }
 0x519   :  { %v6809_v60 = vsel %vm6607_vm3, %v6744_v53, 0.0  ;;  %v21579_v61 = vadd.f32 %v21542_v33, %v6174_v58 }
 0x51a   :  { %v6614_v62 = vadd.f32 %v6613_v59, %v6612_v56  ;;  %v6810_v63 = vadd.f32 %v6809_v60, %v6808_v55  ;;  %v6747_v3 = vmul.f32 %v21573_v57, %v21573_v57  ;;  %v6617_v7 = vsel %vm6607_vm3, %v21573_v57, 0.0 }
 0x51b   :  { %v6615_v4 = vsel %vm6607_vm3, %v21579_v61, 0.0  ;;  %v6746_v6 = vmul.f32 %v21579_v61, %v21579_v61  ;;  %v17392_v2 = vpop.f32.mrb[6].mxu0 }
 0x51c   :  { %v6812_v35 = vadd.f32 %v6811_v36, %v6810_v63  ;;  %v6616_v0 = vadd.f32 %v6615_v4, %v6614_v62  ;;  %v21589_v48 = vadd.f32 %v17392_v2, %v21542_v33  ;;  %v6184_v11 = vpop.f32.mrb[7].mxu0  ;;  %v6815_v14 = vsel %vm6607_vm3, %v6747_v3, 0.0 }
 0x51d   :  { %v6813_v9 = vsel %vm6607_vm3, %v6746_v6, 0.0  ;;  %v21595_v49 = vadd.f32 %v21542_v33, %v6184_v11 }
 0x51e   :  { %v6814_v8 = vadd.f32 %v6813_v9, %v6812_v35  ;;  %v6618_v13 = vadd.f32 %v6617_v7, %v6616_v0  ;;  %v6749_v5 = vmul.f32 %v21589_v48, %v21589_v48  ;;  %v6621_v21 = vsel %vm6607_vm3, %v21589_v48, 0.0 }
 0x51f   :  { %v6619_v10 = vsel %vm6607_vm3, %v21595_v49, 0.0  ;;  %v6748_v12 = vmul.f32 %v21595_v49, %v21595_v49  ;;  %v17395_v15 = vpop.f32.mrb[8].mxu0 }
 0x520   :  { %v6620_v17 = vadd.f32 %v6619_v10, %v6618_v13  ;;  %v6816_v18 = vadd.f32 %v6815_v14, %v6814_v8  ;;  %v21605_v19 = vadd.f32 %v17395_v15, %v21542_v33  ;;  %v6194_v20 = vpop.f32.mrb[9].mxu0  ;;  %v6819_v26 = vsel %vm6607_vm3, %v6749_v5, 0.0 }
 0x521   :  { %v6817_v22 = vsel %vm6607_vm3, %v6748_v12, 0.0  ;;  %v21611_v23 = vadd.f32 %v21542_v33, %v6194_v20 }
 0x522   :  { %v6818_v24 = vadd.f32 %v6817_v22, %v6816_v18  ;;  %v6622_v25 = vadd.f32 %v6621_v21, %v6620_v17  ;;  %v6751_v27 = vmul.f32 %v21605_v19, %v21605_v19  ;;  %v6625_v1 = vsel %vm6607_vm3, %v21605_v19, 0.0 }
 0x523   :  { %v6623_v28 = vsel %vm6607_vm3, %v21611_v23, 0.0  ;;  %v6750_v29 = vmul.f32 %v21611_v23, %v21611_v23  ;;  %v17398_v30 = vpop.f32.mrb[10].mxu0 }
 0x524   :  { %v6624_v31 = vadd.f32 %v6623_v28, %v6622_v25  ;;  %v6820_v32 = vadd.f32 %v6819_v26, %v6818_v24  ;;  %v21621_v34 = vadd.f32 %v17398_v30, %v21542_v33  ;;  %v6204_v38 = vpop.f32.mrb[11].mxu0  ;;  %v6823_v44 = vsel %vm6607_vm3, %v6751_v27, 0.0 }
 0x525   :  { %v6821_v39 = vsel %vm6607_vm3, %v6750_v29, 0.0  ;;  %v21627_v40 = vadd.f32 %v21542_v33, %v6204_v38 }
 0x526   :  { %v6822_v41 = vadd.f32 %v6821_v39, %v6820_v32  ;;  %v6626_v42 = vadd.f32 %v6625_v1, %v6624_v31  ;;  %v6753_v45 = vmul.f32 %v21621_v34, %v21621_v34  ;;  %v6629_v56 = vsel %vm6607_vm3, %v21621_v34, 0.0 }
 0x527   :  { %v6627_v46 = vsel %vm6607_vm3, %v21627_v40, 0.0  ;;  %v6752_v50 = vmul.f32 %v21627_v40, %v21627_v40  ;;  %v17401_v51 = vpop.f32.mrb[12].mxu0 }
 0x528   :  { %v6628_v52 = vadd.f32 %v6627_v46, %v6626_v42  ;;  %v6824_v53 = vadd.f32 %v6823_v44, %v6822_v41  ;;  %v21637_v54 = vadd.f32 %v17401_v51, %v21542_v33  ;;  %v6214_v55 = vpop.f32.mrb[13].mxu0  ;;  %v6827_v63 = vsel %vm6607_vm3, %v6753_v45, 0.0 }
 0x529   :  { %v6825_v58 = vsel %vm6607_vm3, %v6752_v50, 0.0  ;;  %v21643_v59 = vadd.f32 %v21542_v33, %v6214_v55 }
 0x52a   :  { %v6826_v60 = vadd.f32 %v6825_v58, %v6824_v53  ;;  %v6630_v62 = vadd.f32 %v6629_v56, %v6628_v52  ;;  %v6755_v36 = vmul.f32 %v21637_v54, %v21637_v54  ;;  %v6633_v7 = vsel %vm6607_vm3, %v21637_v54, 0.0 }
 0x52b   :  { %v6631_v3 = vsel %vm6607_vm3, %v21643_v59, 0.0  ;;  %v6754_v4 = vmul.f32 %v21643_v59, %v21643_v59  ;;  %v17404_v6 = vpop.f32.mrb[14].mxu0 }
 0x52c   :  { %v6632_v2 = vadd.f32 %v6631_v3, %v6630_v62  ;;  %v6828_v35 = vadd.f32 %v6827_v63, %v6826_v60  ;;  %v21653_v0 = vadd.f32 %v17404_v6, %v21542_v33  ;;  %v6224_v11 = vpop.f32.mrb[15].mxu0  ;;  %v6831_v5 = vsel %vm6607_vm3, %v6755_v36, 0.0 }
 0x52d   :  { %v6829_v9 = vsel %vm6607_vm3, %v6754_v4, 0.0  ;;  %v21659_v8 = vadd.f32 %v21542_v33, %v6224_v11 }
 0x52e   :  { %v6830_v13 = vadd.f32 %v6829_v9, %v6828_v35  ;;  %v6634_v14 = vadd.f32 %v6633_v7, %v6632_v2  ;;  %v6757_v10 = vmul.f32 %v21653_v0, %v21653_v0  ;;  %v6637_v24 = vsel %vm6607_vm3, %v21653_v0, 0.0 }
 0x52f   :  { %v6635_v12 = vsel %vm6607_vm3, %v21659_v8, 0.0  ;;  %v6756_v15 = vmul.f32 %v21659_v8, %v21659_v8  ;;  %v17407_v17 = vpop.f32.mrb[16].mxu0 }
 0x530   :  { %v6636_v18 = vadd.f32 %v6635_v12, %v6634_v14  ;;  %v6832_v20 = vadd.f32 %v6831_v5, %v6830_v13  ;;  %v21669_v21 = vadd.f32 %v17407_v17, %v21542_v33  ;;  %v6234_v22 = vpop.f32.mrb[17].mxu0  ;;  %v6835_v29 = vsel %vm6607_vm3, %v6757_v10, 0.0 }
 0x531   :  { %v6833_v25 = vsel %vm6607_vm3, %v6756_v15, 0.0  ;;  %v21675_v26 = vadd.f32 %v21542_v33, %v6234_v22 }
 0x532   :  { %v6834_v27 = vadd.f32 %v6833_v25, %v6832_v20  ;;  %v6638_v28 = vadd.f32 %v6637_v24, %v6636_v18  ;;  %v6759_v30 = vmul.f32 %v21669_v21, %v21669_v21  ;;  %v6641_v44 = vsel %vm6607_vm3, %v21669_v21, 0.0 }
 0x533   :  { %v6639_v31 = vsel %vm6607_vm3, %v21675_v26, 0.0  ;;  %v6758_v32 = vmul.f32 %v21675_v26, %v21675_v26  ;;  %v17410_v38 = vpop.f32.mrb[18].mxu0 }
 0x534   :  { %v6640_v1 = vadd.f32 %v6639_v31, %v6638_v28  ;;  %v6836_v39 = vadd.f32 %v6835_v29, %v6834_v27  ;;  %v21685_v41 = vadd.f32 %v17410_v38, %v21542_v33  ;;  %v6244_v42 = vpop.f32.mrb[19].mxu0  ;;  %v6839_v52 = vsel %vm6607_vm3, %v6759_v30, 0.0 }
 0x535   :  { %v6837_v45 = vsel %vm6607_vm3, %v6758_v32, 0.0  ;;  %v21691_v46 = vadd.f32 %v21542_v33, %v6244_v42 }
 0x536   :  { %v6838_v50 = vadd.f32 %v6837_v45, %v6836_v39  ;;  %v6642_v51 = vadd.f32 %v6641_v44, %v6640_v1  ;;  %v6761_v53 = vmul.f32 %v21685_v41, %v21685_v41  ;;  %v6645_v3 = vsel %vm6607_vm3, %v21685_v41, 0.0 }
 0x537   :  { %v6643_v55 = vsel %vm6607_vm3, %v21691_v46, 0.0  ;;  %v6760_v56 = vmul.f32 %v21691_v46, %v21691_v46  ;;  %v17413_v58 = vpop.f32.mrb[20].mxu0 }
 0x538   :  { %v6644_v60 = vadd.f32 %v6643_v55, %v6642_v51  ;;  %v6840_v62 = vadd.f32 %v6839_v52, %v6838_v50  ;;  %v21701_v63 = vadd.f32 %v17413_v58, %v21542_v33  ;;  %v6254_v36 = vpop.f32.mrb[21].mxu0  ;;  %v6843_v11 = vsel %vm6607_vm3, %v6761_v53, 0.0 }
 0x539   :  { %v6841_v4 = vsel %vm6607_vm3, %v6760_v56, 0.0  ;;  %v21707_v6 = vadd.f32 %v21542_v33, %v6254_v36 }
 0x53a   :  { %v6842_v2 = vadd.f32 %v6841_v4, %v6840_v62  ;;  %v6646_v35 = vadd.f32 %v6645_v3, %v6644_v60  ;;  %v6763_v7 = vmul.f32 %v21701_v63, %v21701_v63  ;;  %v6649_v17 = vsel %vm6607_vm3, %v21701_v63, 0.0 }
 0x53b   :  { %v6647_v9 = vsel %vm6607_vm3, %v21707_v6, 0.0  ;;  %v6762_v13 = vmul.f32 %v21707_v6, %v21707_v6  ;;  %v17416_v14 = vpop.f32.mrb[22].mxu0 }
 0x53c   :  { %v6648_v5 = vadd.f32 %v6647_v9, %v6646_v35  ;;  %v6844_v10 = vadd.f32 %v6843_v11, %v6842_v2  ;;  %v21717_v12 = vadd.f32 %v17416_v14, %v21542_v33  ;;  %v6264_v15 = vpop.f32.mrb[23].mxu0  ;;  %v6847_v25 = vsel %vm6607_vm3, %v6763_v7, 0.0 }
 0x53d   :  { %v6845_v18 = vsel %vm6607_vm3, %v6762_v13, 0.0  ;;  %v21723_v20 = vadd.f32 %v21542_v33, %v6264_v15 }
 0x53e   :  { %v6846_v22 = vadd.f32 %v6845_v18, %v6844_v10  ;;  %v6650_v24 = vadd.f32 %v6649_v17, %v6648_v5  ;;  %v6765_v27 = vmul.f32 %v21717_v12, %v21717_v12  ;;  %v6653_v39 = vsel %vm6607_vm3, %v21717_v12, 0.0 }
 0x53f   :  { %v6651_v28 = vsel %vm6607_vm3, %v21723_v20, 0.0  ;;  %v6764_v29 = vmul.f32 %v21723_v20, %v21723_v20  ;;  %v17419_v30 = vpop.f32.mrb[24].mxu0 }
 0x540   :  { %v6652_v31 = vadd.f32 %v6651_v28, %v6650_v24  ;;  %v6848_v32 = vadd.f32 %v6847_v25, %v6846_v22  ;;  %v21733_v38 = vadd.f32 %v17419_v30, %v21542_v33  ;;  %v6274_v1 = vpop.f32.mrb[25].mxu0  ;;  %v6851_v51 = vsel %vm6607_vm3, %v6765_v27, 0.0 }
 0x541   :  { %v6849_v42 = vsel %vm6607_vm3, %v6764_v29, 0.0  ;;  %v21739_v44 = vadd.f32 %v21542_v33, %v6274_v1 }
 0x542   :  { %v6850_v45 = vadd.f32 %v6849_v42, %v6848_v32  ;;  %v6654_v50 = vadd.f32 %v6653_v39, %v6652_v31  ;;  %v6767_v52 = vmul.f32 %v21733_v38, %v21733_v38  ;;  %v6657_v3 = vsel %vm6607_vm3, %v21733_v38, 0.0 }
 0x543   :  { %v6655_v53 = vsel %vm6607_vm3, %v21739_v44, 0.0  ;;  %v6766_v55 = vmul.f32 %v21739_v44, %v21739_v44  ;;  %v17422_v56 = vpop.f32.mrb[26].mxu0 }
 0x544   :  { %v6656_v58 = vadd.f32 %v6655_v53, %v6654_v50  ;;  %v6852_v60 = vadd.f32 %v6851_v51, %v6850_v45  ;;  %v21749_v62 = vadd.f32 %v17422_v56, %v21542_v33  ;;  %v6284_v36 = vpop.f32.mrb[27].mxu0  ;;  %v6855_v7 = vsel %vm6607_vm3, %v6767_v52, 0.0 }
 0x545   :  { %v6853_v4 = vsel %vm6607_vm3, %v6766_v55, 0.0  ;;  %v21755_v2 = vadd.f32 %v21542_v33, %v6284_v36 }
 0x546   :  { %v6854_v35 = vadd.f32 %v6853_v4, %v6852_v60  ;;  %v6658_v11 = vadd.f32 %v6657_v3, %v6656_v58  ;;  %v6769_v9 = vmul.f32 %v21749_v62, %v21749_v62  ;;  %v6661_v22 = vsel %vm6607_vm3, %v21749_v62, 0.0 }
 0x547   :  { %v6659_v13 = vsel %vm6607_vm3, %v21755_v2, 0.0  ;;  %v6768_v14 = vmul.f32 %v21755_v2, %v21755_v2  ;;  %v17425_v5 = vpop.f32.mrb[28].mxu0 }
 0x548   :  { %v6660_v10 = vadd.f32 %v6659_v13, %v6658_v11  ;;  %v6856_v15 = vadd.f32 %v6855_v7, %v6854_v35  ;;  %v21765_v17 = vadd.f32 %v17425_v5, %v21542_v33  ;;  %v6294_v18 = vpop.f32.mrb[29].mxu0  ;;  %v6859_v29 = vsel %vm6607_vm3, %v6769_v9, 0.0 }
 0x549   :  { %v6857_v24 = vsel %vm6607_vm3, %v6768_v14, 0.0  ;;  %v21771_v25 = vadd.f32 %v21542_v33, %v6294_v18 }
 0x54a   :  { %v6858_v27 = vadd.f32 %v6857_v24, %v6856_v15  ;;  %v6662_v28 = vadd.f32 %v6661_v22, %v6660_v10  ;;  %v6771_v30 = vmul.f32 %v21765_v17, %v21765_v17  ;;  %v6665_v51 = vsel %vm6607_vm3, %v21765_v17, 0.0 }
 0x54b   :  { %v6663_v31 = vsel %vm6607_vm3, %v21771_v25, 0.0  ;;  %v6770_v32 = vmul.f32 %v21771_v25, %v21771_v25  ;;  %v17428_v1 = vpop.f32.mrb[30].mxu0 }
 0x54c   :  { %v6664_v39 = vadd.f32 %v6663_v31, %v6662_v28  ;;  %v6860_v42 = vadd.f32 %v6859_v29, %v6858_v27  ;;  %v21781_v45 = vadd.f32 %v17428_v1, %v21542_v33  ;;  %v6304_v50 = vpop.f32.mrb[31].mxu0  ;;  %v6863_v58 = vsel %vm6607_vm3, %v6771_v30, 0.0 }
 0x54d   :  { %v6861_v52 = vsel %vm6607_vm3, %v6770_v32, 0.0  ;;  %v21787_v53 = vadd.f32 %v21542_v33, %v6304_v50 }
 0x54e   :  { %v6862_v55 = vadd.f32 %v6861_v52, %v6860_v42  ;;  %v6666_v56 = vadd.f32 %v6665_v51, %v6664_v39  ;;  %v6773_v60 = vmul.f32 %v21781_v45, %v21781_v45  ;;  %v6669_v13 = vsel %vm6607_vm3, %v21781_v45, 0.0 }
 0x54f   :  { %v6667_v36 = vsel %vm6607_vm3, %v21787_v53, 0.0  ;;  %v6772_v3 = vmul.f32 %v21787_v53, %v21787_v53  ;;  %v17431_v4 = vpop.f32.mrb[32].mxu0 }
 0x550   :  { %v6668_v35 = vadd.f32 %v6667_v36, %v6666_v56  ;;  %v6864_v11 = vadd.f32 %v6863_v58, %v6862_v55  ;;  %v21797_v7 = vadd.f32 %v17431_v4, %v21542_v33  ;;  %v6314_v9 = vpop.f32.mrb[33].mxu0  ;;  %v6867_v18 = vsel %vm6607_vm3, %v6773_v60, 0.0 }
 0x551   :  { %v6865_v14 = vsel %vm6607_vm3, %v6772_v3, 0.0  ;;  %v21803_v5 = vadd.f32 %v21542_v33, %v6314_v9 }
 0x552   :  { %v6866_v10 = vadd.f32 %v6865_v14, %v6864_v11  ;;  %v6670_v15 = vadd.f32 %v6669_v13, %v6668_v35  ;;  %v6775_v22 = vmul.f32 %v21797_v7, %v21797_v7  ;;  %v6673_v1 = vsel %vm6607_vm3, %v21797_v7, 0.0 }
 0x553   :  { %v6671_v24 = vsel %vm6607_vm3, %v21803_v5, 0.0  ;;  %v6774_v27 = vmul.f32 %v21803_v5, %v21803_v5  ;;  %v17434_v28 = vpop.f32.mrb[34].mxu0 }
 0x554   :  { %v6672_v29 = vadd.f32 %v6671_v24, %v6670_v15  ;;  %v6868_v30 = vadd.f32 %v6867_v18, %v6866_v10  ;;  %v21813_v31 = vadd.f32 %v17434_v28, %v21542_v33  ;;  %v6324_v32 = vpop.f32.mrb[35].mxu0  ;;  %v6871_v52 = vsel %vm6607_vm3, %v6775_v22, 0.0 }
 0x555   :  { %v6869_v39 = vsel %vm6607_vm3, %v6774_v27, 0.0  ;;  %v21819_v42 = vadd.f32 %v21542_v33, %v6324_v32 }
 0x556   :  { %v6870_v50 = vadd.f32 %v6869_v39, %v6868_v30  ;;  %v6674_v51 = vadd.f32 %v6673_v1, %v6672_v29  ;;  %v6777_v55 = vmul.f32 %v21813_v31, %v21813_v31  ;;  %v6677_v11 = vsel %vm6607_vm3, %v21813_v31, 0.0 }
 0x557   :  { %v6675_v56 = vsel %vm6607_vm3, %v21819_v42, 0.0  ;;  %v6776_v58 = vmul.f32 %v21819_v42, %v21819_v42  ;;  %v17437_v60 = vpop.f32.mrb[36].mxu0 }
 0x558   :  { %v6676_v36 = vadd.f32 %v6675_v56, %v6674_v51  ;;  %v6872_v3 = vadd.f32 %v6871_v52, %v6870_v50  ;;  %v21829_v4 = vadd.f32 %v17437_v60, %v21542_v33  ;;  %v6334_v35 = vpop.f32.mrb[37].mxu0  ;;  %v6875_v15 = vsel %vm6607_vm3, %v6777_v55, 0.0 }
 0x559   :  { %v6873_v9 = vsel %vm6607_vm3, %v6776_v58, 0.0  ;;  %v21835_v13 = vadd.f32 %v21542_v33, %v6334_v35 }
 0x55a   :  { %v6874_v14 = vadd.f32 %v6873_v9, %v6872_v3  ;;  %v6678_v10 = vadd.f32 %v6677_v11, %v6676_v36  ;;  %v6779_v18 = vmul.f32 %v21829_v4, %v21829_v4  ;;  %v6681_v1 = vsel %vm6607_vm3, %v21829_v4, 0.0 }
 0x55b   :  { %v6679_v22 = vsel %vm6607_vm3, %v21835_v13, 0.0  ;;  %v6778_v24 = vmul.f32 %v21835_v13, %v21835_v13  ;;  %v17440_v27 = vpop.f32.mrb[38].mxu0 }
 0x55c   :  { %v6680_v28 = vadd.f32 %v6679_v22, %v6678_v10  ;;  %v6876_v29 = vadd.f32 %v6875_v15, %v6874_v14  ;;  %v21845_v30 = vadd.f32 %v17440_v27, %v21542_v33  ;;  %v6344_v32 = vpop.f32.mrb[39].mxu0  ;;  %v6879_v55 = vsel %vm6607_vm3, %v6779_v18, 0.0 }
 0x55d   :  { %v6877_v39 = vsel %vm6607_vm3, %v6778_v24, 0.0  ;;  %v21851_v50 = vadd.f32 %v21542_v33, %v6344_v32 }
 0x55e   :  { %25788 = vst [vmem:[#allocation9_spill] sm:$0xff] %v21845_v30  ;;  %v6878_v51 = vadd.f32 %v6877_v39, %v6876_v29  ;;  %v6682_v52 = vadd.f32 %v6681_v1, %v6680_v28  ;;  %v6781_v56 = vmul.f32 %v21845_v30, %v21845_v30  ;;  %v6685_v14 = vsel %vm6607_vm3, %v21845_v30, 0.0 }
 0x55f   :  { %v6683_v58 = vsel %vm6607_vm3, %v21851_v50, 0.0  ;;  %v6780_v60 = vmul.f32 %v21851_v50, %v21851_v50  ;;  %v17443_v36 = vpop.f32.mrb[40].mxu0 }
 0x560   :  { %v6684_v3 = vadd.f32 %v6683_v58, %v6682_v52  ;;  %v6880_v35 = vadd.f32 %v6879_v55, %v6878_v51  ;;  %v21861_v11 = vadd.f32 %v17443_v36, %v21542_v33  ;;  %v6354_v9 = vpop.f32.mrb[41].mxu0  ;;  %v6883_v24 = vsel %vm6607_vm3, %v6781_v56, 0.0 }
 0x561   :  { %v6881_v10 = vsel %vm6607_vm3, %v6780_v60, 0.0  ;;  %v21867_v15 = vadd.f32 %v21542_v33, %v6354_v9 }
 0x562   :  { %25789 = vst [vmem:[#allocation10_spill] sm:$0xff] %v21861_v11  ;;  %v6882_v18 = vadd.f32 %v6881_v10, %v6880_v35  ;;  %v6686_v22 = vadd.f32 %v6685_v14, %v6684_v3  ;;  %v6783_v27 = vmul.f32 %v21861_v11, %v21861_v11  ;;  %v6689_v55 = vsel %vm6607_vm3, %v21861_v11, 0.0 }
 0x563   :  { %25790 = vst [vmem:[#allocation11_spill] sm:$0xff] %v21867_v15  ;;  %v6687_v28 = vsel %vm6607_vm3, %v21867_v15, 0.0  ;;  %v6782_v29 = vmul.f32 %v21867_v15, %v21867_v15  ;;  %v17446_v32 = vpop.f32.mrb[42].mxu0 }
 0x564   :  { %v6688_v1 = vadd.f32 %v6687_v28, %v6686_v22  ;;  %v6884_v39 = vadd.f32 %v6883_v24, %v6882_v18  ;;  %v21877_v51 = vadd.f32 %v17446_v32, %v21542_v33  ;;  %v6364_v52 = vpop.f32.mrb[43].mxu0  ;;  %v6887_v3 = vsel %vm6607_vm3, %v6783_v27, 0.0 }
 0x565   :  { %v6885_v56 = vsel %vm6607_vm3, %v6782_v29, 0.0  ;;  %v21883_v58 = vadd.f32 %v21542_v33, %v6364_v52 }
 0x566   :  { %25791 = vst [vmem:[#allocation12_spill] sm:$0xff] %v21877_v51  ;;  %v6886_v60 = vadd.f32 %v6885_v56, %v6884_v39  ;;  %v6690_v36 = vadd.f32 %v6689_v55, %v6688_v1  ;;  %v6785_v35 = vmul.f32 %v21877_v51, %v21877_v51  ;;  %v6693_v29 = vsel %vm6607_vm3, %v21877_v51, 0.0 }
 0x567   :  { %25792 = vst [vmem:[#allocation13_spill] sm:$0xff] %v21883_v58  ;;  %v6691_v9 = vsel %vm6607_vm3, %v21883_v58, 0.0  ;;  %v6784_v14 = vmul.f32 %v21883_v58, %v21883_v58  ;;  %v17449_v10 = vpop.f32.mrb[44].mxu0 }
 0x568   :  { %v6692_v18 = vadd.f32 %v6691_v9, %v6690_v36  ;;  %v6888_v22 = vadd.f32 %v6887_v3, %v6886_v60  ;;  %v21893_v24 = vadd.f32 %v17449_v10, %v21542_v33  ;;  %v6374_v28 = vpop.f32.mrb[45].mxu0  ;;  %v6891_v52 = vsel %vm6607_vm3, %v6785_v35, 0.0  ;;  %v14840_v3 = vld [vmem:[%s25433_s5 + $0x8] sm:$0xff] }
 0x569   :  { %v6889_v27 = vsel %vm6607_vm3, %v6784_v14, 0.0  ;;  %v21899_v32 = vadd.f32 %v21542_v33, %v6374_v28  ;;  %v7394_v9 = vld [vmem:[#allocation3 + $0x1] sm:$0xff]  ;;  %17477 = vmatprep.subr.mxu1 %v14840_v3  ;;  %v7395_v28 = vld [vmem:[#allocation3 + $0x9] sm:$0xff] }
 0x56a   :  { %25793 = vst [vmem:[#allocation14_spill] sm:$0xff] %v21893_v24  ;;  %v6890_v1 = vadd.f32 %v6889_v27, %v6888_v22  ;;  %v6694_v39 = vadd.f32 %v6693_v29, %v6692_v18  ;;  %v6787_v55 = vmul.f32 %v21893_v24, %v21893_v24  ;;  %v7393_v14 = vld [vmem:[%s25433_s5] sm:$0xff]  ;;  %17479 = vmatprep.mubr.msk.f32.mxu1 %vm6607_vm3, %v7394_v9  ;;  %v6697_v29 = vsel %vm6607_vm3, %v21893_v24, 0.0 }
 0x56b   :  { %25794 = vst [vmem:[#allocation15_spill] sm:$0xff] %v21899_v32  ;;  %v6695_v56 = vsel %vm6607_vm3, %v21899_v32, 0.0  ;;  %v6786_v60 = vmul.f32 %v21899_v32, %v21899_v32  ;;  %v17452_v36 = vpop.f32.mrb[46].mxu0  ;;  %17478 = vmatpush3.msra.mxu1 %v14840_v3 }
 0x56c   :  { %v6696_v35 = vadd.f32 %v6695_v56, %v6694_v39  ;;  %v6892_v10 = vadd.f32 %v6891_v52, %v6890_v1  ;;  %v21915_v18 = vadd.f32 %v17452_v36, %v21542_v33  ;;  %v6384_v22 = vpop.f32.mrb[47].mxu0  ;;  %17575 = vmatprep.subr.mxu1 %v7393_v14  ;;  %17480 = vmatmul.mubr.msk.f32.vlgmr.msra.gmra.mrb[0].mxu1 %vm6607_vm3, %v7395_v28  ;;  %v6895_v1 = vsel %vm6607_vm3, %v6787_v55, 0.0 }
 0x56d   :  { %v6893_v27 = vsel %vm6607_vm3, %v6786_v60, 0.0  ;;  %v21922_v32 = vadd.f32 %v21542_v33, %v6384_v22  ;;  %17576 = vmatpush3.msra.mxu1 %v7393_v14 }
 0x56e   :  { %25795 = vst [vmem:[#allocation16_spill] sm:$0xff] %v21915_v18  ;;  %v6894_v51 = vadd.f32 %v6893_v27, %v6892_v10  ;;  %v6698_v39 = vadd.f32 %v6697_v29, %v6696_v35  ;;  %v6789_v52 = vmul.f32 %v21915_v18, %v21915_v18  ;;  %v6701_v55 = vsel %vm6607_vm3, %v21915_v18, 0.0 }
 0x56f   :  { %25796 = vst [vmem:[#allocation17_spill] sm:$0xff] %v21922_v32  ;;  %v6699_v56 = vsel %vm6607_vm3, %v21922_v32, 0.0  ;;  %v6788_v60 = vmul.f32 %v21922_v32, %v21922_v32  ;;  %v17455_v36 = vpop.f32.mrb[48].mxu0 }
 0x570   :  { %v6700_v9 = vadd.f32 %v6699_v56, %v6698_v39  ;;  %v6896_v3 = vadd.f32 %v6895_v1, %v6894_v51  ;;  %v21933_v35 = vadd.f32 %v17455_v36, %v21542_v33  ;;  %v6394_v10 = vpop.f32.mrb[49].mxu0  ;;  %v6899_v32 = vsel %vm6607_vm3, %v6789_v52, 0.0 }
 0x571   :  { %v6897_v22 = vsel %vm6607_vm3, %v6788_v60, 0.0  ;;  %v21939_v28 = vadd.f32 %v21542_v33, %v6394_v10 }
 0x572   :  { %25797 = vst [vmem:[#allocation18_spill] sm:$0xff] %v21933_v35  ;;  %v6898_v29 = vadd.f32 %v6897_v22, %v6896_v3  ;;  %v6702_v27 = vadd.f32 %v6701_v55, %v6700_v9  ;;  %v6791_v14 = vmul.f32 %v21933_v35, %v21933_v35  ;;  %v6705_v9 = vsel %vm6607_vm3, %v21933_v35, 0.0 }
 0x573   :  { %25798 = vst [vmem:[#allocation19_spill] sm:$0xff] %v21939_v28  ;;  %v6703_v51 = vsel %vm6607_vm3, %v21939_v28, 0.0  ;;  %v6790_v39 = vmul.f32 %v21939_v28, %v21939_v28  ;;  %v17458_v1 = vpop.f32.mrb[50].mxu0 }
 0x574   :  { %v6704_v56 = vadd.f32 %v6703_v51, %v6702_v27  ;;  %v6900_v36 = vadd.f32 %v6899_v32, %v6898_v29  ;;  %v21949_v60 = vadd.f32 %v17458_v1, %v21542_v33  ;;  %v6404_v10 = vpop.f32.mrb[51].mxu0  ;;  %v6903_v18 = vsel %vm6607_vm3, %v6791_v14, 0.0 }
 0x575   :  { %v6901_v52 = vsel %vm6607_vm3, %v6790_v39, 0.0  ;;  %v21955_v3 = vadd.f32 %v21542_v33, %v6404_v10 }
 0x576   :  { %25799 = vst [vmem:[#allocation20_spill] sm:$0xff] %v21949_v60  ;;  %v6902_v55 = vadd.f32 %v6901_v52, %v6900_v36  ;;  %v6706_v22 = vadd.f32 %v6705_v9, %v6704_v56  ;;  %v6793_v27 = vmul.f32 %v21949_v60, %v21949_v60  ;;  %v6709_v56 = vsel %vm6607_vm3, %v21949_v60, 0.0 }
 0x577   :  { %25800 = vst [vmem:[#allocation21_spill] sm:$0xff] %v21955_v3  ;;  %v6707_v32 = vsel %vm6607_vm3, %v21955_v3, 0.0  ;;  %v6792_v29 = vmul.f32 %v21955_v3, %v21955_v3  ;;  %v17461_v51 = vpop.f32.mrb[52].mxu0 }
 0x578   :  { %v6708_v1 = vadd.f32 %v6707_v32, %v6706_v22  ;;  %v6904_v35 = vadd.f32 %v6903_v18, %v6902_v55  ;;  %v21965_v39 = vadd.f32 %v17461_v51, %v21542_v33  ;;  %v6414_v10 = vpop.f32.mrb[53].mxu0  ;;  %v6907_v28 = vsel %vm6607_vm3, %v6793_v27, 0.0 }
 0x579   :  { %v6905_v14 = vsel %vm6607_vm3, %v6792_v29, 0.0  ;;  %v21971_v36 = vadd.f32 %v21542_v33, %v6414_v10 }
 0x57a   :  { %25801 = vst [vmem:[#allocation22_spill] sm:$0xff] %v21965_v39  ;;  %v6906_v9 = vadd.f32 %v6905_v14, %v6904_v35  ;;  %v6710_v52 = vadd.f32 %v6709_v56, %v6708_v1  ;;  %v6795_v22 = vmul.f32 %v21965_v39, %v21965_v39  ;;  %v6713_v35 = vsel %vm6607_vm3, %v21965_v39, 0.0 }
 0x57b   :  { %25802 = vst [vmem:[#allocation23_spill] sm:$0xff] %v21971_v36  ;;  %v6711_v18 = vsel %vm6607_vm3, %v21971_v36, 0.0  ;;  %v6794_v55 = vmul.f32 %v21971_v36, %v21971_v36  ;;  %v17464_v32 = vpop.f32.mrb[54].mxu0 }
 0x57c   :  { %v6712_v51 = vadd.f32 %v6711_v18, %v6710_v52  ;;  %v6908_v60 = vadd.f32 %v6907_v28, %v6906_v9  ;;  %v21981_v29 = vadd.f32 %v17464_v32, %v21542_v33  ;;  %v6424_v10 = vpop.f32.mrb[55].mxu0  ;;  %v6911_v3 = vsel %vm6607_vm3, %v6795_v22, 0.0 }
 0x57d   :  { %v6909_v27 = vsel %vm6607_vm3, %v6794_v55, 0.0  ;;  %v21987_v1 = vadd.f32 %v21542_v33, %v6424_v10 }
 0x57e   :  { %25803 = vst [vmem:[#allocation24_spill] sm:$0xff] %v21981_v29  ;;  %v6910_v56 = vadd.f32 %v6909_v27, %v6908_v60  ;;  %v6714_v14 = vadd.f32 %v6713_v35, %v6712_v51  ;;  %v6797_v52 = vmul.f32 %v21981_v29, %v21981_v29  ;;  %v6717_v60 = vsel %vm6607_vm3, %v21981_v29, 0.0 }
 0x57f   :  { %25804 = vst [vmem:[#allocation25_spill] sm:$0xff] %v21987_v1  ;;  %v6715_v28 = vsel %vm6607_vm3, %v21987_v1, 0.0  ;;  %v6796_v9 = vmul.f32 %v21987_v1, %v21987_v1  ;;  %v17467_v18 = vpop.f32.mrb[56].mxu0 }
 0x580   :  { %v6716_v32 = vadd.f32 %v6715_v28, %v6714_v14  ;;  %v6912_v39 = vadd.f32 %v6911_v3, %v6910_v56  ;;  %v21997_v55 = vadd.f32 %v17467_v18, %v21542_v33  ;;  %v6434_v10 = vpop.f32.mrb[57].mxu0  ;;  %v6915_v36 = vsel %vm6607_vm3, %v6797_v52, 0.0 }
 0x581   :  { %v6913_v22 = vsel %vm6607_vm3, %v6796_v9, 0.0  ;;  %v22003_v51 = vadd.f32 %v21542_v33, %v6434_v10 }
 0x582   :  { %25805 = vst [vmem:[#allocation26_spill] sm:$0xff] %v21997_v55  ;;  %v6914_v35 = vadd.f32 %v6913_v22, %v6912_v39  ;;  %v6718_v27 = vadd.f32 %v6717_v60, %v6716_v32  ;;  %v6799_v14 = vmul.f32 %v21997_v55, %v21997_v55  ;;  %v6721_v39 = vsel %vm6607_vm3, %v21997_v55, 0.0 }
 0x583   :  { %25806 = vst [vmem:[#allocation27_spill] sm:$0xff] %v22003_v51  ;;  %v6719_v3 = vsel %vm6607_vm3, %v22003_v51, 0.0  ;;  %v6798_v56 = vmul.f32 %v22003_v51, %v22003_v51  ;;  %v17470_v28 = vpop.f32.mrb[58].mxu0 }
 0x584   :  { %v6720_v18 = vadd.f32 %v6719_v3, %v6718_v27  ;;  %v6916_v29 = vadd.f32 %v6915_v36, %v6914_v35  ;;  %v22013_v9 = vadd.f32 %v17470_v28, %v21542_v33  ;;  %v6444_v10 = vpop.f32.mrb[59].mxu0  ;;  %v6919_v1 = vsel %vm6607_vm3, %v6799_v14, 0.0 }
 0x585   :  { %v6917_v52 = vsel %vm6607_vm3, %v6798_v56, 0.0  ;;  %v22019_v32 = vadd.f32 %v21542_v33, %v6444_v10 }
 0x586   :  { %25807 = vst [vmem:[#allocation28_spill] sm:$0xff] %v22013_v9  ;;  %v6918_v60 = vadd.f32 %v6917_v52, %v6916_v29  ;;  %v6722_v22 = vadd.f32 %v6721_v39, %v6720_v18  ;;  %v6801_v27 = vmul.f32 %v22013_v9, %v22013_v9  ;;  %v6725_v29 = vsel %vm6607_vm3, %v22013_v9, 0.0 }
 0x587   :  { %25808 = vst [vmem:[#allocation29_spill] sm:$0xff] %v22019_v32  ;;  %v6723_v36 = vsel %vm6607_vm3, %v22019_v32, 0.0  ;;  %v6800_v35 = vmul.f32 %v22019_v32, %v22019_v32  ;;  %v17473_v3 = vpop.f32.mrb[60].mxu0 }
 0x588   :  { %v6724_v28 = vadd.f32 %v6723_v36, %v6722_v22  ;;  %v6920_v55 = vadd.f32 %v6919_v1, %v6918_v60  ;;  %v22029_v56 = vadd.f32 %v17473_v3, %v21542_v33  ;;  %v6454_v10 = vpop.f32.mrb[61].mxu0  ;;  %v6923_v51 = vsel %vm6607_vm3, %v6801_v27, 0.0 }
 0x589   :  { %v6921_v14 = vsel %vm6607_vm3, %v6800_v35, 0.0  ;;  %v22035_v18 = vadd.f32 %v21542_v33, %v6454_v10 }
 0x58a   :  { %25809 = vst [vmem:[#allocation30_spill] sm:$0xff] %v22029_v56  ;;  %v6922_v39 = vadd.f32 %v6921_v14, %v6920_v55  ;;  %v6726_v52 = vadd.f32 %v6725_v29, %v6724_v28  ;;  %v6803_v22 = vmul.f32 %v22029_v56, %v22029_v56  ;;  %v6729_v55 = vsel %vm6607_vm3, %v22029_v56, 0.0 }
 0x58b   :  { %25810 = vst [vmem:[#allocation31_spill] sm:$0xff] %v22035_v18  ;;  %v6727_v1 = vsel %vm6607_vm3, %v22035_v18, 0.0  ;;  %v6802_v60 = vmul.f32 %v22035_v18, %v22035_v18  ;;  %v17476_v36 = vpop.f32.mrb[62].mxu0 }
 0x58c   :  { %v6728_v3 = vadd.f32 %v6727_v1, %v6726_v52  ;;  %v6924_v9 = vadd.f32 %v6923_v51, %v6922_v39  ;;  %v22045_v35 = vadd.f32 %v17476_v36, %v21542_v33  ;;  %v6464_v10 = vpop.f32.mrb[63].mxu0  ;;  %v6927_v32 = vsel %vm6607_vm3, %v6803_v22, 0.0 }
 0x58d   :  { %v6925_v27 = vsel %vm6607_vm3, %v6802_v60, 0.0  ;;  %v6605_v28 = vadd.f32 %v21542_v33, %v6464_v10 }
 0x58e   :  { %25811 = vst [vmem:[#allocation32_spill] sm:$0xff] %v22045_v35  ;;  %v6926_v29 = vadd.f32 %v6925_v27, %v6924_v9  ;;  %v6730_v14 = vadd.f32 %v6729_v55, %v6728_v3  ;;  %v6805_v18 = vmul.f32 %v22045_v35, %v22045_v35  ;;  %v6733_v36 = vsel %vm6607_vm3, %v22045_v35, 0.0 }
 0x58f   :  { %v6731_v51 = vsel %vm6607_vm3, %v6605_v28, 0.0  ;;  %v6804_v39 = vmul.f32 %v6605_v28, %v6605_v28 }
 0x590   :  { %v6732_v52 = vadd.f32 %v6731_v51, %v6730_v14  ;;  %v6928_v1 = vadd.f32 %v6927_v32, %v6926_v29  ;;  %v6931_v33 = vsel %vm6607_vm3, %v6805_v18, 0.0  ;;  %v6949_v18 = vlaneseq }
 0x591   :  { %v6929_v56 = vsel %vm6607_vm3, %v6804_v39, 0.0 }
 0x592   :  { %v6734_v60 = vadd.f32 %v6733_v36, %v6732_v52  ;;  %v6930_v24 = vadd.f32 %v6929_v56, %v6928_v1  ;;  %v272_v36 = vld [vmem:[%s25434_s3] sm:$0x1] }
 0x594   :  { %v6735_v9 = vrot.slane %v6734_v60, 4  ;;  %v6932_v3 = vadd.f32 %v6931_v33, %v6930_v24  ;;  %v6950_v24 = vshrl.u32 %v6949_v18, 7 }
 0x596   :  { %v6736_v22 = vadd.f32 %v6735_v9, %v6734_v60  ;;  %v6933_v10 = vrot.slane %v6932_v3, 4  ;;  %v22062_v60 = vsub.s32 0, %v6950_v24  ;;  %v25819_v24 = vld [vmem:[#allocation14_spill] sm:$0xff] }
 0x598   :  { %v6737_v55 = vrot.slane %v6736_v22, 2  ;;  %v6934_v27 = vadd.f32 %v6933_v10, %v6932_v3  ;;  %25812 = vst [vmem:[#allocation33_spill] sm:$0xff] %v22062_v60 }
 0x59a   :  { %v6738_v58 = vadd.f32 %v6737_v55, %v6736_v22  ;;  %v6935_v11 = vrot.slane %v6934_v27, 2 }
 0x59c   :  { %v6739_v15 = vrot.slane %v6738_v58, 1  ;;  %v6936_v14 = vadd.f32 %v6935_v11, %v6934_v27 }
 0x59e   :  { %v6740_v32 = vadd.f32 %v6739_v15, %v6738_v58  ;;  %v6937_v29 = vrot.slane %v6936_v14, 1  ;;  %v273_v15 = vld [vmem:[%s25435_s4] sm:$0x1] }
 0x5a0   :  { %v6741_v51 = vmul.f32 0.001953125, %v6740_v32  ;;  %v6938_v35 = vadd.f32 %v6937_v29, %v6936_v14  ;;  %v25813_v29 = vld [vmem:[#allocation9_spill] sm:$0xff] }
 0x5a2   :  { %v6939_v30 = vmul.f32 0.001953125, %v6938_v35  ;;  %v6940_v39 = vmul.f32 %v6741_v51, %v6741_v51 }
 0x5a4   :  { %v6941_v52 = vsub.f32 %v6939_v30, %v6940_v39  ;;  %v25815_v39 = vld [vmem:[#allocation10_spill] sm:$0xff] }
 0x5a6   :  { %v6942_v56 = vmax.f32 %v6941_v52, 0.0  ;;  %v25816_v52 = vld [vmem:[#allocation13_spill] sm:$0xff] }
 0x5a8   :  { %v6943_v1 = vadd.f32 1e-05, %v6942_v56  ;;  %v25817_v56 = vld [vmem:[#allocation12_spill] sm:$0xff] }
 0x5aa   :  { %19384 = vrsqrt.f32 %v6943_v1  ;;  %v25818_v1 = vld [vmem:[#allocation15_spill] sm:$0xff] }
 0x5b4   :  { %v19385_v33 = vpop.eup %19384 }
 0x5b5   :  { %v6945_v11 = vmul.f32 %v19385_v33, %v272_v36  ;;  %v25820_v33 = vld [vmem:[#allocation17_spill] sm:$0xff] }
 0x5b7   :  { %v6946_v58 = vmul.f32 %v6945_v11, %v6741_v51  ;;  %v22068_v30 = vrot.slane %v6945_v11, %v22062_v60  ;;  %v25814_v51 = vld [vmem:[#allocation11_spill] sm:$0xff] }
 0x5b9   :  { %v6947_v35 = vsub.f32 %v273_v15, %v6946_v58  ;;  %v7016_v9 = vmul.f32 %v22068_v30, %v6605_v28  ;;  %v22073_v3 = vmul.f32 %v22068_v30, %v21548_v16  ;;  %v22077_v22 = vmul.f32 %v22068_v30, %v21545_v37  ;;  %v25821_v15 = vld [vmem:[#allocation16_spill] sm:$0xff] }
 0x5ba   :  { %v22081_v10 = vmul.f32 %v22068_v30, %v21564_v47  ;;  %v22085_v55 = vmul.f32 %v22068_v30, %v21559_v43  ;;  %v22089_v27 = vmul.f32 %v22068_v30, %v21579_v61  ;;  %v22093_v16 = vmul.f32 %v22068_v30, %v21573_v57 }
 0x5bb   :  { %v22096_v28 = vrot.slane %v6947_v35, %v22062_v60  ;;  %v22100_v37 = vmul.f32 %v22068_v30, %v21595_v49  ;;  %v22104_v47 = vmul.f32 %v22068_v30, %v21589_v48  ;;  %v22108_v43 = vmul.f32 %v22068_v30, %v21611_v23  ;;  %v25822_v35 = vld [vmem:[#allocation19_spill] sm:$0xff] }
 0x5bc   :  { %v22112_v61 = vmul.f32 %v22068_v30, %v21605_v19  ;;  %v22116_v57 = vmul.f32 %v22068_v30, %v21627_v40  ;;  %v22120_v49 = vmul.f32 %v22068_v30, %v21621_v34  ;;  %v22124_v48 = vmul.f32 %v22068_v30, %v21643_v59  ;;  %v25835_v60 = vld [vmem:[#allocation27_spill] sm:$0xff] }
 0x5bd   :  { %v7086_v14 = vadd.f32 %v22096_v28, %v7016_v9  ;;  %v22129_v23 = vmul.f32 %v22068_v30, %v21637_v54  ;;  %v22133_v19 = vmul.f32 %v22068_v30, %v21659_v8  ;;  %v22137_v40 = vmul.f32 %v22068_v30, %v21653_v0 }
 0x5be   :  { %v22141_v34 = vmul.f32 %v22068_v30, %v21675_v26  ;;  %v22145_v59 = vmul.f32 %v22068_v30, %v21669_v21  ;;  %v22149_v54 = vmul.f32 %v22068_v30, %v21691_v46  ;;  %v22153_v8 = vmul.f32 %v22068_v30, %v21685_v41 }
 0x5bf   :  { %v7150_v32 = vmax.f32 %v7086_v14, 0.0  ;;  %v22157_v0 = vmul.f32 %v22068_v30, %v21707_v6  ;;  %v22161_v26 = vmul.f32 %v22068_v30, %v21701_v63  ;;  %v22165_v21 = vmul.f32 %v22068_v30, %v21723_v20  ;;  %v25823_v14 = vld [vmem:[#allocation18_spill] sm:$0xff] }
 0x5c0   :  { %v22169_v46 = vmul.f32 %v22068_v30, %v21717_v12  ;;  %v22173_v41 = vmul.f32 %v22068_v30, %v21739_v44  ;;  %v22177_v6 = vmul.f32 %v22068_v30, %v21733_v38  ;;  %v22181_v63 = vmul.f32 %v22068_v30, %v21755_v2 }
 0x5c1   :  { %7324 = vst.msk [vmem:[#allocation3 + $0x331] sm:$0xff] %vm6607_vm3, %v7150_v32  ;;  %v22186_v20 = vmul.f32 %v22068_v30, %v21749_v62  ;;  %v22190_v12 = vmul.f32 %v22068_v30, %v21771_v25  ;;  %v22194_v44 = vmul.f32 %v22068_v30, %v21765_v17  ;;  %v22198_v38 = vmul.f32 %v22068_v30, %v21787_v53 }
 0x5c2   :  { %v22202_v2 = vmul.f32 %v22068_v30, %v21781_v45  ;;  %v22206_v62 = vmul.f32 %v22068_v30, %v21803_v5  ;;  %v22210_v25 = vmul.f32 %v22068_v30, %v21797_v7  ;;  %v22214_v17 = vmul.f32 %v22068_v30, %v21819_v42 }
 0x5c3   :  { %v22218_v53 = vmul.f32 %v22068_v30, %v21813_v31  ;;  %v22222_v45 = vmul.f32 %v22068_v30, %v21835_v13  ;;  %v22226_v5 = vmul.f32 %v22068_v30, %v21829_v4  ;;  %v22230_v7 = vmul.f32 %v22068_v30, %v21851_v50 }
 0x5c4   :  { %v22234_v42 = vmul.f32 %v22068_v30, %v25813_v29  ;;  %v22238_v31 = vmul.f32 %v22068_v30, %v25814_v51  ;;  %v22242_v13 = vmul.f32 %v22068_v30, %v25815_v39  ;;  %v22246_v4 = vmul.f32 %v22068_v30, %v25816_v52  ;;  %v25824_v29 = vld [vmem:[#allocation21_spill] sm:$0xff]  ;;  %v25825_v39 = vld [vmem:[#allocation20_spill] sm:$0xff] }
 0x5c5   :  { %v22250_v50 = vmul.f32 %v22068_v30, %v25817_v56  ;;  %v22254_v18 = vmul.f32 %v22068_v30, %v25818_v1  ;;  %v22258_v36 = vmul.f32 %v22068_v30, %v25819_v24  ;;  %v22262_v11 = vmul.f32 %v22068_v30, %v25820_v33  ;;  %v25827_v56 = vld [vmem:[#allocation23_spill] sm:$0xff]  ;;  %v25829_v24 = vld [vmem:[#allocation22_spill] sm:$0xff] }
 0x5c6   :  { %v22266_v58 = vmul.f32 %v22068_v30, %v25821_v15  ;;  %v22270_v9 = vmul.f32 %v22068_v30, %v25822_v35  ;;  %v22274_v32 = vmul.f32 %v22068_v30, %v25823_v14  ;;  %v22278_v51 = vmul.f32 %v22068_v30, %v25824_v29  ;;  %v25831_v15 = vld [vmem:[#allocation25_spill] sm:$0xff]  ;;  %v25833_v14 = vld [vmem:[#allocation24_spill] sm:$0xff] }
 0x5c7   :  { %v22282_v52 = vmul.f32 %v22068_v30, %v25825_v39  ;;  %v22286_v1 = vmul.f32 %v22068_v30, %v25827_v56  ;;  %v22290_v33 = vmul.f32 %v22068_v30, %v25829_v24  ;;  %v22294_v35 = vmul.f32 %v22068_v30, %v25831_v15 }
 0x5c8   :  { %v22298_v29 = vmul.f32 %v22068_v30, %v25833_v14  ;;  %v22302_v39 = vmul.f32 %v22068_v30, %v25835_v60 }
 0x5c9   :  { %25826 = vst [vmem:[#allocation34_spill] sm:$0xff] %v22282_v52  ;;  %25828 = vst [vmem:[#allocation35_spill] sm:$0xff] %v22286_v1  ;;  %v25837_v52 = vld [vmem:[#allocation26_spill] sm:$0xff]  ;;  %v25838_v1 = vld [vmem:[#allocation29_spill] sm:$0xff] }
 0x5ca   :  { %25830 = vst [vmem:[#allocation36_spill] sm:$0xff] %v22290_v33  ;;  %25832 = vst [vmem:[#allocation37_spill] sm:$0xff] %v22294_v35  ;;  %v22306_v56 = vmul.f32 %v22068_v30, %v25837_v52  ;;  %v22310_v24 = vmul.f32 %v22068_v30, %v25838_v1  ;;  %v25839_v33 = vld [vmem:[#allocation28_spill] sm:$0xff]  ;;  %v25840_v35 = vld [vmem:[#allocation31_spill] sm:$0xff]  ;;  %v22330_v1 = vadd.f32 %v22096_v28, %v22073_v3 }
 0x5cb   :  { %25834 = vst [vmem:[#allocation38_spill] sm:$0xff] %v22298_v29  ;;  %25836 = vst [vmem:[#allocation39_spill] sm:$0xff] %v22302_v39  ;;  %v22314_v15 = vmul.f32 %v22068_v30, %v25839_v33  ;;  %v22318_v14 = vmul.f32 %v22068_v30, %v25840_v35  ;;  %v25841_v29 = vld [vmem:[#allocation30_spill] sm:$0xff]  ;;  %v25842_v39 = vld [vmem:[#allocation32_spill] sm:$0xff]  ;;  %v22334_v33 = vadd.f32 %v22096_v28, %v22077_v22 }
 0x5cc   :  { %v22322_v60 = vmul.f32 %v22068_v30, %v25841_v29  ;;  %v22326_v52 = vmul.f32 %v22068_v30, %v25842_v39  ;;  %v22338_v35 = vadd.f32 %v22096_v28, %v22081_v10  ;;  %v22342_v29 = vadd.f32 %v22096_v28, %v22085_v55 }
 0x5cd   :  { %v22346_v30 = vadd.f32 %v22096_v28, %v22089_v27  ;;  %v22350_v3 = vadd.f32 %v22096_v28, %v22093_v16  ;;  %v22354_v22 = vadd.f32 %v22096_v28, %v22100_v37  ;;  %v22358_v10 = vadd.f32 %v22096_v28, %v22104_v47 }
 0x5ce   :  { %v22362_v55 = vadd.f32 %v22096_v28, %v22108_v43  ;;  %v22366_v27 = vadd.f32 %v22096_v28, %v22112_v61  ;;  %v22370_v16 = vadd.f32 %v22096_v28, %v22116_v57  ;;  %v22374_v37 = vadd.f32 %v22096_v28, %v22120_v49 }
 0x5cf   :  { %v22378_v47 = vadd.f32 %v22096_v28, %v22124_v48  ;;  %v22382_v43 = vadd.f32 %v22096_v28, %v22129_v23  ;;  %v22386_v61 = vadd.f32 %v22096_v28, %v22133_v19  ;;  %v22390_v57 = vadd.f32 %v22096_v28, %v22137_v40 }
 0x5d0   :  { %v22394_v49 = vadd.f32 %v22096_v28, %v22141_v34  ;;  %v22398_v48 = vadd.f32 %v22096_v28, %v22145_v59  ;;  %v22402_v23 = vadd.f32 %v22096_v28, %v22149_v54  ;;  %v22406_v19 = vadd.f32 %v22096_v28, %v22153_v8  ;;  %v25848_v39 = vld [vmem:[#allocation34_spill] sm:$0xff] }
 0x5d1   :  { %v22410_v40 = vadd.f32 %v22096_v28, %v22157_v0  ;;  %v22414_v34 = vadd.f32 %v22096_v28, %v22161_v26  ;;  %v22418_v59 = vadd.f32 %v22096_v28, %v22165_v21  ;;  %v22422_v54 = vadd.f32 %v22096_v28, %v22169_v46 }
 0x5d2   :  { %v22426_v8 = vadd.f32 %v22096_v28, %v22173_v41  ;;  %v22430_v0 = vadd.f32 %v22096_v28, %v22177_v6  ;;  %v22434_v26 = vadd.f32 %v22096_v28, %v22181_v63  ;;  %v22438_v21 = vadd.f32 %v22096_v28, %v22186_v20 }
 0x5d3   :  { %v22442_v46 = vadd.f32 %v22096_v28, %v22190_v12  ;;  %v22446_v41 = vadd.f32 %v22096_v28, %v22194_v44  ;;  %v22450_v6 = vadd.f32 %v22096_v28, %v22198_v38  ;;  %v22454_v63 = vadd.f32 %v22096_v28, %v22202_v2 }
 0x5d4   :  { %v22458_v20 = vadd.f32 %v22096_v28, %v22206_v62  ;;  %v22462_v12 = vadd.f32 %v22096_v28, %v22210_v25  ;;  %v22466_v44 = vadd.f32 %v22096_v28, %v22214_v17  ;;  %v22470_v38 = vadd.f32 %v22096_v28, %v22218_v53 }
 0x5d5   :  { %v22474_v2 = vadd.f32 %v22096_v28, %v22222_v45  ;;  %v22478_v62 = vadd.f32 %v22096_v28, %v22226_v5  ;;  %v22482_v25 = vadd.f32 %v22096_v28, %v22230_v7  ;;  %v22486_v17 = vadd.f32 %v22096_v28, %v22234_v42 }
 0x5d6   :  { %v22490_v53 = vadd.f32 %v22096_v28, %v22238_v31  ;;  %v22494_v45 = vadd.f32 %v22096_v28, %v22242_v13  ;;  %v22498_v5 = vadd.f32 %v22096_v28, %v22246_v4  ;;  %v22502_v7 = vadd.f32 %v22096_v28, %v22250_v50 }
 0x5d7   :  { %v22506_v42 = vadd.f32 %v22096_v28, %v22254_v18  ;;  %v22510_v31 = vadd.f32 %v22096_v28, %v22258_v36  ;;  %v22514_v13 = vadd.f32 %v22096_v28, %v22262_v11  ;;  %v22518_v4 = vadd.f32 %v22096_v28, %v22266_v58 }
 0x5d8   :  { %v22522_v50 = vadd.f32 %v22096_v28, %v22270_v9  ;;  %v22526_v18 = vadd.f32 %v22096_v28, %v22274_v32  ;;  %v22530_v36 = vadd.f32 %v22096_v28, %v22278_v51  ;;  %v22534_v11 = vadd.f32 %v22096_v28, %v25848_v39 }
 0x5d9   :  { %25843 = vst [vmem:[#allocation40_spill] sm:$0xff] %v22514_v13  ;;  %25844 = vst [vmem:[#allocation41_spill] sm:$0xff] %v22518_v4  ;;  %v25849_v13 = vld [vmem:[#allocation35_spill] sm:$0xff]  ;;  %v25850_v4 = vld [vmem:[#allocation36_spill] sm:$0xff] }
 0x5da   :  { %25845 = vst [vmem:[#allocation42_spill] sm:$0xff] %v22522_v50  ;;  %25846 = vst [vmem:[#allocation43_spill] sm:$0xff] %v22526_v18  ;;  %v22538_v58 = vadd.f32 %v22096_v28, %v25849_v13  ;;  %v22542_v9 = vadd.f32 %v22096_v28, %v25850_v4  ;;  %v25851_v50 = vld [vmem:[#allocation37_spill] sm:$0xff]  ;;  %v25852_v18 = vld [vmem:[#allocation38_spill] sm:$0xff]  ;;  %v22558_v13 = vadd.f32 %v22096_v28, %v22306_v56 }
 0x5db   :  { %25847 = vst [vmem:[#allocation44_spill] sm:$0xff] %v22530_v36  ;;  %v22546_v32 = vadd.f32 %v22096_v28, %v25851_v50  ;;  %v22550_v51 = vadd.f32 %v22096_v28, %v25852_v18  ;;  %v25853_v36 = vld [vmem:[#allocation39_spill] sm:$0xff]  ;;  %v22562_v4 = vadd.f32 %v22096_v28, %v22310_v24  ;;  %v22566_v50 = vadd.f32 %v22096_v28, %v22314_v15 }
 0x5dc   :  { %v22554_v39 = vadd.f32 %v22096_v28, %v25853_v36  ;;  %25854 = vst [vmem:[#allocation45_spill] sm:$0xff] %v22558_v13  ;;  %v22570_v18 = vadd.f32 %v22096_v28, %v22318_v14  ;;  %v22574_v36 = vadd.f32 %v22096_v28, %v22322_v60  ;;  %v22578_v56 = vadd.f32 %v22096_v28, %v22326_v52 }
 0x5dd   :  { %25855 = vst [vmem:[#allocation46_spill] sm:$0xff] %v22562_v4  ;;  %25856 = vst [vmem:[#allocation47_spill] sm:$0xff] %v22566_v50  ;;  %v7088_v13 = vmax.f32 %v22330_v1, 0.0  ;;  %v7089_v24 = vmax.f32 %v22334_v33, 0.0  ;;  %v7090_v4 = vmax.f32 %v22338_v35, 0.0  ;;  %v7091_v15 = vmax.f32 %v22342_v29, 0.0 }
 0x5de   :  { %25857 = vst [vmem:[#allocation48_spill] sm:$0xff] %v22570_v18  ;;  %25858 = vst [vmem:[#allocation49_spill] sm:$0xff] %v22574_v36  ;;  %v7092_v50 = vmax.f32 %v22346_v30, 0.0  ;;  %v7093_v14 = vmax.f32 %v22350_v3, 0.0  ;;  %v7094_v18 = vmax.f32 %v22354_v22, 0.0  ;;  %v7095_v60 = vmax.f32 %v22358_v10, 0.0 }
 0x5df   :  { %v7096_v36 = vmax.f32 %v22362_v55, 0.0  ;;  %7262 = vst.msk [vmem:[#allocation3 + $0x19] sm:$0xff] %vm6607_vm3, %v7088_v13  ;;  %v7097_v28 = vmax.f32 %v22366_v27, 0.0  ;;  %v7098_v52 = vmax.f32 %v22370_v16, 0.0  ;;  %v7099_v1 = vmax.f32 %v22374_v37, 0.0  ;;  %7263 = vst.msk [vmem:[#allocation3 + $0x21] sm:$0xff] %vm6607_vm3, %v7089_v24 }
 0x5e0   :  { %v7100_v33 = vmax.f32 %v22378_v47, 0.0  ;;  %7264 = vst.msk [vmem:[#allocation3 + $0x31] sm:$0xff] %vm6607_vm3, %v7090_v4  ;;  %7265 = vst.msk [vmem:[#allocation3 + $0x39] sm:$0xff] %vm6607_vm3, %v7091_v15  ;;  %v7101_v35 = vmax.f32 %v22382_v43, 0.0  ;;  %v7102_v29 = vmax.f32 %v22386_v61, 0.0  ;;  %v7103_v30 = vmax.f32 %v22390_v57, 0.0 }
 0x5e1   :  { %7266 = vst.msk [vmem:[#allocation3 + $0x49] sm:$0xff] %vm6607_vm3, %v7092_v50  ;;  %v7104_v3 = vmax.f32 %v22394_v49, 0.0  ;;  %7267 = vst.msk [vmem:[#allocation3 + $0x51] sm:$0xff] %vm6607_vm3, %v7093_v14  ;;  %v22609_v22 = vld [vmem:[%s25433_s5 + $0x10] sm:$0xff]  ;;  %v7105_v10 = vmax.f32 %v22398_v48, 0.0  ;;  %v7106_v55 = vmax.f32 %v22402_v23, 0.0 }
 0x5e2   :  { %7268 = vst.msk [vmem:[#allocation3 + $0x61] sm:$0xff] %vm6607_vm3, %v7094_v18  ;;  %7269 = vst.msk [vmem:[#allocation3 + $0x69] sm:$0xff] %vm6607_vm3, %v7095_v60  ;;  %v7107_v27 = vmax.f32 %v22406_v19, 0.0  ;;  %v7108_v16 = vmax.f32 %v22410_v40, 0.0  ;;  %17673 = vmatprep.subr.mxu1 %v22609_v22  ;;  %v7109_v37 = vmax.f32 %v22414_v34, 0.0  ;;  %v7110_v47 = vmax.f32 %v22418_v59, 0.0 }
 0x5e3   :  { %7270 = vst.msk [vmem:[#allocation3 + $0x79] sm:$0xff] %vm6607_vm3, %v7096_v36  ;;  %7271 = vst.msk [vmem:[#allocation3 + $0x81] sm:$0xff] %vm6607_vm3, %v7097_v28  ;;  %v7111_v43 = vmax.f32 %v22422_v54, 0.0  ;;  %v7112_v61 = vmax.f32 %v22426_v8, 0.0  ;;  %v7113_v57 = vmax.f32 %v22430_v0, 0.0  ;;  %v7114_v49 = vmax.f32 %v22434_v26, 0.0 }
 0x5e4   :  { %7272 = vst.msk [vmem:[#allocation3 + $0x91] sm:$0xff] %vm6607_vm3, %v7098_v52  ;;  %7273 = vst.msk [vmem:[#allocation3 + $0x99] sm:$0xff] %vm6607_vm3, %v7099_v1  ;;  %v7115_v48 = vmax.f32 %v22438_v21, 0.0  ;;  %v7116_v23 = vmax.f32 %v22442_v46, 0.0  ;;  %v7117_v19 = vmax.f32 %v22446_v41, 0.0  ;;  %v7118_v40 = vmax.f32 %v22450_v6, 0.0 }
 0x5e5   :  { %7274 = vst.msk [vmem:[#allocation3 + $0xa9] sm:$0xff] %vm6607_vm3, %v7100_v33  ;;  %7275 = vst.msk [vmem:[#allocation3 + $0xb1] sm:$0xff] %vm6607_vm3, %v7101_v35  ;;  %v7119_v34 = vmax.f32 %v22454_v63, 0.0  ;;  %v7120_v59 = vmax.f32 %v22458_v20, 0.0  ;;  %v7121_v54 = vmax.f32 %v22462_v12, 0.0  ;;  %v7122_v8 = vmax.f32 %v22466_v44, 0.0 }
 0x5e6   :  { %7276 = vst.msk [vmem:[#allocation3 + $0xc1] sm:$0xff] %vm6607_vm3, %v7102_v29  ;;  %7277 = vst.msk [vmem:[#allocation3 + $0xc9] sm:$0xff] %vm6607_vm3, %v7103_v30  ;;  %v7123_v0 = vmax.f32 %v22470_v38, 0.0  ;;  %v7124_v26 = vmax.f32 %v22474_v2, 0.0  ;;  %v7396_v21 = vld [vmem:[#allocation3 + $0x19] sm:$0xff]  ;;  %v7125_v46 = vmax.f32 %v22478_v62, 0.0 }
 0x5e7   :  { %7278 = vst.msk [vmem:[#allocation3 + $0xd9] sm:$0xff] %vm6607_vm3, %v7104_v3  ;;  %7279 = vst.msk [vmem:[#allocation3 + $0xe1] sm:$0xff] %vm6607_vm3, %v7105_v10  ;;  %v7126_v41 = vmax.f32 %v22482_v25, 0.0  ;;  %v7127_v6 = vmax.f32 %v22486_v17, 0.0  ;;  %v7128_v63 = vmax.f32 %v22490_v53, 0.0  ;;  %17482 = vmatprep.mubr.msk.f32.mxu1 %vm6607_vm3, %v7396_v21  ;;  %v7397_v20 = vld [vmem:[#allocation3 + $0x21] sm:$0xff] }
 0x5e8   :  { %7280 = vst.msk [vmem:[#allocation3 + $0xf1] sm:$0xff] %vm6607_vm3, %v7106_v55  ;;  %7281 = vst.msk [vmem:[#allocation3 + $0xf9] sm:$0xff] %vm6607_vm3, %v7107_v27  ;;  %v7129_v12 = vmax.f32 %v22494_v45, 0.0  ;;  %v7130_v44 = vmax.f32 %v22498_v5, 0.0  ;;  %v7131_v38 = vmax.f32 %v22502_v7, 0.0  ;;  %v7132_v2 = vmax.f32 %v22506_v42, 0.0  ;;  %17483 = vmatmul.mubr.msk.f32.gmra.mrb[2].mxu1 %vm6607_vm3, %v7397_v20 }
 0x5e9   :  { %7282 = vst.msk [vmem:[#allocation3 + $0x109] sm:$0xff] %vm6607_vm3, %v7108_v16  ;;  %7283 = vst.msk [vmem:[#allocation3 + $0x111] sm:$0xff] %vm6607_vm3, %v7109_v37  ;;  %v7398_v62 = vld [vmem:[#allocation3 + $0x31] sm:$0xff]  ;;  %v7133_v25 = vmax.f32 %v22510_v31, 0.0  ;;  %v25859_v17 = vld [vmem:[#allocation40_spill] sm:$0xff]  ;;  %v7139_v18 = vmax.f32 %v22534_v11, 0.0 }
 0x5ea   :  { %7284 = vst.msk [vmem:[#allocation3 + $0x121] sm:$0xff] %vm6607_vm3, %v7110_v47  ;;  %7285 = vst.msk [vmem:[#allocation3 + $0x129] sm:$0xff] %vm6607_vm3, %v7111_v43  ;;  %v7134_v53 = vmax.f32 %v25859_v17, 0.0  ;;  %v25860_v45 = vld [vmem:[#allocation41_spill] sm:$0xff]  ;;  %v25861_v7 = vld [vmem:[#allocation42_spill] sm:$0xff]  ;;  %17485 = vmatprep.mubr.msk.f32.mxu1 %vm6607_vm3, %v7398_v62  ;;  %v7140_v36 = vmax.f32 %v22538_v58, 0.0 }
 0x5eb   :  { %7286 = vst.msk [vmem:[#allocation3 + $0x139] sm:$0xff] %vm6607_vm3, %v7112_v61  ;;  %7287 = vst.msk [vmem:[#allocation3 + $0x141] sm:$0xff] %vm6607_vm3, %v7113_v57  ;;  %v7135_v5 = vmax.f32 %v25860_v45, 0.0  ;;  %v7136_v13 = vmax.f32 %v25861_v7, 0.0  ;;  %v25862_v42 = vld [vmem:[#allocation43_spill] sm:$0xff]  ;;  %v25863_v50 = vld [vmem:[#allocation44_spill] sm:$0xff] }
 0x5ec   :  { %7288 = vst.msk [vmem:[#allocation3 + $0x151] sm:$0xff] %vm6607_vm3, %v7114_v49  ;;  %7289 = vst.msk [vmem:[#allocation3 + $0x159] sm:$0xff] %vm6607_vm3, %v7115_v48  ;;  %v7137_v4 = vmax.f32 %v25862_v42, 0.0  ;;  %v7138_v31 = vmax.f32 %v25863_v50, 0.0  ;;  %v7141_v24 = vmax.f32 %v22542_v9, 0.0  ;;  %v7142_v15 = vmax.f32 %v22546_v32, 0.0 }
 0x5ed   :  { %7290 = vst.msk [vmem:[#allocation3 + $0x169] sm:$0xff] %vm6607_vm3, %v7116_v23  ;;  %7291 = vst.msk [vmem:[#allocation3 + $0x171] sm:$0xff] %vm6607_vm3, %v7117_v19  ;;  %v7143_v14 = vmax.f32 %v22550_v51, 0.0  ;;  %v7144_v60 = vmax.f32 %v22554_v39, 0.0  ;;  %v7399_v11 = vld [vmem:[#allocation3 + $0x39] sm:$0xff]  ;;  %v25864_v58 = vld [vmem:[#allocation45_spill] sm:$0xff] }
 0x5ee   :  { %7292 = vst.msk [vmem:[#allocation3 + $0x181] sm:$0xff] %vm6607_vm3, %v7118_v40  ;;  %7293 = vst.msk [vmem:[#allocation3 + $0x189] sm:$0xff] %vm6607_vm3, %v7119_v34  ;;  %v7145_v28 = vmax.f32 %v25864_v58, 0.0  ;;  %v25865_v52 = vld [vmem:[#allocation46_spill] sm:$0xff]  ;;  %v25866_v9 = vld [vmem:[#allocation47_spill] sm:$0xff]  ;;  %17486 = vmatmul.mubr.msk.f32.gmra.mrb[4].mxu1 %vm6607_vm3, %v7399_v11  ;;  %v7151_v30 = vmax.f32 %v22578_v56, 0.0 }
 0x5ef   :  { %7294 = vst.msk [vmem:[#allocation3 + $0x1c9] sm:$0xff] %vm6607_vm3, %v7120_v59  ;;  %7295 = vst.msk [vmem:[#allocation3 + $0x1d1] sm:$0xff] %vm6607_vm3, %v7121_v54  ;;  %v7146_v1 = vmax.f32 %v25865_v52, 0.0  ;;  %v7147_v33 = vmax.f32 %v25866_v9, 0.0  ;;  %v25867_v32 = vld [vmem:[#allocation48_spill] sm:$0xff]  ;;  %v7400_v51 = vld [vmem:[#allocation3 + $0x49] sm:$0xff] }
 0x5f0   :  { %7296 = vst.msk [vmem:[#allocation3 + $0x1e1] sm:$0xff] %vm6607_vm3, %v7122_v8  ;;  %7297 = vst.msk [vmem:[#allocation3 + $0x1e9] sm:$0xff] %vm6607_vm3, %v7123_v0  ;;  %v7148_v35 = vmax.f32 %v25867_v32, 0.0  ;;  %v25868_v39 = vld [vmem:[#allocation49_spill] sm:$0xff]  ;;  %17488 = vmatprep.mubr.msk.f32.mxu1 %vm6607_vm3, %v7400_v51  ;;  %v7401_v56 = vld [vmem:[#allocation3 + $0x51] sm:$0xff] }
 0x5f1   :  { %7298 = vst.msk [vmem:[#allocation3 + $0x1f9] sm:$0xff] %vm6607_vm3, %v7124_v26  ;;  %7299 = vst.msk [vmem:[#allocation3 + $0x201] sm:$0xff] %vm6607_vm3, %v7125_v46  ;;  %v7149_v29 = vmax.f32 %v25868_v39, 0.0  ;;  %v7402_v3 = vld [vmem:[#allocation3 + $0x61] sm:$0xff]  ;;  %v7403_v10 = vld [vmem:[#allocation3 + $0x69] sm:$0xff] }
 0x5f2   :  { %7300 = vst.msk [vmem:[#allocation3 + $0x211] sm:$0xff] %vm6607_vm3, %v7126_v41  ;;  %7301 = vst.msk [vmem:[#allocation3 + $0x219] sm:$0xff] %vm6607_vm3, %v7127_v6  ;;  %17489 = vmatmul.mubr.msk.f32.gmra.mrb[6].mxu1 %vm6607_vm3, %v7401_v56  ;;  %v7404_v55 = vld [vmem:[#allocation3 + $0x79] sm:$0xff]  ;;  %v7405_v27 = vld [vmem:[#allocation3 + $0x81] sm:$0xff] }
 0x5f3   :  { %7302 = vst.msk [vmem:[#allocation3 + $0x229] sm:$0xff] %vm6607_vm3, %v7128_v63  ;;  %7303 = vst.msk [vmem:[#allocation3 + $0x231] sm:$0xff] %vm6607_vm3, %v7129_v12  ;;  %17491 = vmatprep.mubr.msk.f32.mxu1 %vm6607_vm3, %v7402_v3  ;;  %v7406_v16 = vld [vmem:[#allocation3 + $0x91] sm:$0xff]  ;;  %v7407_v37 = vld [vmem:[#allocation3 + $0x99] sm:$0xff] }
 0x5f4   :  { %7304 = vst.msk [vmem:[#allocation3 + $0x241] sm:$0xff] %vm6607_vm3, %v7130_v44  ;;  %7305 = vst.msk [vmem:[#allocation3 + $0x249] sm:$0xff] %vm6607_vm3, %v7131_v38  ;;  %v7408_v47 = vld [vmem:[#allocation3 + $0xa9] sm:$0xff]  ;;  %v7409_v43 = vld [vmem:[#allocation3 + $0xb1] sm:$0xff] }
 0x5f5   :  { %7306 = vst.msk [vmem:[#allocation3 + $0x259] sm:$0xff] %vm6607_vm3, %v7132_v2  ;;  %7307 = vst.msk [vmem:[#allocation3 + $0x261] sm:$0xff] %vm6607_vm3, %v7133_v25  ;;  %v7410_v61 = vld [vmem:[#allocation3 + $0xc1] sm:$0xff]  ;;  %v7411_v57 = vld [vmem:[#allocation3 + $0xc9] sm:$0xff] }
 0x5f6   :  { %7308 = vst.msk [vmem:[#allocation3 + $0x271] sm:$0xff] %vm6607_vm3, %v7134_v53  ;;  %7309 = vst.msk [vmem:[#allocation3 + $0x279] sm:$0xff] %vm6607_vm3, %v7135_v5  ;;  %17492 = vmatmul.mubr.msk.f32.gmra.mrb[8].mxu1 %vm6607_vm3, %v7403_v10  ;;  %v7412_v49 = vld [vmem:[#allocation3 + $0xd9] sm:$0xff]  ;;  %v7413_v48 = vld [vmem:[#allocation3 + $0xe1] sm:$0xff] }
 0x5f7   :  { %7310 = vst.msk [vmem:[#allocation3 + $0x289] sm:$0xff] %vm6607_vm3, %v7136_v13  ;;  %7311 = vst.msk [vmem:[#allocation3 + $0x291] sm:$0xff] %vm6607_vm3, %v7137_v4  ;;  %17494 = vmatprep.mubr.msk.f32.mxu1 %vm6607_vm3, %v7404_v55  ;;  %v7414_v23 = vld [vmem:[#allocation3 + $0xf1] sm:$0xff]  ;;  %v7415_v19 = vld [vmem:[#allocation3 + $0xf9] sm:$0xff] }
 0x5f8   :  { %7312 = vst.msk [vmem:[#allocation3 + $0x2a1] sm:$0xff] %vm6607_vm3, %v7138_v31  ;;  %7313 = vst.msk [vmem:[#allocation3 + $0x2a9] sm:$0xff] %vm6607_vm3, %v7139_v18  ;;  %v7416_v40 = vld [vmem:[#allocation3 + $0x109] sm:$0xff]  ;;  %v7417_v34 = vld [vmem:[#allocation3 + $0x111] sm:$0xff] }
 0x5f9   :  { %7314 = vst.msk [vmem:[#allocation3 + $0x2b9] sm:$0xff] %vm6607_vm3, %v7140_v36  ;;  %7315 = vst.msk [vmem:[#allocation3 + $0x2c1] sm:$0xff] %vm6607_vm3, %v7141_v24  ;;  %v7418_v59 = vld [vmem:[#allocation3 + $0x121] sm:$0xff]  ;;  %v7419_v54 = vld [vmem:[#allocation3 + $0x129] sm:$0xff] }
 0x5fa   :  { %7316 = vst.msk [vmem:[#allocation3 + $0x2d1] sm:$0xff] %vm6607_vm3, %v7142_v15  ;;  %7317 = vst.msk [vmem:[#allocation3 + $0x2d9] sm:$0xff] %vm6607_vm3, %v7143_v14  ;;  %17495 = vmatmul.mubr.msk.f32.gmra.mrb[10].mxu1 %vm6607_vm3, %v7405_v27  ;;  %v7420_v8 = vld [vmem:[#allocation3 + $0x139] sm:$0xff]  ;;  %v7421_v0 = vld [vmem:[#allocation3 + $0x141] sm:$0xff] }
 0x5fb   :  { %7318 = vst.msk [vmem:[#allocation3 + $0x2e9] sm:$0xff] %vm6607_vm3, %v7144_v60  ;;  %7319 = vst.msk [vmem:[#allocation3 + $0x2f1] sm:$0xff] %vm6607_vm3, %v7145_v28  ;;  %17497 = vmatprep.mubr.msk.f32.mxu1 %vm6607_vm3, %v7406_v16  ;;  %v7422_v26 = vld [vmem:[#allocation3 + $0x151] sm:$0xff]  ;;  %v7423_v21 = vld [vmem:[#allocation3 + $0x159] sm:$0xff] }
 0x5fc   :  { %7320 = vst.msk [vmem:[#allocation3 + $0x301] sm:$0xff] %vm6607_vm3, %v7146_v1  ;;  %7321 = vst.msk [vmem:[#allocation3 + $0x309] sm:$0xff] %vm6607_vm3, %v7147_v33  ;;  %v7424_v46 = vld [vmem:[#allocation3 + $0x169] sm:$0xff]  ;;  %v7426_v41 = vld [vmem:[#allocation3 + $0x1b1] sm:$0xff] }
 0x5fd   :  { %7322 = vst.msk [vmem:[#allocation3 + $0x319] sm:$0xff] %vm6607_vm3, %v7148_v35  ;;  %7323 = vst.msk [vmem:[#allocation3 + $0x321] sm:$0xff] %vm6607_vm3, %v7149_v29  ;;  %v7425_v6 = vld [vmem:[#allocation3 + $0x171] sm:$0xff]  ;;  %v7427_v63 = vld [vmem:[#allocation3 + $0x1b9] sm:$0xff] }
 0x5fe   :  { %7325 = vst.msk [vmem:[#allocation3 + $0x339] sm:$0xff] %vm6607_vm3, %v7151_v30  ;;  %17498 = vmatmul.mubr.msk.f32.gmra.mrb[12].mxu1 %vm6607_vm3, %v7407_v37  ;;  %v7428_v20 = vld [vmem:[#allocation3 + $0x1c9] sm:$0xff]  ;;  %v7429_v12 = vld [vmem:[#allocation3 + $0x1d1] sm:$0xff]  ;;  %v7430_v44 = vld [vmem:[#allocation3 + $0x1e1] sm:$0xff] }
 0x5ff   :  { %17500 = vmatprep.mubr.msk.f32.mxu1 %vm6607_vm3, %v7408_v47  ;;  %v7431_v38 = vld [vmem:[#allocation3 + $0x1e9] sm:$0xff]  ;;  %v7432_v2 = vld [vmem:[#allocation3 + $0x1f9] sm:$0xff]  ;;  %v7433_v62 = vld [vmem:[#allocation3 + $0x201] sm:$0xff] }
 0x600   :  { %v7434_v25 = vld [vmem:[#allocation3 + $0x211] sm:$0xff]  ;;  %v7435_v17 = vld [vmem:[#allocation3 + $0x219] sm:$0xff]  ;;  %v7436_v53 = vld [vmem:[#allocation3 + $0x229] sm:$0xff] }
 0x601   :  { %v7437_v45 = vld [vmem:[#allocation3 + $0x231] sm:$0xff]  ;;  %v7438_v5 = vld [vmem:[#allocation3 + $0x241] sm:$0xff]  ;;  %v7439_v7 = vld [vmem:[#allocation3 + $0x249] sm:$0xff] }
 0x602   :  { %17501 = vmatmul.mubr.msk.f32.gmra.mrb[14].mxu1 %vm6607_vm3, %v7409_v43  ;;  %v7440_v13 = vld [vmem:[#allocation3 + $0x259] sm:$0xff]  ;;  %v7441_v42 = vld [vmem:[#allocation3 + $0x261] sm:$0xff]  ;;  %v7442_v4 = vld [vmem:[#allocation3 + $0x271] sm:$0xff] }
 0x603   :  { %17503 = vmatprep.mubr.msk.f32.mxu1 %vm6607_vm3, %v7410_v61  ;;  %v7443_v50 = vld [vmem:[#allocation3 + $0x279] sm:$0xff]  ;;  %v7444_v31 = vld [vmem:[#allocation3 + $0x289] sm:$0xff]  ;;  %v7445_v18 = vld [vmem:[#allocation3 + $0x291] sm:$0xff] }
 0x604   :  { %v7446_v36 = vld [vmem:[#allocation3 + $0x2a1] sm:$0xff]  ;;  %v7447_v24 = vld [vmem:[#allocation3 + $0x2a9] sm:$0xff]  ;;  %v7448_v15 = vld [vmem:[#allocation3 + $0x2b9] sm:$0xff] }
 0x605   :  { %v7449_v14 = vld [vmem:[#allocation3 + $0x2c1] sm:$0xff]  ;;  %v7450_v60 = vld [vmem:[#allocation3 + $0x2d1] sm:$0xff]  ;;  %v7451_v11 = vld [vmem:[#allocation3 + $0x2d9] sm:$0xff] }
 0x606   :  { %17504 = vmatmul.mubr.msk.f32.gmra.mrb[16].mxu1 %vm6607_vm3, %v7411_v57  ;;  %v7452_v58 = vld [vmem:[#allocation3 + $0x2e9] sm:$0xff]  ;;  %v7453_v28 = vld [vmem:[#allocation3 + $0x2f1] sm:$0xff]  ;;  %v7454_v52 = vld [vmem:[#allocation3 + $0x301] sm:$0xff] }
 0x607   :  { %17506 = vmatprep.mubr.msk.f32.mxu1 %vm6607_vm3, %v7412_v49  ;;  %v7455_v1 = vld [vmem:[#allocation3 + $0x309] sm:$0xff]  ;;  %v7456_v9 = vld [vmem:[#allocation3 + $0x319] sm:$0xff]  ;;  %v7457_v32 = vld [vmem:[#allocation3 + $0x321] sm:$0xff] }
 0x608   :  { %v7329_v33 = vld [vmem:[#allocation3] sm:$0xff]  ;;  %v7330_v35 = vld [vmem:[#allocation3 + $0x8] sm:$0xff]  ;;  %v22778_v51 = vld [vmem:[%s25433_s5 + $0x18] sm:$0xff] }
 0x609   :  { %v22781_v39 = vld [vmem:[#allocation3 + $0x18] sm:$0xff]  ;;  %v22787_v29 = vld [vmem:[#allocation3 + $0x20] sm:$0xff]  ;;  %v22791_v30 = vld [vmem:[#allocation3 + $0x30] sm:$0xff] }
 0x60a   :  { %17507 = vmatmul.mubr.msk.f32.gmra.mrb[18].mxu1 %vm6607_vm3, %v7413_v48  ;;  %v22795_v56 = vld [vmem:[#allocation3 + $0x38] sm:$0xff]  ;;  %v22803_v3 = vld [vmem:[#allocation3 + $0x50] sm:$0xff]  ;;  %v22807_v10 = vld [vmem:[#allocation3 + $0x60] sm:$0xff] }
 0x60b   :  { %17509 = vmatprep.mubr.msk.f32.mxu1 %vm6607_vm3, %v7414_v23  ;;  %v22811_v55 = vld [vmem:[#allocation3 + $0x68] sm:$0xff]  ;;  %v22815_v27 = vld [vmem:[#allocation3 + $0x78] sm:$0xff]  ;;  %v22819_v16 = vld [vmem:[#allocation3 + $0x80] sm:$0xff] }
 0x60c   :  { %v22823_v37 = vld [vmem:[#allocation3 + $0x90] sm:$0xff]  ;;  %v22827_v47 = vld [vmem:[#allocation3 + $0x98] sm:$0xff]  ;;  %v22831_v43 = vld [vmem:[#allocation3 + $0xa8] sm:$0xff] }
 0x60d   :  { %v22835_v61 = vld [vmem:[#allocation3 + $0xb0] sm:$0xff]  ;;  %v22839_v57 = vld [vmem:[#allocation3 + $0xc0] sm:$0xff]  ;;  %v22843_v49 = vld [vmem:[#allocation3 + $0xc8] sm:$0xff] }
 0x60e   :  { %17510 = vmatmul.mubr.msk.f32.gmra.mrb[20].mxu1 %vm6607_vm3, %v7415_v19  ;;  %v22847_v48 = vld [vmem:[#allocation3 + $0xd8] sm:$0xff]  ;;  %v22851_v23 = vld [vmem:[#allocation3 + $0xe0] sm:$0xff]  ;;  %v22855_v19 = vld [vmem:[#allocation3 + $0xf0] sm:$0xff] }
 0x60f   :  { %17512 = vmatprep.mubr.msk.f32.mxu1 %vm6607_vm3, %v7416_v40  ;;  %v22859_v40 = vld [vmem:[#allocation3 + $0xf8] sm:$0xff] }
 0x612   :  { %17513 = vmatmul.mubr.msk.f32.gmra.mrb[22].mxu1 %vm6607_vm3, %v7417_v34  ;;  %v22863_v34 = vld [vmem:[#allocation3 + $0x108] sm:$0xff] }
 0x613   :  { %17515 = vmatprep.mubr.msk.f32.mxu1 %vm6607_vm3, %v7418_v59  ;;  %v22867_v59 = vld [vmem:[#allocation3 + $0x110] sm:$0xff] }
 0x616   :  { %17516 = vmatmul.mubr.msk.f32.gmra.mrb[24].mxu1 %vm6607_vm3, %v7419_v54  ;;  %v22871_v54 = vld [vmem:[#allocation3 + $0x120] sm:$0xff] }
 0x617   :  { %17518 = vmatprep.mubr.msk.f32.mxu1 %vm6607_vm3, %v7420_v8  ;;  %v22875_v8 = vld [vmem:[#allocation3 + $0x128] sm:$0xff] }
 0x61a   :  { %17519 = vmatmul.mubr.msk.f32.gmra.mrb[26].mxu1 %vm6607_vm3, %v7421_v0  ;;  %v22879_v0 = vld [vmem:[#allocation3 + $0x138] sm:$0xff] }
 0x61b   :  { %17521 = vmatprep.mubr.msk.f32.mxu1 %vm6607_vm3, %v7422_v26  ;;  %v22883_v26 = vld [vmem:[#allocation3 + $0x140] sm:$0xff] }
 0x61e   :  { %17522 = vmatmul.mubr.msk.f32.gmra.mrb[28].mxu1 %vm6607_vm3, %v7423_v21  ;;  %v22887_v21 = vld [vmem:[#allocation3 + $0x150] sm:$0xff] }
 0x61f   :  { %17524 = vmatprep.mubr.msk.f32.mxu1 %vm6607_vm3, %v7424_v46  ;;  %v22891_v46 = vld [vmem:[#allocation3 + $0x158] sm:$0xff] }
 0x622   :  { %17525 = vmatmul.mubr.msk.f32.gmra.mrb[30].mxu1 %vm6607_vm3, %v7425_v6  ;;  %v7361_v6 = vld [vmem:[#allocation3 + $0x1b0] sm:$0xff] }
 0x623   :  { %17527 = vmatprep.mubr.msk.f32.mxu1 %vm6607_vm3, %v7426_v41  ;;  %v22895_v41 = vld [vmem:[#allocation3 + $0x168] sm:$0xff] }
 0x626   :  { %17528 = vmatmul.mubr.msk.f32.gmra.mrb[32].mxu1 %vm6607_vm3, %v7427_v63  ;;  %v22899_v63 = vld [vmem:[#allocation3 + $0x170] sm:$0xff] }
 0x627   :  { %17530 = vmatprep.mubr.msk.f32.mxu1 %vm6607_vm3, %v7428_v20  ;;  %v7362_v20 = vld [vmem:[#allocation3 + $0x1b8] sm:$0xff] }
 0x62a   :  { %17531 = vmatmul.mubr.msk.f32.gmra.mrb[34].mxu1 %vm6607_vm3, %v7429_v12  ;;  %v22905_v12 = vld [vmem:[#allocation3 + $0x1c8] sm:$0xff] }
 0x62b   :  { %17533 = vmatprep.mubr.msk.f32.mxu1 %vm6607_vm3, %v7430_v44  ;;  %v22909_v44 = vld [vmem:[#allocation3 + $0x1d0] sm:$0xff] }
 0x62e   :  { %17534 = vmatmul.mubr.msk.f32.gmra.mrb[36].mxu1 %vm6607_vm3, %v7431_v38  ;;  %v22913_v38 = vld [vmem:[#allocation3 + $0x1e0] sm:$0xff] }
 0x62f   :  { %17536 = vmatprep.mubr.msk.f32.mxu1 %vm6607_vm3, %v7432_v2  ;;  %v22917_v2 = vld [vmem:[#allocation3 + $0x1e8] sm:$0xff] }
 0x632   :  { %17537 = vmatmul.mubr.msk.f32.gmra.mrb[38].mxu1 %vm6607_vm3, %v7433_v62  ;;  %v22921_v62 = vld [vmem:[#allocation3 + $0x1f8] sm:$0xff] }
 0x633   :  { %17539 = vmatprep.mubr.msk.f32.mxu1 %vm6607_vm3, %v7434_v25  ;;  %v22925_v25 = vld [vmem:[#allocation3 + $0x200] sm:$0xff] }
 0x636   :  { %17540 = vmatmul.mubr.msk.f32.gmra.mrb[40].mxu1 %vm6607_vm3, %v7435_v17  ;;  %v22929_v17 = vld [vmem:[#allocation3 + $0x210] sm:$0xff] }
 0x637   :  { %17542 = vmatprep.mubr.msk.f32.mxu1 %vm6607_vm3, %v7436_v53  ;;  %v22933_v53 = vld [vmem:[#allocation3 + $0x218] sm:$0xff] }
 0x63a   :  { %17543 = vmatmul.mubr.msk.f32.gmra.mrb[42].mxu1 %vm6607_vm3, %v7437_v45  ;;  %v22937_v45 = vld [vmem:[#allocation3 + $0x228] sm:$0xff] }
 0x63b   :  { %17545 = vmatprep.mubr.msk.f32.mxu1 %vm6607_vm3, %v7438_v5  ;;  %v22941_v5 = vld [vmem:[#allocation3 + $0x230] sm:$0xff] }
 0x63e   :  { %17546 = vmatmul.mubr.msk.f32.gmra.mrb[44].mxu1 %vm6607_vm3, %v7439_v7  ;;  %v22945_v7 = vld [vmem:[#allocation3 + $0x240] sm:$0xff] }
 0x63f   :  { %17548 = vmatprep.mubr.msk.f32.mxu1 %vm6607_vm3, %v7440_v13  ;;  %v22949_v13 = vld [vmem:[#allocation3 + $0x248] sm:$0xff] }
 0x642   :  { %17549 = vmatmul.mubr.msk.f32.gmra.mrb[46].mxu1 %vm6607_vm3, %v7441_v42  ;;  %v22953_v42 = vld [vmem:[#allocation3 + $0x258] sm:$0xff] }
 0x643   :  { %17551 = vmatprep.mubr.msk.f32.mxu1 %vm6607_vm3, %v7442_v4  ;;  %v22957_v4 = vld [vmem:[#allocation3 + $0x260] sm:$0xff] }
 0x646   :  { %17552 = vmatmul.mubr.msk.f32.gmra.mrb[48].mxu1 %vm6607_vm3, %v7443_v50  ;;  %v22961_v50 = vld [vmem:[#allocation3 + $0x270] sm:$0xff] }
 0x647   :  { %17554 = vmatprep.mubr.msk.f32.mxu1 %vm6607_vm3, %v7444_v31  ;;  %v22965_v31 = vld [vmem:[#allocation3 + $0x278] sm:$0xff] }
 0x64a   :  { %17555 = vmatmul.mubr.msk.f32.gmra.mrb[50].mxu1 %vm6607_vm3, %v7445_v18  ;;  %v22969_v18 = vld [vmem:[#allocation3 + $0x288] sm:$0xff] }
 0x64b   :  { %17557 = vmatprep.mubr.msk.f32.mxu1 %vm6607_vm3, %v7446_v36  ;;  %v22973_v36 = vld [vmem:[#allocation3 + $0x290] sm:$0xff] }
 0x64e   :  { %17558 = vmatmul.mubr.msk.f32.gmra.mrb[52].mxu1 %vm6607_vm3, %v7447_v24  ;;  %v22977_v24 = vld [vmem:[#allocation3 + $0x2a0] sm:$0xff] }
 0x64f   :  { %17560 = vmatprep.mubr.msk.f32.mxu1 %vm6607_vm3, %v7448_v15  ;;  %v22981_v15 = vld [vmem:[#allocation3 + $0x2a8] sm:$0xff] }
 0x652   :  { %17561 = vmatmul.mubr.msk.f32.gmra.mrb[54].mxu1 %vm6607_vm3, %v7449_v14  ;;  %v22985_v14 = vld [vmem:[#allocation3 + $0x2b8] sm:$0xff] }
 0x653   :  { %17563 = vmatprep.mubr.msk.f32.mxu1 %vm6607_vm3, %v7450_v60  ;;  %v22989_v60 = vld [vmem:[#allocation3 + $0x2c0] sm:$0xff] }
 0x656   :  { %17564 = vmatmul.mubr.msk.f32.gmra.mrb[56].mxu1 %vm6607_vm3, %v7451_v11  ;;  %v22993_v11 = vld [vmem:[#allocation3 + $0x2d0] sm:$0xff] }
 0x657   :  { %17566 = vmatprep.mubr.msk.f32.mxu1 %vm6607_vm3, %v7452_v58  ;;  %v22997_v58 = vld [vmem:[#allocation3 + $0x2d8] sm:$0xff] }
 0x65a   :  { %17567 = vmatmul.mubr.msk.f32.gmra.mrb[58].mxu1 %vm6607_vm3, %v7453_v28  ;;  %v23001_v28 = vld [vmem:[#allocation3 + $0x2e8] sm:$0xff] }
 0x65b   :  { %17569 = vmatprep.mubr.msk.f32.mxu1 %vm6607_vm3, %v7454_v52  ;;  %v23005_v52 = vld [vmem:[#allocation3 + $0x2f0] sm:$0xff] }
 0x65e   :  { %17570 = vmatmul.mubr.msk.f32.gmra.mrb[60].mxu1 %vm6607_vm3, %v7455_v1  ;;  %v23009_v1 = vld [vmem:[#allocation3 + $0x300] sm:$0xff] }
 0x65f   :  { %17572 = vmatprep.mubr.msk.f32.mxu1 %vm6607_vm3, %v7456_v9  ;;  %v23013_v9 = vld [vmem:[#allocation3 + $0x308] sm:$0xff] }
 0x660   :  { %25869 = vst [vmem:[#allocation50_spill] sm:$0xff] %v23013_v9 }
 0x662   :  { %17573 = vmatmul.mubr.msk.f32.gmra.mrb[62].mxu1 %vm6607_vm3, %v7457_v32  ;;  %v8614_v32 = vld [vmem:[#allocation3 + $0x2] sm:$0xff] }
 0x663   :  { %17577 = vmatprep.mubr.msk.f32.mxu1 %vm6607_vm3, %v7329_v33  ;;  %v23017_v33 = vld [vmem:[#allocation3 + $0x318] sm:$0xff] }
 0x664   :  { %25870 = vst [vmem:[#allocation51_spill] sm:$0xff] %v23017_v33 }
 0x666   :  { %17578 = vmatmul.mubr.msk.f32.vlgmr.msra.gmra.mrb[0].mxu1 %vm6607_vm3, %v7330_v35  ;;  %v23021_v35 = vld [vmem:[#allocation3 + $0x320] sm:$0xff] }
 0x667   :  { %17674 = vmatpush3.msra.mxu1 %v22609_v22  ;;  %17580 = vmatprep.mubr.msk.f32.mxu1 %vm6607_vm3, %v22781_v39  ;;  %v22799_v22 = vld [vmem:[#allocation3 + $0x48] sm:$0xff]  ;;  %25871 = vst [vmem:[#allocation52_spill] sm:$0xff] %v23021_v35 }
 0x668   :  { %17771 = vmatprep.subr.mxu1 %v22778_v51 }
 0x66a   :  { %17581 = vmatmul.mubr.msk.f32.gmra.mrb[2].mxu1 %vm6607_vm3, %v22787_v29 }
 0x66b   :  { %17583 = vmatprep.mubr.msk.f32.mxu1 %vm6607_vm3, %v22791_v30 }
 0x66e   :  { %17584 = vmatmul.mubr.msk.f32.gmra.mrb[4].mxu1 %vm6607_vm3, %v22795_v56 }
 0x66f   :  { %17586 = vmatprep.mubr.msk.f32.mxu1 %vm6607_vm3, %v22799_v22 }
 0x672   :  { %17587 = vmatmul.mubr.msk.f32.gmra.mrb[6].mxu1 %vm6607_vm3, %v22803_v3 }
 0x673   :  { %17589 = vmatprep.mubr.msk.f32.mxu1 %vm6607_vm3, %v22807_v10 }
 0x676   :  { %17590 = vmatmul.mubr.msk.f32.gmra.mrb[8].mxu1 %vm6607_vm3, %v22811_v55 }
 0x677   :  { %17592 = vmatprep.mubr.msk.f32.mxu1 %vm6607_vm3, %v22815_v27 }
 0x67a   :  { %17593 = vmatmul.mubr.msk.f32.gmra.mrb[10].mxu1 %vm6607_vm3, %v22819_v16 }
 0x67b   :  { %17595 = vmatprep.mubr.msk.f32.mxu1 %vm6607_vm3, %v22823_v37 }
 0x67e   :  { %17596 = vmatmul.mubr.msk.f32.gmra.mrb[12].mxu1 %vm6607_vm3, %v22827_v47 }
 0x67f   :  { %17598 = vmatprep.mubr.msk.f32.mxu1 %vm6607_vm3, %v22831_v43 }
 0x682   :  { %17599 = vmatmul.mubr.msk.f32.gmra.mrb[14].mxu1 %vm6607_vm3, %v22835_v61 }
 0x683   :  { %17601 = vmatprep.mubr.msk.f32.mxu1 %vm6607_vm3, %v22839_v57 }
 0x686   :  { %17602 = vmatmul.mubr.msk.f32.gmra.mrb[16].mxu1 %vm6607_vm3, %v22843_v49 }
 0x687   :  { %17604 = vmatprep.mubr.msk.f32.mxu1 %vm6607_vm3, %v22847_v48 }
 0x68a   :  { %17605 = vmatmul.mubr.msk.f32.gmra.mrb[18].mxu1 %vm6607_vm3, %v22851_v23 }
 0x68b   :  { %17607 = vmatprep.mubr.msk.f32.mxu1 %vm6607_vm3, %v22855_v19 }
 0x68e   :  { %17608 = vmatmul.mubr.msk.f32.gmra.mrb[20].mxu1 %vm6607_vm3, %v22859_v40 }
 0x68f   :  { %17610 = vmatprep.mubr.msk.f32.mxu1 %vm6607_vm3, %v22863_v34 }
 0x692   :  { %17611 = vmatmul.mubr.msk.f32.gmra.mrb[22].mxu1 %vm6607_vm3, %v22867_v59 }
 0x693   :  { %17613 = vmatprep.mubr.msk.f32.mxu1 %vm6607_vm3, %v22871_v54 }
 0x696   :  { %17614 = vmatmul.mubr.msk.f32.gmra.mrb[24].mxu1 %vm6607_vm3, %v22875_v8 }
 0x697   :  { %17616 = vmatprep.mubr.msk.f32.mxu1 %vm6607_vm3, %v22879_v0 }
 0x69a   :  { %17617 = vmatmul.mubr.msk.f32.gmra.mrb[26].mxu1 %vm6607_vm3, %v22883_v26 }
 0x69b   :  { %17619 = vmatprep.mubr.msk.f32.mxu1 %vm6607_vm3, %v22887_v21 }
 0x69e   :  { %17620 = vmatmul.mubr.msk.f32.gmra.mrb[28].mxu1 %vm6607_vm3, %v22891_v46 }
 0x69f   :  { %17622 = vmatprep.mubr.msk.f32.mxu1 %vm6607_vm3, %v22895_v41 }
 0x6a2   :  { %17623 = vmatmul.mubr.msk.f32.gmra.mrb[30].mxu1 %vm6607_vm3, %v22899_v63 }
 0x6a3   :  { %17625 = vmatprep.mubr.msk.f32.mxu1 %vm6607_vm3, %v7361_v6  ;;  %v8615_v6 = vld [vmem:[#allocation3 + $0xa] sm:$0xff] }
 0x6a6   :  { %17626 = vmatmul.mubr.msk.f32.gmra.mrb[32].mxu1 %vm6607_vm3, %v7362_v20  ;;  %v23029_v20 = vld [vmem:[%s25433_s5 + $0x20] sm:$0xff] }
 0x6a7   :  { %17628 = vmatprep.mubr.msk.f32.mxu1 %vm6607_vm3, %v22905_v12 }
 0x6aa   :  { %17629 = vmatmul.mubr.msk.f32.gmra.mrb[34].mxu1 %vm6607_vm3, %v22909_v44 }
 0x6ab   :  { %17631 = vmatprep.mubr.msk.f32.mxu1 %vm6607_vm3, %v22913_v38 }
 0x6ae   :  { %17632 = vmatmul.mubr.msk.f32.gmra.mrb[36].mxu1 %vm6607_vm3, %v22917_v2 }
 0x6af   :  { %17634 = vmatprep.mubr.msk.f32.mxu1 %vm6607_vm3, %v22921_v62 }
 0x6b2   :  { %17635 = vmatmul.mubr.msk.f32.gmra.mrb[38].mxu1 %vm6607_vm3, %v22925_v25 }
 0x6b3   :  { %17637 = vmatprep.mubr.msk.f32.mxu1 %vm6607_vm3, %v22929_v17 }
 0x6b6   :  { %17638 = vmatmul.mubr.msk.f32.gmra.mrb[40].mxu1 %vm6607_vm3, %v22933_v53 }
 0x6b7   :  { %17640 = vmatprep.mubr.msk.f32.mxu1 %vm6607_vm3, %v22937_v45 }
 0x6ba   :  { %17641 = vmatmul.mubr.msk.f32.gmra.mrb[42].mxu1 %vm6607_vm3, %v22941_v5 }
 0x6bb   :  { %17643 = vmatprep.mubr.msk.f32.mxu1 %vm6607_vm3, %v22945_v7 }
 0x6be   :  { %17644 = vmatmul.mubr.msk.f32.gmra.mrb[44].mxu1 %vm6607_vm3, %v22949_v13 }
 0x6bf   :  { %17646 = vmatprep.mubr.msk.f32.mxu1 %vm6607_vm3, %v22953_v42 }
 0x6c2   :  { %17647 = vmatmul.mubr.msk.f32.gmra.mrb[46].mxu1 %vm6607_vm3, %v22957_v4 }
 0x6c3   :  { %17649 = vmatprep.mubr.msk.f32.mxu1 %vm6607_vm3, %v22961_v50 }
 0x6c6   :  { %17650 = vmatmul.mubr.msk.f32.gmra.mrb[48].mxu1 %vm6607_vm3, %v22965_v31 }
 0x6c7   :  { %17652 = vmatprep.mubr.msk.f32.mxu1 %vm6607_vm3, %v22969_v18 }
 0x6ca   :  { %17653 = vmatmul.mubr.msk.f32.gmra.mrb[50].mxu1 %vm6607_vm3, %v22973_v36 }
 0x6cb   :  { %17655 = vmatprep.mubr.msk.f32.mxu1 %vm6607_vm3, %v22977_v24 }
 0x6ce   :  { %17656 = vmatmul.mubr.msk.f32.gmra.mrb[52].mxu1 %vm6607_vm3, %v22981_v15 }
 0x6cf   :  { %17658 = vmatprep.mubr.msk.f32.mxu1 %vm6607_vm3, %v22985_v14 }
 0x6d2   :  { %17659 = vmatmul.mubr.msk.f32.gmra.mrb[54].mxu1 %vm6607_vm3, %v22989_v60 }
 0x6d3   :  { %17661 = vmatprep.mubr.msk.f32.mxu1 %vm6607_vm3, %v22993_v11 }
 0x6d6   :  { %17662 = vmatmul.mubr.msk.f32.gmra.mrb[56].mxu1 %vm6607_vm3, %v22997_v58 }
 0x6d7   :  { %17664 = vmatprep.mubr.msk.f32.mxu1 %vm6607_vm3, %v23001_v28 }
 0x6da   :  { %17665 = vmatmul.mubr.msk.f32.gmra.mrb[58].mxu1 %vm6607_vm3, %v23005_v52 }
 0x6db   :  { %17667 = vmatprep.mubr.msk.f32.mxu1 %vm6607_vm3, %v23009_v1 }
 0x6de   :  { %17668 = vmatmul.mubr.msk.f32.gmra.mrb[60].mxu1 %vm6607_vm3, %v23013_v9  ;;  %v23032_v9 = vld [vmem:[#allocation3 + $0x1a] sm:$0xff] }
 0x6df   :  { %17670 = vmatprep.mubr.msk.f32.mxu1 %vm6607_vm3, %v23017_v33  ;;  %25872 = vst [vmem:[#allocation53_spill] sm:$0xff] %v23032_v9  ;;  %v23150_v33 = vld [vmem:[#allocation3 + $0x172] sm:$0xff] }
 0x6e0   :  { %25901 = vst [vmem:[#allocation12_spill] sm:$0xff] %v23150_v33 }
 0x6e2   :  { %17671 = vmatmul.mubr.msk.f32.gmra.mrb[62].mxu1 %vm6607_vm3, %v23021_v35  ;;  %v23038_v35 = vld [vmem:[#allocation3 + $0x22] sm:$0xff] }
 0x6e3   :  { %17675 = vmatprep.mubr.msk.f32.mxu1 %vm6607_vm3, %v8614_v32  ;;  %25873 = vst [vmem:[#allocation54_spill] sm:$0xff] %v23038_v35  ;;  %v23042_v32 = vld [vmem:[#allocation3 + $0x32] sm:$0xff] }
 0x6e4   :  { %25874 = vst [vmem:[#allocation55_spill] sm:$0xff] %v23042_v32 }
 0x6e6   :  { %17676 = vmatmul.mubr.msk.f32.vlgmr.msra.gmra.mrb[0].mxu1 %vm6607_vm3, %v8615_v6  ;;  %v23046_v6 = vld [vmem:[#allocation3 + $0x3a] sm:$0xff] }
 0x6e7   :  { %17772 = vmatpush3.msra.mxu1 %v22778_v51  ;;  %17678 = vmatprep.mubr.msk.f32.mxu1 %vm6607_vm3, %v23032_v9  ;;  %25875 = vst [vmem:[#allocation56_spill] sm:$0xff] %v23046_v6  ;;  %v23050_v51 = vld [vmem:[#allocation3 + $0x4a] sm:$0xff]  ;;  %v23054_v9 = vld [vmem:[#allocation3 + $0x52] sm:$0xff] }
 0x6e8   :  { %17869 = vmatprep.subr.mxu1 %v23029_v20  ;;  %25876 = vst [vmem:[#allocation57_spill] sm:$0xff] %v23050_v51  ;;  %25877 = vst [vmem:[#allocation58_spill] sm:$0xff] %v23054_v9 }
 0x6ea   :  { %17679 = vmatmul.mubr.msk.f32.gmra.mrb[2].mxu1 %vm6607_vm3, %v23038_v35  ;;  %v23058_v35 = vld [vmem:[#allocation3 + $0x62] sm:$0xff] }
 0x6eb   :  { %17681 = vmatprep.mubr.msk.f32.mxu1 %vm6607_vm3, %v23042_v32  ;;  %25878 = vst [vmem:[#allocation59_spill] sm:$0xff] %v23058_v35  ;;  %v23062_v32 = vld [vmem:[#allocation3 + $0x6a] sm:$0xff] }
 0x6ec   :  { %25879 = vst [vmem:[#allocation60_spill] sm:$0xff] %v23062_v32 }
 0x6ee   :  { %17682 = vmatmul.mubr.msk.f32.gmra.mrb[4].mxu1 %vm6607_vm3, %v23046_v6  ;;  %v23066_v6 = vld [vmem:[#allocation3 + $0x7a] sm:$0xff] }
 0x6ef   :  { %17684 = vmatprep.mubr.msk.f32.mxu1 %vm6607_vm3, %v23050_v51  ;;  %25880 = vst [vmem:[#allocation61_spill] sm:$0xff] %v23066_v6  ;;  %v23070_v51 = vld [vmem:[#allocation3 + $0x82] sm:$0xff] }
 0x6f0   :  { %25881 = vst [vmem:[#allocation4_spill] sm:$0xff] %v23070_v51 }
 0x6f2   :  { %17685 = vmatmul.mubr.msk.f32.gmra.mrb[6].mxu1 %vm6607_vm3, %v23054_v9  ;;  %v23074_v9 = vld [vmem:[#allocation3 + $0x92] sm:$0xff] }
 0x6f3   :  { %17687 = vmatprep.mubr.msk.f32.mxu1 %vm6607_vm3, %v23058_v35  ;;  %25882 = vst [vmem:[#allocation5_spill] sm:$0xff] %v23074_v9  ;;  %v23078_v35 = vld [vmem:[#allocation3 + $0x9a] sm:$0xff] }
 0x6f4   :  { %25883 = vst [vmem:[#allocation6_spill] sm:$0xff] %v23078_v35 }
 0x6f6   :  { %17688 = vmatmul.mubr.msk.f32.gmra.mrb[8].mxu1 %vm6607_vm3, %v23062_v32  ;;  %v23082_v32 = vld [vmem:[#allocation3 + $0xaa] sm:$0xff] }
 0x6f7   :  { %17690 = vmatprep.mubr.msk.f32.mxu1 %vm6607_vm3, %v23066_v6  ;;  %25884 = vst [vmem:[#allocation7_spill] sm:$0xff] %v23082_v32  ;;  %v23086_v6 = vld [vmem:[#allocation3 + $0xb2] sm:$0xff] }
 0x6f8   :  { %25885 = vst [vmem:[#allocation62_spill] sm:$0xff] %v23086_v6 }
 0x6fa   :  { %17691 = vmatmul.mubr.msk.f32.gmra.mrb[10].mxu1 %vm6607_vm3, %v23070_v51  ;;  %v23090_v51 = vld [vmem:[#allocation3 + $0xc2] sm:$0xff] }
 0x6fb   :  { %17693 = vmatprep.mubr.msk.f32.mxu1 %vm6607_vm3, %v23074_v9  ;;  %25886 = vst [vmem:[#allocation63_spill] sm:$0xff] %v23090_v51  ;;  %v23094_v9 = vld [vmem:[#allocation3 + $0xca] sm:$0xff] }
 0x6fc   :  { %25887 = vst [vmem:[#allocation64_spill] sm:$0xff] %v23094_v9 }
 0x6fe   :  { %17694 = vmatmul.mubr.msk.f32.gmra.mrb[12].mxu1 %vm6607_vm3, %v23078_v35  ;;  %v23098_v35 = vld [vmem:[#allocation3 + $0xda] sm:$0xff] }
 0x6ff   :  { %17696 = vmatprep.mubr.msk.f32.mxu1 %vm6607_vm3, %v23082_v32  ;;  %25888 = vst [vmem:[#allocation65_spill] sm:$0xff] %v23098_v35  ;;  %v23102_v32 = vld [vmem:[#allocation3 + $0xe2] sm:$0xff] }
 0x700   :  { %25889 = vst [vmem:[#allocation66_spill] sm:$0xff] %v23102_v32 }
 0x702   :  { %17697 = vmatmul.mubr.msk.f32.gmra.mrb[14].mxu1 %vm6607_vm3, %v23086_v6  ;;  %v23106_v6 = vld [vmem:[#allocation3 + $0xf2] sm:$0xff] }
 0x703   :  { %17699 = vmatprep.mubr.msk.f32.mxu1 %vm6607_vm3, %v23090_v51  ;;  %25890 = vst [vmem:[#allocation67_spill] sm:$0xff] %v23106_v6  ;;  %v23110_v51 = vld [vmem:[#allocation3 + $0xfa] sm:$0xff] }
 0x704   :  { %25891 = vst [vmem:[#allocation68_spill] sm:$0xff] %v23110_v51 }
 0x706   :  { %17700 = vmatmul.mubr.msk.f32.gmra.mrb[16].mxu1 %vm6607_vm3, %v23094_v9  ;;  %v23114_v9 = vld [vmem:[#allocation3 + $0x10a] sm:$0xff] }
 0x707   :  { %17702 = vmatprep.mubr.msk.f32.mxu1 %vm6607_vm3, %v23098_v35  ;;  %25892 = vst [vmem:[#allocation69_spill] sm:$0xff] %v23114_v9  ;;  %v23118_v35 = vld [vmem:[#allocation3 + $0x112] sm:$0xff] }
 0x708   :  { %25893 = vst [vmem:[#allocation70_spill] sm:$0xff] %v23118_v35 }
 0x70a   :  { %17703 = vmatmul.mubr.msk.f32.gmra.mrb[18].mxu1 %vm6607_vm3, %v23102_v32  ;;  %v23122_v32 = vld [vmem:[#allocation3 + $0x122] sm:$0xff] }
 0x70b   :  { %17705 = vmatprep.mubr.msk.f32.mxu1 %vm6607_vm3, %v23106_v6  ;;  %25894 = vst [vmem:[#allocation71_spill] sm:$0xff] %v23122_v32  ;;  %v23126_v6 = vld [vmem:[#allocation3 + $0x12a] sm:$0xff] }
 0x70c   :  { %25895 = vst [vmem:[#allocation72_spill] sm:$0xff] %v23126_v6 }
 0x70e   :  { %17706 = vmatmul.mubr.msk.f32.gmra.mrb[20].mxu1 %vm6607_vm3, %v23110_v51  ;;  %v23130_v51 = vld [vmem:[#allocation3 + $0x13a] sm:$0xff] }
 0x70f   :  { %17708 = vmatprep.mubr.msk.f32.mxu1 %vm6607_vm3, %v23114_v9  ;;  %25896 = vst [vmem:[#allocation8_spill] sm:$0xff] %v23130_v51  ;;  %v23134_v9 = vld [vmem:[#allocation3 + $0x142] sm:$0xff] }
 0x710   :  { %25897 = vst [vmem:[#allocation9_spill] sm:$0xff] %v23134_v9 }
 0x712   :  { %17709 = vmatmul.mubr.msk.f32.gmra.mrb[22].mxu1 %vm6607_vm3, %v23118_v35  ;;  %v23138_v35 = vld [vmem:[#allocation3 + $0x152] sm:$0xff] }
 0x713   :  { %17711 = vmatprep.mubr.msk.f32.mxu1 %vm6607_vm3, %v23122_v32  ;;  %25898 = vst [vmem:[#allocation11_spill] sm:$0xff] %v23138_v35  ;;  %v23142_v32 = vld [vmem:[#allocation3 + $0x15a] sm:$0xff] }
 0x714   :  { %25899 = vst [vmem:[#allocation10_spill] sm:$0xff] %v23142_v32 }
 0x716   :  { %17712 = vmatmul.mubr.msk.f32.gmra.mrb[24].mxu1 %vm6607_vm3, %v23126_v6  ;;  %v23146_v6 = vld [vmem:[#allocation3 + $0x16a] sm:$0xff] }
 0x717   :  { %17714 = vmatprep.mubr.msk.f32.mxu1 %vm6607_vm3, %v23130_v51  ;;  %25900 = vst [vmem:[#allocation13_spill] sm:$0xff] %v23146_v6  ;;  %v8646_v51 = vld [vmem:[#allocation3 + $0x1b2] sm:$0xff] }
 0x71a   :  { %17715 = vmatmul.mubr.msk.f32.gmra.mrb[26].mxu1 %vm6607_vm3, %v23134_v9  ;;  %v8647_v9 = vld [vmem:[#allocation3 + $0x1ba] sm:$0xff] }
 0x71b   :  { %17717 = vmatprep.mubr.msk.f32.mxu1 %vm6607_vm3, %v23138_v35  ;;  %v23156_v35 = vld [vmem:[#allocation3 + $0x1ca] sm:$0xff] }
 0x71e   :  { %17718 = vmatmul.mubr.msk.f32.gmra.mrb[28].mxu1 %vm6607_vm3, %v23142_v32  ;;  %v23160_v32 = vld [vmem:[#allocation3 + $0x1d2] sm:$0xff] }
 0x71f   :  { %17720 = vmatprep.mubr.msk.f32.mxu1 %vm6607_vm3, %v23146_v6  ;;  %25902 = vst [vmem:[#allocation15_spill] sm:$0xff] %v23160_v32  ;;  %v23164_v6 = vld [vmem:[#allocation3 + $0x1e2] sm:$0xff] }
 0x720   :  { %25903 = vst [vmem:[#allocation14_spill] sm:$0xff] %v23164_v6 }
 0x722   :  { %17721 = vmatmul.mubr.msk.f32.gmra.mrb[30].mxu1 %vm6607_vm3, %v23150_v33  ;;  %v23168_v33 = vld [vmem:[#allocation3 + $0x1ea] sm:$0xff] }
 0x723   :  { %17723 = vmatprep.mubr.msk.f32.mxu1 %vm6607_vm3, %v8646_v51  ;;  %25904 = vst [vmem:[#allocation17_spill] sm:$0xff] %v23168_v33  ;;  %v23176_v51 = vld [vmem:[#allocation3 + $0x202] sm:$0xff] }
 0x724   :  { %25906 = vst [vmem:[#allocation19_spill] sm:$0xff] %v23176_v51 }
 0x726   :  { %17724 = vmatmul.mubr.msk.f32.gmra.mrb[32].mxu1 %vm6607_vm3, %v8647_v9  ;;  %v23172_v9 = vld [vmem:[#allocation3 + $0x1fa] sm:$0xff] }
 0x727   :  { %17726 = vmatprep.mubr.msk.f32.mxu1 %vm6607_vm3, %v23156_v35  ;;  %25905 = vst [vmem:[#allocation16_spill] sm:$0xff] %v23172_v9 }
 0x72a   :  { %17727 = vmatmul.mubr.msk.f32.gmra.mrb[34].mxu1 %vm6607_vm3, %v23160_v32  ;;  %v23180_v32 = vld [vmem:[#allocation3 + $0x212] sm:$0xff] }
 0x72b   :  { %17729 = vmatprep.mubr.msk.f32.mxu1 %vm6607_vm3, %v23164_v6  ;;  %25907 = vst [vmem:[#allocation18_spill] sm:$0xff] %v23180_v32  ;;  %v23184_v6 = vld [vmem:[#allocation3 + $0x21a] sm:$0xff] }
 0x72c   :  { %25908 = vst [vmem:[#allocation21_spill] sm:$0xff] %v23184_v6 }
 0x72e   :  { %17730 = vmatmul.mubr.msk.f32.gmra.mrb[36].mxu1 %vm6607_vm3, %v23168_v33  ;;  %v23188_v33 = vld [vmem:[#allocation3 + $0x22a] sm:$0xff] }
 0x72f   :  { %17732 = vmatprep.mubr.msk.f32.mxu1 %vm6607_vm3, %v23172_v9  ;;  %25909 = vst [vmem:[#allocation20_spill] sm:$0xff] %v23188_v33  ;;  %v23192_v9 = vld [vmem:[#allocation3 + $0x232] sm:$0xff] }
 0x730   :  { %25910 = vst [vmem:[#allocation23_spill] sm:$0xff] %v23192_v9 }
 0x732   :  { %17733 = vmatmul.mubr.msk.f32.gmra.mrb[38].mxu1 %vm6607_vm3, %v23176_v51  ;;  %v23196_v51 = vld [vmem:[#allocation3 + $0x242] sm:$0xff] }
 0x733   :  { %17735 = vmatprep.mubr.msk.f32.mxu1 %vm6607_vm3, %v23180_v32  ;;  %25911 = vst [vmem:[#allocation22_spill] sm:$0xff] %v23196_v51  ;;  %v23200_v32 = vld [vmem:[#allocation3 + $0x24a] sm:$0xff] }
 0x734   :  { %25912 = vst [vmem:[#allocation25_spill] sm:$0xff] %v23200_v32 }
 0x736   :  { %17736 = vmatmul.mubr.msk.f32.gmra.mrb[40].mxu1 %vm6607_vm3, %v23184_v6  ;;  %v23204_v6 = vld [vmem:[#allocation3 + $0x25a] sm:$0xff] }
 0x737   :  { %17738 = vmatprep.mubr.msk.f32.mxu1 %vm6607_vm3, %v23188_v33  ;;  %25913 = vst [vmem:[#allocation24_spill] sm:$0xff] %v23204_v6  ;;  %v23208_v33 = vld [vmem:[#allocation3 + $0x262] sm:$0xff] }
 0x738   :  { %25914 = vst [vmem:[#allocation27_spill] sm:$0xff] %v23208_v33 }
 0x73a   :  { %17739 = vmatmul.mubr.msk.f32.gmra.mrb[42].mxu1 %vm6607_vm3, %v23192_v9  ;;  %v23212_v9 = vld [vmem:[#allocation3 + $0x272] sm:$0xff] }
 0x73b   :  { %17741 = vmatprep.mubr.msk.f32.mxu1 %vm6607_vm3, %v23196_v51  ;;  %25915 = vst [vmem:[#allocation26_spill] sm:$0xff] %v23212_v9  ;;  %v23216_v51 = vld [vmem:[#allocation3 + $0x27a] sm:$0xff] }
 0x73c   :  { %25916 = vst [vmem:[#allocation29_spill] sm:$0xff] %v23216_v51 }
 0x73e   :  { %17742 = vmatmul.mubr.msk.f32.gmra.mrb[44].mxu1 %vm6607_vm3, %v23200_v32  ;;  %v23220_v32 = vld [vmem:[#allocation3 + $0x28a] sm:$0xff] }
 0x73f   :  { %17744 = vmatprep.mubr.msk.f32.mxu1 %vm6607_vm3, %v23204_v6  ;;  %25917 = vst [vmem:[#allocation28_spill] sm:$0xff] %v23220_v32  ;;  %v23224_v6 = vld [vmem:[#allocation3 + $0x292] sm:$0xff] }
 0x740   :  { %25918 = vst [vmem:[#allocation31_spill] sm:$0xff] %v23224_v6 }
 0x742   :  { %17745 = vmatmul.mubr.msk.f32.gmra.mrb[46].mxu1 %vm6607_vm3, %v23208_v33  ;;  %v23228_v33 = vld [vmem:[#allocation3 + $0x2a2] sm:$0xff] }
 0x743   :  { %17747 = vmatprep.mubr.msk.f32.mxu1 %vm6607_vm3, %v23212_v9  ;;  %25919 = vst [vmem:[#allocation30_spill] sm:$0xff] %v23228_v33  ;;  %v23232_v9 = vld [vmem:[#allocation3 + $0x2aa] sm:$0xff] }
 0x744   :  { %25920 = vst [vmem:[#allocation32_spill] sm:$0xff] %v23232_v9 }
 0x746   :  { %17748 = vmatmul.mubr.msk.f32.gmra.mrb[48].mxu1 %vm6607_vm3, %v23216_v51  ;;  %v23236_v51 = vld [vmem:[#allocation3 + $0x2ba] sm:$0xff] }
 0x747   :  { %17750 = vmatprep.mubr.msk.f32.mxu1 %vm6607_vm3, %v23220_v32  ;;  %25921 = vst [vmem:[#allocation34_spill] sm:$0xff] %v23236_v51  ;;  %v23240_v32 = vld [vmem:[#allocation3 + $0x2c2] sm:$0xff] }
 0x748   :  { %25922 = vst [vmem:[#allocation35_spill] sm:$0xff] %v23240_v32 }
 0x74a   :  { %17751 = vmatmul.mubr.msk.f32.gmra.mrb[50].mxu1 %vm6607_vm3, %v23224_v6  ;;  %v23244_v6 = vld [vmem:[#allocation3 + $0x2d2] sm:$0xff] }
 0x74b   :  { %17753 = vmatprep.mubr.msk.f32.mxu1 %vm6607_vm3, %v23228_v33  ;;  %25923 = vst [vmem:[#allocation36_spill] sm:$0xff] %v23244_v6  ;;  %v23248_v33 = vld [vmem:[#allocation3 + $0x2da] sm:$0xff] }
 0x74c   :  { %25924 = vst [vmem:[#allocation37_spill] sm:$0xff] %v23248_v33 }
 0x74e   :  { %17754 = vmatmul.mubr.msk.f32.gmra.mrb[52].mxu1 %vm6607_vm3, %v23232_v9  ;;  %v23252_v9 = vld [vmem:[#allocation3 + $0x2ea] sm:$0xff] }
 0x74f   :  { %17756 = vmatprep.mubr.msk.f32.mxu1 %vm6607_vm3, %v23236_v51  ;;  %25925 = vst [vmem:[#allocation38_spill] sm:$0xff] %v23252_v9  ;;  %v23256_v51 = vld [vmem:[#allocation3 + $0x2f2] sm:$0xff] }
 0x752   :  { %17757 = vmatmul.mubr.msk.f32.gmra.mrb[54].mxu1 %vm6607_vm3, %v23240_v32  ;;  %v23260_v32 = vld [vmem:[#allocation3 + $0x302] sm:$0xff] }
 0x753   :  { %17759 = vmatprep.mubr.msk.f32.mxu1 %vm6607_vm3, %v23244_v6  ;;  %25926 = vst [vmem:[#allocation39_spill] sm:$0xff] %v23260_v32  ;;  %v23264_v6 = vld [vmem:[#allocation3 + $0x30a] sm:$0xff] }
 0x756   :  { %17760 = vmatmul.mubr.msk.f32.gmra.mrb[56].mxu1 %vm6607_vm3, %v23248_v33  ;;  %v23268_v33 = vld [vmem:[#allocation3 + $0x31a] sm:$0xff] }
 0x757   :  { %17762 = vmatprep.mubr.msk.f32.mxu1 %vm6607_vm3, %v23252_v9  ;;  %v23272_v9 = vld [vmem:[#allocation3 + $0x322] sm:$0xff] }
 0x75a   :  { %17763 = vmatmul.mubr.msk.f32.gmra.mrb[58].mxu1 %vm6607_vm3, %v23256_v51 }
 0x75b   :  { %17765 = vmatprep.mubr.msk.f32.mxu1 %vm6607_vm3, %v23260_v32  ;;  %v23281_v32 = vld [vmem:[%s25433_s5 + $0x28] sm:$0xff] }
 0x75e   :  { %17766 = vmatmul.mubr.msk.f32.gmra.mrb[60].mxu1 %vm6607_vm3, %v23264_v6 }
 0x75f   :  { %17768 = vmatprep.mubr.msk.f32.mxu1 %vm6607_vm3, %v23268_v33 }
 0x762   :  { %17769 = vmatmul.mubr.msk.f32.gmra.mrb[62].mxu1 %vm6607_vm3, %v23272_v9 }
 0x763   :  { %17773 = vmatprep.mubr.msk.f32.mxu1 %vm6607_vm3, %v22781_v39  ;;  %v23343_v39 = vld [vmem:[#allocation3 + $0x180] sm:$0xff] }
 0x766   :  { %17774 = vmatmul.mubr.msk.f32.vlgmr.msra.gmra.mrb[0].mxu1 %vm6607_vm3, %v22787_v29  ;;  %v23347_v29 = vld [vmem:[#allocation3 + $0x188] sm:$0xff] }
 0x767   :  { %17870 = vmatpush3.msra.mxu1 %v23029_v20  ;;  %17776 = vmatprep.mubr.msk.f32.mxu1 %vm6607_vm3, %v22791_v30  ;;  %v25927_v30 = vld [vmem:[#allocation50_spill] sm:$0xff] }
 0x768   :  { %17967 = vmatprep.subr.mxu1 %v23281_v32  ;;  %v23610_v20 = vld [vmem:[#allocation3 + $0x291] sm:$0xff] }
 0x76a   :  { %17777 = vmatmul.mubr.msk.f32.gmra.mrb[2].mxu1 %vm6607_vm3, %v22795_v56  ;;  %v25928_v56 = vld [vmem:[#allocation51_spill] sm:$0xff] }
 0x76b   :  { %17779 = vmatprep.mubr.msk.f32.mxu1 %vm6607_vm3, %v22799_v22  ;;  %v25929_v22 = vld [vmem:[#allocation52_spill] sm:$0xff] }
 0x76e   :  { %17780 = vmatmul.mubr.msk.f32.gmra.mrb[4].mxu1 %vm6607_vm3, %v22803_v3  ;;  %v23411_v3 = vld [vmem:[#allocation3 + $0x330] sm:$0xff] }
 0x76f   :  { %17782 = vmatprep.mubr.msk.f32.mxu1 %vm6607_vm3, %v22807_v10  ;;  %v23415_v10 = vld [vmem:[#allocation3 + $0x338] sm:$0xff] }
 0x772   :  { %17783 = vmatmul.mubr.msk.f32.gmra.mrb[6].mxu1 %vm6607_vm3, %v22811_v55  ;;  %v10028_v55 = vld [vmem:[#allocation3 + $0x19] sm:$0xff] }
 0x773   :  { %17785 = vmatprep.mubr.msk.f32.mxu1 %vm6607_vm3, %v22815_v27  ;;  %v10029_v27 = vld [vmem:[#allocation3 + $0x21] sm:$0xff] }
 0x776   :  { %17786 = vmatmul.mubr.msk.f32.gmra.mrb[8].mxu1 %vm6607_vm3, %v22819_v16  ;;  %v23423_v16 = vld [vmem:[%s25433_s5 + $0x30] sm:$0xff] }
 0x777   :  { %17788 = vmatprep.mubr.msk.f32.mxu1 %vm6607_vm3, %v22823_v37  ;;  %v23426_v37 = vld [vmem:[#allocation3 + $0x31] sm:$0xff] }
 0x77a   :  { %17789 = vmatmul.mubr.msk.f32.gmra.mrb[10].mxu1 %vm6607_vm3, %v22827_v47  ;;  %v23432_v47 = vld [vmem:[#allocation3 + $0x39] sm:$0xff] }
 0x77b   :  { %17791 = vmatprep.mubr.msk.f32.mxu1 %vm6607_vm3, %v22831_v43  ;;  %v23436_v43 = vld [vmem:[#allocation3 + $0x49] sm:$0xff] }
 0x77e   :  { %17792 = vmatmul.mubr.msk.f32.gmra.mrb[12].mxu1 %vm6607_vm3, %v22835_v61  ;;  %v23440_v61 = vld [vmem:[#allocation3 + $0x51] sm:$0xff] }
 0x77f   :  { %17794 = vmatprep.mubr.msk.f32.mxu1 %vm6607_vm3, %v22839_v57  ;;  %v23444_v57 = vld [vmem:[#allocation3 + $0x61] sm:$0xff] }
 0x782   :  { %17795 = vmatmul.mubr.msk.f32.gmra.mrb[14].mxu1 %vm6607_vm3, %v22843_v49  ;;  %v23448_v49 = vld [vmem:[#allocation3 + $0x69] sm:$0xff] }
 0x783   :  { %17797 = vmatprep.mubr.msk.f32.mxu1 %vm6607_vm3, %v22847_v48  ;;  %v23452_v48 = vld [vmem:[#allocation3 + $0x79] sm:$0xff] }
 0x786   :  { %17798 = vmatmul.mubr.msk.f32.gmra.mrb[16].mxu1 %vm6607_vm3, %v22851_v23  ;;  %v23456_v23 = vld [vmem:[#allocation3 + $0x81] sm:$0xff] }
 0x787   :  { %17800 = vmatprep.mubr.msk.f32.mxu1 %vm6607_vm3, %v22855_v19  ;;  %v23460_v19 = vld [vmem:[#allocation3 + $0x91] sm:$0xff] }
 0x78a   :  { %17801 = vmatmul.mubr.msk.f32.gmra.mrb[18].mxu1 %vm6607_vm3, %v22859_v40  ;;  %v23464_v40 = vld [vmem:[#allocation3 + $0x99] sm:$0xff] }
 0x78b   :  { %17803 = vmatprep.mubr.msk.f32.mxu1 %vm6607_vm3, %v22863_v34  ;;  %v23468_v34 = vld [vmem:[#allocation3 + $0xa9] sm:$0xff] }
 0x78e   :  { %17804 = vmatmul.mubr.msk.f32.gmra.mrb[20].mxu1 %vm6607_vm3, %v22867_v59  ;;  %v23472_v59 = vld [vmem:[#allocation3 + $0xb1] sm:$0xff] }
 0x78f   :  { %17806 = vmatprep.mubr.msk.f32.mxu1 %vm6607_vm3, %v22871_v54  ;;  %v23476_v54 = vld [vmem:[#allocation3 + $0xc1] sm:$0xff] }
 0x792   :  { %17807 = vmatmul.mubr.msk.f32.gmra.mrb[22].mxu1 %vm6607_vm3, %v22875_v8  ;;  %v23480_v8 = vld [vmem:[#allocation3 + $0xc9] sm:$0xff] }
 0x793   :  { %17809 = vmatprep.mubr.msk.f32.mxu1 %vm6607_vm3, %v22879_v0  ;;  %v23484_v0 = vld [vmem:[#allocation3 + $0xd9] sm:$0xff] }
 0x796   :  { %17810 = vmatmul.mubr.msk.f32.gmra.mrb[24].mxu1 %vm6607_vm3, %v22883_v26  ;;  %v23488_v26 = vld [vmem:[#allocation3 + $0xe1] sm:$0xff] }
 0x797   :  { %17812 = vmatprep.mubr.msk.f32.mxu1 %vm6607_vm3, %v22887_v21  ;;  %v23492_v21 = vld [vmem:[#allocation3 + $0xf1] sm:$0xff] }
 0x79a   :  { %17813 = vmatmul.mubr.msk.f32.gmra.mrb[26].mxu1 %vm6607_vm3, %v22891_v46  ;;  %v23496_v46 = vld [vmem:[#allocation3 + $0xf9] sm:$0xff] }
 0x79b   :  { %17815 = vmatprep.mubr.msk.f32.mxu1 %vm6607_vm3, %v22895_v41  ;;  %v23500_v41 = vld [vmem:[#allocation3 + $0x109] sm:$0xff] }
 0x79e   :  { %17816 = vmatmul.mubr.msk.f32.gmra.mrb[28].mxu1 %vm6607_vm3, %v22899_v63  ;;  %v23504_v63 = vld [vmem:[#allocation3 + $0x111] sm:$0xff] }
 0x79f   :  { %17818 = vmatprep.mubr.msk.f32.mxu1 %vm6607_vm3, %v23343_v39 }
 0x7a2   :  { %17819 = vmatmul.mubr.msk.f32.gmra.mrb[30].mxu1 %vm6607_vm3, %v23347_v29 }
 0x7a3   :  { %17821 = vmatprep.mubr.msk.f32.mxu1 %vm6607_vm3, %v22905_v12  ;;  %v23508_v12 = vld [vmem:[#allocation3 + $0x121] sm:$0xff] }
 0x7a6   :  { %17822 = vmatmul.mubr.msk.f32.gmra.mrb[32].mxu1 %vm6607_vm3, %v22909_v44  ;;  %v23512_v44 = vld [vmem:[#allocation3 + $0x129] sm:$0xff] }
 0x7a7   :  { %17824 = vmatprep.mubr.msk.f32.mxu1 %vm6607_vm3, %v22913_v38  ;;  %v23516_v38 = vld [vmem:[#allocation3 + $0x139] sm:$0xff] }
 0x7aa   :  { %17825 = vmatmul.mubr.msk.f32.gmra.mrb[34].mxu1 %vm6607_vm3, %v22917_v2  ;;  %v23520_v2 = vld [vmem:[#allocation3 + $0x141] sm:$0xff] }
 0x7ab   :  { %17827 = vmatprep.mubr.msk.f32.mxu1 %vm6607_vm3, %v22921_v62  ;;  %v23524_v62 = vld [vmem:[#allocation3 + $0x151] sm:$0xff] }
 0x7ae   :  { %17828 = vmatmul.mubr.msk.f32.gmra.mrb[36].mxu1 %vm6607_vm3, %v22925_v25  ;;  %v23528_v25 = vld [vmem:[#allocation3 + $0x159] sm:$0xff] }
 0x7af   :  { %17830 = vmatprep.mubr.msk.f32.mxu1 %vm6607_vm3, %v22929_v17  ;;  %v23532_v17 = vld [vmem:[#allocation3 + $0x169] sm:$0xff] }
 0x7b2   :  { %17831 = vmatmul.mubr.msk.f32.gmra.mrb[38].mxu1 %vm6607_vm3, %v22933_v53  ;;  %v23536_v53 = vld [vmem:[#allocation3 + $0x171] sm:$0xff] }
 0x7b3   :  { %17833 = vmatprep.mubr.msk.f32.mxu1 %vm6607_vm3, %v22937_v45  ;;  %v23540_v45 = vld [vmem:[#allocation3 + $0x181] sm:$0xff] }
 0x7b6   :  { %17834 = vmatmul.mubr.msk.f32.gmra.mrb[40].mxu1 %vm6607_vm3, %v22941_v5  ;;  %v23544_v5 = vld [vmem:[#allocation3 + $0x189] sm:$0xff] }
 0x7b7   :  { %17836 = vmatprep.mubr.msk.f32.mxu1 %vm6607_vm3, %v22945_v7  ;;  %v10060_v7 = vld [vmem:[#allocation3 + $0x1c9] sm:$0xff] }
 0x7ba   :  { %17837 = vmatmul.mubr.msk.f32.gmra.mrb[42].mxu1 %vm6607_vm3, %v22949_v13  ;;  %v10061_v13 = vld [vmem:[#allocation3 + $0x1d1] sm:$0xff] }
 0x7bb   :  { %17839 = vmatprep.mubr.msk.f32.mxu1 %vm6607_vm3, %v22953_v42  ;;  %v23550_v42 = vld [vmem:[#allocation3 + $0x1e1] sm:$0xff] }
 0x7be   :  { %17840 = vmatmul.mubr.msk.f32.gmra.mrb[44].mxu1 %vm6607_vm3, %v22957_v4  ;;  %v23554_v4 = vld [vmem:[#allocation3 + $0x1e9] sm:$0xff] }
 0x7bf   :  { %17842 = vmatprep.mubr.msk.f32.mxu1 %vm6607_vm3, %v22961_v50  ;;  %v23558_v50 = vld [vmem:[#allocation3 + $0x1f9] sm:$0xff] }
 0x7c2   :  { %17843 = vmatmul.mubr.msk.f32.gmra.mrb[46].mxu1 %vm6607_vm3, %v22965_v31  ;;  %v23562_v31 = vld [vmem:[#allocation3 + $0x201] sm:$0xff] }
 0x7c3   :  { %17845 = vmatprep.mubr.msk.f32.mxu1 %vm6607_vm3, %v22969_v18  ;;  %v23566_v18 = vld [vmem:[#allocation3 + $0x211] sm:$0xff] }
 0x7c6   :  { %17846 = vmatmul.mubr.msk.f32.gmra.mrb[48].mxu1 %vm6607_vm3, %v22973_v36  ;;  %v23570_v36 = vld [vmem:[#allocation3 + $0x219] sm:$0xff] }
 0x7c7   :  { %17848 = vmatprep.mubr.msk.f32.mxu1 %vm6607_vm3, %v22977_v24  ;;  %v23574_v24 = vld [vmem:[#allocation3 + $0x229] sm:$0xff] }
 0x7ca   :  { %17849 = vmatmul.mubr.msk.f32.gmra.mrb[50].mxu1 %vm6607_vm3, %v22981_v15  ;;  %v23578_v15 = vld [vmem:[#allocation3 + $0x231] sm:$0xff] }
 0x7cb   :  { %17851 = vmatprep.mubr.msk.f32.mxu1 %vm6607_vm3, %v22985_v14  ;;  %v23582_v14 = vld [vmem:[#allocation3 + $0x241] sm:$0xff] }
 0x7ce   :  { %17852 = vmatmul.mubr.msk.f32.gmra.mrb[52].mxu1 %vm6607_vm3, %v22989_v60  ;;  %v23586_v60 = vld [vmem:[#allocation3 + $0x249] sm:$0xff] }
 0x7cf   :  { %17854 = vmatprep.mubr.msk.f32.mxu1 %vm6607_vm3, %v22993_v11  ;;  %v23590_v11 = vld [vmem:[#allocation3 + $0x259] sm:$0xff] }
 0x7d2   :  { %17855 = vmatmul.mubr.msk.f32.gmra.mrb[54].mxu1 %vm6607_vm3, %v22997_v58  ;;  %v23594_v58 = vld [vmem:[#allocation3 + $0x261] sm:$0xff] }
 0x7d3   :  { %17857 = vmatprep.mubr.msk.f32.mxu1 %vm6607_vm3, %v23001_v28  ;;  %v23598_v28 = vld [vmem:[#allocation3 + $0x271] sm:$0xff] }
 0x7d6   :  { %17858 = vmatmul.mubr.msk.f32.gmra.mrb[56].mxu1 %vm6607_vm3, %v23005_v52  ;;  %v23602_v52 = vld [vmem:[#allocation3 + $0x279] sm:$0xff] }
 0x7d7   :  { %17860 = vmatprep.mubr.msk.f32.mxu1 %vm6607_vm3, %v23009_v1  ;;  %v23606_v1 = vld [vmem:[#allocation3 + $0x289] sm:$0xff] }
 0x7da   :  { %17861 = vmatmul.mubr.msk.f32.gmra.mrb[58].mxu1 %vm6607_vm3, %v25927_v30  ;;  %v23618_v30 = vld [vmem:[#allocation3 + $0x2a9] sm:$0xff] }
 0x7db   :  { %17863 = vmatprep.mubr.msk.f32.mxu1 %vm6607_vm3, %v25928_v56  ;;  %25931 = vst [vmem:[#allocation41_spill] sm:$0xff] %v23618_v30  ;;  %v23622_v56 = vld [vmem:[#allocation3 + $0x2b9] sm:$0xff] }
 0x7dc   :  { %25932 = vst [vmem:[#allocation42_spill] sm:$0xff] %v23622_v56 }
 0x7de   :  { %17864 = vmatmul.mubr.msk.f32.gmra.mrb[60].mxu1 %vm6607_vm3, %v25929_v22  ;;  %v23626_v22 = vld [vmem:[#allocation3 + $0x2c1] sm:$0xff] }
 0x7df   :  { %17866 = vmatprep.mubr.msk.f32.mxu1 %vm6607_vm3, %v23411_v3  ;;  %25933 = vst [vmem:[#allocation43_spill] sm:$0xff] %v23626_v22 }
 0x7e2   :  { %17867 = vmatmul.mubr.msk.f32.gmra.mrb[62].mxu1 %vm6607_vm3, %v23415_v10 }
 0x7e3   :  { %17871 = vmatprep.mubr.msk.f32.mxu1 %vm6607_vm3, %v10028_v55  ;;  %v23630_v55 = vld [vmem:[#allocation3 + $0x2d1] sm:$0xff] }
 0x7e4   :  { %25934 = vst [vmem:[#allocation44_spill] sm:$0xff] %v23630_v55 }
 0x7e6   :  { %17872 = vmatmul.mubr.msk.f32.vlgmr.msra.gmra.mrb[0].mxu1 %vm6607_vm3, %v10029_v27  ;;  %v23634_v27 = vld [vmem:[#allocation3 + $0x2d9] sm:$0xff] }
 0x7e7   :  { %17968 = vmatpush3.msra.mxu1 %v23281_v32  ;;  %17874 = vmatprep.mubr.msk.f32.mxu1 %vm6607_vm3, %v23426_v37  ;;  %v23614_v32 = vld [vmem:[#allocation3 + $0x2a1] sm:$0xff]  ;;  %25935 = vst [vmem:[#allocation45_spill] sm:$0xff] %v23634_v27 }
 0x7e8   :  { %18065 = vmatprep.subr.mxu1 %v23423_v16  ;;  %25930 = vst [vmem:[#allocation40_spill] sm:$0xff] %v23614_v32 }
 0x7ea   :  { %17875 = vmatmul.mubr.msk.f32.gmra.mrb[2].mxu1 %vm6607_vm3, %v23432_v47 }
 0x7eb   :  { %17877 = vmatprep.mubr.msk.f32.mxu1 %vm6607_vm3, %v23436_v43 }
 0x7ee   :  { %17878 = vmatmul.mubr.msk.f32.gmra.mrb[4].mxu1 %vm6607_vm3, %v23440_v61 }
 0x7ef   :  { %17880 = vmatprep.mubr.msk.f32.mxu1 %vm6607_vm3, %v23444_v57 }
 0x7f2   :  { %17881 = vmatmul.mubr.msk.f32.gmra.mrb[6].mxu1 %vm6607_vm3, %v23448_v49 }
 0x7f3   :  { %17883 = vmatprep.mubr.msk.f32.mxu1 %vm6607_vm3, %v23452_v48 }
 0x7f6   :  { %17884 = vmatmul.mubr.msk.f32.gmra.mrb[8].mxu1 %vm6607_vm3, %v23456_v23 }
 0x7f7   :  { %17886 = vmatprep.mubr.msk.f32.mxu1 %vm6607_vm3, %v23460_v19 }
 0x7fa   :  { %17887 = vmatmul.mubr.msk.f32.gmra.mrb[10].mxu1 %vm6607_vm3, %v23464_v40 }
 0x7fb   :  { %17889 = vmatprep.mubr.msk.f32.mxu1 %vm6607_vm3, %v23468_v34 }
 0x7fe   :  { %17890 = vmatmul.mubr.msk.f32.gmra.mrb[12].mxu1 %vm6607_vm3, %v23472_v59 }
 0x7ff   :  { %17892 = vmatprep.mubr.msk.f32.mxu1 %vm6607_vm3, %v23476_v54 }
 0x802   :  { %17893 = vmatmul.mubr.msk.f32.gmra.mrb[14].mxu1 %vm6607_vm3, %v23480_v8 }
 0x803   :  { %17895 = vmatprep.mubr.msk.f32.mxu1 %vm6607_vm3, %v23484_v0 }
 0x806   :  { %17896 = vmatmul.mubr.msk.f32.gmra.mrb[16].mxu1 %vm6607_vm3, %v23488_v26 }
 0x807   :  { %17898 = vmatprep.mubr.msk.f32.mxu1 %vm6607_vm3, %v23492_v21 }
 0x80a   :  { %17899 = vmatmul.mubr.msk.f32.gmra.mrb[18].mxu1 %vm6607_vm3, %v23496_v46 }
 0x80b   :  { %17901 = vmatprep.mubr.msk.f32.mxu1 %vm6607_vm3, %v23500_v41 }
 0x80e   :  { %17902 = vmatmul.mubr.msk.f32.gmra.mrb[20].mxu1 %vm6607_vm3, %v23504_v63 }
 0x80f   :  { %17904 = vmatprep.mubr.msk.f32.mxu1 %vm6607_vm3, %v23508_v12 }
 0x812   :  { %17905 = vmatmul.mubr.msk.f32.gmra.mrb[22].mxu1 %vm6607_vm3, %v23512_v44 }
 0x813   :  { %17907 = vmatprep.mubr.msk.f32.mxu1 %vm6607_vm3, %v23516_v38 }
 0x816   :  { %17908 = vmatmul.mubr.msk.f32.gmra.mrb[24].mxu1 %vm6607_vm3, %v23520_v2 }
 0x817   :  { %17910 = vmatprep.mubr.msk.f32.mxu1 %vm6607_vm3, %v23524_v62 }
 0x81a   :  { %17911 = vmatmul.mubr.msk.f32.gmra.mrb[26].mxu1 %vm6607_vm3, %v23528_v25 }
 0x81b   :  { %17913 = vmatprep.mubr.msk.f32.mxu1 %vm6607_vm3, %v23532_v17 }
 0x81e   :  { %17914 = vmatmul.mubr.msk.f32.gmra.mrb[28].mxu1 %vm6607_vm3, %v23536_v53 }
 0x81f   :  { %17916 = vmatprep.mubr.msk.f32.mxu1 %vm6607_vm3, %v23540_v45 }
 0x822   :  { %17917 = vmatmul.mubr.msk.f32.gmra.mrb[30].mxu1 %vm6607_vm3, %v23544_v5 }
 0x823   :  { %17919 = vmatprep.mubr.msk.f32.mxu1 %vm6607_vm3, %v10060_v7  ;;  %v23638_v7 = vld [vmem:[#allocation3 + $0x2e9] sm:$0xff] }
 0x824   :  { %25936 = vst [vmem:[#allocation46_spill] sm:$0xff] %v23638_v7 }
 0x826   :  { %17920 = vmatmul.mubr.msk.f32.gmra.mrb[32].mxu1 %vm6607_vm3, %v10061_v13  ;;  %v23642_v13 = vld [vmem:[#allocation3 + $0x2f1] sm:$0xff] }
 0x827   :  { %17922 = vmatprep.mubr.msk.f32.mxu1 %vm6607_vm3, %v23550_v42  ;;  %25937 = vst [vmem:[#allocation47_spill] sm:$0xff] %v23642_v13 }
 0x82a   :  { %17923 = vmatmul.mubr.msk.f32.gmra.mrb[34].mxu1 %vm6607_vm3, %v23554_v4 }
 0x82b   :  { %17925 = vmatprep.mubr.msk.f32.mxu1 %vm6607_vm3, %v23558_v50 }
 0x82e   :  { %17926 = vmatmul.mubr.msk.f32.gmra.mrb[36].mxu1 %vm6607_vm3, %v23562_v31 }
 0x82f   :  { %17928 = vmatprep.mubr.msk.f32.mxu1 %vm6607_vm3, %v23566_v18 }
 0x832   :  { %17929 = vmatmul.mubr.msk.f32.gmra.mrb[38].mxu1 %vm6607_vm3, %v23570_v36 }
 0x833   :  { %17931 = vmatprep.mubr.msk.f32.mxu1 %vm6607_vm3, %v23574_v24 }
 0x836   :  { %17932 = vmatmul.mubr.msk.f32.gmra.mrb[40].mxu1 %vm6607_vm3, %v23578_v15 }
 0x837   :  { %17934 = vmatprep.mubr.msk.f32.mxu1 %vm6607_vm3, %v23582_v14 }
 0x83a   :  { %17935 = vmatmul.mubr.msk.f32.gmra.mrb[42].mxu1 %vm6607_vm3, %v23586_v60 }
 0x83b   :  { %17937 = vmatprep.mubr.msk.f32.mxu1 %vm6607_vm3, %v23590_v11 }
 0x83e   :  { %17938 = vmatmul.mubr.msk.f32.gmra.mrb[44].mxu1 %vm6607_vm3, %v23594_v58 }
 0x83f   :  { %17940 = vmatprep.mubr.msk.f32.mxu1 %vm6607_vm3, %v23598_v28 }
 0x842   :  { %17941 = vmatmul.mubr.msk.f32.gmra.mrb[46].mxu1 %vm6607_vm3, %v23602_v52 }
 0x843   :  { %17943 = vmatprep.mubr.msk.f32.mxu1 %vm6607_vm3, %v23606_v1 }
 0x846   :  { %17944 = vmatmul.mubr.msk.f32.gmra.mrb[48].mxu1 %vm6607_vm3, %v23610_v20 }
 0x847   :  { %17946 = vmatprep.mubr.msk.f32.mxu1 %vm6607_vm3, %v23614_v32  ;;  %v25954_v32 = vld [vmem:[#allocation5_spill] sm:$0xff] }
 0x84a   :  { %17947 = vmatmul.mubr.msk.f32.gmra.mrb[50].mxu1 %vm6607_vm3, %v23618_v30  ;;  %v25950_v30 = vld [vmem:[#allocation59_spill] sm:$0xff] }
 0x84b   :  { %17949 = vmatprep.mubr.msk.f32.mxu1 %vm6607_vm3, %v23622_v56  ;;  %v25945_v56 = vld [vmem:[#allocation54_spill] sm:$0xff] }
 0x84e   :  { %17950 = vmatmul.mubr.msk.f32.gmra.mrb[52].mxu1 %vm6607_vm3, %v23626_v22  ;;  %v23646_v22 = vld [vmem:[#allocation3 + $0x301] sm:$0xff] }
 0x84f   :  { %17952 = vmatprep.mubr.msk.f32.mxu1 %vm6607_vm3, %v23630_v55  ;;  %25938 = vst [vmem:[#allocation48_spill] sm:$0xff] %v23646_v22  ;;  %v23650_v55 = vld [vmem:[#allocation3 + $0x309] sm:$0xff] }
 0x850   :  { %25939 = vst [vmem:[#allocation49_spill] sm:$0xff] %v23650_v55 }
 0x852   :  { %17953 = vmatmul.mubr.msk.f32.gmra.mrb[54].mxu1 %vm6607_vm3, %v23634_v27  ;;  %v23654_v27 = vld [vmem:[#allocation3 + $0x319] sm:$0xff] }
 0x853   :  { %17955 = vmatprep.mubr.msk.f32.mxu1 %vm6607_vm3, %v23638_v7  ;;  %25940 = vst [vmem:[#allocation50_spill] sm:$0xff] %v23654_v27  ;;  %v23658_v7 = vld [vmem:[#allocation3 + $0x321] sm:$0xff] }
 0x854   :  { %25941 = vst [vmem:[#allocation51_spill] sm:$0xff] %v23658_v7 }
 0x856   :  { %17956 = vmatmul.mubr.msk.f32.gmra.mrb[56].mxu1 %vm6607_vm3, %v23642_v13  ;;  %v23662_v13 = vld [vmem:[#allocation3 + $0x331] sm:$0xff] }
 0x857   :  { %17958 = vmatprep.mubr.msk.f32.mxu1 %vm6607_vm3, %v23646_v22  ;;  %25942 = vst [vmem:[#allocation52_spill] sm:$0xff] %v23662_v13  ;;  %v23666_v22 = vld [vmem:[#allocation3 + $0x339] sm:$0xff] }
 0x858   :  { %25943 = vst [vmem:[#allocation73_spill] sm:$0xff] %v23666_v22 }
 0x85a   :  { %17959 = vmatmul.mubr.msk.f32.gmra.mrb[58].mxu1 %vm6607_vm3, %v23650_v55  ;;  %v25944_v55 = vld [vmem:[#allocation53_spill] sm:$0xff] }
 0x85b   :  { %17961 = vmatprep.mubr.msk.f32.mxu1 %vm6607_vm3, %v23654_v27  ;;  %v23675_v27 = vld [vmem:[%s25433_s5 + $0x38] sm:$0xff] }
 0x85e   :  { %17962 = vmatmul.mubr.msk.f32.gmra.mrb[60].mxu1 %vm6607_vm3, %v23658_v7  ;;  %v25946_v7 = vld [vmem:[#allocation55_spill] sm:$0xff] }
 0x85f   :  { %17964 = vmatprep.mubr.msk.f32.mxu1 %vm6607_vm3, %v23662_v13  ;;  %v25947_v13 = vld [vmem:[#allocation56_spill] sm:$0xff] }
 0x862   :  { %17965 = vmatmul.mubr.msk.f32.gmra.mrb[62].mxu1 %vm6607_vm3, %v23666_v22  ;;  %v25948_v22 = vld [vmem:[#allocation57_spill] sm:$0xff] }
 0x863   :  { %17969 = vmatprep.mubr.msk.f32.mxu1 %vm6607_vm3, %v25944_v55  ;;  %v25949_v55 = vld [vmem:[#allocation58_spill] sm:$0xff] }
 0x866   :  { %17970 = vmatmul.mubr.msk.f32.vlgmr.msra.gmra.mrb[0].mxu1 %vm6607_vm3, %v25945_v56  ;;  %v25951_v56 = vld [vmem:[#allocation60_spill] sm:$0xff] }
 0x867   :  { %18066 = vmatpush3.msra.mxu1 %v23423_v16  ;;  %17972 = vmatprep.mubr.msk.f32.mxu1 %vm6607_vm3, %v25946_v7  ;;  %v25952_v16 = vld [vmem:[#allocation61_spill] sm:$0xff]  ;;  %v25953_v7 = vld [vmem:[#allocation4_spill] sm:$0xff] }
 0x868   :  { %18163 = vmatprep.subr.mxu1 %v23675_v27 }
 0x86a   :  { %17973 = vmatmul.mubr.msk.f32.gmra.mrb[2].mxu1 %vm6607_vm3, %v25947_v13  ;;  %v25955_v13 = vld [vmem:[#allocation6_spill] sm:$0xff] }
 0x86b   :  { %17975 = vmatprep.mubr.msk.f32.mxu1 %vm6607_vm3, %v25948_v22  ;;  %v25956_v22 = vld [vmem:[#allocation7_spill] sm:$0xff] }
 0x86e   :  { %17976 = vmatmul.mubr.msk.f32.gmra.mrb[4].mxu1 %vm6607_vm3, %v25949_v55  ;;  %v25957_v55 = vld [vmem:[#allocation62_spill] sm:$0xff] }
 0x86f   :  { %17978 = vmatprep.mubr.msk.f32.mxu1 %vm6607_vm3, %v25950_v30  ;;  %v25958_v30 = vld [vmem:[#allocation63_spill] sm:$0xff] }
 0x872   :  { %17979 = vmatmul.mubr.msk.f32.gmra.mrb[6].mxu1 %vm6607_vm3, %v25951_v56  ;;  %v25959_v56 = vld [vmem:[#allocation64_spill] sm:$0xff] }
 0x873   :  { %17981 = vmatprep.mubr.msk.f32.mxu1 %vm6607_vm3, %v25952_v16  ;;  %v25960_v16 = vld [vmem:[#allocation65_spill] sm:$0xff] }
 0x876   :  { %17982 = vmatmul.mubr.msk.f32.gmra.mrb[8].mxu1 %vm6607_vm3, %v25953_v7  ;;  %v25961_v7 = vld [vmem:[#allocation66_spill] sm:$0xff] }
 0x877   :  { %17984 = vmatprep.mubr.msk.f32.mxu1 %vm6607_vm3, %v25954_v32  ;;  %v25962_v32 = vld [vmem:[#allocation67_spill] sm:$0xff] }
 0x87a   :  { %17985 = vmatmul.mubr.msk.f32.gmra.mrb[10].mxu1 %vm6607_vm3, %v25955_v13  ;;  %v25963_v13 = vld [vmem:[#allocation68_spill] sm:$0xff] }
 0x87b   :  { %17987 = vmatprep.mubr.msk.f32.mxu1 %vm6607_vm3, %v25956_v22  ;;  %v25964_v22 = vld [vmem:[#allocation69_spill] sm:$0xff] }
 0x87e   :  { %17988 = vmatmul.mubr.msk.f32.gmra.mrb[12].mxu1 %vm6607_vm3, %v25957_v55  ;;  %v25965_v55 = vld [vmem:[#allocation70_spill] sm:$0xff] }
 0x87f   :  { %17990 = vmatprep.mubr.msk.f32.mxu1 %vm6607_vm3, %v25958_v30  ;;  %v25966_v30 = vld [vmem:[#allocation71_spill] sm:$0xff] }
 0x882   :  { %17991 = vmatmul.mubr.msk.f32.gmra.mrb[14].mxu1 %vm6607_vm3, %v25959_v56  ;;  %v25967_v56 = vld [vmem:[#allocation72_spill] sm:$0xff] }
 0x883   :  { %17993 = vmatprep.mubr.msk.f32.mxu1 %vm6607_vm3, %v25960_v16  ;;  %v25968_v16 = vld [vmem:[#allocation8_spill] sm:$0xff] }
 0x886   :  { %17994 = vmatmul.mubr.msk.f32.gmra.mrb[16].mxu1 %vm6607_vm3, %v25961_v7  ;;  %v25969_v7 = vld [vmem:[#allocation9_spill] sm:$0xff] }
 0x887   :  { %17996 = vmatprep.mubr.msk.f32.mxu1 %vm6607_vm3, %v25962_v32  ;;  %v25970_v32 = vld [vmem:[#allocation11_spill] sm:$0xff] }
 0x88a   :  { %17997 = vmatmul.mubr.msk.f32.gmra.mrb[18].mxu1 %vm6607_vm3, %v25963_v13  ;;  %v25971_v13 = vld [vmem:[#allocation10_spill] sm:$0xff] }
 0x88b   :  { %17999 = vmatprep.mubr.msk.f32.mxu1 %vm6607_vm3, %v25964_v22  ;;  %v25972_v22 = vld [vmem:[#allocation13_spill] sm:$0xff] }
 0x88e   :  { %18000 = vmatmul.mubr.msk.f32.gmra.mrb[20].mxu1 %vm6607_vm3, %v25965_v55  ;;  %v25973_v55 = vld [vmem:[#allocation12_spill] sm:$0xff] }
 0x88f   :  { %18002 = vmatprep.mubr.msk.f32.mxu1 %vm6607_vm3, %v25966_v30  ;;  %v23737_v30 = vld [vmem:[#allocation3 + $0x182] sm:$0xff] }
 0x892   :  { %18003 = vmatmul.mubr.msk.f32.gmra.mrb[22].mxu1 %vm6607_vm3, %v25967_v56  ;;  %v23741_v56 = vld [vmem:[#allocation3 + $0x18a] sm:$0xff] }
 0x893   :  { %18005 = vmatprep.mubr.msk.f32.mxu1 %vm6607_vm3, %v25968_v16  ;;  %25974 = vst [vmem:[#allocation53_spill] sm:$0xff] %v23741_v56  ;;  %v25975_v16 = vld [vmem:[#allocation15_spill] sm:$0xff] }
 0x896   :  { %18006 = vmatmul.mubr.msk.f32.gmra.mrb[24].mxu1 %vm6607_vm3, %v25969_v7  ;;  %v25976_v7 = vld [vmem:[#allocation14_spill] sm:$0xff] }
 0x897   :  { %18008 = vmatprep.mubr.msk.f32.mxu1 %vm6607_vm3, %v25970_v32  ;;  %v25977_v32 = vld [vmem:[#allocation17_spill] sm:$0xff] }
 0x89a   :  { %18009 = vmatmul.mubr.msk.f32.gmra.mrb[26].mxu1 %vm6607_vm3, %v25971_v13  ;;  %v25978_v13 = vld [vmem:[#allocation16_spill] sm:$0xff] }
 0x89b   :  { %18011 = vmatprep.mubr.msk.f32.mxu1 %vm6607_vm3, %v25972_v22  ;;  %v25979_v22 = vld [vmem:[#allocation19_spill] sm:$0xff] }
 0x89e   :  { %18012 = vmatmul.mubr.msk.f32.gmra.mrb[28].mxu1 %vm6607_vm3, %v25973_v55  ;;  %v25980_v55 = vld [vmem:[#allocation18_spill] sm:$0xff] }
 0x89f   :  { %18014 = vmatprep.mubr.msk.f32.mxu1 %vm6607_vm3, %v23737_v30 }
 0x8a2   :  { %18015 = vmatmul.mubr.msk.f32.gmra.mrb[30].mxu1 %vm6607_vm3, %v23741_v56  ;;  %v25981_v56 = vld [vmem:[#allocation21_spill] sm:$0xff] }
 0x8a3   :  { %18017 = vmatprep.mubr.msk.f32.mxu1 %vm6607_vm3, %v23156_v35  ;;  %v25982_v35 = vld [vmem:[#allocation20_spill] sm:$0xff] }
 0x8a6   :  { %18018 = vmatmul.mubr.msk.f32.gmra.mrb[32].mxu1 %vm6607_vm3, %v25975_v16  ;;  %v25983_v16 = vld [vmem:[#allocation23_spill] sm:$0xff] }
 0x8a7   :  { %18020 = vmatprep.mubr.msk.f32.mxu1 %vm6607_vm3, %v25976_v7  ;;  %v25984_v7 = vld [vmem:[#allocation22_spill] sm:$0xff] }
 0x8aa   :  { %18021 = vmatmul.mubr.msk.f32.gmra.mrb[34].mxu1 %vm6607_vm3, %v25977_v32  ;;  %v25985_v32 = vld [vmem:[#allocation25_spill] sm:$0xff] }
 0x8ab   :  { %18023 = vmatprep.mubr.msk.f32.mxu1 %vm6607_vm3, %v25978_v13  ;;  %v25986_v13 = vld [vmem:[#allocation24_spill] sm:$0xff] }
 0x8ae   :  { %18024 = vmatmul.mubr.msk.f32.gmra.mrb[36].mxu1 %vm6607_vm3, %v25979_v22  ;;  %v25987_v22 = vld [vmem:[#allocation27_spill] sm:$0xff] }
 0x8af   :  { %18026 = vmatprep.mubr.msk.f32.mxu1 %vm6607_vm3, %v25980_v55  ;;  %v25988_v55 = vld [vmem:[#allocation26_spill] sm:$0xff] }
 0x8b2   :  { %18027 = vmatmul.mubr.msk.f32.gmra.mrb[38].mxu1 %vm6607_vm3, %v25981_v56  ;;  %v25989_v56 = vld [vmem:[#allocation29_spill] sm:$0xff] }
 0x8b3   :  { %18029 = vmatprep.mubr.msk.f32.mxu1 %vm6607_vm3, %v25982_v35  ;;  %v25990_v35 = vld [vmem:[#allocation28_spill] sm:$0xff] }
 0x8b6   :  { %18030 = vmatmul.mubr.msk.f32.gmra.mrb[40].mxu1 %vm6607_vm3, %v25983_v16  ;;  %v25991_v16 = vld [vmem:[#allocation31_spill] sm:$0xff] }
 0x8b7   :  { %18032 = vmatprep.mubr.msk.f32.mxu1 %vm6607_vm3, %v25984_v7  ;;  %v25992_v7 = vld [vmem:[#allocation30_spill] sm:$0xff] }
 0x8ba   :  { %18033 = vmatmul.mubr.msk.f32.gmra.mrb[42].mxu1 %vm6607_vm3, %v25985_v32  ;;  %v25993_v32 = vld [vmem:[#allocation32_spill] sm:$0xff] }
 0x8bb   :  { %18035 = vmatprep.mubr.msk.f32.mxu1 %vm6607_vm3, %v25986_v13  ;;  %v25994_v13 = vld [vmem:[#allocation34_spill] sm:$0xff] }
 0x8be   :  { %18036 = vmatmul.mubr.msk.f32.gmra.mrb[44].mxu1 %vm6607_vm3, %v25987_v22  ;;  %v25995_v22 = vld [vmem:[#allocation35_spill] sm:$0xff] }
 0x8bf   :  { %18038 = vmatprep.mubr.msk.f32.mxu1 %vm6607_vm3, %v25988_v55  ;;  %v25996_v55 = vld [vmem:[#allocation36_spill] sm:$0xff] }
 0x8c2   :  { %18039 = vmatmul.mubr.msk.f32.gmra.mrb[46].mxu1 %vm6607_vm3, %v25989_v56  ;;  %v25997_v56 = vld [vmem:[#allocation37_spill] sm:$0xff] }
 0x8c3   :  { %18041 = vmatprep.mubr.msk.f32.mxu1 %vm6607_vm3, %v25990_v35  ;;  %v25998_v35 = vld [vmem:[#allocation38_spill] sm:$0xff] }
 0x8c6   :  { %18042 = vmatmul.mubr.msk.f32.gmra.mrb[48].mxu1 %vm6607_vm3, %v25991_v16  ;;  %v25999_v16 = vld [vmem:[#allocation39_spill] sm:$0xff] }
 0x8c7   :  { %18044 = vmatprep.mubr.msk.f32.mxu1 %vm6607_vm3, %v25992_v7  ;;  %v23805_v7 = vld [vmem:[#allocation3 + $0x332] sm:$0xff] }
 0x8ca   :  { %18045 = vmatmul.mubr.msk.f32.gmra.mrb[50].mxu1 %vm6607_vm3, %v25993_v32  ;;  %v23809_v32 = vld [vmem:[#allocation3 + $0x33a] sm:$0xff] }
 0x8cb   :  { %18047 = vmatprep.mubr.msk.f32.mxu1 %vm6607_vm3, %v25994_v13  ;;  %v11446_v13 = vld [vmem:[#allocation3 + $0x50] sm:$0xff] }
 0x8ce   :  { %18048 = vmatmul.mubr.msk.f32.gmra.mrb[52].mxu1 %vm6607_vm3, %v25995_v22  ;;  %v11447_v22 = vld [vmem:[#allocation3 + $0x60] sm:$0xff] }
 0x8cf   :  { %18050 = vmatprep.mubr.msk.f32.mxu1 %vm6607_vm3, %v25996_v55  ;;  %v11448_v55 = vld [vmem:[#allocation3 + $0x68] sm:$0xff] }
 0x8d2   :  { %18051 = vmatmul.mubr.msk.f32.gmra.mrb[54].mxu1 %vm6607_vm3, %v25997_v56  ;;  %v11449_v56 = vld [vmem:[#allocation3 + $0x78] sm:$0xff] }
 0x8d3   :  { %18053 = vmatprep.mubr.msk.f32.mxu1 %vm6607_vm3, %v25998_v35  ;;  %v11450_v35 = vld [vmem:[#allocation3 + $0x80] sm:$0xff] }
 0x8d6   :  { %18054 = vmatmul.mubr.msk.f32.gmra.mrb[56].mxu1 %vm6607_vm3, %v23256_v51  ;;  %v11443_v51 = vld [vmem:[#allocation3 + $0x30] sm:$0xff] }
 0x8d7   :  { %18056 = vmatprep.mubr.msk.f32.mxu1 %vm6607_vm3, %v25999_v16  ;;  %v11452_v16 = vld [vmem:[#allocation3 + $0x98] sm:$0xff] }
 0x8da   :  { %18057 = vmatmul.mubr.msk.f32.gmra.mrb[58].mxu1 %vm6607_vm3, %v23264_v6  ;;  %v11444_v6 = vld [vmem:[#allocation3 + $0x38] sm:$0xff] }
 0x8db   :  { %18059 = vmatprep.mubr.msk.f32.mxu1 %vm6607_vm3, %v23268_v33  ;;  %v23817_v33 = vld [vmem:[%s25433_s5 + $0x40] sm:$0xff] }
 0x8de   :  { %18060 = vmatmul.mubr.msk.f32.gmra.mrb[60].mxu1 %vm6607_vm3, %v23272_v9  ;;  %v11445_v9 = vld [vmem:[#allocation3 + $0x48] sm:$0xff] }
 0x8df   :  { %18062 = vmatprep.mubr.msk.f32.mxu1 %vm6607_vm3, %v23805_v7 }
 0x8e2   :  { %18063 = vmatmul.mubr.msk.f32.gmra.mrb[62].mxu1 %vm6607_vm3, %v23809_v32 }
 0x8e3   :  { %18067 = vmatprep.mubr.msk.f32.mxu1 %vm6607_vm3, %v11443_v51  ;;  %v11453_v51 = vld [vmem:[#allocation3 + $0xa8] sm:$0xff] }
 0x8e6   :  { %18068 = vmatmul.mubr.msk.f32.vlgmr.msra.gmra.mrb[0].mxu1 %vm6607_vm3, %v11444_v6  ;;  %v11454_v6 = vld [vmem:[#allocation3 + $0xb0] sm:$0xff] }
 0x8e7   :  { %18164 = vmatpush3.msra.mxu1 %v23675_v27  ;;  %18070 = vmatprep.mubr.msk.f32.mxu1 %vm6607_vm3, %v11445_v9  ;;  %v11451_v27 = vld [vmem:[#allocation3 + $0x90] sm:$0xff]  ;;  %v11455_v9 = vld [vmem:[#allocation3 + $0xc0] sm:$0xff] }
 0x8e8   :  { %18261 = vmatprep.subr.mxu1 %v23817_v33 }
 0x8ea   :  { %18071 = vmatmul.mubr.msk.f32.gmra.mrb[2].mxu1 %vm6607_vm3, %v11446_v13  ;;  %v11456_v13 = vld [vmem:[#allocation3 + $0xc8] sm:$0xff] }
 0x8eb   :  { %18073 = vmatprep.mubr.msk.f32.mxu1 %vm6607_vm3, %v11447_v22  ;;  %v11457_v22 = vld [vmem:[#allocation3 + $0xd8] sm:$0xff] }
 0x8ee   :  { %18074 = vmatmul.mubr.msk.f32.gmra.mrb[4].mxu1 %vm6607_vm3, %v11448_v55  ;;  %v11458_v55 = vld [vmem:[#allocation3 + $0xe0] sm:$0xff] }
 0x8ef   :  { %18076 = vmatprep.mubr.msk.f32.mxu1 %vm6607_vm3, %v11449_v56  ;;  %v11459_v56 = vld [vmem:[#allocation3 + $0xf0] sm:$0xff] }
 0x8f2   :  { %18077 = vmatmul.mubr.msk.f32.gmra.mrb[6].mxu1 %vm6607_vm3, %v11450_v35  ;;  %v11460_v35 = vld [vmem:[#allocation3 + $0xf8] sm:$0xff] }
 0x8f3   :  { %18079 = vmatprep.mubr.msk.f32.mxu1 %vm6607_vm3, %v11451_v27  ;;  %v11461_v27 = vld [vmem:[#allocation3 + $0x108] sm:$0xff] }
 0x8f6   :  { %18080 = vmatmul.mubr.msk.f32.gmra.mrb[8].mxu1 %vm6607_vm3, %v11452_v16  ;;  %v11462_v16 = vld [vmem:[#allocation3 + $0x110] sm:$0xff] }
 0x8f7   :  { %18082 = vmatprep.mubr.msk.f32.mxu1 %vm6607_vm3, %v11453_v51  ;;  %v11463_v51 = vld [vmem:[#allocation3 + $0x120] sm:$0xff] }
 0x8fa   :  { %18083 = vmatmul.mubr.msk.f32.gmra.mrb[10].mxu1 %vm6607_vm3, %v11454_v6  ;;  %v11464_v6 = vld [vmem:[#allocation3 + $0x128] sm:$0xff] }
 0x8fb   :  { %18085 = vmatprep.mubr.msk.f32.mxu1 %vm6607_vm3, %v11455_v9  ;;  %v11465_v9 = vld [vmem:[#allocation3 + $0x138] sm:$0xff] }
 0x8fe   :  { %18086 = vmatmul.mubr.msk.f32.gmra.mrb[12].mxu1 %vm6607_vm3, %v11456_v13  ;;  %v11466_v13 = vld [vmem:[#allocation3 + $0x140] sm:$0xff] }
 0x8ff   :  { %18088 = vmatprep.mubr.msk.f32.mxu1 %vm6607_vm3, %v11457_v22  ;;  %v11467_v22 = vld [vmem:[#allocation3 + $0x150] sm:$0xff] }
 0x902   :  { %18089 = vmatmul.mubr.msk.f32.gmra.mrb[14].mxu1 %vm6607_vm3, %v11458_v55  ;;  %v11468_v55 = vld [vmem:[#allocation3 + $0x158] sm:$0xff] }
 0x903   :  { %18091 = vmatprep.mubr.msk.f32.mxu1 %vm6607_vm3, %v11459_v56  ;;  %v11469_v56 = vld [vmem:[#allocation3 + $0x168] sm:$0xff] }
 0x906   :  { %18092 = vmatmul.mubr.msk.f32.gmra.mrb[16].mxu1 %vm6607_vm3, %v11460_v35  ;;  %v11470_v35 = vld [vmem:[#allocation3 + $0x170] sm:$0xff] }
 0x907   :  { %18094 = vmatprep.mubr.msk.f32.mxu1 %vm6607_vm3, %v11461_v27  ;;  %v11473_v27 = vld [vmem:[#allocation3 + $0x198] sm:$0xff] }
 0x90a   :  { %18095 = vmatmul.mubr.msk.f32.gmra.mrb[18].mxu1 %vm6607_vm3, %v11462_v16  ;;  %v11474_v16 = vld [vmem:[#allocation3 + $0x1a0] sm:$0xff] }
 0x90b   :  { %18097 = vmatprep.mubr.msk.f32.mxu1 %vm6607_vm3, %v11463_v51  ;;  %v11475_v51 = vld [vmem:[#allocation3 + $0x1e0] sm:$0xff] }
 0x90e   :  { %18098 = vmatmul.mubr.msk.f32.gmra.mrb[20].mxu1 %vm6607_vm3, %v11464_v6  ;;  %v11476_v6 = vld [vmem:[#allocation3 + $0x1e8] sm:$0xff] }
 0x90f   :  { %18100 = vmatprep.mubr.msk.f32.mxu1 %vm6607_vm3, %v11465_v9  ;;  %v11477_v9 = vld [vmem:[#allocation3 + $0x1f8] sm:$0xff] }
 0x912   :  { %18101 = vmatmul.mubr.msk.f32.gmra.mrb[22].mxu1 %vm6607_vm3, %v11466_v13  ;;  %v11478_v13 = vld [vmem:[#allocation3 + $0x200] sm:$0xff] }
 0x913   :  { %18103 = vmatprep.mubr.msk.f32.mxu1 %vm6607_vm3, %v11467_v22  ;;  %v11481_v22 = vld [vmem:[#allocation3 + $0x228] sm:$0xff] }
 0x916   :  { %18104 = vmatmul.mubr.msk.f32.gmra.mrb[24].mxu1 %vm6607_vm3, %v11468_v55  ;;  %v11482_v55 = vld [vmem:[#allocation3 + $0x230] sm:$0xff] }
 0x917   :  { %18106 = vmatprep.mubr.msk.f32.mxu1 %vm6607_vm3, %v11469_v56  ;;  %v11483_v56 = vld [vmem:[#allocation3 + $0x240] sm:$0xff] }
 0x91a   :  { %18107 = vmatmul.mubr.msk.f32.gmra.mrb[26].mxu1 %vm6607_vm3, %v11470_v35  ;;  %v11484_v35 = vld [vmem:[#allocation3 + $0x248] sm:$0xff] }
 0x91b   :  { %18109 = vmatprep.mubr.msk.f32.mxu1 %vm6607_vm3, %v23343_v39  ;;  %v11479_v39 = vld [vmem:[#allocation3 + $0x210] sm:$0xff] }
 0x91e   :  { %18110 = vmatmul.mubr.msk.f32.gmra.mrb[28].mxu1 %vm6607_vm3, %v23347_v29  ;;  %v11480_v29 = vld [vmem:[#allocation3 + $0x218] sm:$0xff] }
 0x91f   :  { %18112 = vmatprep.mubr.msk.f32.mxu1 %vm6607_vm3, %v11473_v27  ;;  %v11485_v27 = vld [vmem:[#allocation3 + $0x258] sm:$0xff] }
 0x922   :  { %18113 = vmatmul.mubr.msk.f32.gmra.mrb[30].mxu1 %vm6607_vm3, %v11474_v16  ;;  %v11486_v16 = vld [vmem:[#allocation3 + $0x260] sm:$0xff] }
 0x923   :  { %18115 = vmatprep.mubr.msk.f32.mxu1 %vm6607_vm3, %v11475_v51  ;;  %v11487_v51 = vld [vmem:[#allocation3 + $0x270] sm:$0xff] }
 0x926   :  { %18116 = vmatmul.mubr.msk.f32.gmra.mrb[32].mxu1 %vm6607_vm3, %v11476_v6  ;;  %v11488_v6 = vld [vmem:[#allocation3 + $0x278] sm:$0xff] }
 0x927   :  { %18118 = vmatprep.mubr.msk.f32.mxu1 %vm6607_vm3, %v11477_v9  ;;  %v11489_v9 = vld [vmem:[#allocation3 + $0x288] sm:$0xff] }
 0x92a   :  { %18119 = vmatmul.mubr.msk.f32.gmra.mrb[34].mxu1 %vm6607_vm3, %v11478_v13  ;;  %v11490_v13 = vld [vmem:[#allocation3 + $0x290] sm:$0xff] }
 0x92b   :  { %18121 = vmatprep.mubr.msk.f32.mxu1 %vm6607_vm3, %v11479_v39  ;;  %v11491_v39 = vld [vmem:[#allocation3 + $0x2a0] sm:$0xff] }
 0x92e   :  { %18122 = vmatmul.mubr.msk.f32.gmra.mrb[36].mxu1 %vm6607_vm3, %v11480_v29  ;;  %v11492_v29 = vld [vmem:[#allocation3 + $0x2a8] sm:$0xff] }
 0x92f   :  { %18124 = vmatprep.mubr.msk.f32.mxu1 %vm6607_vm3, %v11481_v22  ;;  %v11493_v22 = vld [vmem:[#allocation3 + $0x2b8] sm:$0xff] }
 0x932   :  { %18125 = vmatmul.mubr.msk.f32.gmra.mrb[38].mxu1 %vm6607_vm3, %v11482_v55  ;;  %v11494_v55 = vld [vmem:[#allocation3 + $0x2c0] sm:$0xff] }
 0x933   :  { %18127 = vmatprep.mubr.msk.f32.mxu1 %vm6607_vm3, %v11483_v56  ;;  %v11495_v56 = vld [vmem:[#allocation3 + $0x2d0] sm:$0xff] }
 0x936   :  { %18128 = vmatmul.mubr.msk.f32.gmra.mrb[40].mxu1 %vm6607_vm3, %v11484_v35  ;;  %v11496_v35 = vld [vmem:[#allocation3 + $0x2d8] sm:$0xff] }
 0x937   :  { %18130 = vmatprep.mubr.msk.f32.mxu1 %vm6607_vm3, %v11485_v27  ;;  %v11497_v27 = vld [vmem:[#allocation3 + $0x2e8] sm:$0xff] }
 0x93a   :  { %18131 = vmatmul.mubr.msk.f32.gmra.mrb[42].mxu1 %vm6607_vm3, %v11486_v16  ;;  %v11498_v16 = vld [vmem:[#allocation3 + $0x2f0] sm:$0xff] }
 0x93b   :  { %18133 = vmatprep.mubr.msk.f32.mxu1 %vm6607_vm3, %v11487_v51  ;;  %v11499_v51 = vld [vmem:[#allocation3 + $0x300] sm:$0xff] }
 0x93e   :  { %18134 = vmatmul.mubr.msk.f32.gmra.mrb[44].mxu1 %vm6607_vm3, %v11488_v6  ;;  %v11500_v6 = vld [vmem:[#allocation3 + $0x308] sm:$0xff] }
 0x93f   :  { %18136 = vmatprep.mubr.msk.f32.mxu1 %vm6607_vm3, %v11489_v9  ;;  %v11501_v9 = vld [vmem:[#allocation3 + $0x318] sm:$0xff] }
 0x942   :  { %18137 = vmatmul.mubr.msk.f32.gmra.mrb[46].mxu1 %vm6607_vm3, %v11490_v13  ;;  %v11502_v13 = vld [vmem:[#allocation3 + $0x320] sm:$0xff] }
 0x943   :  { %18139 = vmatprep.mubr.msk.f32.mxu1 %vm6607_vm3, %v11491_v39  ;;  %v11505_v39 = vld [vmem:[#allocation3 + $0x348] sm:$0xff] }
 0x946   :  { %18140 = vmatmul.mubr.msk.f32.gmra.mrb[48].mxu1 %vm6607_vm3, %v11492_v29  ;;  %v11506_v29 = vld [vmem:[#allocation3 + $0x350] sm:$0xff] }
 0x947   :  { %18142 = vmatprep.mubr.msk.f32.mxu1 %vm6607_vm3, %v11493_v22  ;;  %v12889_v22 = vld [vmem:[#allocation3 + $0x1e2] sm:$0xff] }
 0x94a   :  { %18143 = vmatmul.mubr.msk.f32.gmra.mrb[50].mxu1 %vm6607_vm3, %v11494_v55  ;;  %v12890_v55 = vld [vmem:[#allocation3 + $0x1ea] sm:$0xff] }
 0x94b   :  { %18145 = vmatprep.mubr.msk.f32.mxu1 %vm6607_vm3, %v11495_v56  ;;  %v12891_v56 = vld [vmem:[#allocation3 + $0x1fa] sm:$0xff] }
 0x94e   :  { %18146 = vmatmul.mubr.msk.f32.gmra.mrb[52].mxu1 %vm6607_vm3, %v11496_v35  ;;  %v12892_v35 = vld [vmem:[#allocation3 + $0x202] sm:$0xff] }
 0x94f   :  { %18148 = vmatprep.mubr.msk.f32.mxu1 %vm6607_vm3, %v11497_v27  ;;  %v12894_v27 = vld [vmem:[#allocation3 + $0x21a] sm:$0xff] }
 0x952   :  { %18149 = vmatmul.mubr.msk.f32.gmra.mrb[54].mxu1 %vm6607_vm3, %v11498_v16  ;;  %v12895_v16 = vld [vmem:[#allocation3 + $0x22a] sm:$0xff] }
 0x953   :  { %18151 = vmatprep.mubr.msk.f32.mxu1 %vm6607_vm3, %v11499_v51  ;;  %v12896_v51 = vld [vmem:[#allocation3 + $0x232] sm:$0xff] }
 0x956   :  { %18152 = vmatmul.mubr.msk.f32.gmra.mrb[56].mxu1 %vm6607_vm3, %v11500_v6  ;;  %v12897_v6 = vld [vmem:[#allocation3 + $0x242] sm:$0xff] }
 0x957   :  { %18154 = vmatprep.mubr.msk.f32.mxu1 %vm6607_vm3, %v11501_v9  ;;  %v12898_v9 = vld [vmem:[#allocation3 + $0x24a] sm:$0xff] }
 0x95a   :  { %18155 = vmatmul.mubr.msk.f32.gmra.mrb[58].mxu1 %vm6607_vm3, %v11502_v13  ;;  %v12899_v13 = vld [vmem:[#allocation3 + $0x25a] sm:$0xff] }
 0x95b   :  { %18157 = vmatprep.mubr.msk.f32.mxu1 %vm6607_vm3, %v23411_v3  ;;  %v12180_v3 = vld [vmem:[#allocation3 + $0x199] sm:$0xff] }
 0x95e   :  { %18158 = vmatmul.mubr.msk.f32.gmra.mrb[60].mxu1 %vm6607_vm3, %v23415_v10  ;;  %v12181_v10 = vld [vmem:[#allocation3 + $0x1a1] sm:$0xff] }
 0x95f   :  { %18160 = vmatprep.mubr.msk.f32.mxu1 %vm6607_vm3, %v11505_v39  ;;  %v12900_v39 = vld [vmem:[#allocation3 + $0x262] sm:$0xff] }
 0x962   :  { %18161 = vmatmul.mubr.msk.f32.gmra.mrb[62].mxu1 %vm6607_vm3, %v11506_v29  ;;  %v12901_v29 = vld [vmem:[#allocation3 + $0x272] sm:$0xff] }
 0x963   :  { %18165 = vmatprep.mubr.msk.f32.mxu1 %vm6607_vm3, %v23426_v37  ;;  %v26000_v37 = vld [vmem:[#allocation40_spill] sm:$0xff] }
 0x966   :  { %18166 = vmatmul.mubr.msk.f32.vlgmr.msra.gmra.mrb[0].mxu1 %vm6607_vm3, %v23432_v47  ;;  %v26001_v47 = vld [vmem:[#allocation41_spill] sm:$0xff] }
 0x967   :  { %18262 = vmatpush3.msra.mxu1 %v23817_v33  ;;  %18168 = vmatprep.mubr.msk.f32.mxu1 %vm6607_vm3, %v23436_v43  ;;  %v26002_v43 = vld [vmem:[#allocation42_spill] sm:$0xff]  ;;  %v12888_v33 = vld [vmem:[#allocation3 + $0x1a2] sm:$0xff] }
 0x96a   :  { %18169 = vmatmul.mubr.msk.f32.gmra.mrb[2].mxu1 %vm6607_vm3, %v23440_v61  ;;  %v26003_v61 = vld [vmem:[#allocation43_spill] sm:$0xff] }
 0x96b   :  { %18171 = vmatprep.mubr.msk.f32.mxu1 %vm6607_vm3, %v23444_v57  ;;  %v26004_v57 = vld [vmem:[#allocation44_spill] sm:$0xff] }
 0x96e   :  { %18172 = vmatmul.mubr.msk.f32.gmra.mrb[4].mxu1 %vm6607_vm3, %v23448_v49  ;;  %v26005_v49 = vld [vmem:[#allocation45_spill] sm:$0xff] }
 0x96f   :  { %18174 = vmatprep.mubr.msk.f32.mxu1 %vm6607_vm3, %v23452_v48  ;;  %v26006_v48 = vld [vmem:[#allocation46_spill] sm:$0xff] }
 0x972   :  { %18175 = vmatmul.mubr.msk.f32.gmra.mrb[6].mxu1 %vm6607_vm3, %v23456_v23  ;;  %v26007_v23 = vld [vmem:[#allocation47_spill] sm:$0xff] }
 0x973   :  { %18177 = vmatprep.mubr.msk.f32.mxu1 %vm6607_vm3, %v23460_v19  ;;  %v26008_v19 = vld [vmem:[#allocation48_spill] sm:$0xff] }
 0x976   :  { %18178 = vmatmul.mubr.msk.f32.gmra.mrb[8].mxu1 %vm6607_vm3, %v23464_v40  ;;  %v26009_v40 = vld [vmem:[#allocation49_spill] sm:$0xff] }
 0x977   :  { %18180 = vmatprep.mubr.msk.f32.mxu1 %vm6607_vm3, %v23468_v34  ;;  %v26010_v34 = vld [vmem:[#allocation50_spill] sm:$0xff] }
 0x97a   :  { %18181 = vmatmul.mubr.msk.f32.gmra.mrb[10].mxu1 %vm6607_vm3, %v23472_v59  ;;  %v26011_v59 = vld [vmem:[#allocation51_spill] sm:$0xff] }
 0x97b   :  { %18183 = vmatprep.mubr.msk.f32.mxu1 %vm6607_vm3, %v23476_v54  ;;  %v26012_v54 = vld [vmem:[#allocation52_spill] sm:$0xff] }
 0x97e   :  { %18184 = vmatmul.mubr.msk.f32.gmra.mrb[12].mxu1 %vm6607_vm3, %v23480_v8  ;;  %v12212_v8 = vld [vmem:[#allocation3 + $0x349] sm:$0xff] }
 0x97f   :  { %18186 = vmatprep.mubr.msk.f32.mxu1 %vm6607_vm3, %v23484_v0  ;;  %v26013_v0 = vld [vmem:[#allocation73_spill] sm:$0xff] }
 0x982   :  { %18187 = vmatmul.mubr.msk.f32.gmra.mrb[14].mxu1 %vm6607_vm3, %v23488_v26  ;;  %v12213_v26 = vld [vmem:[#allocation3 + $0x351] sm:$0xff] }
 0x983   :  { %18189 = vmatprep.mubr.msk.f32.mxu1 %vm6607_vm3, %v23492_v21  ;;  %v12857_v21 = vld [vmem:[#allocation3 + $0x32] sm:$0xff] }
 0x986   :  { %18190 = vmatmul.mubr.msk.f32.gmra.mrb[16].mxu1 %vm6607_vm3, %v23496_v46  ;;  %v12858_v46 = vld [vmem:[#allocation3 + $0x3a] sm:$0xff] }
 0x987   :  { %18192 = vmatprep.mubr.msk.f32.mxu1 %vm6607_vm3, %v23500_v41  ;;  %v12859_v41 = vld [vmem:[#allocation3 + $0x4a] sm:$0xff] }
 0x98a   :  { %18193 = vmatmul.mubr.msk.f32.gmra.mrb[18].mxu1 %vm6607_vm3, %v23504_v63  ;;  %v12860_v63 = vld [vmem:[#allocation3 + $0x52] sm:$0xff] }
 0x98b   :  { %18195 = vmatprep.mubr.msk.f32.mxu1 %vm6607_vm3, %v23508_v12  ;;  %v12861_v12 = vld [vmem:[#allocation3 + $0x62] sm:$0xff] }
 0x98e   :  { %18196 = vmatmul.mubr.msk.f32.gmra.mrb[20].mxu1 %vm6607_vm3, %v23512_v44  ;;  %v12862_v44 = vld [vmem:[#allocation3 + $0x6a] sm:$0xff] }
 0x98f   :  { %18198 = vmatprep.mubr.msk.f32.mxu1 %vm6607_vm3, %v23516_v38  ;;  %v12863_v38 = vld [vmem:[#allocation3 + $0x7a] sm:$0xff] }
 0x992   :  { %18199 = vmatmul.mubr.msk.f32.gmra.mrb[22].mxu1 %vm6607_vm3, %v23520_v2  ;;  %v12864_v2 = vld [vmem:[#allocation3 + $0x82] sm:$0xff] }
 0x993   :  { %18201 = vmatprep.mubr.msk.f32.mxu1 %vm6607_vm3, %v23524_v62  ;;  %v12865_v62 = vld [vmem:[#allocation3 + $0x92] sm:$0xff] }
 0x996   :  { %18202 = vmatmul.mubr.msk.f32.gmra.mrb[24].mxu1 %vm6607_vm3, %v23528_v25  ;;  %v12866_v25 = vld [vmem:[#allocation3 + $0x9a] sm:$0xff] }
 0x997   :  { %18204 = vmatprep.mubr.msk.f32.mxu1 %vm6607_vm3, %v23532_v17  ;;  %v12867_v17 = vld [vmem:[#allocation3 + $0xaa] sm:$0xff] }
 0x99a   :  { %18205 = vmatmul.mubr.msk.f32.gmra.mrb[26].mxu1 %vm6607_vm3, %v23536_v53  ;;  %v12868_v53 = vld [vmem:[#allocation3 + $0xb2] sm:$0xff] }
 0x99b   :  { %18207 = vmatprep.mubr.msk.f32.mxu1 %vm6607_vm3, %v23540_v45  ;;  %v12869_v45 = vld [vmem:[#allocation3 + $0xc2] sm:$0xff] }
 0x99e   :  { %18208 = vmatmul.mubr.msk.f32.gmra.mrb[28].mxu1 %vm6607_vm3, %v23544_v5  ;;  %v12870_v5 = vld [vmem:[#allocation3 + $0xca] sm:$0xff] }
 0x99f   :  { %18210 = vmatprep.mubr.msk.f32.mxu1 %vm6607_vm3, %v12180_v3  ;;  %v12902_v3 = vld [vmem:[#allocation3 + $0x27a] sm:$0xff] }
 0x9a2   :  { %18211 = vmatmul.mubr.msk.f32.gmra.mrb[30].mxu1 %vm6607_vm3, %v12181_v10  ;;  %v12903_v10 = vld [vmem:[#allocation3 + $0x28a] sm:$0xff] }
 0x9a3   :  { %18213 = vmatprep.mubr.msk.f32.mxu1 %vm6607_vm3, %v23550_v42  ;;  %v12871_v42 = vld [vmem:[#allocation3 + $0xda] sm:$0xff] }
 0x9a6   :  { %18214 = vmatmul.mubr.msk.f32.gmra.mrb[32].mxu1 %vm6607_vm3, %v23554_v4  ;;  %v12872_v4 = vld [vmem:[#allocation3 + $0xe2] sm:$0xff] }
 0x9a7   :  { %18216 = vmatprep.mubr.msk.f32.mxu1 %vm6607_vm3, %v23558_v50  ;;  %v12873_v50 = vld [vmem:[#allocation3 + $0xf2] sm:$0xff] }
 0x9aa   :  { %18217 = vmatmul.mubr.msk.f32.gmra.mrb[34].mxu1 %vm6607_vm3, %v23562_v31  ;;  %v12874_v31 = vld [vmem:[#allocation3 + $0xfa] sm:$0xff] }
 0x9ab   :  { %18219 = vmatprep.mubr.msk.f32.mxu1 %vm6607_vm3, %v23566_v18  ;;  %v12875_v18 = vld [vmem:[#allocation3 + $0x10a] sm:$0xff] }
 0x9ae   :  { %18220 = vmatmul.mubr.msk.f32.gmra.mrb[36].mxu1 %vm6607_vm3, %v23570_v36  ;;  %v12876_v36 = vld [vmem:[#allocation3 + $0x112] sm:$0xff] }
 0x9af   :  { %18222 = vmatprep.mubr.msk.f32.mxu1 %vm6607_vm3, %v23574_v24  ;;  %v12877_v24 = vld [vmem:[#allocation3 + $0x122] sm:$0xff] }
 0x9b2   :  { %18223 = vmatmul.mubr.msk.f32.gmra.mrb[38].mxu1 %vm6607_vm3, %v23578_v15  ;;  %v12878_v15 = vld [vmem:[#allocation3 + $0x12a] sm:$0xff] }
 0x9b3   :  { %18225 = vmatprep.mubr.msk.f32.mxu1 %vm6607_vm3, %v23582_v14  ;;  %v12879_v14 = vld [vmem:[#allocation3 + $0x13a] sm:$0xff] }
 0x9b6   :  { %18226 = vmatmul.mubr.msk.f32.gmra.mrb[40].mxu1 %vm6607_vm3, %v23586_v60  ;;  %v12880_v60 = vld [vmem:[#allocation3 + $0x142] sm:$0xff] }
 0x9b7   :  { %18228 = vmatprep.mubr.msk.f32.mxu1 %vm6607_vm3, %v23590_v11  ;;  %v12881_v11 = vld [vmem:[#allocation3 + $0x152] sm:$0xff] }
 0x9ba   :  { %18229 = vmatmul.mubr.msk.f32.gmra.mrb[42].mxu1 %vm6607_vm3, %v23594_v58  ;;  %v12882_v58 = vld [vmem:[#allocation3 + $0x15a] sm:$0xff] }
 0x9bb   :  { %18231 = vmatprep.mubr.msk.f32.mxu1 %vm6607_vm3, %v23598_v28  ;;  %v12883_v28 = vld [vmem:[#allocation3 + $0x16a] sm:$0xff] }
 0x9be   :  { %18232 = vmatmul.mubr.msk.f32.gmra.mrb[44].mxu1 %vm6607_vm3, %v23602_v52  ;;  %v12884_v52 = vld [vmem:[#allocation3 + $0x172] sm:$0xff] }
 0x9bf   :  { %18234 = vmatprep.mubr.msk.f32.mxu1 %vm6607_vm3, %v23606_v1  ;;  %v12887_v1 = vld [vmem:[#allocation3 + $0x19a] sm:$0xff] }
 0x9c2   :  { %18235 = vmatmul.mubr.msk.f32.gmra.mrb[46].mxu1 %vm6607_vm3, %v23610_v20  ;;  %v26014_v20 = vld [vmem:[#allocation53_spill] sm:$0xff] }
 0x9c3   :  { %18237 = vmatprep.mubr.msk.f32.mxu1 %vm6607_vm3, %v26000_v37  ;;  %v12904_v37 = vld [vmem:[#allocation3 + $0x292] sm:$0xff] }
 0x9c6   :  { %18238 = vmatmul.mubr.msk.f32.gmra.mrb[48].mxu1 %vm6607_vm3, %v26001_v47  ;;  %v12905_v47 = vld [vmem:[#allocation3 + $0x2a2] sm:$0xff] }
 0x9c7   :  { %18240 = vmatprep.mubr.msk.f32.mxu1 %vm6607_vm3, %v26002_v43  ;;  %v12906_v43 = vld [vmem:[#allocation3 + $0x2aa] sm:$0xff] }
 0x9ca   :  { %18241 = vmatmul.mubr.msk.f32.gmra.mrb[50].mxu1 %vm6607_vm3, %v26003_v61  ;;  %v12907_v61 = vld [vmem:[#allocation3 + $0x2ba] sm:$0xff] }
 0x9cb   :  { %18243 = vmatprep.mubr.msk.f32.mxu1 %vm6607_vm3, %v26004_v57  ;;  %v12908_v57 = vld [vmem:[#allocation3 + $0x2c2] sm:$0xff] }
 0x9ce   :  { %18244 = vmatmul.mubr.msk.f32.gmra.mrb[52].mxu1 %vm6607_vm3, %v26005_v49  ;;  %v12909_v49 = vld [vmem:[#allocation3 + $0x2d2] sm:$0xff] }
 0x9cf   :  { %18246 = vmatprep.mubr.msk.f32.mxu1 %vm6607_vm3, %v26006_v48  ;;  %v12910_v48 = vld [vmem:[#allocation3 + $0x2da] sm:$0xff] }
 0x9d2   :  { %18247 = vmatmul.mubr.msk.f32.gmra.mrb[54].mxu1 %vm6607_vm3, %v26007_v23  ;;  %v12911_v23 = vld [vmem:[#allocation3 + $0x2ea] sm:$0xff] }
 0x9d3   :  { %18249 = vmatprep.mubr.msk.f32.mxu1 %vm6607_vm3, %v26008_v19  ;;  %v12912_v19 = vld [vmem:[#allocation3 + $0x2f2] sm:$0xff] }
 0x9d6   :  { %18250 = vmatmul.mubr.msk.f32.gmra.mrb[56].mxu1 %vm6607_vm3, %v26009_v40  ;;  %v12913_v40 = vld [vmem:[#allocation3 + $0x302] sm:$0xff] }
 0x9d7   :  { %18252 = vmatprep.mubr.msk.f32.mxu1 %vm6607_vm3, %v26010_v34  ;;  %v12914_v34 = vld [vmem:[#allocation3 + $0x30a] sm:$0xff] }
 0x9da   :  { %18253 = vmatmul.mubr.msk.f32.gmra.mrb[58].mxu1 %vm6607_vm3, %v26011_v59  ;;  %v12915_v59 = vld [vmem:[#allocation3 + $0x31a] sm:$0xff] }
 0x9db   :  { %18255 = vmatprep.mubr.msk.f32.mxu1 %vm6607_vm3, %v26012_v54  ;;  %v12916_v54 = vld [vmem:[#allocation3 + $0x322] sm:$0xff] }
 0x9de   :  { %18256 = vmatmul.mubr.msk.f32.gmra.mrb[60].mxu1 %vm6607_vm3, %v26013_v0  ;;  %v12920_v0 = vld [vmem:[#allocation3 + $0x352] sm:$0xff] }
 0x9df   :  { %18258 = vmatprep.mubr.msk.f32.mxu1 %vm6607_vm3, %v12212_v8  ;;  %v12919_v8 = vld [vmem:[#allocation3 + $0x34a] sm:$0xff] }
 0x9e2   :  { %18259 = vmatmul.mubr.msk.f32.gmra.mrb[62].mxu1 %vm6607_vm3, %v12213_v26  ;;  %v24084_v26 = vld [vmem:[%s25436_s6] ss:$0 sm:$0xff] }
 0x9e3   :  { %18263 = vmatprep.mubr.msk.f32.mxu1 %vm6607_vm3, %v12857_v21 }
 0x9e6   :  { %18264 = vmatmul.mubr.msk.f32.vlgmr.msra.gmra.mrb[0].mxu1 %vm6607_vm3, %v12858_v46 }
 0x9e7   :  { %18266 = vmatprep.mubr.msk.f32.mxu1 %vm6607_vm3, %v12859_v41 }
 0x9ea   :  { %18267 = vmatmul.mubr.msk.f32.gmra.mrb[2].mxu1 %vm6607_vm3, %v12860_v63 }
 0x9eb   :  { %18269 = vmatprep.mubr.msk.f32.mxu1 %vm6607_vm3, %v12861_v12 }
 0x9ee   :  { %18270 = vmatmul.mubr.msk.f32.gmra.mrb[4].mxu1 %vm6607_vm3, %v12862_v44 }
 0x9ef   :  { %18272 = vmatprep.mubr.msk.f32.mxu1 %vm6607_vm3, %v12863_v38 }
 0x9f2   :  { %18273 = vmatmul.mubr.msk.f32.gmra.mrb[6].mxu1 %vm6607_vm3, %v12864_v2 }
 0x9f3   :  { %18275 = vmatprep.mubr.msk.f32.mxu1 %vm6607_vm3, %v12865_v62 }
 0x9f6   :  { %18276 = vmatmul.mubr.msk.f32.gmra.mrb[8].mxu1 %vm6607_vm3, %v12866_v25 }
 0x9f7   :  { %18278 = vmatprep.mubr.msk.f32.mxu1 %vm6607_vm3, %v12867_v17 }
 0x9fa   :  { %18279 = vmatmul.mubr.msk.f32.gmra.mrb[10].mxu1 %vm6607_vm3, %v12868_v53 }
 0x9fb   :  { %18281 = vmatprep.mubr.msk.f32.mxu1 %vm6607_vm3, %v12869_v45 }
 0x9fe   :  { %18282 = vmatmul.mubr.msk.f32.gmra.mrb[12].mxu1 %vm6607_vm3, %v12870_v5 }
 0x9ff   :  { %18284 = vmatprep.mubr.msk.f32.mxu1 %vm6607_vm3, %v12871_v42 }
 0xa02   :  { %18285 = vmatmul.mubr.msk.f32.gmra.mrb[14].mxu1 %vm6607_vm3, %v12872_v4 }
 0xa03   :  { %18287 = vmatprep.mubr.msk.f32.mxu1 %vm6607_vm3, %v12873_v50 }
 0xa06   :  { %18288 = vmatmul.mubr.msk.f32.gmra.mrb[16].mxu1 %vm6607_vm3, %v12874_v31 }
 0xa07   :  { %18290 = vmatprep.mubr.msk.f32.mxu1 %vm6607_vm3, %v12875_v18 }
 0xa0a   :  { %18291 = vmatmul.mubr.msk.f32.gmra.mrb[18].mxu1 %vm6607_vm3, %v12876_v36 }
 0xa0b   :  { %18293 = vmatprep.mubr.msk.f32.mxu1 %vm6607_vm3, %v12877_v24 }
 0xa0e   :  { %18294 = vmatmul.mubr.msk.f32.gmra.mrb[20].mxu1 %vm6607_vm3, %v12878_v15 }
 0xa0f   :  { %18296 = vmatprep.mubr.msk.f32.mxu1 %vm6607_vm3, %v12879_v14 }
 0xa12   :  { %18297 = vmatmul.mubr.msk.f32.gmra.mrb[22].mxu1 %vm6607_vm3, %v12880_v60 }
 0xa13   :  { %18299 = vmatprep.mubr.msk.f32.mxu1 %vm6607_vm3, %v12881_v11 }
 0xa16   :  { %18300 = vmatmul.mubr.msk.f32.gmra.mrb[24].mxu1 %vm6607_vm3, %v12882_v58 }
 0xa17   :  { %18302 = vmatprep.mubr.msk.f32.mxu1 %vm6607_vm3, %v12883_v28 }
 0xa1a   :  { %18303 = vmatmul.mubr.msk.f32.gmra.mrb[26].mxu1 %vm6607_vm3, %v12884_v52 }
 0xa1b   :  { %18305 = vmatprep.mubr.msk.f32.mxu1 %vm6607_vm3, %v23737_v30  ;;  %v12893_v30 = vld [vmem:[#allocation3 + $0x212] sm:$0xff] }
 0xa1e   :  { %18306 = vmatmul.mubr.msk.f32.gmra.mrb[28].mxu1 %vm6607_vm3, %v26014_v20 }
 0xa1f   :  { %18308 = vmatprep.mubr.msk.f32.mxu1 %vm6607_vm3, %v12887_v1 }
 0xa22   :  { %18309 = vmatmul.mubr.msk.f32.gmra.mrb[30].mxu1 %vm6607_vm3, %v12888_v33 }
 0xa23   :  { %18311 = vmatprep.mubr.msk.f32.mxu1 %vm6607_vm3, %v12889_v22 }
 0xa26   :  { %18312 = vmatmul.mubr.msk.f32.gmra.mrb[32].mxu1 %vm6607_vm3, %v12890_v55 }
 0xa27   :  { %18314 = vmatprep.mubr.msk.f32.mxu1 %vm6607_vm3, %v12891_v56 }
 0xa2a   :  { %18315 = vmatmul.mubr.msk.f32.gmra.mrb[34].mxu1 %vm6607_vm3, %v12892_v35 }
 0xa2b   :  { %18317 = vmatprep.mubr.msk.f32.mxu1 %vm6607_vm3, %v12893_v30 }
 0xa2e   :  { %18318 = vmatmul.mubr.msk.f32.gmra.mrb[36].mxu1 %vm6607_vm3, %v12894_v27 }
 0xa2f   :  { %18320 = vmatprep.mubr.msk.f32.mxu1 %vm6607_vm3, %v12895_v16 }
 0xa32   :  { %18321 = vmatmul.mubr.msk.f32.gmra.mrb[38].mxu1 %vm6607_vm3, %v12896_v51 }
 0xa33   :  { %18323 = vmatprep.mubr.msk.f32.mxu1 %vm6607_vm3, %v12897_v6 }
 0xa36   :  { %18324 = vmatmul.mubr.msk.f32.gmra.mrb[40].mxu1 %vm6607_vm3, %v12898_v9 }
 0xa37   :  { %18326 = vmatprep.mubr.msk.f32.mxu1 %vm6607_vm3, %v12899_v13 }
 0xa3a   :  { %18327 = vmatmul.mubr.msk.f32.gmra.mrb[42].mxu1 %vm6607_vm3, %v12900_v39 }
 0xa3b   :  { %18329 = vmatprep.mubr.msk.f32.mxu1 %vm6607_vm3, %v12901_v29 }
 0xa3e   :  { %18330 = vmatmul.mubr.msk.f32.gmra.mrb[44].mxu1 %vm6607_vm3, %v12902_v3 }
 0xa3f   :  { %18332 = vmatprep.mubr.msk.f32.mxu1 %vm6607_vm3, %v12903_v10 }
 0xa42   :  { %18333 = vmatmul.mubr.msk.f32.gmra.mrb[46].mxu1 %vm6607_vm3, %v12904_v37 }
 0xa43   :  { %18335 = vmatprep.mubr.msk.f32.mxu1 %vm6607_vm3, %v12905_v47 }
 0xa46   :  { %18336 = vmatmul.mubr.msk.f32.gmra.mrb[48].mxu1 %vm6607_vm3, %v12906_v43 }
 0xa47   :  { %18338 = vmatprep.mubr.msk.f32.mxu1 %vm6607_vm3, %v12907_v61 }
 0xa4a   :  { %18339 = vmatmul.mubr.msk.f32.gmra.mrb[50].mxu1 %vm6607_vm3, %v12908_v57 }
 0xa4b   :  { %18341 = vmatprep.mubr.msk.f32.mxu1 %vm6607_vm3, %v12909_v49 }
 0xa4e   :  { %18342 = vmatmul.mubr.msk.f32.gmra.mrb[52].mxu1 %vm6607_vm3, %v12910_v48 }
 0xa4f   :  { %18344 = vmatprep.mubr.msk.f32.mxu1 %vm6607_vm3, %v12911_v23 }
 0xa52   :  { %18345 = vmatmul.mubr.msk.f32.gmra.mrb[54].mxu1 %vm6607_vm3, %v12912_v19 }
 0xa53   :  { %18347 = vmatprep.mubr.msk.f32.mxu1 %vm6607_vm3, %v12913_v40 }
 0xa56   :  { %18348 = vmatmul.mubr.msk.f32.gmra.mrb[56].mxu1 %vm6607_vm3, %v12914_v34 }
 0xa57   :  { %18350 = vmatprep.mubr.msk.f32.mxu1 %vm6607_vm3, %v12915_v59 }
 0xa5a   :  { %18351 = vmatmul.mubr.msk.f32.gmra.mrb[58].mxu1 %vm6607_vm3, %v12916_v54 }
 0xa5b   :  { %18353 = vmatprep.mubr.msk.f32.mxu1 %vm6607_vm3, %v23805_v7 }
 0xa5e   :  { %18354 = vmatmul.mubr.msk.f32.gmra.mrb[60].mxu1 %vm6607_vm3, %v23809_v32 }
 0xa5f   :  { %18356 = vmatprep.mubr.msk.f32.mxu1 %vm6607_vm3, %v12919_v8 }
 0xa62   :  { %18357 = vmatmul.mubr.msk.f32.gmra.mrb[62].mxu1 %vm6607_vm3, %v12920_v0 }
 0xab9   :  { %v18265_v21 = vpop.f32.mrb[0].mxu1 }
 0xaba   :  { %v24087_v46 = vadd.f32 %v18265_v21, %v24084_v26  ;;  %v13181_v41 = vpop.f32.mrb[1].mxu1 }
 0xabb   :  { %v24090_v7 = vadd.f32 %v24084_v26, %v13181_v41 }
 0xabc   :  { %v13769_v32 = vmul.f32 %v24087_v46, %v24087_v46  ;;  %v13635_v63 = vsel %vm6607_vm3, %v24087_v46, 0.0 }
 0xabd   :  { %v13634_v12 = vsel %vm6607_vm3, %v24090_v7, 0.0  ;;  %v13768_v44 = vmul.f32 %v24090_v7, %v24090_v7  ;;  %v18268_v38 = vpop.f32.mrb[2].mxu1 }
 0xabe   :  { %v24101_v2 = vadd.f32 %v18268_v38, %v24084_v26  ;;  %v13191_v62 = vpop.f32.mrb[3].mxu1  ;;  %v13833_v25 = vsel %vm6607_vm3, %v13769_v32, 0.0  ;;  %v13636_v45 = vadd.f32 %v13635_v63, %v13634_v12 }
 0xabf   :  { %v13832_v17 = vsel %vm6607_vm3, %v13768_v44, 0.0  ;;  %v24106_v53 = vadd.f32 %v24084_v26, %v13191_v62 }
 0xac0   :  { %v13771_v5 = vmul.f32 %v24101_v2, %v24101_v2  ;;  %v13834_v31 = vadd.f32 %v13833_v25, %v13832_v17  ;;  %v13639_v15 = vsel %vm6607_vm3, %v24101_v2, 0.0 }
 0xac1   :  { %v13637_v42 = vsel %vm6607_vm3, %v24106_v53, 0.0  ;;  %v13770_v4 = vmul.f32 %v24106_v53, %v24106_v53  ;;  %v18271_v50 = vpop.f32.mrb[4].mxu1 }
 0xac2   :  { %v13638_v18 = vadd.f32 %v13637_v42, %v13636_v45  ;;  %v24115_v36 = vadd.f32 %v18271_v50, %v24084_v26  ;;  %v13201_v24 = vpop.f32.mrb[5].mxu1  ;;  %v13837_v28 = vsel %vm6607_vm3, %v13771_v5, 0.0 }
 0xac3   :  { %v13835_v14 = vsel %vm6607_vm3, %v13770_v4, 0.0  ;;  %v24121_v60 = vadd.f32 %v24084_v26, %v13201_v24 }
 0xac4   :  { %v13640_v11 = vadd.f32 %v13639_v15, %v13638_v18  ;;  %v13836_v58 = vadd.f32 %v13835_v14, %v13834_v31  ;;  %v13773_v52 = vmul.f32 %v24115_v36, %v24115_v36  ;;  %v13643_v30 = vsel %vm6607_vm3, %v24115_v36, 0.0 }
 0xac5   :  { %v13641_v1 = vsel %vm6607_vm3, %v24121_v60, 0.0  ;;  %v13772_v20 = vmul.f32 %v24121_v60, %v24121_v60  ;;  %v18274_v33 = vpop.f32.mrb[6].mxu1 }
 0xac6   :  { %v13838_v22 = vadd.f32 %v13837_v28, %v13836_v58  ;;  %v13642_v55 = vadd.f32 %v13641_v1, %v13640_v11  ;;  %v24131_v56 = vadd.f32 %v18274_v33, %v24084_v26  ;;  %v13211_v35 = vpop.f32.mrb[7].mxu1  ;;  %v13841_v9 = vsel %vm6607_vm3, %v13773_v52, 0.0 }
 0xac7   :  { %v13839_v27 = vsel %vm6607_vm3, %v13772_v20, 0.0  ;;  %v24137_v16 = vadd.f32 %v24084_v26, %v13211_v35 }
 0xac8   :  { %v13840_v51 = vadd.f32 %v13839_v27, %v13838_v22  ;;  %v13644_v6 = vadd.f32 %v13643_v30, %v13642_v55  ;;  %v13775_v13 = vmul.f32 %v24131_v56, %v24131_v56  ;;  %v13647_v61 = vsel %vm6607_vm3, %v24131_v56, 0.0 }
 0xac9   :  { %v13645_v39 = vsel %vm6607_vm3, %v24137_v16, 0.0  ;;  %v13774_v29 = vmul.f32 %v24137_v16, %v24137_v16  ;;  %v18277_v3 = vpop.f32.mrb[8].mxu1 }
 0xaca   :  { %v13646_v10 = vadd.f32 %v13645_v39, %v13644_v6  ;;  %v13842_v37 = vadd.f32 %v13841_v9, %v13840_v51  ;;  %v24147_v47 = vadd.f32 %v18277_v3, %v24084_v26  ;;  %v13221_v43 = vpop.f32.mrb[9].mxu1  ;;  %v13845_v19 = vsel %vm6607_vm3, %v13775_v13, 0.0 }
 0xacb   :  { %v13843_v57 = vsel %vm6607_vm3, %v13774_v29, 0.0  ;;  %v24153_v49 = vadd.f32 %v24084_v26, %v13221_v43 }
 0xacc   :  { %v13844_v48 = vadd.f32 %v13843_v57, %v13842_v37  ;;  %v13648_v23 = vadd.f32 %v13647_v61, %v13646_v10  ;;  %v13777_v40 = vmul.f32 %v24147_v47, %v24147_v47  ;;  %v13651_v32 = vsel %vm6607_vm3, %v24147_v47, 0.0 }
 0xacd   :  { %v13649_v34 = vsel %vm6607_vm3, %v24153_v49, 0.0  ;;  %v13776_v59 = vmul.f32 %v24153_v49, %v24153_v49  ;;  %v18280_v54 = vpop.f32.mrb[10].mxu1 }
 0xace   :  { %v13650_v8 = vadd.f32 %v13649_v34, %v13648_v23  ;;  %v13846_v0 = vadd.f32 %v13845_v19, %v13844_v48  ;;  %v24163_v21 = vadd.f32 %v18280_v54, %v24084_v26  ;;  %v13231_v41 = vpop.f32.mrb[11].mxu1  ;;  %v13849_v62 = vsel %vm6607_vm3, %v13777_v40, 0.0 }
 0xacf   :  { %v13847_v63 = vsel %vm6607_vm3, %v13776_v59, 0.0  ;;  %v24169_v12 = vadd.f32 %v24084_v26, %v13231_v41 }
 0xad0   :  { %v13848_v44 = vadd.f32 %v13847_v63, %v13846_v0  ;;  %v13652_v38 = vadd.f32 %v13651_v32, %v13650_v8  ;;  %v13779_v25 = vmul.f32 %v24163_v21, %v24163_v21  ;;  %v13655_v18 = vsel %vm6607_vm3, %v24163_v21, 0.0 }
 0xad1   :  { %v13653_v17 = vsel %vm6607_vm3, %v24169_v12, 0.0  ;;  %v13778_v45 = vmul.f32 %v24169_v12, %v24169_v12  ;;  %v18283_v5 = vpop.f32.mrb[12].mxu1 }
 0xad2   :  { %v13654_v42 = vadd.f32 %v13653_v17, %v13652_v38  ;;  %v13850_v4 = vadd.f32 %v13849_v62, %v13848_v44  ;;  %v24179_v50 = vadd.f32 %v18283_v5, %v24084_v26  ;;  %v13241_v31 = vpop.f32.mrb[13].mxu1  ;;  %v13853_v58 = vsel %vm6607_vm3, %v13779_v25, 0.0 }
 0xad3   :  { %v13851_v24 = vsel %vm6607_vm3, %v13778_v45, 0.0  ;;  %v24185_v15 = vadd.f32 %v24084_v26, %v13241_v31 }
 0xad4   :  { %v13852_v14 = vadd.f32 %v13851_v24, %v13850_v4  ;;  %v13656_v11 = vadd.f32 %v13655_v18, %v13654_v42  ;;  %v13781_v28 = vmul.f32 %v24179_v50, %v24179_v50  ;;  %v13659_v30 = vsel %vm6607_vm3, %v24179_v50, 0.0 }
 0xad5   :  { %v13657_v52 = vsel %vm6607_vm3, %v24185_v15, 0.0  ;;  %v13780_v1 = vmul.f32 %v24185_v15, %v24185_v15  ;;  %v18286_v20 = vpop.f32.mrb[14].mxu1 }
 0xad6   :  { %v13658_v33 = vadd.f32 %v13657_v52, %v13656_v11  ;;  %v13854_v22 = vadd.f32 %v13853_v58, %v13852_v14  ;;  %v24195_v55 = vadd.f32 %v18286_v20, %v24084_v26  ;;  %v13251_v35 = vpop.f32.mrb[15].mxu1  ;;  %v13857_v13 = vsel %vm6607_vm3, %v13781_v28, 0.0 }
 0xad7   :  { %v13855_v27 = vsel %vm6607_vm3, %v13780_v1, 0.0  ;;  %v24201_v51 = vadd.f32 %v24084_v26, %v13251_v35 }
 0xad8   :  { %v13856_v6 = vadd.f32 %v13855_v27, %v13854_v22  ;;  %v13660_v9 = vadd.f32 %v13659_v30, %v13658_v33  ;;  %v13783_v39 = vmul.f32 %v24195_v55, %v24195_v55  ;;  %v13663_v48 = vsel %vm6607_vm3, %v24195_v55, 0.0 }
 0xad9   :  { %v13661_v29 = vsel %vm6607_vm3, %v24201_v51, 0.0  ;;  %v13782_v3 = vmul.f32 %v24201_v51, %v24201_v51  ;;  %v18289_v10 = vpop.f32.mrb[16].mxu1 }
 0xada   :  { %v13662_v37 = vadd.f32 %v13661_v29, %v13660_v9  ;;  %v13858_v43 = vadd.f32 %v13857_v13, %v13856_v6  ;;  %v24211_v61 = vadd.f32 %v18289_v10, %v24084_v26  ;;  %v13261_v57 = vpop.f32.mrb[17].mxu1  ;;  %v13861_v59 = vsel %vm6607_vm3, %v13783_v39, 0.0 }
 0xadb   :  { %v13859_v23 = vsel %vm6607_vm3, %v13782_v3, 0.0  ;;  %v24217_v19 = vadd.f32 %v24084_v26, %v13261_v57 }
 0xadc   :  { %v13860_v40 = vadd.f32 %v13859_v23, %v13858_v43  ;;  %v13664_v34 = vadd.f32 %v13663_v48, %v13662_v37  ;;  %v13785_v54 = vmul.f32 %v24211_v61, %v24211_v61  ;;  %v13667_v62 = vsel %vm6607_vm3, %v24211_v61, 0.0 }
 0xadd   :  { %v13665_v8 = vsel %vm6607_vm3, %v24217_v19, 0.0  ;;  %v13784_v0 = vmul.f32 %v24217_v19, %v24217_v19  ;;  %v18292_v41 = vpop.f32.mrb[18].mxu1 }
 0xade   :  { %v13666_v32 = vadd.f32 %v13665_v8, %v13664_v34  ;;  %v13862_v63 = vadd.f32 %v13861_v59, %v13860_v40  ;;  %v24227_v44 = vadd.f32 %v18292_v41, %v24084_v26  ;;  %v13271_v38 = vpop.f32.mrb[19].mxu1  ;;  %v13865_v42 = vsel %vm6607_vm3, %v13785_v54, 0.0 }
 0xadf   :  { %v13863_v25 = vsel %vm6607_vm3, %v13784_v0, 0.0  ;;  %v24233_v17 = vadd.f32 %v24084_v26, %v13271_v38 }
 0xae0   :  { %v13864_v45 = vadd.f32 %v13863_v25, %v13862_v63  ;;  %v13668_v5 = vadd.f32 %v13667_v62, %v13666_v32  ;;  %v13787_v4 = vmul.f32 %v24227_v44, %v24227_v44  ;;  %v13671_v52 = vsel %vm6607_vm3, %v24227_v44, 0.0 }
 0xae1   :  { %v13669_v31 = vsel %vm6607_vm3, %v24233_v17, 0.0  ;;  %v13786_v18 = vmul.f32 %v24233_v17, %v24233_v17  ;;  %v18295_v24 = vpop.f32.mrb[20].mxu1 }
 0xae2   :  { %v13670_v14 = vadd.f32 %v13669_v31, %v13668_v5  ;;  %v13866_v11 = vadd.f32 %v13865_v42, %v13864_v45  ;;  %v24243_v58 = vadd.f32 %v18295_v24, %v24084_v26  ;;  %v13281_v28 = vpop.f32.mrb[21].mxu1  ;;  %v13869_v35 = vsel %vm6607_vm3, %v13787_v4, 0.0 }
 0xae3   :  { %v13867_v1 = vsel %vm6607_vm3, %v13786_v18, 0.0  ;;  %v24249_v20 = vadd.f32 %v24084_v26, %v13281_v28 }
 0xae4   :  { %v13868_v33 = vadd.f32 %v13867_v1, %v13866_v11  ;;  %v13672_v22 = vadd.f32 %v13671_v52, %v13670_v14  ;;  %v13789_v30 = vmul.f32 %v24243_v58, %v24243_v58  ;;  %v13675_v10 = vsel %vm6607_vm3, %v24243_v58, 0.0 }
 0xae5   :  { %v13673_v27 = vsel %vm6607_vm3, %v24249_v20, 0.0  ;;  %v13788_v6 = vmul.f32 %v24249_v20, %v24249_v20  ;;  %v18298_v9 = vpop.f32.mrb[22].mxu1 }
 0xae6   :  { %v13674_v13 = vadd.f32 %v13673_v27, %v13672_v22  ;;  %v13870_v39 = vadd.f32 %v13869_v35, %v13868_v33  ;;  %v24259_v29 = vadd.f32 %v18298_v9, %v24084_v26  ;;  %v13291_v3 = vpop.f32.mrb[23].mxu1  ;;  %v13873_v23 = vsel %vm6607_vm3, %v13789_v30, 0.0 }
 0xae7   :  { %v13871_v37 = vsel %vm6607_vm3, %v13788_v6, 0.0  ;;  %v24265_v43 = vadd.f32 %v24084_v26, %v13291_v3 }
 0xae8   :  { %v13872_v57 = vadd.f32 %v13871_v37, %v13870_v39  ;;  %v13676_v48 = vadd.f32 %v13675_v10, %v13674_v13  ;;  %v13791_v40 = vmul.f32 %v24259_v29, %v24259_v29  ;;  %v13679_v63 = vsel %vm6607_vm3, %v24259_v29, 0.0 }
 0xae9   :  { %v13677_v34 = vsel %vm6607_vm3, %v24265_v43, 0.0  ;;  %v13790_v59 = vmul.f32 %v24265_v43, %v24265_v43  ;;  %v18301_v54 = vpop.f32.mrb[24].mxu1 }
 0xaea   :  { %v13678_v8 = vadd.f32 %v13677_v34, %v13676_v48  ;;  %v13874_v0 = vadd.f32 %v13873_v23, %v13872_v57  ;;  %v24275_v41 = vadd.f32 %v18301_v54, %v24084_v26  ;;  %v13301_v32 = vpop.f32.mrb[25].mxu1  ;;  %v13877_v5 = vsel %vm6607_vm3, %v13791_v40, 0.0 }
 0xaeb   :  { %v13875_v38 = vsel %vm6607_vm3, %v13790_v59, 0.0  ;;  %v24281_v62 = vadd.f32 %v24084_v26, %v13301_v32 }
 0xaec   :  { %v13876_v25 = vadd.f32 %v13875_v38, %v13874_v0  ;;  %v13680_v45 = vadd.f32 %v13679_v63, %v13678_v8  ;;  %v13793_v42 = vmul.f32 %v24275_v41, %v24275_v41  ;;  %v13683_v52 = vsel %vm6607_vm3, %v24275_v41, 0.0 }
 0xaed   :  { %v13681_v4 = vsel %vm6607_vm3, %v24281_v62, 0.0  ;;  %v13792_v31 = vmul.f32 %v24281_v62, %v24281_v62  ;;  %v18304_v18 = vpop.f32.mrb[26].mxu1 }
 0xaee   :  { %v13682_v24 = vadd.f32 %v13681_v4, %v13680_v45  ;;  %v13878_v14 = vadd.f32 %v13877_v5, %v13876_v25  ;;  %v24291_v11 = vadd.f32 %v18304_v18, %v24084_v26  ;;  %v13311_v28 = vpop.f32.mrb[27].mxu1  ;;  %v13881_v30 = vsel %vm6607_vm3, %v13793_v42, 0.0 }
 0xaef   :  { %v13879_v1 = vsel %vm6607_vm3, %v13792_v31, 0.0  ;;  %v24297_v33 = vadd.f32 %v24084_v26, %v13311_v28 }
 0xaf0   :  { %v13880_v22 = vadd.f32 %v13879_v1, %v13878_v14  ;;  %v13684_v35 = vadd.f32 %v13683_v52, %v13682_v24  ;;  %v13795_v27 = vmul.f32 %v24291_v11, %v24291_v11  ;;  %v13687_v57 = vsel %vm6607_vm3, %v24291_v11, 0.0 }
 0xaf1   :  { %v13685_v6 = vsel %vm6607_vm3, %v24297_v33, 0.0  ;;  %v13794_v9 = vmul.f32 %v24297_v33, %v24297_v33  ;;  %v18307_v13 = vpop.f32.mrb[28].mxu1 }
 0xaf2   :  { %v13686_v39 = vadd.f32 %v13685_v6, %v13684_v35  ;;  %v13882_v3 = vadd.f32 %v13881_v30, %v13880_v22  ;;  %v24307_v10 = vadd.f32 %v18307_v13, %v24084_v26  ;;  %v13321_v37 = vpop.f32.mrb[29].mxu1  ;;  %v13885_v59 = vsel %vm6607_vm3, %v13795_v27, 0.0 }
 0xaf3   :  { %v13883_v48 = vsel %vm6607_vm3, %v13794_v9, 0.0  ;;  %v24313_v23 = vadd.f32 %v24084_v26, %v13321_v37 }
 0xaf4   :  { %v13884_v40 = vadd.f32 %v13883_v48, %v13882_v3  ;;  %v13688_v34 = vadd.f32 %v13687_v57, %v13686_v39  ;;  %v13797_v54 = vmul.f32 %v24307_v10, %v24307_v10  ;;  %v13691_v5 = vsel %vm6607_vm3, %v24307_v10, 0.0 }
 0xaf5   :  { %v13689_v8 = vsel %vm6607_vm3, %v24313_v23, 0.0  ;;  %v13796_v0 = vmul.f32 %v24313_v23, %v24313_v23  ;;  %v18310_v32 = vpop.f32.mrb[30].mxu1 }
 0xaf6   :  { %v13690_v63 = vadd.f32 %v13689_v8, %v13688_v34  ;;  %v13886_v38 = vadd.f32 %v13885_v59, %v13884_v40  ;;  %v24323_v25 = vadd.f32 %v18310_v32, %v24084_v26  ;;  %v13331_v45 = vpop.f32.mrb[31].mxu1  ;;  %v13889_v24 = vsel %vm6607_vm3, %v13797_v54, 0.0 }
 0xaf7   :  { %v13887_v42 = vsel %vm6607_vm3, %v13796_v0, 0.0  ;;  %v24329_v4 = vadd.f32 %v24084_v26, %v13331_v45 }
 0xaf8   :  { %v13888_v31 = vadd.f32 %v13887_v42, %v13886_v38  ;;  %v13692_v18 = vadd.f32 %v13691_v5, %v13690_v63  ;;  %v13799_v14 = vmul.f32 %v24323_v25, %v24323_v25  ;;  %v13695_v6 = vsel %vm6607_vm3, %v24323_v25, 0.0 }
 0xaf9   :  { %v13693_v28 = vsel %vm6607_vm3, %v24329_v4, 0.0  ;;  %v13798_v52 = vmul.f32 %v24329_v4, %v24329_v4  ;;  %v18313_v1 = vpop.f32.mrb[32].mxu1 }
 0xafa   :  { %v13694_v22 = vadd.f32 %v13693_v28, %v13692_v18  ;;  %v13890_v35 = vadd.f32 %v13889_v24, %v13888_v31  ;;  %v24339_v30 = vadd.f32 %v18313_v1, %v24084_v26  ;;  %v13341_v27 = vpop.f32.mrb[33].mxu1  ;;  %v13893_v37 = vsel %vm6607_vm3, %v13799_v14, 0.0 }
 0xafb   :  { %v13891_v9 = vsel %vm6607_vm3, %v13798_v52, 0.0  ;;  %v24345_v13 = vadd.f32 %v24084_v26, %v13341_v27 }
 0xafc   :  { %v13892_v39 = vadd.f32 %v13891_v9, %v13890_v35  ;;  %v13696_v3 = vadd.f32 %v13695_v6, %v13694_v22  ;;  %v13801_v57 = vmul.f32 %v24339_v30, %v24339_v30  ;;  %v13699_v32 = vsel %vm6607_vm3, %v24339_v30, 0.0 }
 0xafd   :  { %v13697_v48 = vsel %vm6607_vm3, %v24345_v13, 0.0  ;;  %v13800_v40 = vmul.f32 %v24345_v13, %v24345_v13  ;;  %v18316_v34 = vpop.f32.mrb[34].mxu1 }
 0xafe   :  { %v13698_v59 = vadd.f32 %v13697_v48, %v13696_v3  ;;  %v13894_v54 = vadd.f32 %v13893_v37, %v13892_v39  ;;  %v24355_v8 = vadd.f32 %v18316_v34, %v24084_v26  ;;  %v13351_v0 = vpop.f32.mrb[35].mxu1  ;;  %v13897_v42 = vsel %vm6607_vm3, %v13801_v57, 0.0 }
 0xaff   :  { %v13895_v63 = vsel %vm6607_vm3, %v13800_v40, 0.0  ;;  %v24361_v38 = vadd.f32 %v24084_v26, %v13351_v0 }
 0xb00   :  { %v13896_v45 = vadd.f32 %v13895_v63, %v13894_v54  ;;  %v13700_v5 = vadd.f32 %v13699_v32, %v13698_v59  ;;  %v13803_v31 = vmul.f32 %v24355_v8, %v24355_v8  ;;  %v13703_v35 = vsel %vm6607_vm3, %v24355_v8, 0.0 }
 0xb01   :  { %v13701_v18 = vsel %vm6607_vm3, %v24361_v38, 0.0  ;;  %v13802_v24 = vmul.f32 %v24361_v38, %v24361_v38  ;;  %v18319_v14 = vpop.f32.mrb[36].mxu1 }
 0xb02   :  { %v13702_v28 = vadd.f32 %v13701_v18, %v13700_v5  ;;  %v13898_v52 = vadd.f32 %v13897_v42, %v13896_v45  ;;  %v24371_v1 = vadd.f32 %v18319_v14, %v24084_v26  ;;  %v13361_v22 = vpop.f32.mrb[37].mxu1  ;;  %v13901_v3 = vsel %vm6607_vm3, %v13803_v31, 0.0 }
 0xb03   :  { %v13899_v27 = vsel %vm6607_vm3, %v13802_v24, 0.0  ;;  %v24377_v6 = vadd.f32 %v24084_v26, %v13361_v22 }
 0xb04   :  { %v13900_v9 = vadd.f32 %v13899_v27, %v13898_v52  ;;  %v13704_v39 = vadd.f32 %v13703_v35, %v13702_v28  ;;  %v13805_v37 = vmul.f32 %v24371_v1, %v24371_v1  ;;  %v13707_v32 = vsel %vm6607_vm3, %v24371_v1, 0.0 }
 0xb05   :  { %v13705_v57 = vsel %vm6607_vm3, %v24377_v6, 0.0  ;;  %v13804_v48 = vmul.f32 %v24377_v6, %v24377_v6  ;;  %v18322_v40 = vpop.f32.mrb[38].mxu1 }
 0xb06   :  { %v13706_v34 = vadd.f32 %v13705_v57, %v13704_v39  ;;  %v13902_v59 = vadd.f32 %v13901_v3, %v13900_v9  ;;  %v24387_v54 = vadd.f32 %v18322_v40, %v24084_v26  ;;  %v13371_v0 = vpop.f32.mrb[39].mxu1  ;;  %v13905_v31 = vsel %vm6607_vm3, %v13805_v37, 0.0 }
 0xb07   :  { %v13903_v63 = vsel %vm6607_vm3, %v13804_v48, 0.0  ;;  %v24393_v45 = vadd.f32 %v24084_v26, %v13371_v0 }
 0xb08   :  { %v13904_v5 = vadd.f32 %v13903_v63, %v13902_v59  ;;  %v13708_v42 = vadd.f32 %v13707_v32, %v13706_v34  ;;  %v13807_v18 = vmul.f32 %v24387_v54, %v24387_v54  ;;  %v13711_v9 = vsel %vm6607_vm3, %v24387_v54, 0.0 }
 0xb09   :  { %v13709_v24 = vsel %vm6607_vm3, %v24393_v45, 0.0  ;;  %v13806_v14 = vmul.f32 %v24393_v45, %v24393_v45  ;;  %v18325_v28 = vpop.f32.mrb[40].mxu1 }
 0xb0a   :  { %v13710_v52 = vadd.f32 %v13709_v24, %v13708_v42  ;;  %v13906_v22 = vadd.f32 %v13905_v31, %v13904_v5  ;;  %v24403_v35 = vadd.f32 %v18325_v28, %v24084_v26  ;;  %v13381_v27 = vpop.f32.mrb[41].mxu1  ;;  %v13909_v48 = vsel %vm6607_vm3, %v13807_v18, 0.0 }
 0xb0b   :  { %v13907_v39 = vsel %vm6607_vm3, %v13806_v14, 0.0  ;;  %v24409_v3 = vadd.f32 %v24084_v26, %v13381_v27 }
 0xb0c   :  { %26015 = vst [vmem:[#allocation54_spill] sm:$0xff] %v24403_v35  ;;  %v13908_v37 = vadd.f32 %v13907_v39, %v13906_v22  ;;  %v13712_v57 = vadd.f32 %v13711_v9, %v13710_v52  ;;  %v13809_v40 = vmul.f32 %v24403_v35, %v24403_v35  ;;  %v13715_v31 = vsel %vm6607_vm3, %v24403_v35, 0.0 }
 0xb0d   :  { %26016 = vst [vmem:[#allocation55_spill] sm:$0xff] %v24409_v3  ;;  %v13713_v34 = vsel %vm6607_vm3, %v24409_v3, 0.0  ;;  %v13808_v59 = vmul.f32 %v24409_v3, %v24409_v3  ;;  %v18328_v0 = vpop.f32.mrb[42].mxu1 }
 0xb0e   :  { %v13714_v32 = vadd.f32 %v13713_v34, %v13712_v57  ;;  %v13910_v63 = vadd.f32 %v13909_v48, %v13908_v37  ;;  %v24419_v5 = vadd.f32 %v18328_v0, %v24084_v26  ;;  %v13391_v42 = vpop.f32.mrb[43].mxu1  ;;  %v13913_v52 = vsel %vm6607_vm3, %v13809_v40, 0.0 }
 0xb0f   :  { %v13911_v18 = vsel %vm6607_vm3, %v13808_v59, 0.0  ;;  %v24425_v24 = vadd.f32 %v24084_v26, %v13391_v42 }
 0xb10   :  { %26017 = vst [vmem:[#allocation56_spill] sm:$0xff] %v24419_v5  ;;  %v13912_v14 = vadd.f32 %v13911_v18, %v13910_v63  ;;  %v13716_v28 = vadd.f32 %v13715_v31, %v13714_v32  ;;  %v13811_v22 = vmul.f32 %v24419_v5, %v24419_v5  ;;  %v13719_v59 = vsel %vm6607_vm3, %v24419_v5, 0.0 }
 0xb11   :  { %26018 = vst [vmem:[#allocation57_spill] sm:$0xff] %v24425_v24  ;;  %v13717_v27 = vsel %vm6607_vm3, %v24425_v24, 0.0  ;;  %v13810_v9 = vmul.f32 %v24425_v24, %v24425_v24  ;;  %v18331_v39 = vpop.f32.mrb[44].mxu1 }
 0xb12   :  { %v13718_v37 = vadd.f32 %v13717_v27, %v13716_v28  ;;  %v13914_v57 = vadd.f32 %v13913_v52, %v13912_v14  ;;  %v24435_v48 = vadd.f32 %v18331_v39, %v24084_v26  ;;  %v13401_v34 = vpop.f32.mrb[45].mxu1  ;;  %v13917_v42 = vsel %vm6607_vm3, %v13811_v22, 0.0 }
 0xb13   :  { %v13915_v40 = vsel %vm6607_vm3, %v13810_v9, 0.0  ;;  %v24441_v0 = vadd.f32 %v24084_v26, %v13401_v34 }
 0xb14   :  { %26019 = vst [vmem:[#allocation58_spill] sm:$0xff] %v24435_v48  ;;  %v13916_v32 = vadd.f32 %v13915_v40, %v13914_v57  ;;  %v13720_v63 = vadd.f32 %v13719_v59, %v13718_v37  ;;  %v13813_v31 = vmul.f32 %v24435_v48, %v24435_v48  ;;  %v13723_v37 = vsel %vm6607_vm3, %v24435_v48, 0.0 }
 0xb15   :  { %26020 = vst [vmem:[#allocation59_spill] sm:$0xff] %v24441_v0  ;;  %v13721_v18 = vsel %vm6607_vm3, %v24441_v0, 0.0  ;;  %v13812_v14 = vmul.f32 %v24441_v0, %v24441_v0  ;;  %v18334_v28 = vpop.f32.mrb[46].mxu1 }
 0xb16   :  { %v13722_v52 = vadd.f32 %v13721_v18, %v13720_v63  ;;  %v13918_v27 = vadd.f32 %v13917_v42, %v13916_v32  ;;  %v24451_v9 = vadd.f32 %v18334_v28, %v24084_v26  ;;  %v13411_v39 = vpop.f32.mrb[47].mxu1  ;;  %v13921_v40 = vsel %vm6607_vm3, %v13813_v31, 0.0 }
 0xb17   :  { %v13919_v22 = vsel %vm6607_vm3, %v13812_v14, 0.0  ;;  %v24457_v57 = vadd.f32 %v24084_v26, %v13411_v39 }
 0xb18   :  { %26021 = vst [vmem:[#allocation60_spill] sm:$0xff] %v24451_v9  ;;  %v13920_v34 = vadd.f32 %v13919_v22, %v13918_v27  ;;  %v13724_v59 = vadd.f32 %v13723_v37, %v13722_v52  ;;  %v13815_v63 = vmul.f32 %v24451_v9, %v24451_v9  ;;  %v13727_v52 = vsel %vm6607_vm3, %v24451_v9, 0.0 }
 0xb19   :  { %26022 = vst [vmem:[#allocation61_spill] sm:$0xff] %v24457_v57  ;;  %v13725_v32 = vsel %vm6607_vm3, %v24457_v57, 0.0  ;;  %v13814_v42 = vmul.f32 %v24457_v57, %v24457_v57  ;;  %v18337_v18 = vpop.f32.mrb[48].mxu1 }
 0xb1a   :  { %v13726_v28 = vadd.f32 %v13725_v32, %v13724_v59  ;;  %v13922_v48 = vadd.f32 %v13921_v40, %v13920_v34  ;;  %v24467_v14 = vadd.f32 %v18337_v18, %v24084_v26  ;;  %v13421_v39 = vpop.f32.mrb[49].mxu1  ;;  %v13925_v0 = vsel %vm6607_vm3, %v13815_v63, 0.0 }
 0xb1b   :  { %v13923_v31 = vsel %vm6607_vm3, %v13814_v42, 0.0  ;;  %v24473_v27 = vadd.f32 %v24084_v26, %v13421_v39 }
 0xb1c   :  { %26023 = vst [vmem:[#allocation4_spill] sm:$0xff] %v24467_v14  ;;  %v13924_v37 = vadd.f32 %v13923_v31, %v13922_v48  ;;  %v13728_v22 = vadd.f32 %v13727_v52, %v13726_v28  ;;  %v13817_v59 = vmul.f32 %v24467_v14, %v24467_v14  ;;  %v13731_v48 = vsel %vm6607_vm3, %v24467_v14, 0.0 }
 0xb1d   :  { %26024 = vst [vmem:[#allocation5_spill] sm:$0xff] %v24473_v27  ;;  %v13729_v34 = vsel %vm6607_vm3, %v24473_v27, 0.0  ;;  %v13816_v40 = vmul.f32 %v24473_v27, %v24473_v27  ;;  %v18340_v32 = vpop.f32.mrb[50].mxu1 }
 0xb1e   :  { %v13730_v18 = vadd.f32 %v13729_v34, %v13728_v22  ;;  %v13926_v9 = vadd.f32 %v13925_v0, %v13924_v37  ;;  %v24483_v42 = vadd.f32 %v18340_v32, %v24084_v26  ;;  %v13431_v39 = vpop.f32.mrb[51].mxu1  ;;  %v13929_v57 = vsel %vm6607_vm3, %v13817_v59, 0.0 }
 0xb1f   :  { %v13927_v63 = vsel %vm6607_vm3, %v13816_v40, 0.0  ;;  %v24489_v28 = vadd.f32 %v24084_v26, %v13431_v39 }
 0xb20   :  { %26025 = vst [vmem:[#allocation6_spill] sm:$0xff] %v24483_v42  ;;  %v13928_v52 = vadd.f32 %v13927_v63, %v13926_v9  ;;  %v13732_v31 = vadd.f32 %v13731_v48, %v13730_v18  ;;  %v13819_v22 = vmul.f32 %v24483_v42, %v24483_v42  ;;  %v13735_v9 = vsel %vm6607_vm3, %v24483_v42, 0.0 }
 0xb21   :  { %26026 = vst [vmem:[#allocation7_spill] sm:$0xff] %v24489_v28  ;;  %v13733_v0 = vsel %vm6607_vm3, %v24489_v28, 0.0  ;;  %v13818_v37 = vmul.f32 %v24489_v28, %v24489_v28  ;;  %v18343_v34 = vpop.f32.mrb[52].mxu1 }
 0xb22   :  { %v13734_v32 = vadd.f32 %v13733_v0, %v13732_v31  ;;  %v13930_v14 = vadd.f32 %v13929_v57, %v13928_v52  ;;  %v24499_v40 = vadd.f32 %v18343_v34, %v24084_v26  ;;  %v13441_v39 = vpop.f32.mrb[53].mxu1  ;;  %v13933_v27 = vsel %vm6607_vm3, %v13819_v22, 0.0 }
 0xb23   :  { %v13931_v59 = vsel %vm6607_vm3, %v13818_v37, 0.0  ;;  %v24505_v18 = vadd.f32 %v24084_v26, %v13441_v39 }
 0xb24   :  { %26027 = vst [vmem:[#allocation62_spill] sm:$0xff] %v24499_v40  ;;  %v13932_v48 = vadd.f32 %v13931_v59, %v13930_v14  ;;  %v13736_v63 = vadd.f32 %v13735_v9, %v13734_v32  ;;  %v13821_v31 = vmul.f32 %v24499_v40, %v24499_v40  ;;  %v13739_v14 = vsel %vm6607_vm3, %v24499_v40, 0.0 }
 0xb25   :  { %26028 = vst [vmem:[#allocation63_spill] sm:$0xff] %v24505_v18  ;;  %v13737_v57 = vsel %vm6607_vm3, %v24505_v18, 0.0  ;;  %v13820_v52 = vmul.f32 %v24505_v18, %v24505_v18  ;;  %v18346_v0 = vpop.f32.mrb[54].mxu1 }
 0xb26   :  { %v13738_v34 = vadd.f32 %v13737_v57, %v13736_v63  ;;  %v13934_v42 = vadd.f32 %v13933_v27, %v13932_v48  ;;  %v24515_v37 = vadd.f32 %v18346_v0, %v24084_v26  ;;  %v13451_v39 = vpop.f32.mrb[55].mxu1  ;;  %v13937_v28 = vsel %vm6607_vm3, %v13821_v31, 0.0 }
 0xb27   :  { %v13935_v22 = vsel %vm6607_vm3, %v13820_v52, 0.0  ;;  %v24521_v32 = vadd.f32 %v24084_v26, %v13451_v39 }
 0xb28   :  { %26029 = vst [vmem:[#allocation64_spill] sm:$0xff] %v24515_v37  ;;  %v13936_v9 = vadd.f32 %v13935_v22, %v13934_v42  ;;  %v13740_v59 = vadd.f32 %v13739_v14, %v13738_v34  ;;  %v13823_v63 = vmul.f32 %v24515_v37, %v24515_v37  ;;  %v13743_v42 = vsel %vm6607_vm3, %v24515_v37, 0.0 }
 0xb29   :  { %26030 = vst [vmem:[#allocation65_spill] sm:$0xff] %v24521_v32  ;;  %v13741_v27 = vsel %vm6607_vm3, %v24521_v32, 0.0  ;;  %v13822_v48 = vmul.f32 %v24521_v32, %v24521_v32  ;;  %v18349_v57 = vpop.f32.mrb[56].mxu1 }
 0xb2a   :  { %v13742_v0 = vadd.f32 %v13741_v27, %v13740_v59  ;;  %v13938_v40 = vadd.f32 %v13937_v28, %v13936_v9  ;;  %v24531_v52 = vadd.f32 %v18349_v57, %v24084_v26  ;;  %v13461_v39 = vpop.f32.mrb[57].mxu1  ;;  %v13941_v18 = vsel %vm6607_vm3, %v13823_v63, 0.0 }
 0xb2b   :  { %v13939_v31 = vsel %vm6607_vm3, %v13822_v48, 0.0  ;;  %v24537_v34 = vadd.f32 %v24084_v26, %v13461_v39 }
 0xb2c   :  { %26031 = vst [vmem:[#allocation66_spill] sm:$0xff] %v24531_v52  ;;  %v13940_v14 = vadd.f32 %v13939_v31, %v13938_v40  ;;  %v13744_v22 = vadd.f32 %v13743_v42, %v13742_v0  ;;  %v13825_v59 = vmul.f32 %v24531_v52, %v24531_v52  ;;  %v13747_v40 = vsel %vm6607_vm3, %v24531_v52, 0.0 }
 0xb2d   :  { %26032 = vst [vmem:[#allocation67_spill] sm:$0xff] %v24537_v34  ;;  %v13745_v28 = vsel %vm6607_vm3, %v24537_v34, 0.0  ;;  %v13824_v9 = vmul.f32 %v24537_v34, %v24537_v34  ;;  %v18352_v27 = vpop.f32.mrb[58].mxu1 }
 0xb2e   :  { %v13746_v57 = vadd.f32 %v13745_v28, %v13744_v22  ;;  %v13942_v37 = vadd.f32 %v13941_v18, %v13940_v14  ;;  %v24547_v48 = vadd.f32 %v18352_v27, %v24084_v26  ;;  %v13471_v39 = vpop.f32.mrb[59].mxu1  ;;  %v13945_v32 = vsel %vm6607_vm3, %v13825_v59, 0.0 }
 0xb2f   :  { %v13943_v63 = vsel %vm6607_vm3, %v13824_v9, 0.0  ;;  %v24553_v0 = vadd.f32 %v24084_v26, %v13471_v39 }
 0xb30   :  { %26033 = vst [vmem:[#allocation68_spill] sm:$0xff] %v24547_v48  ;;  %v13944_v42 = vadd.f32 %v13943_v63, %v13942_v37  ;;  %v13748_v31 = vadd.f32 %v13747_v40, %v13746_v57  ;;  %v13827_v22 = vmul.f32 %v24547_v48, %v24547_v48  ;;  %v13751_v37 = vsel %vm6607_vm3, %v24547_v48, 0.0 }
 0xb31   :  { %26034 = vst [vmem:[#allocation69_spill] sm:$0xff] %v24553_v0  ;;  %v13749_v18 = vsel %vm6607_vm3, %v24553_v0, 0.0  ;;  %v13826_v14 = vmul.f32 %v24553_v0, %v24553_v0  ;;  %v18355_v28 = vpop.f32.mrb[60].mxu1 }
 0xb32   :  { %v13750_v27 = vadd.f32 %v13749_v18, %v13748_v31  ;;  %v13946_v52 = vadd.f32 %v13945_v32, %v13944_v42  ;;  %v24563_v9 = vadd.f32 %v18355_v28, %v24084_v26  ;;  %v13481_v39 = vpop.f32.mrb[61].mxu1  ;;  %v13949_v34 = vsel %vm6607_vm3, %v13827_v22, 0.0 }
 0xb33   :  { %v13947_v59 = vsel %vm6607_vm3, %v13826_v14, 0.0  ;;  %v24569_v57 = vadd.f32 %v24084_v26, %v13481_v39 }
 0xb34   :  { %26035 = vst [vmem:[#allocation70_spill] sm:$0xff] %v24563_v9  ;;  %v13948_v40 = vadd.f32 %v13947_v59, %v13946_v52  ;;  %v13752_v63 = vadd.f32 %v13751_v37, %v13750_v27  ;;  %v13829_v31 = vmul.f32 %v24563_v9, %v24563_v9  ;;  %v13755_v52 = vsel %vm6607_vm3, %v24563_v9, 0.0 }
 0xb35   :  { %26036 = vst [vmem:[#allocation71_spill] sm:$0xff] %v24569_v57  ;;  %v13753_v32 = vsel %vm6607_vm3, %v24569_v57, 0.0  ;;  %v13828_v42 = vmul.f32 %v24569_v57, %v24569_v57  ;;  %v18358_v18 = vpop.f32.mrb[62].mxu1 }
 0xb36   :  { %v13754_v28 = vadd.f32 %v13753_v32, %v13752_v63  ;;  %v13950_v48 = vadd.f32 %v13949_v34, %v13948_v40  ;;  %v24579_v14 = vadd.f32 %v18358_v18, %v24084_v26  ;;  %v13491_v39 = vpop.f32.mrb[63].mxu1  ;;  %v13953_v0 = vsel %vm6607_vm3, %v13829_v31, 0.0 }
 0xb37   :  { %v13951_v22 = vsel %vm6607_vm3, %v13828_v42, 0.0  ;;  %v24585_v27 = vadd.f32 %v24084_v26, %v13491_v39 }
 0xb38   :  { %26037 = vst [vmem:[#allocation72_spill] sm:$0xff] %v24579_v14  ;;  %v13952_v37 = vadd.f32 %v13951_v22, %v13950_v48  ;;  %v13756_v59 = vadd.f32 %v13755_v52, %v13754_v28  ;;  %v13831_v63 = vmul.f32 %v24579_v14, %v24579_v14  ;;  %v13759_v42 = vsel %vm6607_vm3, %v24579_v14, 0.0 }
 0xb39   :  { %26038 = vst [vmem:[#allocation8_spill] sm:$0xff] %v24585_v27  ;;  %v13757_v34 = vsel %vm6607_vm3, %v24585_v27, 0.0  ;;  %v13830_v40 = vmul.f32 %v24585_v27, %v24585_v27 }
 0xb3a   :  { %v13758_v32 = vadd.f32 %v13757_v34, %v13756_v59  ;;  %v13954_v18 = vadd.f32 %v13953_v0, %v13952_v37  ;;  %v13957_v31 = vsel %vm6607_vm3, %v13831_v63, 0.0  ;;  %v7327_v63 = vld [vmem:[%s25437_s7] sm:$0x1] }
 0xb3b   :  { %v13955_v26 = vsel %vm6607_vm3, %v13830_v40, 0.0 }
 0xb3c   :  { %v13760_v48 = vadd.f32 %v13759_v42, %v13758_v32  ;;  %v13956_v28 = vadd.f32 %v13955_v26, %v13954_v18 }
 0xb3e   :  { %v13761_v39 = vrot.slane %v13760_v48, 4  ;;  %v13958_v52 = vadd.f32 %v13957_v31, %v13956_v28 }
 0xb40   :  { %v13762_v22 = vadd.f32 %v13761_v39, %v13760_v48  ;;  %v13959_v9 = vrot.slane %v13958_v52, 4  ;;  %v26040_v39 = vld [vmem:[#allocation55_spill] sm:$0xff] }
 0xb42   :  { %v13763_v57 = vrot.slane %v13762_v22, 2  ;;  %v13960_v5 = vadd.f32 %v13959_v9, %v13958_v52  ;;  %v26041_v52 = vld [vmem:[#allocation54_spill] sm:$0xff] }
 0xb44   :  { %v13764_v24 = vadd.f32 %v13763_v57, %v13762_v22  ;;  %v13961_v35 = vrot.slane %v13960_v5, 2  ;;  %v26042_v22 = vld [vmem:[#allocation57_spill] sm:$0xff] }
 0xb46   :  { %v13765_v27 = vrot.slane %v13764_v24, 1  ;;  %v13962_v59 = vadd.f32 %v13961_v35, %v13960_v5  ;;  %v24604_v35 = vld [vmem:[%s25438_s8] sm:$0x1] }
 0xb48   :  { %v13766_v0 = vadd.f32 %v13765_v27, %v13764_v24  ;;  %v13963_v37 = vrot.slane %v13962_v59, 1  ;;  %v26039_v24 = vld [vmem:[#allocation33_spill] sm:$0xff] }
 0xb4a   :  { %v13767_v34 = vmul.f32 0.001953125, %v13766_v0  ;;  %v13964_v14 = vadd.f32 %v13963_v37, %v13962_v59  ;;  %v26043_v59 = vld [vmem:[#allocation56_spill] sm:$0xff]  ;;  %v26044_v0 = vld [vmem:[#allocation59_spill] sm:$0xff]  ;;  %v26045_v37 = vld [vmem:[#allocation58_spill] sm:$0xff] }
 0xb4c   :  { %v13965_v3 = vmul.f32 0.001953125, %v13964_v14  ;;  %v13966_v40 = vmul.f32 %v13767_v34, %v13767_v34 }
 0xb4e   :  { %v13967_v32 = vsub.f32 %v13965_v3, %v13966_v40  ;;  %v26046_v40 = vld [vmem:[#allocation61_spill] sm:$0xff] }
 0xb50   :  { %v13968_v18 = vmax.f32 %v13967_v32, 0.0 }
 0xb52   :  { %v13969_v42 = vadd.f32 1e-05, %v13968_v18  ;;  %v26047_v18 = vld [vmem:[#allocation60_spill] sm:$0xff] }
 0xb54   :  { %19386 = vrsqrt.f32 %v13969_v42 }
 0xb5e   :  { %v19387_v26 = vpop.eup %19386 }
 0xb5f   :  { %v13971_v9 = vmul.f32 %v19387_v26, %v7327_v63  ;;  %v26049_v63 = vld [vmem:[#allocation5_spill] sm:$0xff] }
 0xb61   :  { %v24606_v5 = vmul.f32 %v13971_v9, %v13767_v34  ;;  %v24609_v57 = vrot.slane %v13971_v9, %v26039_v24  ;;  %v26051_v9 = vld [vmem:[#allocation4_spill] sm:$0xff] }
 0xb63   :  { %v13973_v3 = vsub.f32 %v24604_v35, %v24606_v5  ;;  %v24615_v14 = vmul.f32 %v24609_v57, %v24090_v7  ;;  %v24619_v27 = vmul.f32 %v24609_v57, %v24087_v46  ;;  %v24623_v48 = vmul.f32 %v24609_v57, %v24106_v53  ;;  %v26053_v5 = vld [vmem:[#allocation7_spill] sm:$0xff] }
 0xb64   :  { %v24627_v28 = vmul.f32 %v24609_v57, %v24101_v2  ;;  %v24631_v31 = vmul.f32 %v24609_v57, %v24121_v60  ;;  %v24635_v7 = vmul.f32 %v24609_v57, %v24115_v36  ;;  %v24639_v46 = vmul.f32 %v24609_v57, %v24137_v16 }
 0xb65   :  { %v24643_v53 = vmul.f32 %v24609_v57, %v24131_v56  ;;  %v24647_v2 = vmul.f32 %v24609_v57, %v24153_v49  ;;  %v24651_v60 = vmul.f32 %v24609_v57, %v24147_v47  ;;  %v24655_v36 = vmul.f32 %v24609_v57, %v24169_v12 }
 0xb66   :  { %v24659_v16 = vmul.f32 %v24609_v57, %v24163_v21  ;;  %v24663_v56 = vmul.f32 %v24609_v57, %v24185_v15  ;;  %v24667_v49 = vmul.f32 %v24609_v57, %v24179_v50  ;;  %v24671_v47 = vmul.f32 %v24609_v57, %v24201_v51 }
 0xb67   :  { %v24675_v12 = vmul.f32 %v24609_v57, %v24195_v55  ;;  %v24679_v21 = vmul.f32 %v24609_v57, %v24217_v19  ;;  %v24683_v15 = vmul.f32 %v24609_v57, %v24211_v61  ;;  %v24687_v50 = vmul.f32 %v24609_v57, %v24233_v17 }
 0xb68   :  { %v24691_v51 = vmul.f32 %v24609_v57, %v24227_v44  ;;  %v24695_v55 = vmul.f32 %v24609_v57, %v24249_v20  ;;  %v24699_v19 = vmul.f32 %v24609_v57, %v24243_v58  ;;  %v24703_v61 = vmul.f32 %v24609_v57, %v24265_v43 }
 0xb69   :  { %v24707_v17 = vmul.f32 %v24609_v57, %v24259_v29  ;;  %v24711_v44 = vmul.f32 %v24609_v57, %v24281_v62  ;;  %v24715_v20 = vmul.f32 %v24609_v57, %v24275_v41  ;;  %v24719_v58 = vmul.f32 %v24609_v57, %v24297_v33 }
 0xb6a   :  { %v24723_v43 = vmul.f32 %v24609_v57, %v24291_v11  ;;  %v24727_v29 = vmul.f32 %v24609_v57, %v24313_v23  ;;  %v24731_v62 = vmul.f32 %v24609_v57, %v24307_v10  ;;  %v24735_v41 = vmul.f32 %v24609_v57, %v24329_v4 }
 0xb6b   :  { %v24739_v33 = vmul.f32 %v24609_v57, %v24323_v25  ;;  %v24743_v11 = vmul.f32 %v24609_v57, %v24345_v13  ;;  %v24747_v23 = vmul.f32 %v24609_v57, %v24339_v30  ;;  %v24751_v10 = vmul.f32 %v24609_v57, %v24361_v38 }
 0xb6c   :  { %v24755_v4 = vmul.f32 %v24609_v57, %v24355_v8  ;;  %v24759_v25 = vmul.f32 %v24609_v57, %v24377_v6  ;;  %v24763_v13 = vmul.f32 %v24609_v57, %v24371_v1  ;;  %v24767_v30 = vmul.f32 %v24609_v57, %v24393_v45 }
 0xb6d   :  { %v24771_v38 = vmul.f32 %v24609_v57, %v24387_v54  ;;  %v24775_v8 = vmul.f32 %v24609_v57, %v26040_v39  ;;  %v24779_v6 = vmul.f32 %v24609_v57, %v26041_v52  ;;  %v24783_v1 = vmul.f32 %v24609_v57, %v26042_v22  ;;  %v26055_v52 = vld [vmem:[#allocation6_spill] sm:$0xff] }
 0xb6e   :  { %v24787_v45 = vmul.f32 %v24609_v57, %v26043_v59  ;;  %v24791_v54 = vmul.f32 %v24609_v57, %v26044_v0  ;;  %v24795_v34 = vmul.f32 %v24609_v57, %v26045_v37  ;;  %v24799_v32 = vmul.f32 %v24609_v57, %v26046_v40  ;;  %v26057_v59 = vld [vmem:[#allocation69_spill] sm:$0xff]  ;;  %v26059_v37 = vld [vmem:[#allocation68_spill] sm:$0xff] }
 0xb6f   :  { %v24803_v42 = vmul.f32 %v24609_v57, %v26047_v18  ;;  %v24807_v26 = vmul.f32 %v24609_v57, %v26049_v63  ;;  %v24811_v35 = vmul.f32 %v24609_v57, %v26051_v9  ;;  %v24815_v39 = vmul.f32 %v24609_v57, %v26053_v5  ;;  %v26061_v18 = vld [vmem:[#allocation71_spill] sm:$0xff]  ;;  %v26063_v9 = vld [vmem:[#allocation70_spill] sm:$0xff] }
 0xb70   :  { %v24819_v22 = vmul.f32 %v24609_v57, %v26055_v52  ;;  %v24823_v0 = vmul.f32 %v24609_v57, %v26057_v59  ;;  %v24827_v40 = vmul.f32 %v24609_v57, %v26059_v37  ;;  %v24831_v63 = vmul.f32 %v24609_v57, %v26061_v18  ;;  %v26069_v37 = vld [vmem:[#allocation72_spill] sm:$0xff] }
 0xb71   :  { %26048 = vst [vmem:[#allocation9_spill] sm:$0xff] %v24803_v42  ;;  %26050 = vst [vmem:[#allocation11_spill] sm:$0xff] %v24807_v26  ;;  %v24835_v5 = vmul.f32 %v24609_v57, %v26063_v9  ;;  %v24850_v18 = vrot.slane %v13973_v3, %v26039_v24 }
 0xb72   :  { %26052 = vst [vmem:[#allocation10_spill] sm:$0xff] %v24811_v35  ;;  %26054 = vst [vmem:[#allocation13_spill] sm:$0xff] %v24815_v39  ;;  %v26065_v39 = vld [vmem:[#allocation8_spill] sm:$0xff] }
 0xb73   :  { %26056 = vst [vmem:[#allocation12_spill] sm:$0xff] %v24819_v22  ;;  %26058 = vst [vmem:[#allocation15_spill] sm:$0xff] %v24823_v0  ;;  %v24839_v52 = vmul.f32 %v24609_v57, %v26065_v39  ;;  %v26067_v22 = vld [vmem:[#allocation63_spill] sm:$0xff]  ;;  %v26068_v0 = vld [vmem:[#allocation62_spill] sm:$0xff]  ;;  %v24866_v24 = vadd.f32 %v24850_v18, %v24619_v27  ;;  %v24870_v3 = vadd.f32 %v24850_v18, %v24623_v48 }
 0xb74   :  { %26060 = vst [vmem:[#allocation14_spill] sm:$0xff] %v24827_v40  ;;  %26062 = vst [vmem:[#allocation17_spill] sm:$0xff] %v24831_v63  ;;  %v14032_v59 = vmul.f32 %v24609_v57, %v26067_v22  ;;  %v14033_v35 = vmul.f32 %v24609_v57, %v26068_v0  ;;  %v24847_v40 = vmul.f32 %v24609_v57, %v26069_v37  ;;  %v26070_v63 = vld [vmem:[#allocation65_spill] sm:$0xff]  ;;  %v26073_v22 = vld [vmem:[#allocation66_spill] sm:$0xff] }
 0xb75   :  { %26064 = vst [vmem:[#allocation16_spill] sm:$0xff] %v24835_v5  ;;  %26066 = vst [vmem:[#allocation19_spill] sm:$0xff] %v24839_v52  ;;  %v14034_v9 = vmul.f32 %v24609_v57, %v26070_v63  ;;  %v26071_v5 = vld [vmem:[#allocation64_spill] sm:$0xff]  ;;  %v26072_v52 = vld [vmem:[#allocation67_spill] sm:$0xff]  ;;  %v14037_v42 = vmul.f32 %v24609_v57, %v26073_v22  ;;  %v24862_v0 = vadd.f32 %v24850_v18, %v24615_v14 }
 0xb76   :  { %v14035_v39 = vmul.f32 %v24609_v57, %v26071_v5  ;;  %v14036_v26 = vmul.f32 %v24609_v57, %v26072_v52  ;;  %v24874_v63 = vadd.f32 %v24850_v18, %v24627_v28  ;;  %v24878_v5 = vadd.f32 %v24850_v18, %v24631_v31 }
 0xb77   :  { %v24882_v57 = vadd.f32 %v24850_v18, %v24635_v7  ;;  %v24886_v14 = vadd.f32 %v24850_v18, %v24639_v46  ;;  %v24890_v27 = vadd.f32 %v24850_v18, %v24643_v53  ;;  %v24894_v48 = vadd.f32 %v24850_v18, %v24647_v2 }
 0xb78   :  { %v24898_v28 = vadd.f32 %v24850_v18, %v24651_v60  ;;  %v24902_v31 = vadd.f32 %v24850_v18, %v24655_v36  ;;  %v24906_v7 = vadd.f32 %v24850_v18, %v24659_v16  ;;  %v24910_v46 = vadd.f32 %v24850_v18, %v24663_v56  ;;  %v26077_v52 = vld [vmem:[#allocation11_spill] sm:$0xff] }
 0xb79   :  { %v24914_v53 = vadd.f32 %v24850_v18, %v24667_v49  ;;  %v24918_v2 = vadd.f32 %v24850_v18, %v24671_v47  ;;  %v24922_v60 = vadd.f32 %v24850_v18, %v24675_v12  ;;  %v24926_v36 = vadd.f32 %v24850_v18, %v24679_v21  ;;  %v26078_v37 = vld [vmem:[#allocation10_spill] sm:$0xff]  ;;  %v26080_v22 = vld [vmem:[#allocation13_spill] sm:$0xff] }
 0xb7a   :  { %v24930_v16 = vadd.f32 %v24850_v18, %v24683_v15  ;;  %v24934_v56 = vadd.f32 %v24850_v18, %v24687_v50  ;;  %v24938_v49 = vadd.f32 %v24850_v18, %v24691_v51  ;;  %v24942_v47 = vadd.f32 %v24850_v18, %v24695_v55 }
 0xb7b   :  { %v24946_v12 = vadd.f32 %v24850_v18, %v24699_v19  ;;  %v24950_v21 = vadd.f32 %v24850_v18, %v24703_v61  ;;  %v24954_v15 = vadd.f32 %v24850_v18, %v24707_v17  ;;  %v24958_v50 = vadd.f32 %v24850_v18, %v24711_v44 }
 0xb7c   :  { %v24962_v51 = vadd.f32 %v24850_v18, %v24715_v20  ;;  %v24966_v55 = vadd.f32 %v24850_v18, %v24719_v58  ;;  %v24970_v19 = vadd.f32 %v24850_v18, %v24723_v43  ;;  %v24974_v61 = vadd.f32 %v24850_v18, %v24727_v29 }
 0xb7d   :  { %v24978_v17 = vadd.f32 %v24850_v18, %v24731_v62  ;;  %v24982_v44 = vadd.f32 %v24850_v18, %v24735_v41  ;;  %v24986_v20 = vadd.f32 %v24850_v18, %v24739_v33  ;;  %v24990_v58 = vadd.f32 %v24850_v18, %v24743_v11 }
 0xb7e   :  { %v24994_v43 = vadd.f32 %v24850_v18, %v24747_v23  ;;  %v24998_v29 = vadd.f32 %v24850_v18, %v24751_v10  ;;  %v25002_v62 = vadd.f32 %v24850_v18, %v24755_v4  ;;  %v25006_v41 = vadd.f32 %v24850_v18, %v24759_v25 }
 0xb7f   :  { %v25010_v33 = vadd.f32 %v24850_v18, %v24763_v13  ;;  %v25014_v11 = vadd.f32 %v24850_v18, %v24767_v30  ;;  %v25018_v23 = vadd.f32 %v24850_v18, %v24771_v38  ;;  %v25022_v10 = vadd.f32 %v24850_v18, %v24775_v8 }
 0xb80   :  { %v25026_v4 = vadd.f32 %v24850_v18, %v24779_v6  ;;  %v25030_v25 = vadd.f32 %v24850_v18, %v24783_v1  ;;  %v25034_v13 = vadd.f32 %v24850_v18, %v24787_v45  ;;  %v25038_v30 = vadd.f32 %v24850_v18, %v24791_v54  ;;  %v26076_v6 = vld [vmem:[#allocation9_spill] sm:$0xff] }
 0xb81   :  { %v25042_v38 = vadd.f32 %v24850_v18, %v24795_v34  ;;  %v25046_v8 = vadd.f32 %v24850_v18, %v24799_v32  ;;  %v25050_v1 = vadd.f32 %v24850_v18, %v26076_v6  ;;  %v25054_v45 = vadd.f32 %v24850_v18, %v26077_v52 }
 0xb82   :  { %v25058_v54 = vadd.f32 %v24850_v18, %v26078_v37  ;;  %v25062_v34 = vadd.f32 %v24850_v18, %v26080_v22  ;;  %v25072_v6 = vadd.f32 %v24850_v18, %v14033_v35  ;;  %v25075_v52 = vadd.f32 %v24850_v18, %v14034_v9 }
 0xb83   :  { %26074 = vst [vmem:[#allocation18_spill] sm:$0xff] %v25042_v38  ;;  %26075 = vst [vmem:[#allocation21_spill] sm:$0xff] %v25046_v8  ;;  %v26081_v38 = vld [vmem:[#allocation12_spill] sm:$0xff]  ;;  %v25069_v8 = vadd.f32 %v24850_v18, %v14032_v59  ;;  %v25078_v37 = vadd.f32 %v24850_v18, %v14035_v39  ;;  %v25084_v22 = vadd.f32 %v24850_v18, %v14037_v42  ;;  %v26087_v59 = vld [vmem:[#allocation14_spill] sm:$0xff] }
 0xb84   :  { %26079 = vst [vmem:[#allocation20_spill] sm:$0xff] %v25058_v54  ;;  %v25066_v32 = vadd.f32 %v24850_v18, %v26081_v38  ;;  %26083 = vst [vmem:[#allocation22_spill] sm:$0xff] %v25072_v6  ;;  %v25081_v54 = vadd.f32 %v24850_v18, %v14036_v26  ;;  %v26085_v38 = vld [vmem:[#allocation15_spill] sm:$0xff]  ;;  %v25092_v35 = vadd.f32 %v24850_v18, %v26087_v59  ;;  %v26089_v6 = vld [vmem:[#allocation17_spill] sm:$0xff]  ;;  %v14115_v59 = vmax.f32 %v24866_v24, 0.0 }
 0xb85   :  { %26084 = vst [vmem:[#allocation25_spill] sm:$0xff] %v25078_v37  ;;  %v25096_v9 = vadd.f32 %v24850_v18, %v26089_v6  ;;  %v26091_v39 = vld [vmem:[#allocation16_spill] sm:$0xff]  ;;  %v26093_v26 = vld [vmem:[#allocation19_spill] sm:$0xff]  ;;  %v14117_v6 = vmax.f32 %v24874_v63, 0.0  ;;  %v14126_v24 = vmax.f32 %v24910_v46, 0.0  ;;  %v14128_v63 = vmax.f32 %v24918_v2, 0.0 }
 0xb86   :  { %26082 = vst [vmem:[#allocation23_spill] sm:$0xff] %v25066_v32  ;;  %v25088_v32 = vadd.f32 %v24850_v18, %v26085_v38  ;;  %26088 = vst [vmem:[#allocation27_spill] sm:$0xff] %v25092_v35  ;;  %v25100_v37 = vadd.f32 %v24850_v18, %v26091_v39  ;;  %v25104_v42 = vadd.f32 %v24850_v18, %v26093_v26  ;;  %v14116_v35 = vmax.f32 %v24870_v3, 0.0 }
 0xb87   :  { %26090 = vst [vmem:[#allocation26_spill] sm:$0xff] %v25096_v9  ;;  %v25108_v38 = vadd.f32 %v24850_v18, %v24847_v40  ;;  %v14118_v9 = vmax.f32 %v24878_v5, 0.0  ;;  %v14119_v39 = vmax.f32 %v24882_v57, 0.0  ;;  %v14121_v26 = vmax.f32 %v24890_v27, 0.0  ;;  %14179 = vst.msk [vmem:[%s25439_s9 + $0x8] sm:$0xff] %vm6607_vm3, %v14115_v59 }
 0xb88   :  { %26086 = vst [vmem:[#allocation24_spill] sm:$0xff] %v25088_v32  ;;  %26092 = vst [vmem:[#allocation29_spill] sm:$0xff] %v25100_v37  ;;  %v14114_v32 = vmax.f32 %v24862_v0, 0.0  ;;  %v14120_v37 = vmax.f32 %v24886_v14, 0.0  ;;  %v14123_v40 = vmax.f32 %v24898_v28, 0.0  ;;  %v14124_v18 = vmax.f32 %v24902_v31, 0.0 }
 0xb89   :  { %26094 = vst [vmem:[#allocation28_spill] sm:$0xff] %v25104_v42  ;;  %v14122_v42 = vmax.f32 %v24894_v48, 0.0  ;;  %v14125_v0 = vmax.f32 %v24906_v7, 0.0  ;;  %14180 = vst.msk [vmem:[%s25439_s9 + $0x10] sm:$0xff] %vm6607_vm3, %v14116_v35  ;;  %v14127_v3 = vmax.f32 %v24914_v53, 0.0  ;;  %v14129_v5 = vmax.f32 %v24922_v60, 0.0 }
 0xb8a   :  { %14178 = vst.msk [vmem:[%s25439_s9] sm:$0xff] %vm6607_vm3, %v14114_v32  ;;  %14181 = vst.msk [vmem:[%s25439_s9 + $0x18] sm:$0xff] %vm6607_vm3, %v14117_v6  ;;  %v14130_v57 = vmax.f32 %v24926_v36, 0.0  ;;  %v14131_v14 = vmax.f32 %v24930_v16, 0.0  ;;  %v14132_v27 = vmax.f32 %v24934_v56, 0.0  ;;  %v14133_v48 = vmax.f32 %v24938_v49, 0.0 }
 0xb8b   :  { %14182 = vst.msk [vmem:[%s25439_s9 + $0x20] sm:$0xff] %vm6607_vm3, %v14118_v9  ;;  %14183 = vst.msk [vmem:[%s25439_s9 + $0x28] sm:$0xff] %vm6607_vm3, %v14119_v39  ;;  %v14134_v28 = vmax.f32 %v24942_v47, 0.0  ;;  %v14135_v31 = vmax.f32 %v24946_v12, 0.0  ;;  %v14136_v7 = vmax.f32 %v24950_v21, 0.0  ;;  %v14137_v46 = vmax.f32 %v24954_v15, 0.0 }
 0xb8c   :  { %14184 = vst.msk [vmem:[%s25439_s9 + $0x30] sm:$0xff] %vm6607_vm3, %v14120_v37  ;;  %14185 = vst.msk [vmem:[%s25439_s9 + $0x38] sm:$0xff] %vm6607_vm3, %v14121_v26  ;;  %v14138_v53 = vmax.f32 %v24958_v50, 0.0  ;;  %v14139_v2 = vmax.f32 %v24962_v51, 0.0  ;;  %v14140_v60 = vmax.f32 %v24966_v55, 0.0  ;;  %v14141_v36 = vmax.f32 %v24970_v19, 0.0 }
 0xb8d   :  { %14186 = vst.msk [vmem:[%s25439_s9 + $0x40] sm:$0xff] %vm6607_vm3, %v14122_v42  ;;  %14187 = vst.msk [vmem:[%s25439_s9 + $0x48] sm:$0xff] %vm6607_vm3, %v14123_v40  ;;  %v14142_v16 = vmax.f32 %v24974_v61, 0.0  ;;  %v14143_v56 = vmax.f32 %v24978_v17, 0.0  ;;  %v14144_v49 = vmax.f32 %v24982_v44, 0.0  ;;  %v14145_v47 = vmax.f32 %v24986_v20, 0.0 }
 0xb8e   :  { %14188 = vst.msk [vmem:[%s25439_s9 + $0x50] sm:$0xff] %vm6607_vm3, %v14124_v18  ;;  %14189 = vst.msk [vmem:[%s25439_s9 + $0x58] sm:$0xff] %vm6607_vm3, %v14125_v0  ;;  %v14146_v12 = vmax.f32 %v24990_v58, 0.0  ;;  %v14147_v21 = vmax.f32 %v24994_v43, 0.0  ;;  %v14148_v15 = vmax.f32 %v24998_v29, 0.0  ;;  %v14149_v50 = vmax.f32 %v25002_v62, 0.0 }
 0xb8f   :  { %14190 = vst.msk [vmem:[%s25439_s9 + $0x60] sm:$0xff] %vm6607_vm3, %v14126_v24  ;;  %14191 = vst.msk [vmem:[%s25439_s9 + $0x68] sm:$0xff] %vm6607_vm3, %v14127_v3  ;;  %v14150_v51 = vmax.f32 %v25006_v41, 0.0  ;;  %v14151_v55 = vmax.f32 %v25010_v33, 0.0  ;;  %v14152_v19 = vmax.f32 %v25014_v11, 0.0  ;;  %v14153_v61 = vmax.f32 %v25018_v23, 0.0 }
 0xb90   :  { %14192 = vst.msk [vmem:[%s25439_s9 + $0x70] sm:$0xff] %vm6607_vm3, %v14128_v63  ;;  %14193 = vst.msk [vmem:[%s25439_s9 + $0x78] sm:$0xff] %vm6607_vm3, %v14129_v5  ;;  %v14154_v17 = vmax.f32 %v25022_v10, 0.0  ;;  %v14155_v44 = vmax.f32 %v25026_v4, 0.0  ;;  %v14156_v20 = vmax.f32 %v25030_v25, 0.0  ;;  %v14157_v58 = vmax.f32 %v25034_v13, 0.0 }
 0xb91   :  { %14194 = vst.msk [vmem:[%s25439_s9 + $0x80] sm:$0xff] %vm6607_vm3, %v14130_v57  ;;  %14195 = vst.msk [vmem:[%s25439_s9 + $0x88] sm:$0xff] %vm6607_vm3, %v14131_v14  ;;  %v14158_v43 = vmax.f32 %v25038_v30, 0.0  ;;  %v26095_v29 = vld [vmem:[#allocation18_spill] sm:$0xff]  ;;  %v26096_v41 = vld [vmem:[#allocation21_spill] sm:$0xff]  ;;  %v14161_v11 = vmax.f32 %v25050_v1, 0.0 }
 0xb92   :  { %14196 = vst.msk [vmem:[%s25439_s9 + $0x90] sm:$0xff] %vm6607_vm3, %v14132_v27  ;;  %14197 = vst.msk [vmem:[%s25439_s9 + $0x98] sm:$0xff] %vm6607_vm3, %v14133_v48  ;;  %v14159_v62 = vmax.f32 %v26095_v29, 0.0  ;;  %v14160_v33 = vmax.f32 %v26096_v41, 0.0  ;;  %v14162_v23 = vmax.f32 %v25054_v45, 0.0  ;;  %v26097_v10 = vld [vmem:[#allocation20_spill] sm:$0xff] }
 0xb93   :  { %14198 = vst.msk [vmem:[%s25439_s9 + $0xa0] sm:$0xff] %vm6607_vm3, %v14134_v28  ;;  %14199 = vst.msk [vmem:[%s25439_s9 + $0xa8] sm:$0xff] %vm6607_vm3, %v14135_v31  ;;  %v14163_v4 = vmax.f32 %v26097_v10, 0.0  ;;  %v14164_v25 = vmax.f32 %v25062_v34, 0.0  ;;  %v26098_v13 = vld [vmem:[#allocation23_spill] sm:$0xff]  ;;  %v14166_v1 = vmax.f32 %v25069_v8, 0.0 }
 0xb94   :  { %14200 = vst.msk [vmem:[%s25439_s9 + $0xb0] sm:$0xff] %vm6607_vm3, %v14136_v7  ;;  %14201 = vst.msk [vmem:[%s25439_s9 + $0xb8] sm:$0xff] %vm6607_vm3, %v14137_v46  ;;  %v14165_v30 = vmax.f32 %v26098_v13, 0.0  ;;  %v26099_v45 = vld [vmem:[#allocation22_spill] sm:$0xff]  ;;  %v14168_v32 = vmax.f32 %v25075_v52, 0.0  ;;  %v26100_v37 = vld [vmem:[#allocation25_spill] sm:$0xff] }
 0xb95   :  { %14202 = vst.msk [vmem:[%s25439_s9 + $0xc0] sm:$0xff] %vm6607_vm3, %v14138_v53  ;;  %14203 = vst.msk [vmem:[%s25439_s9 + $0xc8] sm:$0xff] %vm6607_vm3, %v14139_v2  ;;  %v14167_v34 = vmax.f32 %v26099_v45, 0.0  ;;  %v14169_v35 = vmax.f32 %v26100_v37, 0.0  ;;  %v14170_v8 = vmax.f32 %v25081_v54, 0.0  ;;  %v14171_v52 = vmax.f32 %v25084_v22, 0.0 }
 0xb96   :  { %14204 = vst.msk [vmem:[%s25439_s9 + $0xd0] sm:$0xff] %vm6607_vm3, %v14140_v60  ;;  %14205 = vst.msk [vmem:[%s25439_s9 + $0xd8] sm:$0xff] %vm6607_vm3, %v14141_v36  ;;  %v26101_v9 = vld [vmem:[#allocation24_spill] sm:$0xff]  ;;  %v26102_v59 = vld [vmem:[#allocation27_spill] sm:$0xff]  ;;  %v14177_v0 = vmax.f32 %v25108_v38, 0.0 }
 0xb97   :  { %14206 = vst.msk [vmem:[%s25439_s9 + $0xe0] sm:$0xff] %vm6607_vm3, %v14142_v16  ;;  %14207 = vst.msk [vmem:[%s25439_s9 + $0xe8] sm:$0xff] %vm6607_vm3, %v14143_v56  ;;  %v14172_v42 = vmax.f32 %v26101_v9, 0.0  ;;  %v14173_v6 = vmax.f32 %v26102_v59, 0.0  ;;  %v26103_v54 = vld [vmem:[#allocation26_spill] sm:$0xff]  ;;  %v26104_v39 = vld [vmem:[#allocation29_spill] sm:$0xff] }
 0xb98   :  { %14208 = vst.msk [vmem:[%s25439_s9 + $0xf0] sm:$0xff] %vm6607_vm3, %v14144_v49  ;;  %14209 = vst.msk [vmem:[%s25439_s9 + $0xf8] sm:$0xff] %vm6607_vm3, %v14145_v47  ;;  %v14174_v22 = vmax.f32 %v26103_v54, 0.0  ;;  %v14175_v26 = vmax.f32 %v26104_v39, 0.0  ;;  %v26105_v40 = vld [vmem:[#allocation28_spill] sm:$0xff] }
 0xb99   :  { %14210 = vst.msk [vmem:[%s25439_s9 + $0x100] sm:$0xff] %vm6607_vm3, %v14146_v12  ;;  %14211 = vst.msk [vmem:[%s25439_s9 + $0x108] sm:$0xff] %vm6607_vm3, %v14147_v21  ;;  %v14176_v18 = vmax.f32 %v26105_v40, 0.0 }
 0xb9a   :  { %14212 = vst.msk [vmem:[%s25439_s9 + $0x110] sm:$0xff] %vm6607_vm3, %v14148_v15  ;;  %14213 = vst.msk [vmem:[%s25439_s9 + $0x118] sm:$0xff] %vm6607_vm3, %v14149_v50 }
 0xb9b   :  { %14214 = vst.msk [vmem:[%s25439_s9 + $0x120] sm:$0xff] %vm6607_vm3, %v14150_v51  ;;  %14215 = vst.msk [vmem:[%s25439_s9 + $0x128] sm:$0xff] %vm6607_vm3, %v14151_v55 }
 0xb9c   :  { %14216 = vst.msk [vmem:[%s25439_s9 + $0x130] sm:$0xff] %vm6607_vm3, %v14152_v19  ;;  %14217 = vst.msk [vmem:[%s25439_s9 + $0x138] sm:$0xff] %vm6607_vm3, %v14153_v61 }
 0xb9d   :  { %14218 = vst.msk [vmem:[%s25439_s9 + $0x140] sm:$0xff] %vm6607_vm3, %v14154_v17  ;;  %14219 = vst.msk [vmem:[%s25439_s9 + $0x148] sm:$0xff] %vm6607_vm3, %v14155_v44 }
 0xb9e   :  { %14220 = vst.msk [vmem:[%s25439_s9 + $0x150] sm:$0xff] %vm6607_vm3, %v14156_v20  ;;  %14221 = vst.msk [vmem:[%s25439_s9 + $0x158] sm:$0xff] %vm6607_vm3, %v14157_v58 }
 0xb9f   :  { %14222 = vst.msk [vmem:[%s25439_s9 + $0x160] sm:$0xff] %vm6607_vm3, %v14158_v43  ;;  %14223 = vst.msk [vmem:[%s25439_s9 + $0x168] sm:$0xff] %vm6607_vm3, %v14159_v62 }
 0xba0   :  { %14224 = vst.msk [vmem:[%s25439_s9 + $0x170] sm:$0xff] %vm6607_vm3, %v14160_v33  ;;  %14225 = vst.msk [vmem:[%s25439_s9 + $0x178] sm:$0xff] %vm6607_vm3, %v14161_v11 }
 0xba1   :  { %14226 = vst.msk [vmem:[%s25439_s9 + $0x180] sm:$0xff] %vm6607_vm3, %v14162_v23  ;;  %14227 = vst.msk [vmem:[%s25439_s9 + $0x188] sm:$0xff] %vm6607_vm3, %v14163_v4 }
 0xba2   :  { %14228 = vst.msk [vmem:[%s25439_s9 + $0x190] sm:$0xff] %vm6607_vm3, %v14164_v25  ;;  %14229 = vst.msk [vmem:[%s25439_s9 + $0x198] sm:$0xff] %vm6607_vm3, %v14165_v30 }
 0xba3   :  { %14230 = vst.msk [vmem:[%s25439_s9 + $0x1a0] sm:$0xff] %vm6607_vm3, %v14166_v1  ;;  %14231 = vst.msk [vmem:[%s25439_s9 + $0x1a8] sm:$0xff] %vm6607_vm3, %v14167_v34 }
 0xba4   :  { %14232 = vst.msk [vmem:[%s25439_s9 + $0x1b0] sm:$0xff] %vm6607_vm3, %v14168_v32  ;;  %14233 = vst.msk [vmem:[%s25439_s9 + $0x1b8] sm:$0xff] %vm6607_vm3, %v14169_v35 }
 0xba5   :  { %14234 = vst.msk [vmem:[%s25439_s9 + $0x1c0] sm:$0xff] %vm6607_vm3, %v14170_v8  ;;  %14235 = vst.msk [vmem:[%s25439_s9 + $0x1c8] sm:$0xff] %vm6607_vm3, %v14171_v52 }
 0xba6   :  { %14236 = vst.msk [vmem:[%s25439_s9 + $0x1d0] sm:$0xff] %vm6607_vm3, %v14172_v42  ;;  %14237 = vst.msk [vmem:[%s25439_s9 + $0x1d8] sm:$0xff] %vm6607_vm3, %v14173_v6 }
 0xba7   :  { %14238 = vst.msk [vmem:[%s25439_s9 + $0x1e0] sm:$0xff] %vm6607_vm3, %v14174_v22  ;;  %14239 = vst.msk [vmem:[%s25439_s9 + $0x1e8] sm:$0xff] %vm6607_vm3, %v14175_v26 }
 0xba8   :  { %14240 = vst.msk [vmem:[%s25439_s9 + $0x1f0] sm:$0xff] %vm6607_vm3, %v14176_v18  ;;  %14241 = vst.msk [vmem:[%s25439_s9 + $0x1f8] sm:$0xff] %vm6607_vm3, %v14177_v0 }

</bundles_post_ra>
